<compile_context>
chip_gen: v7x
topology: tpu7x:2x2x1
jax: 0.10.0
libtpu: 0.0.40
codegen_flags: <defaults>
</compile_context>

<pallas_src>
import functools

import jax
import jax.numpy as jnp
from jax.experimental import pallas as pl
from jax.experimental.pallas import tpu as pltpu


# ----------------------------------------------------------------------------
# Tile-size helper: largest multiple-of-8 divisor of M that is <= target and
# (when possible) leaves at least `min_grid` grid steps.
# ----------------------------------------------------------------------------
def _pick_tm(M, target=2048, min_grid=2):
    cap = min(target, M)
    if M // min_grid >= 8:
        cap = min(cap, M // min_grid)
    cap = max(8, cap - cap % 8)
    for t in range(cap, 7, -8):
        if M % t == 0:
            return t
    for t in range(min(cap, M), 0, -1):
        if M % t == 0:
            return t
    return M


# ----------------------------------------------------------------------------
# Kernel 1: 1x1 Conv + (folded) BN + SiLU as a row-tiled matmul (adjust_channel).
# ----------------------------------------------------------------------------
def _matmul_bias_silu_kernel(x_ref, w_ref, b_ref, o_ref):
    x = x_ref[...].astype(jnp.bfloat16)
    y = jnp.dot(x, w_ref[...], preferred_element_type=jnp.float32) + b_ref[...]
    y = y * jax.nn.sigmoid(y)                       # SiLU, f32 epilogue
    o_ref[...] = y.astype(o_ref.dtype)


def matmul_bias_silu(x2d, w_bf16, bias_f32, *, tm_target=2048):
    M, cin = x2d.shape
    cout = w_bf16.shape[1]
    tm = _pick_tm(M, tm_target)
    return pl.pallas_call(
        _matmul_bias_silu_kernel,
        out_shape=jax.ShapeDtypeStruct((M, cout), jnp.bfloat16),
        grid=(M // tm,),
        in_specs=[
            pl.BlockSpec((tm, cin), lambda i: (i, 0)),
            pl.BlockSpec((cin, cout), lambda i: (0, 0)),    # weights VMEM-resident
            pl.BlockSpec((1, cout), lambda i: (0, 0)),
        ],
        out_specs=pl.BlockSpec((tm, cout), lambda i: (i, 0)),
        compiler_params=pltpu.CompilerParams(dimension_semantics=("parallel",)),
    )(x2d, w_bf16, bias_f32)


# ----------------------------------------------------------------------------
# Kernel 2: fused Partial_conv3 + MLP, single stacked first-layer dot.
#   xin = [im2col(conv'd channels) | untouched channels]   (M, 9*cc + dim-cc) bf16
#   h   = SiLU(xin @ W_fused + b1)       # pconv + BN folded into W_fused / b1
#   y   = h @ W2                         # bias-free
# ----------------------------------------------------------------------------
def _pconv_mlp_kernel(x_ref, w1_ref, b1_ref, w2_ref, o_ref):
    x = x_ref[...].astype(jnp.bfloat16)
    h = jnp.dot(x, w1_ref[...], preferred_element_type=jnp.float32) + b1_ref[...]
    h = h * jax.nn.sigmoid(h)                       # SiLU, f32
    y = jnp.dot(h.astype(jnp.bfloat16), w2_ref[...],
                preferred_element_type=jnp.float32)
    o_ref[...] = y.astype(o_ref.dtype)


def pconv_mlp(xin, w_fused, b1, w2, *, tm_target=2048):
    M, K = xin.shape
    hid = w_fused.shape[1]
    dim = w2.shape[1]
    tm = _pick_tm(M, tm_target)
    return pl.pallas_call(
        _pconv_mlp_kernel,
        out_shape=jax.ShapeDtypeStruct((M, dim), jnp.bfloat16),
        grid=(M // tm,),
        in_specs=[
            pl.BlockSpec((tm, K), lambda i: (i, 0)),
            pl.BlockSpec((K, hid), lambda i: (0, 0)),       # weights VMEM-resident
            pl.BlockSpec((1, hid), lambda i: (0, 0)),
            pl.BlockSpec((hid, dim), lambda i: (0, 0)),
        ],
        out_specs=pl.BlockSpec((tm, dim), lambda i: (i, 0)),
        compiler_params=pltpu.CompilerParams(dimension_semantics=("parallel",)),
    )(xin, w_fused, b1, w2)


# ----------------------------------------------------------------------------
# Kernel 3: EMA attention + residual add, one whole batch image per grid step.
#   All tensors keep `dim` (= G * cg) on the lane axis.  The grouped cg->cg
#   convs use block-diagonal (dim, dim) weights; per-group reductions and
#   broadcasts use 0/1 group-membership matmuls (mg: (dim, G), mgt: (G, dim)).
#   The 3x3 conv taps are built in-kernel from a zero-padded VMEM scratch.
# ----------------------------------------------------------------------------
def _ema_residual_kernel(y_ref, sc_ref, w1_ref, b1_ref, w3_ref, b3_ref,
                         gg_ref, gb_ref, mg_ref, mgt_ref, o_ref, pad_ref, *, eps):
    H, W, dim = y_ref.shape
    HW = H * W
    y3 = y_ref[...].astype(jnp.float32)                        # (H, W, dim)

    # ---- directional pooling + shared (block-diag) 1x1 conv gates ----
    x_h = jnp.mean(y3, axis=1)                                 # (H, dim)
    x_w = jnp.mean(y3, axis=0)                                 # (W, dim)
    gh = jax.nn.sigmoid(jnp.dot(x_h.astype(jnp.bfloat16), w1_ref[...],
                                preferred_element_type=jnp.float32) + b1_ref[...])
    gw = jax.nn.sigmoid(jnp.dot(x_w.astype(jnp.bfloat16), w1_ref[...],
                                preferred_element_type=jnp.float32) + b1_ref[...])

    # ---- x1 = per-channel GroupNorm(y * sig(x_h) * sig(x_w)) ----
    x1 = y3 * gh.reshape(H, 1, dim) * gw.reshape(1, W, dim)
    x1f = x1.reshape(HW, dim)
    mu = jnp.mean(x1f, axis=0, keepdims=True)                  # (1, dim)
    var = jnp.mean(jnp.square(x1f - mu), axis=0, keepdims=True)
    x1f = (x1f - mu) * jax.lax.rsqrt(var + eps)
    x1f = x1f * gg_ref[...] + gb_ref[...]

    # ---- x2 = grouped 3x3 conv (block-diag taps) on y, in-kernel im2col ----
    pad_ref[...] = jnp.zeros(pad_ref.shape, pad_ref.dtype)
    pad_ref[pl.ds(1, H), pl.ds(1, W), :] = y_ref[...]
    x2f = jnp.zeros((HW, dim), jnp.float32)
    for t in range(9):
        kh, kw = t // 3, t % 3
        tap = pad_ref[pl.ds(kh, H), pl.ds(kw, W), :]           # (H, W, dim) bf16
        x2f = x2f + jnp.dot(tap.reshape(HW, dim), w3_ref[t],
                            preferred_element_type=jnp.float32)
    x2f = x2f + b3_ref[...]

    # ---- cross-branch channel softmax within each group ----
    mg = mg_ref[...]                                           # (dim, G) 0/1
    mgt = mgt_ref[...]                                         # (G, dim) 0/1

    def group_softmax(v):                                      # v: (1, dim)
        e = jnp.exp(v - jnp.max(v, axis=-1, keepdims=True))    # global shift is valid per group
        den = jnp.dot(jnp.dot(e, mg, preferred_element_type=jnp.float32), mgt,
                      preferred_element_type=jnp.float32)      # per-group sum, broadcast back
        return e / den

    s1 = group_softmax(jnp.mean(x1f, axis=0, keepdims=True))   # (1, dim)
    s2 = group_softmax(jnp.mean(x2f, axis=0, keepdims=True))   # (1, dim)
    wmap = (jnp.dot(x2f * s1, mg, preferred_element_type=jnp.float32)
            + jnp.dot(x1f * s2, mg, preferred_element_type=jnp.float32))   # (HW, G)
    wfull = jnp.dot(wmap, mgt, preferred_element_type=jnp.float32)         # (HW, dim)

    out = (sc_ref[...].astype(jnp.float32).reshape(HW, dim)
           + y3.reshape(HW, dim) * jax.nn.sigmoid(wfull))
    o_ref[...] = out.reshape(o_ref.shape).astype(o_ref.dtype)


def ema_residual(y, shortcut, p, *, dim, factor, eps=1e-5):
    N, H, W, _ = y.shape
    G = factor
    return pl.pallas_call(
        functools.partial(_ema_residual_kernel, eps=eps),
        out_shape=jax.ShapeDtypeStruct((N, H, W, dim), jnp.float32),
        grid=(N,),
        in_specs=[
            pl.BlockSpec((None, H, W, dim), lambda i: (i, 0, 0, 0)),
            pl.BlockSpec((None, H, W, dim), lambda i: (i, 0, 0, 0)),
            pl.BlockSpec((dim, dim), lambda i: (0, 0)),
            pl.BlockSpec((1, dim), lambda i: (0, 0)),
            pl.BlockSpec((9, dim, dim), lambda i: (0, 0, 0)),
            pl.BlockSpec((1, dim), lambda i: (0, 0)),
            pl.BlockSpec((1, dim), lambda i: (0, 0)),
            pl.BlockSpec((1, dim), lambda i: (0, 0)),
            pl.BlockSpec((dim, G), lambda i: (0, 0)),
            pl.BlockSpec((G, dim), lambda i: (0, 0)),
        ],
        out_specs=pl.BlockSpec((None, H, W, dim), lambda i: (i, 0, 0, 0)),
        scratch_shapes=[pltpu.VMEM((H + 2, W + 2, dim), jnp.bfloat16)],
        compiler_params=pltpu.CompilerParams(dimension_semantics=("parallel",)),
    )(y, shortcut, p["ema_w1"], p["ema_b1"], p["ema_w3"], p["ema_b3"],
      p["ema_gn_g"], p["ema_gn_b"], p["ema_mg"], p["ema_mgt"])


# ----------------------------------------------------------------------------
# Parameters (deterministic synthetic) + BN folding + layer fusion.
# ----------------------------------------------------------------------------
def _fold_bn(w_oc_first, key, eps=1e-5):
    cout = w_oc_first.shape[0]
    k1, k2, k3, k4 = jax.random.split(key, 4)
    gamma = 1.0 + 0.1 * jax.random.normal(k1, (cout,), jnp.float32)
    beta = 0.1 * jax.random.normal(k2, (cout,), jnp.float32)
    mean = 0.1 * jax.random.normal(k3, (cout,), jnp.float32)
    var = 1.0 + 0.1 * jnp.abs(jax.random.normal(k4, (cout,), jnp.float32))
    scale = gamma / jnp.sqrt(var + eps)
    w_f = w_oc_first * scale.reshape((cout,) + (1,) * (w_oc_first.ndim - 1))
    b_f = beta - mean * scale
    return w_f, b_f


def init_params(key, inc, dim, *, n_div=4, mlp_ratio=2, factor=8):
    cc = dim // n_div
    hid = int(dim * mlp_ratio)
    G = factor
    cg = dim // factor
    ks = jax.random.split(key, 12)
    p = {}

    # adjust_channel: Conv(inc, dim, 1) = conv1x1(bias=False) + BN + SiLU
    if inc != dim:
        w = 0.1 * jax.random.normal(ks[0], (dim, inc), jnp.float32)
        wf, bf = _fold_bn(w, ks[1])
        p["adj_w"] = wf.T.astype(jnp.bfloat16)                 # (inc, dim)
        p["adj_b"] = bf.reshape(1, dim)

    # Partial_conv3: Conv2d(cc, cc, 3, 1, 1, bias=False)  (no BN, no act)
    wpc = 0.1 * jax.random.normal(ks[2], (cc, cc, 3, 3), jnp.float32)
    wc = jnp.transpose(wpc, (2, 3, 1, 0)).reshape(9 * cc, cc)  # im2col layout (kh,kw,ci)->co

    # mlp[0]: Conv(dim, hid, 1) = conv1x1(bias=False) + BN + SiLU  (BN folded)
    w1 = 0.1 * jax.random.normal(ks[3], (hid, dim), jnp.float32)
    w1f, b1f = _fold_bn(w1, ks[4])
    w1m = w1f.T                                                # (dim, hid)
    wc1 = wc @ w1m[:cc, :]                                     # fold pconv into mlp[0]
    p["w_fused"] = jnp.concatenate([wc1, w1m[cc:, :]], axis=0).astype(jnp.bfloat16)
    p["b1"] = b1f.reshape(1, hid)

    # mlp[1]: Conv2d(hid, dim, 1, bias=False)
    w2 = 0.1 * jax.random.normal(ks[5], (dim, hid), jnp.float32)
    p["w2"] = w2.T.astype(jnp.bfloat16)                        # (hid, dim)

    # EMA(dim, factor): shared per-group conv1x1 / conv3x3 / GroupNorm(cg, cg)
    eyeG = jnp.eye(G, dtype=jnp.float32)
    w1x1 = 0.1 * jax.random.normal(ks[6], (cg, cg), jnp.float32)        # (co, ci)
    p["ema_w1"] = jnp.kron(eyeG, w1x1.T).astype(jnp.bfloat16)           # block-diag (dim, dim)
    b1e = 0.1 * jax.random.normal(ks[7], (cg,), jnp.float32)
    p["ema_b1"] = jnp.tile(b1e, G).reshape(1, dim)
    w3 = 0.1 * jax.random.normal(ks[8], (cg, cg, 3, 3), jnp.float32)    # (co, ci, kh, kw)
    taps = [jnp.kron(eyeG, w3[:, :, kh, kw].T) for kh in range(3) for kw in range(3)]
    p["ema_w3"] = jnp.stack(taps, axis=0).astype(jnp.bfloat16)          # (9, dim, dim)
    b3e = 0.1 * jax.random.normal(ks[9], (cg,), jnp.float32)
    p["ema_b3"] = jnp.tile(b3e, G).reshape(1, dim)
    gng = 1.0 + 0.1 * jax.random.normal(ks[10], (cg,), jnp.float32)
    gnb = 0.1 * jax.random.normal(ks[11], (cg,), jnp.float32)
    p["ema_gn_g"] = jnp.tile(gng, G).reshape(1, dim)
    p["ema_gn_b"] = jnp.tile(gnb, G).reshape(1, dim)
    # 0/1 group-membership matrices for per-group reductions / broadcasts.
    mg = jnp.kron(eyeG, jnp.ones((cg, 1), jnp.float32))                 # (dim, G)
    p["ema_mg"] = mg
    p["ema_mgt"] = mg.T
    return p


# ----------------------------------------------------------------------------
# Forward pass.
# ----------------------------------------------------------------------------
def faster_block_ema_forward(x_nchw, params, *, dim, n_div=4, factor=8):
    N, cin, H, W = x_nchw.shape
    cc = dim // n_div
    M = N * H * W

    x = jnp.transpose(x_nchw, (0, 2, 3, 1)).astype(jnp.bfloat16)   # NCHW -> NHWC, bf16

    # adjust_channel (only present when inc != dim)
    if "adj_w" in params:
        x = matmul_bias_silu(x.reshape(M, cin), params["adj_w"], params["adj_b"])
        x = x.reshape(N, H, W, dim)
    shortcut = x                                                   # bf16

    # Fused Partial_conv3 + MLP: one bf16 operand = [im2col(x[:, :cc]) | x[:, cc:]].
    xp = jnp.pad(x[..., :cc], ((0, 0), (1, 1), (1, 1), (0, 0)))
    cols = [xp[:, kh:kh + H, kw:kw + W, :] for kh in range(3) for kw in range(3)]
    cols.append(x[..., cc:])
    pconv_in = jnp.concatenate(cols, axis=-1).reshape(M, 9 * cc + dim - cc)

    y = pconv_mlp(pconv_in, params["w_fused"], params["b1"], params["w2"])
    y = y.reshape(N, H, W, dim)                                    # bf16

    # EMA attention + residual add (f32 output).
    out = ema_residual(y, shortcut, params, dim=dim, factor=factor)
    return jnp.transpose(out, (0, 3, 1, 2))                        # NHWC -> NCHW


if __name__ == "__main__":
    # Faster_Block_EMA(inc=24, dim=32, n_div=4, mlp_ratio=2) on a (2, 24, 16, 16)
    # NCHW input. EMA uses factor=8 groups (cg=4).
    N, inc, Hs, Ws = 2, 24, 16, 16
    dim, n_div, mlp_ratio, factor = 32, 4, 2, 8

    key = jax.random.PRNGKey(0)
    kx, kp = jax.random.split(key)
    x = jax.random.normal(kx, (N, inc, Hs, Ws), jnp.float32)
    params = init_params(kp, inc, dim, n_div=n_div, mlp_ratio=mlp_ratio, factor=factor)

    fwd = jax.jit(functools.partial(faster_block_ema_forward,
                                    dim=dim, n_div=n_div, factor=factor))
    out = fwd(x, params)
    out = jax.block_until_ready(out)

    assert out.shape == (N, dim, Hs, Ws), out.shape
    assert out.dtype == jnp.float32
    print("KERNEL_OK")
</pallas_src>

<mosaic_0001>
module attributes {stable_mosaic.version = 11 : i64} {
  func.func @_matmul_bias_silu_kernel(%arg0: i32, %arg1: memref<256x24xbf16, #tpu.memory_space<vmem>>, %arg2: memref<24x32xbf16, #tpu.memory_space<vmem>>, %arg3: memref<1x32xf32, #tpu.memory_space<vmem>>, %arg4: memref<256x32xbf16, #tpu.memory_space<vmem>>) attributes {dimension_semantics = [#tpu.dimension_semantics<parallel>], iteration_bounds = array<i64: 2>, scalar_prefetch = 0 : i64, scratch_operands = 0 : i64, tpu.core_type = #tpu.core_type<tc>, window_params = [{transform_indices = @transform_0, window_bounds = array<i64: 256, 24>}, {pipeline_mode = #tpu.pipeline_mode<synchronous>, transform_indices = @transform_1, window_bounds = array<i64: 24, 32>}, {pipeline_mode = #tpu.pipeline_mode<synchronous>, transform_indices = @transform_2, window_bounds = array<i64: 1, 32>}, {transform_indices = @transform_3, window_bounds = array<i64: 256, 32>}]} {
    %c0 = arith.constant 0 : index
    %c0_0 = arith.constant 0 : index
    %0 = vector.load %arg1[%c0, %c0_0] : memref<256x24xbf16, #tpu.memory_space<vmem>>, vector<256x24xbf16>
    %c0_1 = arith.constant 0 : index
    %c0_2 = arith.constant 0 : index
    %1 = vector.load %arg2[%c0_1, %c0_2] : memref<24x32xbf16, #tpu.memory_space<vmem>>, vector<24x32xbf16>
    %cst = arith.constant dense<0.000000e+00> : vector<256x32xf32>
    %2 = tpu.matmul %0, %1, %cst {dimension_numbers = #tpu.dot_dimension_numbers<[1], [0], [0], [1], [0, 0, 1, 1], [], []>} : vector<256x24xbf16>, vector<24x32xbf16>, vector<256x32xf32> -> vector<256x32xf32>
    %c0_3 = arith.constant 0 : index
    %c0_4 = arith.constant 0 : index
    %3 = vector.load %arg3[%c0_3, %c0_4] : memref<1x32xf32, #tpu.memory_space<vmem>>, vector<1x32xf32>
    %4 = vector.broadcast %3 : vector<1x32xf32> to vector<256x32xf32>
    %5 = arith.addf %2, %4 : vector<256x32xf32>
    %6 = arith.negf %5 : vector<256x32xf32>
    %7 = math.exp %6 : vector<256x32xf32>
    %cst_5 = arith.constant 1.000000e+00 : f32
    %8 = vector.broadcast %cst_5 : f32 to vector<256x32xf32>
    %9 = arith.addf %8, %7 : vector<256x32xf32>
    %10 = arith.divf %8, %9 : vector<256x32xf32>
    %11 = arith.mulf %5, %10 : vector<256x32xf32>
    %12 = arith.truncf %11 : vector<256x32xf32> to vector<256x32xbf16>
    %c0_6 = arith.constant 0 : index
    %c0_7 = arith.constant 0 : index
    %13 = vector.load %arg4[%c0_6, %c0_7] : memref<256x32xbf16, #tpu.memory_space<vmem>>, vector<256x32xbf16>
    tpu.vector_store %arg4[%c0_6, %c0_7], %12 {strides = array<i32>} : memref<256x32xbf16, #tpu.memory_space<vmem>>, vector<256x32xbf16>,
    return
  }
  func.func @transform_0(%arg0: i32) -> (i32, i32) {
    %c0_i32 = arith.constant 0 : i32
    %c0_i32_0 = arith.constant 0 : i32
    return %arg0, %c0_i32 : i32, i32
  }
  func.func @transform_1(%arg0: i32) -> (i32, i32) {
    %c0_i32 = arith.constant 0 : i32
    %c0_i32_0 = arith.constant 0 : i32
    %c0_i32_1 = arith.constant 0 : i32
    return %c0_i32, %c0_i32_0 : i32, i32
  }
  func.func @transform_2(%arg0: i32) -> (i32, i32) {
    %c0_i32 = arith.constant 0 : i32
    %c0_i32_0 = arith.constant 0 : i32
    %c0_i32_1 = arith.constant 0 : i32
    return %c0_i32, %c0_i32_0 : i32, i32
  }
  func.func @transform_3(%arg0: i32) -> (i32, i32) {
    %c0_i32 = arith.constant 0 : i32
    %c0_i32_0 = arith.constant 0 : i32
    return %arg0, %c0_i32 : i32, i32
  }
}

module attributes {stable_mosaic.version = 11 : i64} {
  func.func @_pconv_mlp_kernel(%arg0: i32, %arg1: memref<256x96xbf16, #tpu.memory_space<vmem>>, %arg2: memref<96x64xbf16, #tpu.memory_space<vmem>>, %arg3: memref<1x64xf32, #tpu.memory_space<vmem>>, %arg4: memref<64x32xbf16, #tpu.memory_space<vmem>>, %arg5: memref<256x32xbf16, #tpu.memory_space<vmem>>) attributes {dimension_semantics = [#tpu.dimension_semantics<parallel>], iteration_bounds = array<i64: 2>, scalar_prefetch = 0 : i64, scratch_operands = 0 : i64, tpu.core_type = #tpu.core_type<tc>, window_params = [{transform_indices = @transform_0, window_bounds = array<i64: 256, 96>}, {pipeline_mode = #tpu.pipeline_mode<synchronous>, transform_indices = @transform_1, window_bounds = array<i64: 96, 64>}, {pipeline_mode = #tpu.pipeline_mode<synchronous>, transform_indices = @transform_2, window_bounds = array<i64: 1, 64>}, {pipeline_mode = #tpu.pipeline_mode<synchronous>, transform_indices = @transform_3, window_bounds = array<i64: 64, 32>}, {transform_indices = @transform_4, window_bounds = array<i64: 256, 32>}]} {
    %c0 = arith.constant 0 : index
    %c0_0 = arith.constant 0 : index
    %0 = vector.load %arg1[%c0, %c0_0] : memref<256x96xbf16, #tpu.memory_space<vmem>>, vector<256x96xbf16>
    %c0_1 = arith.constant 0 : index
    %c0_2 = arith.constant 0 : index
    %1 = vector.load %arg2[%c0_1, %c0_2] : memref<96x64xbf16, #tpu.memory_space<vmem>>, vector<96x64xbf16>
    %cst = arith.constant dense<0.000000e+00> : vector<256x64xf32>
    %2 = tpu.matmul %0, %1, %cst {dimension_numbers = #tpu.dot_dimension_numbers<[1], [0], [0], [1], [0, 0, 1, 1], [], []>} : vector<256x96xbf16>, vector<96x64xbf16>, vector<256x64xf32> -> vector<256x64xf32>
    %c0_3 = arith.constant 0 : index
    %c0_4 = arith.constant 0 : index
    %3 = vector.load %arg3[%c0_3, %c0_4] : memref<1x64xf32, #tpu.memory_space<vmem>>, vector<1x64xf32>
    %4 = vector.broadcast %3 : vector<1x64xf32> to vector<256x64xf32>
    %5 = arith.addf %2, %4 : vector<256x64xf32>
    %6 = arith.negf %5 : vector<256x64xf32>
    %7 = math.exp %6 : vector<256x64xf32>
    %cst_5 = arith.constant 1.000000e+00 : f32
    %8 = vector.broadcast %cst_5 : f32 to vector<256x64xf32>
    %9 = arith.addf %8, %7 : vector<256x64xf32>
    %10 = arith.divf %8, %9 : vector<256x64xf32>
    %11 = arith.mulf %5, %10 : vector<256x64xf32>
    %12 = arith.truncf %11 : vector<256x64xf32> to vector<256x64xbf16>
    %c0_6 = arith.constant 0 : index
    %c0_7 = arith.constant 0 : index
    %13 = vector.load %arg4[%c0_6, %c0_7] : memref<64x32xbf16, #tpu.memory_space<vmem>>, vector<64x32xbf16>
    %cst_8 = arith.constant dense<0.000000e+00> : vector<256x32xf32>
    %14 = tpu.matmul %12, %13, %cst_8 {dimension_numbers = #tpu.dot_dimension_numbers<[1], [0], [0], [1], [0, 0, 1, 1], [], []>} : vector<256x64xbf16>, vector<64x32xbf16>, vector<256x32xf32> -> vector<256x32xf32>
    %15 = arith.truncf %14 : vector<256x32xf32> to vector<256x32xbf16>
    %c0_9 = arith.constant 0 : index
    %c0_10 = arith.constant 0 : index
    %16 = vector.load %arg5[%c0_9, %c0_10] : memref<256x32xbf16, #tpu.memory_space<vmem>>, vector<256x32xbf16>
    tpu.vector_store %arg5[%c0_9, %c0_10], %15 {strides = array<i32>} : memref<256x32xbf16, #tpu.memory_space<vmem>>, vector<256x32xbf16>,
    return
  }
  func.func @transform_0(%arg0: i32) -> (i32, i32) {
    %c0_i32 = arith.constant 0 : i32
    %c0_i32_0 = arith.constant 0 : i32
    return %arg0, %c0_i32 : i32, i32
  }
  func.func @transform_1(%arg0: i32) -> (i32, i32) {
    %c0_i32 = arith.constant 0 : i32
    %c0_i32_0 = arith.constant 0 : i32
    %c0_i32_1 = arith.constant 0 : i32
    return %c0_i32, %c0_i32_0 : i32, i32
  }
  func.func @transform_2(%arg0: i32) -> (i32, i32) {
    %c0_i32 = arith.constant 0 : i32
    %c0_i32_0 = arith.constant 0 : i32
    %c0_i32_1 = arith.constant 0 : i32
    return %c0_i32, %c0_i32_0 : i32, i32
  }
  func.func @transform_3(%arg0: i32) -> (i32, i32) {
    %c0_i32 = arith.constant 0 : i32
    %c0_i32_0 = arith.constant 0 : i32
    %c0_i32_1 = arith.constant 0 : i32
    return %c0_i32, %c0_i32_0 : i32, i32
  }
  func.func @transform_4(%arg0: i32) -> (i32, i32) {
    %c0_i32 = arith.constant 0 : i32
    %c0_i32_0 = arith.constant 0 : i32
    return %arg0, %c0_i32 : i32, i32
  }
}

module attributes {stable_mosaic.version = 11 : i64} {
  func.func @_ema_residual_kernel(%arg0: i32, %arg1: memref<1x16x16x32xbf16, #tpu.memory_space<vmem>>, %arg2: memref<1x16x16x32xbf16, #tpu.memory_space<vmem>>, %arg3: memref<32x32xbf16, #tpu.memory_space<vmem>>, %arg4: memref<1x32xf32, #tpu.memory_space<vmem>>, %arg5: memref<9x32x32xbf16, #tpu.memory_space<vmem>>, %arg6: memref<1x32xf32, #tpu.memory_space<vmem>>, %arg7: memref<1x32xf32, #tpu.memory_space<vmem>>, %arg8: memref<1x32xf32, #tpu.memory_space<vmem>>, %arg9: memref<32x8xf32, #tpu.memory_space<vmem>>, %arg10: memref<8x32xf32, #tpu.memory_space<vmem>>, %arg11: memref<1x16x16x32xf32, #tpu.memory_space<vmem>>, %arg12: memref<18x18x32xbf16, #tpu.memory_space<vmem>>) attributes {dimension_semantics = [#tpu.dimension_semantics<parallel>], iteration_bounds = array<i64: 2>, scalar_prefetch = 0 : i64, scratch_operands = 1 : i64, tpu.core_type = #tpu.core_type<tc>, window_params = [{transform_indices = @transform_0, window_bounds = array<i64: 1, 16, 16, 32>}, {transform_indices = @transform_1, window_bounds = array<i64: 1, 16, 16, 32>}, {pipeline_mode = #tpu.pipeline_mode<synchronous>, transform_indices = @transform_2, window_bounds = array<i64: 32, 32>}, {pipeline_mode = #tpu.pipeline_mode<synchronous>, transform_indices = @transform_3, window_bounds = array<i64: 1, 32>}, {pipeline_mode = #tpu.pipeline_mode<synchronous>, transform_indices = @transform_4, window_bounds = array<i64: 9, 32, 32>}, {pipeline_mode = #tpu.pipeline_mode<synchronous>, transform_indices = @transform_5, window_bounds = array<i64: 1, 32>}, {pipeline_mode = #tpu.pipeline_mode<synchronous>, transform_indices = @transform_6, window_bounds = array<i64: 1, 32>}, {pipeline_mode = #tpu.pipeline_mode<synchronous>, transform_indices = @transform_7, window_bounds = array<i64: 1, 32>}, {pipeline_mode = #tpu.pipeline_mode<synchronous>, transform_indices = @transform_8, window_bounds = array<i64: 32, 8>}, {pipeline_mode = #tpu.pipeline_mode<synchronous>, transform_indices = @transform_9, window_bounds = array<i64: 8, 32>}, {transform_indices = @transform_10, window_bounds = array<i64: 1, 16, 16, 32>}]} {
    %c0 = arith.constant 0 : index
    %c0_0 = arith.constant 0 : index
    %c0_1 = arith.constant 0 : index
    %c0_2 = arith.constant 0 : index
    %0 = vector.load %arg1[%c0, %c0_0, %c0_1, %c0_2] : memref<1x16x16x32xbf16, #tpu.memory_space<vmem>>, vector<1x16x16x32xbf16>
    %1 = vector.shape_cast %0 : vector<1x16x16x32xbf16> to vector<16x16x32xbf16>
    %2 = arith.extf %1 : vector<16x16x32xbf16> to vector<16x16x32xf32>
    %cst = arith.constant dense<0.000000e+00> : vector<16x32xf32>
    %3 = vector.multi_reduction <add>, %2, %cst [1] : vector<16x16x32xf32> to vector<16x32xf32>
    %cst_3 = arith.constant 1.600000e+01 : f32
    %4 = vector.broadcast %cst_3 : f32 to vector<16x32xf32>
    %5 = arith.divf %3, %4 : vector<16x32xf32>
    %cst_4 = arith.constant dense<0.000000e+00> : vector<16x32xf32>
    %6 = vector.multi_reduction <add>, %2, %cst_4 [0] : vector<16x16x32xf32> to vector<16x32xf32>
    %cst_5 = arith.constant 1.600000e+01 : f32
    %7 = vector.broadcast %cst_5 : f32 to vector<16x32xf32>
    %8 = arith.divf %6, %7 : vector<16x32xf32>
    %9 = arith.truncf %5 : vector<16x32xf32> to vector<16x32xbf16>
    %c0_6 = arith.constant 0 : index
    %c0_7 = arith.constant 0 : index
    %10 = vector.load %arg3[%c0_6, %c0_7] : memref<32x32xbf16, #tpu.memory_space<vmem>>, vector<32x32xbf16>
    %cst_8 = arith.constant dense<0.000000e+00> : vector<16x32xf32>
    %11 = tpu.matmul %9, %10, %cst_8 {dimension_numbers = #tpu.dot_dimension_numbers<[1], [0], [0], [1], [0, 0, 1, 1], [], []>} : vector<16x32xbf16>, vector<32x32xbf16>, vector<16x32xf32> -> vector<16x32xf32>
    %c0_9 = arith.constant 0 : index
    %c0_10 = arith.constant 0 : index
    %12 = vector.load %arg4[%c0_9, %c0_10] : memref<1x32xf32, #tpu.memory_space<vmem>>, vector<1x32xf32>
    %13 = vector.broadcast %12 : vector<1x32xf32> to vector<16x32xf32>
    %14 = arith.addf %11, %13 : vector<16x32xf32>
    %15 = arith.negf %14 : vector<16x32xf32>
    %16 = math.exp %15 : vector<16x32xf32>
    %cst_11 = arith.constant 1.000000e+00 : f32
    %17 = vector.broadcast %cst_11 : f32 to vector<16x32xf32>
    %18 = arith.addf %17, %16 : vector<16x32xf32>
    %19 = arith.divf %17, %18 : vector<16x32xf32>
    %20 = arith.truncf %8 : vector<16x32xf32> to vector<16x32xbf16>
    %c0_12 = arith.constant 0 : index
    %c0_13 = arith.constant 0 : index
    %21 = vector.load %arg3[%c0_12, %c0_13] : memref<32x32xbf16, #tpu.memory_space<vmem>>, vector<32x32xbf16>
    %cst_14 = arith.constant dense<0.000000e+00> : vector<16x32xf32>
    %22 = tpu.matmul %20, %21, %cst_14 {dimension_numbers = #tpu.dot_dimension_numbers<[1], [0], [0], [1], [0, 0, 1, 1], [], []>} : vector<16x32xbf16>, vector<32x32xbf16>, vector<16x32xf32> -> vector<16x32xf32>
    %c0_15 = arith.constant 0 : index
    %c0_16 = arith.constant 0 : index
    %23 = vector.load %arg4[%c0_15, %c0_16] : memref<1x32xf32, #tpu.memory_space<vmem>>, vector<1x32xf32>
    %24 = vector.broadcast %23 : vector<1x32xf32> to vector<16x32xf32>
    %25 = arith.addf %22, %24 : vector<16x32xf32>
    %26 = arith.negf %25 : vector<16x32xf32>
    %27 = math.exp %26 : vector<16x32xf32>
    %cst_17 = arith.constant 1.000000e+00 : f32
    %28 = vector.broadcast %cst_17 : f32 to vector<16x32xf32>
    %29 = arith.addf %28, %27 : vector<16x32xf32>
    %30 = arith.divf %28, %29 : vector<16x32xf32>
    %31 = vector.shape_cast %19 : vector<16x32xf32> to vector<16x1x32xf32>
    %32 = vector.broadcast %31 : vector<16x1x32xf32> to vector<16x16x32xf32>
    %33 = arith.mulf %2, %32 : vector<16x16x32xf32>
    %34 = vector.shape_cast %30 : vector<16x32xf32> to vector<1x16x32xf32>
    %35 = vector.broadcast %34 : vector<1x16x32xf32> to vector<16x16x32xf32>
    %36 = arith.mulf %33, %35 : vector<16x16x32xf32>
    %37 = vector.shape_cast %36 : vector<16x16x32xf32> to vector<256x32xf32>
    %cst_18 = arith.constant dense<0.000000e+00> : vector<32xf32>
    %38 = vector.multi_reduction <add>, %37, %cst_18 [0] : vector<256x32xf32> to vector<32xf32>
    %39 = vector.shape_cast %38 : vector<32xf32> to vector<1x32xf32>
    %cst_19 = arith.constant 2.560000e+02 : f32
    %40 = vector.broadcast %cst_19 : f32 to vector<1x32xf32>
    %41 = arith.divf %39, %40 : vector<1x32xf32>
    %42 = vector.broadcast %41 : vector<1x32xf32> to vector<256x32xf32>
    %43 = arith.subf %37, %42 : vector<256x32xf32>
    %44 = arith.mulf %43, %43 : vector<256x32xf32>
    %cst_20 = arith.constant dense<0.000000e+00> : vector<32xf32>
    %45 = vector.multi_reduction <add>, %44, %cst_20 [0] : vector<256x32xf32> to vector<32xf32>
    %46 = vector.shape_cast %45 : vector<32xf32> to vector<1x32xf32>
    %cst_21 = arith.constant 2.560000e+02 : f32
    %47 = vector.broadcast %cst_21 : f32 to vector<1x32xf32>
    %48 = arith.divf %46, %47 : vector<1x32xf32>
    %49 = vector.broadcast %41 : vector<1x32xf32> to vector<256x32xf32>
    %50 = arith.subf %37, %49 : vector<256x32xf32>
    %cst_22 = arith.constant 9.99999974E-6 : f32
    %51 = vector.broadcast %cst_22 : f32 to vector<1x32xf32>
    %52 = arith.addf %48, %51 : vector<1x32xf32>
    %53 = math.rsqrt %52 : vector<1x32xf32>
    %54 = vector.broadcast %53 : vector<1x32xf32> to vector<256x32xf32>
    %55 = arith.mulf %50, %54 : vector<256x32xf32>
    %c0_23 = arith.constant 0 : index
    %c0_24 = arith.constant 0 : index
    %56 = vector.load %arg7[%c0_23, %c0_24] : memref<1x32xf32, #tpu.memory_space<vmem>>, vector<1x32xf32>
    %57 = vector.broadcast %56 : vector<1x32xf32> to vector<256x32xf32>
    %58 = arith.mulf %55, %57 : vector<256x32xf32>
    %c0_25 = arith.constant 0 : index
    %c0_26 = arith.constant 0 : index
    %59 = vector.load %arg8[%c0_25, %c0_26] : memref<1x32xf32, #tpu.memory_space<vmem>>, vector<1x32xf32>
    %60 = vector.broadcast %59 : vector<1x32xf32> to vector<256x32xf32>
    %61 = arith.addf %58, %60 : vector<256x32xf32>
    %cst_27 = arith.constant 0.000000e+00 : bf16
    %62 = vector.broadcast %cst_27 : bf16 to vector<18x18x32xbf16>
    %c0_28 = arith.constant 0 : index
    %c0_29 = arith.constant 0 : index
    %c0_30 = arith.constant 0 : index
    %63 = vector.load %arg12[%c0_28, %c0_29, %c0_30] : memref<18x18x32xbf16, #tpu.memory_space<vmem>>, vector<18x18x32xbf16>
    tpu.vector_store %arg12[%c0_28, %c0_29, %c0_30], %62 {strides = array<i32>} : memref<18x18x32xbf16, #tpu.memory_space<vmem>>, vector<18x18x32xbf16>,
    %c0_31 = arith.constant 0 : index
    %c0_32 = arith.constant 0 : index
    %c0_33 = arith.constant 0 : index
    %c0_34 = arith.constant 0 : index
    %64 = vector.load %arg1[%c0_31, %c0_32, %c0_33, %c0_34] : memref<1x16x16x32xbf16, #tpu.memory_space<vmem>>, vector<1x16x16x32xbf16>
    %65 = vector.shape_cast %64 : vector<1x16x16x32xbf16> to vector<16x16x32xbf16>
    %c1 = arith.constant 1 : index
    %c1_35 = arith.constant 1 : index
    %c0_36 = arith.constant 0 : index
    %66 = vector.load %arg12[%c1, %c1_35, %c0_36] : memref<18x18x32xbf16, #tpu.memory_space<vmem>>, vector<16x16x32xbf16>
    tpu.vector_store %arg12[%c1, %c1_35, %c0_36], %65 {strides = array<i32>} : memref<18x18x32xbf16, #tpu.memory_space<vmem>>, vector<16x16x32xbf16>,
    %cst_37 = arith.constant 0.000000e+00 : f32
    %67 = vector.broadcast %cst_37 : f32 to vector<256x32xf32>
    %c0_38 = arith.constant 0 : index
    %c0_39 = arith.constant 0 : index
    %c0_40 = arith.constant 0 : index
    %68 = vector.load %arg12[%c0_38, %c0_39, %c0_40] : memref<18x18x32xbf16, #tpu.memory_space<vmem>>, vector<16x16x32xbf16>
    %69 = vector.shape_cast %68 : vector<16x16x32xbf16> to vector<256x32xbf16>
    %c0_41 = arith.constant 0 : index
    %c0_42 = arith.constant 0 : index
    %c0_43 = arith.constant 0 : index
    %70 = vector.load %arg5[%c0_41, %c0_42, %c0_43] : memref<9x32x32xbf16, #tpu.memory_space<vmem>>, vector<1x32x32xbf16>
    %71 = vector.shape_cast %70 : vector<1x32x32xbf16> to vector<32x32xbf16>
    %cst_44 = arith.constant dense<0.000000e+00> : vector<256x32xf32>
    %72 = tpu.matmul %69, %71, %cst_44 {dimension_numbers = #tpu.dot_dimension_numbers<[1], [0], [0], [1], [0, 0, 1, 1], [], []>} : vector<256x32xbf16>, vector<32x32xbf16>, vector<256x32xf32> -> vector<256x32xf32>
    %73 = arith.addf %67, %72 : vector<256x32xf32>
    %c0_45 = arith.constant 0 : index
    %c1_46 = arith.constant 1 : index
    %c0_47 = arith.constant 0 : index
    %74 = vector.load %arg12[%c0_45, %c1_46, %c0_47] : memref<18x18x32xbf16, #tpu.memory_space<vmem>>, vector<16x16x32xbf16>
    %75 = vector.shape_cast %74 : vector<16x16x32xbf16> to vector<256x32xbf16>
    %c1_48 = arith.constant 1 : index
    %c0_49 = arith.constant 0 : index
    %c0_50 = arith.constant 0 : index
    %76 = vector.load %arg5[%c1_48, %c0_49, %c0_50] : memref<9x32x32xbf16, #tpu.memory_space<vmem>>, vector<1x32x32xbf16>
    %77 = vector.shape_cast %76 : vector<1x32x32xbf16> to vector<32x32xbf16>
    %cst_51 = arith.constant dense<0.000000e+00> : vector<256x32xf32>
    %78 = tpu.matmul %75, %77, %cst_51 {dimension_numbers = #tpu.dot_dimension_numbers<[1], [0], [0], [1], [0, 0, 1, 1], [], []>} : vector<256x32xbf16>, vector<32x32xbf16>, vector<256x32xf32> -> vector<256x32xf32>
    %79 = arith.addf %73, %78 : vector<256x32xf32>
    %c0_52 = arith.constant 0 : index
    %c2 = arith.constant 2 : index
    %c0_53 = arith.constant 0 : index
    %80 = vector.load %arg12[%c0_52, %c2, %c0_53] : memref<18x18x32xbf16, #tpu.memory_space<vmem>>, vector<16x16x32xbf16>
    %81 = vector.shape_cast %80 : vector<16x16x32xbf16> to vector<256x32xbf16>
    %c2_54 = arith.constant 2 : index
    %c0_55 = arith.constant 0 : index
    %c0_56 = arith.constant 0 : index
    %82 = vector.load %arg5[%c2_54, %c0_55, %c0_56] : memref<9x32x32xbf16, #tpu.memory_space<vmem>>, vector<1x32x32xbf16>
    %83 = vector.shape_cast %82 : vector<1x32x32xbf16> to vector<32x32xbf16>
    %cst_57 = arith.constant dense<0.000000e+00> : vector<256x32xf32>
    %84 = tpu.matmul %81, %83, %cst_57 {dimension_numbers = #tpu.dot_dimension_numbers<[1], [0], [0], [1], [0, 0, 1, 1], [], []>} : vector<256x32xbf16>, vector<32x32xbf16>, vector<256x32xf32> -> vector<256x32xf32>
    %85 = arith.addf %79, %84 : vector<256x32xf32>
    %c1_58 = arith.constant 1 : index
    %c0_59 = arith.constant 0 : index
    %c0_60 = arith.constant 0 : index
    %86 = vector.load %arg12[%c1_58, %c0_59, %c0_60] : memref<18x18x32xbf16, #tpu.memory_space<vmem>>, vector<16x16x32xbf16>
    %87 = vector.shape_cast %86 : vector<16x16x32xbf16> to vector<256x32xbf16>
    %c3 = arith.constant 3 : index
    %c0_61 = arith.constant 0 : index
    %c0_62 = arith.constant 0 : index
    %88 = vector.load %arg5[%c3, %c0_61, %c0_62] : memref<9x32x32xbf16, #tpu.memory_space<vmem>>, vector<1x32x32xbf16>
    %89 = vector.shape_cast %88 : vector<1x32x32xbf16> to vector<32x32xbf16>
    %cst_63 = arith.constant dense<0.000000e+00> : vector<256x32xf32>
    %90 = tpu.matmul %87, %89, %cst_63 {dimension_numbers = #tpu.dot_dimension_numbers<[1], [0], [0], [1], [0, 0, 1, 1], [], []>} : vector<256x32xbf16>, vector<32x32xbf16>, vector<256x32xf32> -> vector<256x32xf32>
    %91 = arith.addf %85, %90 : vector<256x32xf32>
    %c1_64 = arith.constant 1 : index
    %c1_65 = arith.constant 1 : index
    %c0_66 = arith.constant 0 : index
    %92 = vector.load %arg12[%c1_64, %c1_65, %c0_66] : memref<18x18x32xbf16, #tpu.memory_space<vmem>>, vector<16x16x32xbf16>
    %93 = vector.shape_cast %92 : vector<16x16x32xbf16> to vector<256x32xbf16>
    %c4 = arith.constant 4 : index
    %c0_67 = arith.constant 0 : index
    %c0_68 = arith.constant 0 : index
    %94 = vector.load %arg5[%c4, %c0_67, %c0_68] : memref<9x32x32xbf16, #tpu.memory_space<vmem>>, vector<1x32x32xbf16>
    %95 = vector.shape_cast %94 : vector<1x32x32xbf16> to vector<32x32xbf16>
    %cst_69 = arith.constant dense<0.000000e+00> : vector<256x32xf32>
    %96 = tpu.matmul %93, %95, %cst_69 {dimension_numbers = #tpu.dot_dimension_numbers<[1], [0], [0], [1], [0, 0, 1, 1], [], []>} : vector<256x32xbf16>, vector<32x32xbf16>, vector<256x32xf32> -> vector<256x32xf32>
    %97 = arith.addf %91, %96 : vector<256x32xf32>
    %c1_70 = arith.constant 1 : index
    %c2_71 = arith.constant 2 : index
    %c0_72 = arith.constant 0 : index
    %98 = vector.load %arg12[%c1_70, %c2_71, %c0_72] : memref<18x18x32xbf16, #tpu.memory_space<vmem>>, vector<16x16x32xbf16>
    %99 = vector.shape_cast %98 : vector<16x16x32xbf16> to vector<256x32xbf16>
    %c5 = arith.constant 5 : index
    %c0_73 = arith.constant 0 : index
    %c0_74 = arith.constant 0 : index
    %100 = vector.load %arg5[%c5, %c0_73, %c0_74] : memref<9x32x32xbf16, #tpu.memory_space<vmem>>, vector<1x32x32xbf16>
    %101 = vector.shape_cast %100 : vector<1x32x32xbf16> to vector<32x32xbf16>
    %cst_75 = arith.constant dense<0.000000e+00> : vector<256x32xf32>
    %102 = tpu.matmul %99, %101, %cst_75 {dimension_numbers = #tpu.dot_dimension_numbers<[1], [0], [0], [1], [0, 0, 1, 1], [], []>} : vector<256x32xbf16>, vector<32x32xbf16>, vector<256x32xf32> -> vector<256x32xf32>
    %103 = arith.addf %97, %102 : vector<256x32xf32>
    %c2_76 = arith.constant 2 : index
    %c0_77 = arith.constant 0 : index
    %c0_78 = arith.constant 0 : index
    %104 = vector.load %arg12[%c2_76, %c0_77, %c0_78] : memref<18x18x32xbf16, #tpu.memory_space<vmem>>, vector<16x16x32xbf16>
    %105 = vector.shape_cast %104 : vector<16x16x32xbf16> to vector<256x32xbf16>
    %c6 = arith.constant 6 : index
    %c0_79 = arith.constant 0 : index
    %c0_80 = arith.constant 0 : index
    %106 = vector.load %arg5[%c6, %c0_79, %c0_80] : memref<9x32x32xbf16, #tpu.memory_space<vmem>>, vector<1x32x32xbf16>
    %107 = vector.shape_cast %106 : vector<1x32x32xbf16> to vector<32x32xbf16>
    %cst_81 = arith.constant dense<0.000000e+00> : vector<256x32xf32>
    %108 = tpu.matmul %105, %107, %cst_81 {dimension_numbers = #tpu.dot_dimension_numbers<[1], [0], [0], [1], [0, 0, 1, 1], [], []>} : vector<256x32xbf16>, vector<32x32xbf16>, vector<256x32xf32> -> vector<256x32xf32>
    %109 = arith.addf %103, %108 : vector<256x32xf32>
    %c2_82 = arith.constant 2 : index
    %c1_83 = arith.constant 1 : index
    %c0_84 = arith.constant 0 : index
    %110 = vector.load %arg12[%c2_82, %c1_83, %c0_84] : memref<18x18x32xbf16, #tpu.memory_space<vmem>>, vector<16x16x32xbf16>
    %111 = vector.shape_cast %110 : vector<16x16x32xbf16> to vector<256x32xbf16>
    %c7 = arith.constant 7 : index
    %c0_85 = arith.constant 0 : index
    %c0_86 = arith.constant 0 : index
    %112 = vector.load %arg5[%c7, %c0_85, %c0_86] : memref<9x32x32xbf16, #tpu.memory_space<vmem>>, vector<1x32x32xbf16>
    %113 = vector.shape_cast %112 : vector<1x32x32xbf16> to vector<32x32xbf16>
    %cst_87 = arith.constant dense<0.000000e+00> : vector<256x32xf32>
    %114 = tpu.matmul %111, %113, %cst_87 {dimension_numbers = #tpu.dot_dimension_numbers<[1], [0], [0], [1], [0, 0, 1, 1], [], []>} : vector<256x32xbf16>, vector<32x32xbf16>, vector<256x32xf32> -> vector<256x32xf32>
    %115 = arith.addf %109, %114 : vector<256x32xf32>
    %c2_88 = arith.constant 2 : index
    %c2_89 = arith.constant 2 : index
    %c0_90 = arith.constant 0 : index
    %116 = vector.load %arg12[%c2_88, %c2_89, %c0_90] : memref<18x18x32xbf16, #tpu.memory_space<vmem>>, vector<16x16x32xbf16>
    %117 = vector.shape_cast %116 : vector<16x16x32xbf16> to vector<256x32xbf16>
    %c8 = arith.constant 8 : index
    %c0_91 = arith.constant 0 : index
    %c0_92 = arith.constant 0 : index
    %118 = vector.load %arg5[%c8, %c0_91, %c0_92] : memref<9x32x32xbf16, #tpu.memory_space<vmem>>, vector<1x32x32xbf16>
    %119 = vector.shape_cast %118 : vector<1x32x32xbf16> to vector<32x32xbf16>
    %cst_93 = arith.constant dense<0.000000e+00> : vector<256x32xf32>
    %120 = tpu.matmul %117, %119, %cst_93 {dimension_numbers = #tpu.dot_dimension_numbers<[1], [0], [0], [1], [0, 0, 1, 1], [], []>} : vector<256x32xbf16>, vector<32x32xbf16>, vector<256x32xf32> -> vector<256x32xf32>
    %121 = arith.addf %115, %120 : vector<256x32xf32>
    %c0_94 = arith.constant 0 : index
    %c0_95 = arith.constant 0 : index
    %122 = vector.load %arg6[%c0_94, %c0_95] : memref<1x32xf32, #tpu.memory_space<vmem>>, vector<1x32xf32>
    %123 = vector.broadcast %122 : vector<1x32xf32> to vector<256x32xf32>
    %124 = arith.addf %121, %123 : vector<256x32xf32>
    %c0_96 = arith.constant 0 : index
    %c0_97 = arith.constant 0 : index
    %125 = vector.load %arg9[%c0_96, %c0_97] : memref<32x8xf32, #tpu.memory_space<vmem>>, vector<32x8xf32>
    %c0_98 = arith.constant 0 : index
    %c0_99 = arith.constant 0 : index
    %126 = vector.load %arg10[%c0_98, %c0_99] : memref<8x32xf32, #tpu.memory_space<vmem>>, vector<8x32xf32>
    %cst_100 = arith.constant dense<0.000000e+00> : vector<32xf32>
    %127 = vector.multi_reduction <add>, %61, %cst_100 [0] : vector<256x32xf32> to vector<32xf32>
    %128 = vector.shape_cast %127 : vector<32xf32> to vector<1x32xf32>
    %cst_101 = arith.constant 2.560000e+02 : f32
    %129 = vector.broadcast %cst_101 : f32 to vector<1x32xf32>
    %130 = arith.divf %128, %129 : vector<1x32xf32>
    %cst_102 = arith.constant dense<0xFF800000> : vector<1xf32>
    %131 = vector.multi_reduction <maximumf>, %130, %cst_102 [1] : vector<1x32xf32> to vector<1xf32>
    %132 = vector.shape_cast %131 : vector<1xf32> to vector<1x1xf32>
    %133 = vector.broadcast %132 : vector<1x1xf32> to vector<1x32xf32>
    %134 = arith.subf %130, %133 : vector<1x32xf32>
    %135 = math.exp %134 : vector<1x32xf32>
    %cst_103 = arith.constant dense<0.000000e+00> : vector<1x8xf32>
    %136 = tpu.matmul %135, %125, %cst_103 {dimension_numbers = #tpu.dot_dimension_numbers<[1], [0], [0], [1], [0, 0, 1, 1], [], []>} : vector<1x32xf32>, vector<32x8xf32>, vector<1x8xf32> -> vector<1x8xf32>
    %cst_104 = arith.constant dense<0.000000e+00> : vector<1x32xf32>
    %137 = tpu.matmul %136, %126, %cst_104 {dimension_numbers = #tpu.dot_dimension_numbers<[1], [0], [0], [1], [0, 0, 1, 1], [], []>} : vector<1x8xf32>, vector<8x32xf32>, vector<1x32xf32> -> vector<1x32xf32>
    %138 = arith.divf %135, %137 : vector<1x32xf32>
    %cst_105 = arith.constant dense<0.000000e+00> : vector<32xf32>
    %139 = vector.multi_reduction <add>, %124, %cst_105 [0] : vector<256x32xf32> to vector<32xf32>
    %140 = vector.shape_cast %139 : vector<32xf32> to vector<1x32xf32>
    %cst_106 = arith.constant 2.560000e+02 : f32
    %141 = vector.broadcast %cst_106 : f32 to vector<1x32xf32>
    %142 = arith.divf %140, %141 : vector<1x32xf32>
    %cst_107 = arith.constant dense<0xFF800000> : vector<1xf32>
    %143 = vector.multi_reduction <maximumf>, %142, %cst_107 [1] : vector<1x32xf32> to vector<1xf32>
    %144 = vector.shape_cast %143 : vector<1xf32> to vector<1x1xf32>
    %145 = vector.broadcast %144 : vector<1x1xf32> to vector<1x32xf32>
    %146 = arith.subf %142, %145 : vector<1x32xf32>
    %147 = math.exp %146 : vector<1x32xf32>
    %cst_108 = arith.constant dense<0.000000e+00> : vector<1x8xf32>
    %148 = tpu.matmul %147, %125, %cst_108 {dimension_numbers = #tpu.dot_dimension_numbers<[1], [0], [0], [1], [0, 0, 1, 1], [], []>} : vector<1x32xf32>, vector<32x8xf32>, vector<1x8xf32> -> vector<1x8xf32>
    %cst_109 = arith.constant dense<0.000000e+00> : vector<1x32xf32>
    %149 = tpu.matmul %148, %126, %cst_109 {dimension_numbers = #tpu.dot_dimension_numbers<[1], [0], [0], [1], [0, 0, 1, 1], [], []>} : vector<1x8xf32>, vector<8x32xf32>, vector<1x32xf32> -> vector<1x32xf32>
    %150 = arith.divf %147, %149 : vector<1x32xf32>
    %151 = vector.broadcast %138 : vector<1x32xf32> to vector<256x32xf32>
    %152 = arith.mulf %124, %151 : vector<256x32xf32>
    %cst_110 = arith.constant dense<0.000000e+00> : vector<256x8xf32>
    %153 = tpu.matmul %152, %125, %cst_110 {dimension_numbers = #tpu.dot_dimension_numbers<[1], [0], [0], [1], [0, 0, 1, 1], [], []>} : vector<256x32xf32>, vector<32x8xf32>, vector<256x8xf32> -> vector<256x8xf32>
    %154 = vector.broadcast %150 : vector<1x32xf32> to vector<256x32xf32>
    %155 = arith.mulf %61, %154 : vector<256x32xf32>
    %cst_111 = arith.constant dense<0.000000e+00> : vector<256x8xf32>
    %156 = tpu.matmul %155, %125, %cst_111 {dimension_numbers = #tpu.dot_dimension_numbers<[1], [0], [0], [1], [0, 0, 1, 1], [], []>} : vector<256x32xf32>, vector<32x8xf32>, vector<256x8xf32> -> vector<256x8xf32>
    %157 = arith.addf %153, %156 : vector<256x8xf32>
    %cst_112 = arith.constant dense<0.000000e+00> : vector<256x32xf32>
    %158 = tpu.matmul %157, %126, %cst_112 {dimension_numbers = #tpu.dot_dimension_numbers<[1], [0], [0], [1], [0, 0, 1, 1], [], []>} : vector<256x8xf32>, vector<8x32xf32>, vector<256x32xf32> -> vector<256x32xf32>
    %c0_113 = arith.constant 0 : index
    %c0_114 = arith.constant 0 : index
    %c0_115 = arith.constant 0 : index
    %c0_116 = arith.constant 0 : index
    %159 = vector.load %arg2[%c0_113, %c0_114, %c0_115, %c0_116] : memref<1x16x16x32xbf16, #tpu.memory_space<vmem>>, vector<1x16x16x32xbf16>
    %160 = vector.shape_cast %159 : vector<1x16x16x32xbf16> to vector<16x16x32xbf16>
    %161 = arith.extf %160 : vector<16x16x32xbf16> to vector<16x16x32xf32>
    %162 = vector.shape_cast %161 : vector<16x16x32xf32> to vector<256x32xf32>
    %163 = vector.shape_cast %2 : vector<16x16x32xf32> to vector<256x32xf32>
    %164 = arith.negf %158 : vector<256x32xf32>
    %165 = math.exp %164 : vector<256x32xf32>
    %cst_117 = arith.constant 1.000000e+00 : f32
    %166 = vector.broadcast %cst_117 : f32 to vector<256x32xf32>
    %167 = arith.addf %166, %165 : vector<256x32xf32>
    %168 = arith.divf %166, %167 : vector<256x32xf32>
    %169 = arith.mulf %163, %168 : vector<256x32xf32>
    %170 = arith.addf %162, %169 : vector<256x32xf32>
    %171 = vector.shape_cast %170 : vector<256x32xf32> to vector<16x16x32xf32>
    %c0_118 = arith.constant 0 : index
    %c0_119 = arith.constant 0 : index
    %c0_120 = arith.constant 0 : index
    %c0_121 = arith.constant 0 : index
    %172 = vector.load %arg11[%c0_118, %c0_119, %c0_120, %c0_121] : memref<1x16x16x32xf32, #tpu.memory_space<vmem>>, vector<1x16x16x32xf32>
    %173 = vector.shape_cast %172 : vector<1x16x16x32xf32> to vector<16x16x32xf32>
    %174 = vector.shape_cast %171 : vector<16x16x32xf32> to vector<1x16x16x32xf32>
    tpu.vector_store %arg11[%c0_118, %c0_119, %c0_120, %c0_121], %174 {strides = array<i32>} : memref<1x16x16x32xf32, #tpu.memory_space<vmem>>, vector<1x16x16x32xf32>,
    return
  }
  func.func @transform_0(%arg0: i32) -> (i32, i32, i32, i32) {
    %c0_i32 = arith.constant 0 : i32
    %c0_i32_0 = arith.constant 0 : i32
    %c0_i32_1 = arith.constant 0 : i32
    %c0_i32_2 = arith.constant 0 : i32
    return %arg0, %c0_i32, %c0_i32_0, %c0_i32_1 : i32, i32, i32, i32
  }
  func.func @transform_1(%arg0: i32) -> (i32, i32, i32, i32) {
    %c0_i32 = arith.constant 0 : i32
    %c0_i32_0 = arith.constant 0 : i32
    %c0_i32_1 = arith.constant 0 : i32
    %c0_i32_2 = arith.constant 0 : i32
    return %arg0, %c0_i32, %c0_i32_0, %c0_i32_1 : i32, i32, i32, i32
  }
  func.func @transform_2(%arg0: i32) -> (i32, i32) {
    %c0_i32 = arith.constant 0 : i32
    %c0_i32_0 = arith.constant 0 : i32
    %c0_i32_1 = arith.constant 0 : i32
    return %c0_i32, %c0_i32_0 : i32, i32
  }
  func.func @transform_3(%arg0: i32) -> (i32, i32) {
    %c0_i32 = arith.constant 0 : i32
    %c0_i32_0 = arith.constant 0 : i32
    %c0_i32_1 = arith.constant 0 : i32
    return %c0_i32, %c0_i32_0 : i32, i32
  }
  func.func @transform_4(%arg0: i32) -> (i32, i32, i32) {
    %c0_i32 = arith.constant 0 : i32
    %c0_i32_0 = arith.constant 0 : i32
    %c0_i32_1 = arith.constant 0 : i32
    %c0_i32_2 = arith.constant 0 : i32
    return %c0_i32, %c0_i32_0, %c0_i32_1 : i32, i32, i32
  }
  func.func @transform_5(%arg0: i32) -> (i32, i32) {
    %c0_i32 = arith.constant 0 : i32
    %c0_i32_0 = arith.constant 0 : i32
    %c0_i32_1 = arith.constant 0 : i32
    return %c0_i32, %c0_i32_0 : i32, i32
  }
  func.func @transform_6(%arg0: i32) -> (i32, i32) {
    %c0_i32 = arith.constant 0 : i32
    %c0_i32_0 = arith.constant 0 : i32
    %c0_i32_1 = arith.constant 0 : i32
    return %c0_i32, %c0_i32_0 : i32, i32
  }
  func.func @transform_7(%arg0: i32) -> (i32, i32) {
    %c0_i32 = arith.constant 0 : i32
    %c0_i32_0 = arith.constant 0 : i32
    %c0_i32_1 = arith.constant 0 : i32
    return %c0_i32, %c0_i32_0 : i32, i32
  }
  func.func @transform_8(%arg0: i32) -> (i32, i32) {
    %c0_i32 = arith.constant 0 : i32
    %c0_i32_0 = arith.constant 0 : i32
    %c0_i32_1 = arith.constant 0 : i32
    return %c0_i32, %c0_i32_0 : i32, i32
  }
  func.func @transform_9(%arg0: i32) -> (i32, i32) {
    %c0_i32 = arith.constant 0 : i32
    %c0_i32_0 = arith.constant 0 : i32
    %c0_i32_1 = arith.constant 0 : i32
    return %c0_i32, %c0_i32_0 : i32, i32
  }
  func.func @transform_10(%arg0: i32) -> (i32, i32, i32, i32) {
    %c0_i32 = arith.constant 0 : i32
    %c0_i32_0 = arith.constant 0 : i32
    %c0_i32_1 = arith.constant 0 : i32
    %c0_i32_2 = arith.constant 0 : i32
    return %arg0, %c0_i32, %c0_i32_0, %c0_i32_1 : i32, i32, i32, i32
  }
}

</mosaic_0001>

<bundles_post_ra>
// kernel: faster_block_ema_forward.3
= control target key start
LH: loop header
LB: loop body
LE: loop exit
PB: predicated region body
PF: predicated region fallthrough
CT: control target
= control target key end

     0   :  { %s1345_s12 = smov 0   ;;  %s1661_s0 = inlined_call_operand.vmem [shape: bf16[512,24], index: 0, kind: input, shape index: {}]   ;;  %s1662_s1 = inlined_call_operand.vmem [shape: bf16[24,32], index: 1, kind: input, shape index: {}]   ;;  %s1663_s2 = inlined_call_operand.vmem [shape: f32[1,32], index: 2, kind: input, shape index: {}]   ;;  %s1664_s3 = inlined_call_operand.vmem [shape: bf16[512,32], index: 3, kind: output, shape index: {}]  }
   0x1 LB: > { %s961_s13 = sadd.s32 4294967295, %s1323_s12   ;;  %p965_p0 = scmp.ge.s32.totalorder %s1323_s12, 1  ;;  %s1323_s12 = sphi %s1345_s12, %s13_s12  }
   0x2   : > { %p138_p1 = scmp.lt.s32.totalorder %s1323_s12, 3 }
   0x4   : > { %p139_p2 = pnand %p965_p0, %p138_p1 }
   0x5   : > { %v1171_v0 = vld [vmem:[%s1662_s1] sm:$0xff] (!%p139_p2)   ;;  %v1172_v1 = vld [vmem:[%s1662_s1 + $0x8] ss:$0 sps:$4 sm:$0xff] (!%p139_p2)   ;;  %vm355_vm0 = vcmask (!%p139_p2), 1043456   ;;  %s966_s18 = sshll.u32 (!%p139_p2), %s961_s13, 5  ;;  %vm306_vm1 = vcmask (!%p139_p2), 195584  }
   0x6   : > { %142 = sbr.rel (%p139_p2) target bundleno = 322 (0x142), region = 32  ;;  %1121 = vmatprep.subr.bf16.mxu0 (!%p139_p2), %v1171_v0  ;;  %1157 = vmatprep.subr.bf16.mxu1 (!%p139_p2), %v1171_v0  ;;  %p163_p3 = scmp.lt.s32.totalorder (!%p139_p2), %s966_s18, 63  ;;  %v357_v2 = vsel (!%p139_p2), %vm355_vm0, %v1172_v1, 0  ;;  %v1404_v19 = vld [vmem:[%s1663_s2] ss:$0 sm:$0xff] (!%p139_p2)  ;;  %vm872_vm2 = vcmask (!%p139_p2), 257024  }
   0x7   : > { %1122 = vmatpush3.bf16.msra.mxu0 (!%p139_p2), %v1171_v0  ;;  %1159 = vmatpush3.bf16.msra.mxu1 (!%p139_p2), %v1171_v0 }
   0x8   : > { %1161 = vmatprep.subr.msk.bf16.mxu0 (!%p139_p2), %vm355_vm0, %v1172_v1  ;;  %1162 = vmatprep.subr.msk.bf16.mxu1 (!%p139_p2), %vm355_vm0, %v1172_v1 }
   0xb   : > { %1124 = vmatpush3.bf16.msra.mxu0 (!%p139_p2), %v357_v2  ;;  %1160 = vmatpush3.bf16.msra.mxu1 (!%p139_p2), %v357_v2 }
   0xd   : > { %s1666_s18 = smov (!%p163_p3, %s966_s18), 63 }
   0xe   : > { %s967_s19 = sshll.u32 %s1666_s18, 2 }
   0xf   : > { %s1367_s22 = scalar_lea.vmem %s1661_s0, %s967_s19  ;;  %s1511_s27 = scalar_lea.vmem %s1664_s3, %s967_s19 }
  0x10   : > { %v1173_v3 = vld [vmem:[%s1367_s22] sm:$0xff]   ;;  %v1175_v5 = vld [vmem:[%s1367_s22 + $0x8] sm:$0xff]   ;;  %v1177_v7 = vld [vmem:[%s1367_s22 + $0x10] sm:$0xff]  }
  0x11   : > { %v1174_v4 = vld [vmem:[%s1367_s22 + $0x40] sm:$0xff]   ;;  %1125 = vmatprep.mubr.msk.bf16.mxu0 %vm306_vm1, %v1173_v3  ;;  %v1176_v6 = vld [vmem:[%s1367_s22 + $0x48] sm:$0xff]   ;;  %v1178_v8 = vld [vmem:[%s1367_s22 + $0x50] sm:$0xff]  }
  0x12   : > { %1141 = vmatprep.mubr.msk.bf16.mxu1 %vm306_vm1, %v1174_v4  ;;  %1126 = vmatmul.mubr.msk.bf16.vlgmr.msra.gmra.mrb[0].mxu0 %vm306_vm1, %v1175_v5  ;;  %v1179_v9 = vld [vmem:[%s1367_s22 + $0x18] sm:$0xff]   ;;  %v1181_v11 = vld [vmem:[%s1367_s22 + $0x20] sm:$0xff]   ;;  %v1183_v13 = vld [vmem:[%s1367_s22 + $0x28] sm:$0xff]  }
  0x13   : > { %1142 = vmatmul.mubr.msk.bf16.vlgmr.msra.gmra.mrb[0].mxu1 %vm306_vm1, %v1176_v6  ;;  %1129 = vmatprep.mubr.msk.bf16.mxu0 %vm306_vm1, %v1177_v7  ;;  %v1180_v10 = vld [vmem:[%s1367_s22 + $0x58] sm:$0xff]   ;;  %v1182_v12 = vld [vmem:[%s1367_s22 + $0x60] sm:$0xff]   ;;  %v1184_v14 = vld [vmem:[%s1367_s22 + $0x68] sm:$0xff]  }
  0x14   : > { %1145 = vmatprep.mubr.msk.bf16.mxu1 %vm306_vm1, %v1178_v8  ;;  %v1185_v15 = vld [vmem:[%s1367_s22 + $0x30] sm:$0xff]   ;;  %v1187_v17 = vld [vmem:[%s1367_s22 + $0x38] sm:$0xff]  }
  0x15   : > { %v1186_v16 = vld [vmem:[%s1367_s22 + $0x70] sm:$0xff]   ;;  %v1188_v18 = vld [vmem:[%s1367_s22 + $0x78] sm:$0xff]  }
  0x1a   : > { %1130 = vmatmul.mubr.msk.bf16.gmra.mrb[4].mxu0 %vm306_vm1, %v1179_v9 }
  0x1b   : > { %1146 = vmatmul.mubr.msk.bf16.gmra.mrb[4].mxu1 %vm306_vm1, %v1180_v10  ;;  %1133 = vmatprep.mubr.msk.bf16.mxu0 %vm306_vm1, %v1181_v11 }
  0x1c   : > { %1149 = vmatprep.mubr.msk.bf16.mxu1 %vm306_vm1, %v1182_v12 }
  0x22   : > { %1134 = vmatmul.mubr.msk.bf16.gmra.mrb[8].mxu0 %vm306_vm1, %v1183_v13 }
  0x23   : > { %1150 = vmatmul.mubr.msk.bf16.gmra.mrb[8].mxu1 %vm306_vm1, %v1184_v14  ;;  %1137 = vmatprep.mubr.msk.bf16.mxu0 %vm306_vm1, %v1185_v15 }
  0x24   : > { %1153 = vmatprep.mubr.msk.bf16.mxu1 %vm306_vm1, %v1186_v16 }
  0x2a   : > { %1138 = vmatmul.mubr.msk.bf16.gmra.mrb[12].mxu0 %vm306_vm1, %v1187_v17 }
  0x2b   : > { %1154 = vmatmul.mubr.msk.bf16.gmra.mrb[12].mxu1 %vm306_vm1, %v1188_v18 }
  0xe5   : > { %v1127_v20 = vpop.f32.mrb[0].mxu0 }
  0xe6   : > { %v1407_v21 = vadd.f32 %v1127_v20, %v1404_v19  ;;  %v1143_v22 = vpop.f32.mrb[0].mxu1  ;;  %v393_v23 = vpop.f32.mrb[1].mxu0 }
  0xe7   : > { %v1410_v24 = vadd.f32 %v1143_v22, %v1404_v19  ;;  %v1413_v25 = vadd.f32 %v1404_v19, %v393_v23  ;;  %v457_v26 = vpop.f32.mrb[1].mxu1  ;;  %v1128_v27 = vpop.f32.mrb[2].mxu0 }
  0xe8   : > { %v1007_v28 = vmul.f32 -1.442695, %v1407_v21  ;;  %v1417_v29 = vadd.f32 %v1404_v19, %v457_v26  ;;  %v1420_v30 = vadd.f32 %v1128_v27, %v1404_v19  ;;  %v1144_v31 = vpop.f32.mrb[2].mxu1  ;;  %v396_v32 = vpop.f32.mrb[3].mxu0 }
  0xe9   : > { %v1023_v33 = vmul.f32 -1.442695, %v1410_v24  ;;  %v1005_v34 = vmul.f32 -1.442695, %v1413_v25  ;;  %v1425_v35 = vadd.f32 %v1144_v31, %v1404_v19  ;;  %v1428_v36 = vadd.f32 %v1404_v19, %v396_v32  ;;  %v460_v37 = vpop.f32.mrb[3].mxu1 }
  0xea   : > { %1189 = vpow2.f32 %v1007_v28  ;;  %v1021_v38 = vmul.f32 -1.442695, %v1417_v29  ;;  %v1008_v39 = vmul.f32 -1.442695, %v1420_v30  ;;  %v1433_v40 = vadd.f32 %v1404_v19, %v460_v37 }
  0xeb   : > { %1191 = vpow2.f32 %v1023_v33  ;;  %v1024_v41 = vmul.f32 -1.442695, %v1425_v35  ;;  %v1006_v42 = vmul.f32 -1.442695, %v1428_v36 }
  0xec   : > { %1193 = vpow2.f32 %v1005_v34  ;;  %v1022_v43 = vmul.f32 -1.442695, %v1433_v40 }
  0xed   : > { %1195 = vpow2.f32 %v1021_v38  ;;  %v1131_v44 = vpop.f32.mrb[4].mxu0 }
  0xee   : > { %1197 = vpow2.f32 %v1008_v39  ;;  %v1439_v45 = vadd.f32 %v1131_v44, %v1404_v19  ;;  %v1147_v46 = vpop.f32.mrb[4].mxu1  ;;  %v409_v47 = vpop.f32.mrb[5].mxu0 }
  0xef   : > { %1199 = vpow2.f32 %v1024_v41  ;;  %v1442_v48 = vadd.f32 %v1147_v46, %v1404_v19  ;;  %v1445_v49 = vadd.f32 %v1404_v19, %v409_v47  ;;  %v473_v50 = vpop.f32.mrb[5].mxu1  ;;  %v1132_v51 = vpop.f32.mrb[6].mxu0 }
  0xf0   : > { %1201 = vpow2.f32 %v1006_v42  ;;  %v1011_v52 = vmul.f32 -1.442695, %v1439_v45  ;;  %v1449_v53 = vadd.f32 %v1404_v19, %v473_v50  ;;  %v1452_v54 = vadd.f32 %v1132_v51, %v1404_v19  ;;  %v1148_v55 = vpop.f32.mrb[6].mxu1  ;;  %v412_v56 = vpop.f32.mrb[7].mxu0 }
  0xf1   : > { %1203 = vpow2.f32 %v1022_v43  ;;  %v1027_v57 = vmul.f32 -1.442695, %v1442_v48  ;;  %v1009_v58 = vmul.f32 -1.442695, %v1445_v49  ;;  %v476_v59 = vpop.f32.mrb[7].mxu1  ;;  %v1461_v20 = vadd.f32 %v1148_v55, %v1404_v19 }
  0xf2   : > { %1205 = vpow2.f32 %v1011_v52  ;;  %v1025_v60 = vmul.f32 -1.442695, %v1449_v53  ;;  %v1012_v61 = vmul.f32 -1.442695, %v1452_v54  ;;  %v1464_v26 = vadd.f32 %v1404_v19, %v412_v56 }
  0xf3   : > { %1207 = vpow2.f32 %v1027_v57  ;;  %v1467_v31 = vadd.f32 %v1404_v19, %v476_v59  ;;  %v1028_v42 = vmul.f32 -1.442695, %v1461_v20 }
  0xf4   : > { %v1190_v62 = vpop.eup %1189  ;;  %1209 = vpow2.f32 %v1009_v58  ;;  %v1010_v51 = vmul.f32 -1.442695, %v1464_v26 }
  0xf5   : > { %v1192_v63 = vpop.eup %1191  ;;  %v618_v0 = vadd.f32 1.0, %v1190_v62  ;;  %1211 = vpow2.f32 %v1025_v60  ;;  %v1135_v1 = vpop.f32.mrb[8].mxu0  ;;  %v1026_v59 = vmul.f32 -1.442695, %v1467_v31 }
  0xf6   : > { %v1194_v2 = vpop.eup %1193  ;;  %v634_v3 = vadd.f32 1.0, %v1192_v63  ;;  %1213 = vpow2.f32 %v1012_v61  ;;  %v1151_v4 = vpop.f32.mrb[8].mxu1  ;;  %v1470_v34 = vadd.f32 %v1135_v1, %v1404_v19 }
  0xf7   : > { %v425_v5 = vpop.f32.mrb[9].mxu0  ;;  %v1196_v6 = vpop.eup %1195  ;;  %1215 = vrcp.f32 %v618_v0  ;;  %v616_v7 = vadd.f32 1.0, %v1194_v2  ;;  %v1473_v37 = vadd.f32 %v1151_v4, %v1404_v19 }
  0xf8   : > { %v489_v8 = vpop.f32.mrb[9].mxu1  ;;  %v1136_v9 = vpop.f32.mrb[10].mxu0  ;;  %1217 = vrcp.f32 %v634_v3  ;;  %v632_v11 = vadd.f32 1.0, %v1196_v6  ;;  %v1477_v43 = vadd.f32 %v1404_v19, %v425_v5  ;;  %v1015_v1 = vmul.f32 -1.442695, %v1470_v34 }
  0xf9   : > { %v1198_v10 = vpop.eup %1197  ;;  %v1152_v12 = vpop.f32.mrb[10].mxu1  ;;  %1219 = vrcp.f32 %v616_v7  ;;  %v1483_v52 = vadd.f32 %v1404_v19, %v489_v8  ;;  %v1491_v60 = vadd.f32 %v1136_v9, %v1404_v19  ;;  %v1031_v2 = vmul.f32 -1.442695, %v1473_v37 }
  0xfa   : > { %v428_v13 = vpop.f32.mrb[11].mxu0  ;;  %v1200_v14 = vpop.eup %1199  ;;  %v619_v15 = vadd.f32 1.0, %v1198_v10  ;;  %1221 = vrcp.f32 %v632_v11  ;;  %v1013_v6 = vmul.f32 -1.442695, %v1477_v43  ;;  %v1504_v7 = vadd.f32 %v1152_v12, %v1404_v19 }
  0xfb   : > { %v1458_v16 = vpop.f32.mrb[11].mxu1  ;;  %v1202_v17 = vpop.eup %1201  ;;  %v635_v18 = vadd.f32 1.0, %v1200_v14  ;;  %v1029_v10 = vmul.f32 -1.442695, %v1483_v52 }
  0xfc   : > { %v1204_v22 = vpop.eup %1203  ;;  %1223 = vrcp.f32 %v619_v15  ;;  %v617_v23 = vadd.f32 1.0, %v1202_v17  ;;  %v1016_v15 = vmul.f32 -1.442695, %v1491_v60 }
  0xfd   : > { %v1206_v27 = vpop.eup %1205  ;;  %1225 = vrcp.f32 %v635_v18  ;;  %v633_v28 = vadd.f32 1.0, %v1204_v22  ;;  %v1139_v38 = vpop.f32.mrb[12].mxu0 }
  0xfe   : > { %v1208_v32 = vpop.eup %1207  ;;  %1227 = vrcp.f32 %v617_v23  ;;  %v622_v33 = vadd.f32 1.0, %v1206_v27  ;;  %v1155_v44 = vpop.f32.mrb[12].mxu1 }
  0xff   : > { %v1210_v39 = vpop.eup %1209  ;;  %1229 = vrcp.f32 %v633_v28  ;;  %v638_v41 = vadd.f32 1.0, %v1208_v32  ;;  %v1479_v46 = vpop.f32.mrb[13].mxu0 }
 0x100   : > { %v1212_v47 = vpop.eup %1211  ;;  %1231 = vrcp.f32 %v622_v33  ;;  %v620_v50 = vadd.f32 1.0, %v1210_v39  ;;  %v1485_v55 = vpop.f32.mrb[13].mxu1 }
 0x101   : > { %v1487_v56 = vpop.f32.mrb[14].mxu0  ;;  %v1214_v57 = vpop.eup %1213  ;;  %1233 = vrcp.f32 %v638_v41  ;;  %v636_v58 = vadd.f32 1.0, %v1212_v47  ;;  %v1539_v41 = vadd.f32 %v1155_v44, %v1404_v19 }
 0x102   : > { %v1493_v61 = vpop.f32.mrb[14].mxu1  ;;  %v1495_v62 = vpop.f32.mrb[15].mxu0  ;;  %1235 = vrcp.f32 %v620_v50  ;;  %v623_v0 = vadd.f32 1.0, %v1214_v57 }
 0x103   : > { %v1216_v63 = vpop.eup %1215  ;;  %v1499_v3 = vpop.f32.mrb[15].mxu1  ;;  %1237 = vrcp.f32 %v636_v58 }
 0x104   : > { %v1218_v4 = vpop.eup %1217  ;;  %v714_v5 = vmul.f32 %v1216_v63, %v1407_v21  ;;  %1239 = vrcp.f32 %v623_v0  ;;  %v1516_v21 = vadd.f32 %v1404_v19, %v428_v13 }
 0x105   : > { %v1220_v8 = vpop.eup %1219  ;;  %v730_v9 = vmul.f32 %v1218_v4, %v1410_v24  ;;  %1241 = vpow2.f32 %v1028_v42  ;;  %v1523_v24 = vadd.f32 %v1404_v19, %v1458_v16  ;;  %v1533_v16 = vadd.f32 %v1139_v38, %v1404_v19 }
 0x106   : > { %v1222_v11 = vpop.eup %1221  ;;  %v1073_v14 = vpack.c.bf16 %v714_v5, %v714_v5  ;;  %v712_v12 = vmul.f32 %v1220_v8, %v1413_v25  ;;  %1243 = vpow2.f32 %v1010_v51  ;;  %v1032_v25 = vmul.f32 -1.442695, %v1504_v7 }
 0x107   : > { %v1224_v17 = vpop.eup %1223  ;;  %v1089_v18 = vpack.c.bf16 %v730_v9, %v730_v9  ;;  %v728_v22 = vmul.f32 %v1222_v11, %v1417_v29  ;;  %1245 = vpow2.f32 %v1026_v59  ;;  %v1014_v38 = vmul.f32 -1.442695, %v1516_v21 }
 0x108   : > { %v1226_v13 = vpop.eup %1225  ;;  %875 = vst.msk [vmem:[%s1511_s27 + $0x8] sm:$0xf] %vm872_vm2, %v1073_v14  ;;  %v1071_v23 = vpack.c.bf16 %v712_v12, %v712_v12  ;;  %v715_v27 = vmul.f32 %v1224_v17, %v1420_v30  ;;  %1247 = vpow2.f32 %v1015_v1  ;;  %v1030_v44 = vmul.f32 -1.442695, %v1523_v24 }
 0x109   : > { %v1228_v28 = vpop.eup %1227  ;;  %891 = vst.msk [vmem:[%s1511_s27 + $0x48] sm:$0xf] %vm872_vm2, %v1089_v18  ;;  %v1087_v29 = vpack.c.bf16 %v728_v22, %v728_v22  ;;  %v731_v32 = vmul.f32 %v1226_v13, %v1425_v35  ;;  %1249 = vpow2.f32 %v1031_v2  ;;  %v1019_v59 = vmul.f32 -1.442695, %v1533_v16 }
 0x10a   : > { %v1230_v33 = vpop.eup %1229  ;;  %873 = vst.msk [vmem:[%s1511_s27] sm:$0xf] %vm872_vm2, %v1071_v23  ;;  %v1074_v39 = vpack.c.bf16 %v715_v27, %v715_v27  ;;  %v713_v30 = vmul.f32 %v1228_v28, %v1428_v36  ;;  %1251 = vpow2.f32 %v1013_v6  ;;  %v1035_v1 = vmul.f32 -1.442695, %v1539_v41 }
 0x10b   : > { %v1232_v42 = vpop.eup %1231  ;;  %889 = vst.msk [vmem:[%s1511_s27 + $0x40] sm:$0xf] %vm872_vm2, %v1087_v29  ;;  %v1090_v35 = vpack.c.bf16 %v731_v32, %v731_v32  ;;  %v729_v47 = vmul.f32 %v1230_v33, %v1433_v40  ;;  %1253 = vpow2.f32 %v1029_v10  ;;  %v1573_v32 = vadd.f32 %v1404_v19, %v1479_v46 }
 0x10c   : > { %v1234_v50 = vpop.eup %1233  ;;  %876 = vst.msk [vmem:[%s1511_s27 + $0xc] sm:$0xf] %vm872_vm2, %v1074_v39  ;;  %v1072_v51 = vpack.c.bf16 %v713_v30, %v713_v30  ;;  %v718_v36 = vmul.f32 %v1232_v42, %v1439_v45  ;;  %1255 = vpow2.f32 %v1016_v15  ;;  %v1577_v30 = vadd.f32 %v1404_v19, %v1485_v55 }
 0x10d   : > { %v1236_v57 = vpop.eup %1235  ;;  %892 = vst.msk [vmem:[%s1511_s27 + $0x4c] sm:$0xf] %vm872_vm2, %v1090_v35  ;;  %v1088_v58 = vpack.c.bf16 %v729_v47, %v729_v47  ;;  %v734_v40 = vmul.f32 %v1234_v50, %v1442_v48  ;;  %1257 = vpow2.f32 %v1032_v25  ;;  %v1581_v47 = vadd.f32 %v1487_v56, %v1404_v19 }
 0x10e   : > { %v1238_v63 = vpop.eup %1237  ;;  %874 = vst.msk [vmem:[%s1511_s27 + $0x4] sm:$0xf] %vm872_vm2, %v1072_v51  ;;  %v1077_v0 = vpack.c.bf16 %v718_v36, %v718_v36  ;;  %v716_v45 = vmul.f32 %v1236_v57, %v1445_v49  ;;  %1259 = vpow2.f32 %v1014_v38  ;;  %v1585_v46 = vadd.f32 %v1493_v61, %v1404_v19 }
 0x10f   : > { %v1240_v2 = vpop.eup %1239  ;;  %890 = vst.msk [vmem:[%s1511_s27 + $0x44] sm:$0xf] %vm872_vm2, %v1088_v58  ;;  %v1093_v4 = vpack.c.bf16 %v734_v40, %v734_v40  ;;  %v732_v48 = vmul.f32 %v1238_v63, %v1449_v53  ;;  %1261 = vpow2.f32 %v1030_v44  ;;  %v1017_v55 = vmul.f32 -1.442695, %v1573_v32 }
 0x110   : > { %v1242_v5 = vpop.eup %1241  ;;  %879 = vst.msk [vmem:[%s1511_s27 + $0x18] sm:$0xf] %vm872_vm2, %v1077_v0  ;;  %v1075_v6 = vpack.c.bf16 %v716_v45, %v716_v45  ;;  %v719_v8 = vmul.f32 %v1240_v2, %v1452_v54  ;;  %1263 = vpow2.f32 %v1019_v59  ;;  %v1590_v44 = vadd.f32 %v1404_v19, %v1495_v62 }
 0x111   : > { %v1244_v49 = vpop.eup %1243  ;;  %895 = vst.msk [vmem:[%s1511_s27 + $0x58] sm:$0xf] %vm872_vm2, %v1093_v4  ;;  %v1091_v9 = vpack.c.bf16 %v732_v48, %v732_v48  ;;  %v639_v10 = vadd.f32 1.0, %v1242_v5  ;;  %1265 = vpow2.f32 %v1035_v1  ;;  %v1033_v58 = vmul.f32 -1.442695, %v1577_v30 }
 0x112   : > { %v1246_v11 = vpop.eup %1245  ;;  %877 = vst.msk [vmem:[%s1511_s27 + $0x10] sm:$0xf] %vm872_vm2, %v1075_v6  ;;  %v1078_v53 = vpack.c.bf16 %v719_v8, %v719_v8  ;;  %v621_v14 = vadd.f32 1.0, %v1244_v49  ;;  %v1595_v40 = vadd.f32 %v1404_v19, %v1499_v3  ;;  %v1020_v63 = vmul.f32 -1.442695, %v1581_v47 }
 0x113   : > { %v1248_v12 = vpop.eup %1247  ;;  %893 = vst.msk [vmem:[%s1511_s27 + $0x50] sm:$0xf] %vm872_vm2, %v1091_v9  ;;  %1267 = vrcp.f32 %v639_v10  ;;  %v637_v15 = vadd.f32 1.0, %v1246_v11  ;;  %v1036_v45 = vmul.f32 -1.442695, %v1585_v46 }
 0x114   : > { %v1250_v54 = vpop.eup %1249  ;;  %880 = vst.msk [vmem:[%s1511_s27 + $0x1c] sm:$0xf] %vm872_vm2, %v1078_v53  ;;  %1269 = vrcp.f32 %v621_v14  ;;  %v626_v17 = vadd.f32 1.0, %v1248_v12  ;;  %v1018_v19 = vmul.f32 -1.442695, %v1590_v44 }
 0x115   : > { %v1252_v18 = vpop.eup %1251  ;;  %1271 = vrcp.f32 %v637_v15  ;;  %v642_v22 = vadd.f32 1.0, %v1250_v54  ;;  %v1034_v5 = vmul.f32 -1.442695, %v1595_v40 }
 0x116   : > { %v1254_v13 = vpop.eup %1253  ;;  %1273 = vrcp.f32 %v626_v17  ;;  %v624_v23 = vadd.f32 1.0, %v1252_v18 }
 0x117   : > { %v1256_v27 = vpop.eup %1255  ;;  %1275 = vrcp.f32 %v642_v22  ;;  %v640_v25 = vadd.f32 1.0, %v1254_v13 }
 0x118   : > { %v1258_v28 = vpop.eup %1257  ;;  %1277 = vrcp.f32 %v624_v23  ;;  %v627_v29 = vadd.f32 1.0, %v1256_v27 }
 0x119   : > { %v1260_v33 = vpop.eup %1259  ;;  %1279 = vrcp.f32 %v640_v25  ;;  %v643_v39 = vadd.f32 1.0, %v1258_v28 }
 0x11a   : > { %v1262_v42 = vpop.eup %1261  ;;  %1281 = vrcp.f32 %v627_v29  ;;  %v625_v35 = vadd.f32 1.0, %v1260_v33 }
 0x11b   : > { %v1264_v38 = vpop.eup %1263  ;;  %1283 = vrcp.f32 %v643_v39  ;;  %v641_v50 = vadd.f32 1.0, %v1262_v42 }
 0x11c   : > { %v1266_v51 = vpop.eup %1265  ;;  %1285 = vrcp.f32 %v625_v35  ;;  %v630_v36 = vadd.f32 1.0, %v1264_v38 }
 0x11d   : > { %v1268_v57 = vpop.eup %1267  ;;  %1287 = vrcp.f32 %v641_v50  ;;  %v646_v56 = vadd.f32 1.0, %v1266_v51 }
 0x11e   : > { %v1270_v61 = vpop.eup %1269  ;;  %v735_v59 = vmul.f32 %v1268_v57, %v1461_v20  ;;  %1289 = vrcp.f32 %v630_v36 }
 0x11f   : > { %v1272_v0 = vpop.eup %1271  ;;  %v717_v62 = vmul.f32 %v1270_v61, %v1464_v26  ;;  %1291 = vrcp.f32 %v646_v56 }
 0x120   : > { %v1274_v1 = vpop.eup %1273  ;;  %v1094_v2 = vpack.c.bf16 %v735_v59, %v735_v59  ;;  %v733_v4 = vmul.f32 %v1272_v0, %v1467_v31  ;;  %1293 = vpow2.f32 %v1017_v55 }
 0x121   : > { %v1276_v3 = vpop.eup %1275  ;;  %v1076_v20 = vpack.c.bf16 %v717_v62, %v717_v62  ;;  %v722_v48 = vmul.f32 %v1274_v1, %v1470_v34  ;;  %1295 = vpow2.f32 %v1033_v58 }
 0x122   : > { %v1278_v26 = vpop.eup %1277  ;;  %896 = vst.msk [vmem:[%s1511_s27 + $0x5c] sm:$0xf] %vm872_vm2, %v1094_v2  ;;  %v1092_v6 = vpack.c.bf16 %v733_v4, %v733_v4  ;;  %v738_v8 = vmul.f32 %v1276_v3, %v1473_v37  ;;  %1297 = vpow2.f32 %v1020_v63 }
 0x123   : > { %v1280_v31 = vpop.eup %1279  ;;  %878 = vst.msk [vmem:[%s1511_s27 + $0x14] sm:$0xf] %vm872_vm2, %v1076_v20  ;;  %v1081_v49 = vpack.c.bf16 %v722_v48, %v722_v48  ;;  %v720_v9 = vmul.f32 %v1278_v26, %v1477_v43  ;;  %1299 = vpow2.f32 %v1036_v45 }
 0x124   : > { %v1282_v34 = vpop.eup %1281  ;;  %894 = vst.msk [vmem:[%s1511_s27 + $0x54] sm:$0xf] %vm872_vm2, %v1092_v6  ;;  %v1097_v10 = vpack.c.bf16 %v738_v8, %v738_v8  ;;  %v736_v11 = vmul.f32 %v1280_v31, %v1483_v52  ;;  %1301 = vpow2.f32 %v1018_v19 }
 0x125   : > { %v1284_v53 = vpop.eup %1283  ;;  %883 = vst.msk [vmem:[%s1511_s27 + $0x28] sm:$0xf] %vm872_vm2, %v1081_v49  ;;  %v1079_v37 = vpack.c.bf16 %v720_v9, %v720_v9  ;;  %v723_v14 = vmul.f32 %v1282_v34, %v1491_v60  ;;  %1303 = vpow2.f32 %v1034_v5 }
 0x126   : > { %v1286_v12 = vpop.eup %1285  ;;  %899 = vst.msk [vmem:[%s1511_s27 + $0x68] sm:$0xf] %vm872_vm2, %v1097_v10  ;;  %v1095_v43 = vpack.c.bf16 %v736_v11, %v736_v11  ;;  %v739_v15 = vmul.f32 %v1284_v53, %v1504_v7 }
 0x127   : > { %v1288_v54 = vpop.eup %1287  ;;  %881 = vst.msk [vmem:[%s1511_s27 + $0x20] sm:$0xf] %vm872_vm2, %v1079_v37  ;;  %v1082_v52 = vpack.c.bf16 %v723_v14, %v723_v14  ;;  %v721_v17 = vmul.f32 %v1286_v12, %v1516_v21 }
 0x128   : > { %v1290_v18 = vpop.eup %1289  ;;  %897 = vst.msk [vmem:[%s1511_s27 + $0x60] sm:$0xf] %vm872_vm2, %v1095_v43  ;;  %v1098_v60 = vpack.c.bf16 %v739_v15, %v739_v15  ;;  %v737_v22 = vmul.f32 %v1288_v54, %v1523_v24 }
 0x129   : > { %v1292_v13 = vpop.eup %1291  ;;  %884 = vst.msk [vmem:[%s1511_s27 + $0x2c] sm:$0xf] %vm872_vm2, %v1082_v52  ;;  %v1080_v23 = vpack.c.bf16 %v721_v17, %v721_v17  ;;  %v726_v7 = vmul.f32 %v1290_v18, %v1533_v16 }
 0x12a   : > { %v1294_v27 = vpop.eup %1293  ;;  %900 = vst.msk [vmem:[%s1511_s27 + $0x6c] sm:$0xf] %vm872_vm2, %v1098_v60  ;;  %v1096_v25 = vpack.c.bf16 %v737_v22, %v737_v22  ;;  %v742_v21 = vmul.f32 %v1292_v13, %v1539_v41 }
 0x12b   : > { %v1296_v28 = vpop.eup %1295  ;;  %882 = vst.msk [vmem:[%s1511_s27 + $0x24] sm:$0xf] %vm872_vm2, %v1080_v23  ;;  %v1085_v29 = vpack.c.bf16 %v726_v7, %v726_v7  ;;  %v628_v33 = vadd.f32 1.0, %v1294_v27 }
 0x12c   : > { %v1298_v24 = vpop.eup %1297  ;;  %898 = vst.msk [vmem:[%s1511_s27 + $0x64] sm:$0xf] %vm872_vm2, %v1096_v25  ;;  %v1101_v39 = vpack.c.bf16 %v742_v21, %v742_v21  ;;  %v644_v42 = vadd.f32 1.0, %v1296_v28 }
 0x12d   : > { %v1300_v35 = vpop.eup %1299  ;;  %887 = vst.msk [vmem:[%s1511_s27 + $0x38] sm:$0xf] %vm872_vm2, %v1085_v29  ;;  %1305 = vrcp.f32 %v628_v33  ;;  %v631_v16 = vadd.f32 1.0, %v1298_v24 }
 0x12e   : > { %v1302_v38 = vpop.eup %1301  ;;  %903 = vst.msk [vmem:[%s1511_s27 + $0x78] sm:$0xf] %vm872_vm2, %v1101_v39  ;;  %1307 = vrcp.f32 %v644_v42  ;;  %v647_v41 = vadd.f32 1.0, %v1300_v35 }
 0x12f   : > { %v1304_v50 = vpop.eup %1303  ;;  %1309 = vrcp.f32 %v631_v16  ;;  %v629_v51 = vadd.f32 1.0, %v1302_v38 }
 0x130   : > { %1311 = vrcp.f32 %v647_v41  ;;  %v645_v36 = vadd.f32 1.0, %v1304_v50 }
 0x131   : > { %1313 = vrcp.f32 %v629_v51 }
 0x132   : > { %1315 = vrcp.f32 %v645_v36 }
 0x137   : > { %v1306_v55 = vpop.eup %1305 }
 0x138   : > { %v1308_v57 = vpop.eup %1307  ;;  %v724_v56 = vmul.f32 %v1306_v55, %v1573_v32 }
 0x139   : > { %v1310_v58 = vpop.eup %1309  ;;  %v740_v61 = vmul.f32 %v1308_v57, %v1577_v30 }
 0x13a   : > { %v1312_v59 = vpop.eup %1311  ;;  %v1083_v63 = vpack.c.bf16 %v724_v56, %v724_v56  ;;  %v727_v0 = vmul.f32 %v1310_v58, %v1581_v47 }
 0x13b   : > { %v1314_v62 = vpop.eup %1313  ;;  %v1099_v45 = vpack.c.bf16 %v740_v61, %v740_v61  ;;  %v743_v1 = vmul.f32 %v1312_v59, %v1585_v46 }
 0x13c   : > { %v1316_v2 = vpop.eup %1315  ;;  %885 = vst.msk [vmem:[%s1511_s27 + $0x30] sm:$0xf] %vm872_vm2, %v1083_v63  ;;  %v1086_v4 = vpack.c.bf16 %v727_v0, %v727_v0  ;;  %v725_v32 = vmul.f32 %v1314_v62, %v1590_v44 }
 0x13d   : > { %901 = vst.msk [vmem:[%s1511_s27 + $0x70] sm:$0xf] %vm872_vm2, %v1099_v45  ;;  %v1102_v30 = vpack.c.bf16 %v743_v1, %v743_v1  ;;  %v741_v19 = vmul.f32 %v1316_v2, %v1595_v40 }
 0x13e   : > { %888 = vst.msk [vmem:[%s1511_s27 + $0x3c] sm:$0xf] %vm872_vm2, %v1086_v4  ;;  %v1084_v3 = vpack.c.bf16 %v725_v32, %v725_v32 }
 0x13f   : > { %904 = vst.msk [vmem:[%s1511_s27 + $0x7c] sm:$0xf] %vm872_vm2, %v1102_v30  ;;  %v1100_v47 = vpack.c.bf16 %v741_v19, %v741_v19 }
 0x140   : > { %886 = vst.msk [vmem:[%s1511_s27 + $0x34] sm:$0xf] %vm872_vm2, %v1084_v3 }
 0x141   : > { %902 = vst.msk [vmem:[%s1511_s27 + $0x74] sm:$0xf] %vm872_vm2, %v1100_v47 }
 0x142 PF: > { %s13_s12 = sadd.s32 1, %s1323_s12  }
 0x143   : > { %p10_p4 = scmp.ge.s32.totalorder %s13_s12, 4  }
 0x145   :  { %12 = sbr.rel (!%p10_p4) target bundleno = 1 (0x1), region = 62 }

// kernel: faster_block_ema_forward.4
= control target key start
LH: loop header
LB: loop body
LE: loop exit
PB: predicated region body
PF: predicated region fallthrough
CT: control target
= control target key end

     0   :  { %s1765_s15 = smov 0   ;;  %s2100_s0 = inlined_call_operand.vmem [shape: bf16[512,96], index: 0, kind: input, shape index: {}]   ;;  %s2101_s1 = inlined_call_operand.vmem [shape: bf16[96,64], index: 1, kind: input, shape index: {}]   ;;  %s2102_s2 = inlined_call_operand.vmem [shape: f32[1,64], index: 2, kind: input, shape index: {}]   ;;  %s2103_s3 = inlined_call_operand.vmem [shape: bf16[64,32], index: 3, kind: input, shape index: {}]   ;;  %s2104_s4 = inlined_call_operand.vmem [shape: bf16[512,32], index: 4, kind: output, shape index: {}]  }
   0x1 LB: > { %s1278_s16 = sadd.s32 4294967295, %s1738_s15   ;;  %p1282_p0 = scmp.ge.s32.totalorder %s1738_s15, 1  ;;  %s1738_s15 = sphi %s1765_s15, %s14_s15  }
   0x2   : > { %p163_p1 = scmp.lt.s32.totalorder %s1738_s15, 3 }
   0x4   : > { %p164_p2 = pnand %p1282_p0, %p163_p1 }
   0x5   : > { %v1578_v0 = vld [vmem:[%s2101_s1] sm:$0xff] (!%p164_p2)   ;;  %s1283_s19 = sshll.u32 (!%p164_p2), %s1278_s16, 5  ;;  %v1579_v1 = vld [vmem:[%s2101_s1 + $0x8] sm:$0xff] (!%p164_p2)   ;;  %v1580_v2 = vld [vmem:[%s2101_s1 + $0x10] sm:$0xff] (!%p164_p2)   ;;  %vm369_vm0 = vcmask (!%p164_p2), 785408   ;;  %vm851_vm1 = vcmask (!%p164_p2), 523264  }
   0x6   : > { %167 = sbr.rel (%p164_p2) target bundleno = 555 (0x22b), region = 36  ;;  %p190_p3 = scmp.lt.s32.totalorder (!%p164_p2), %s1283_s19, 63  ;;  %1486 = vmatprep.subr.bf16.mxu0 (!%p164_p2), %v1578_v0  ;;  %v1581_v4 = vld [vmem:[%s2101_s1 + $0x18] sm:$0xff] (!%p164_p2)   ;;  %v1582_v5 = vld [vmem:[%s2101_s1 + $0x20] sm:$0xff] (!%p164_p2)   ;;  %v1583_v6 = vld [vmem:[%s2101_s1 + $0x28] sm:$0xff] (!%p164_p2)   ;;  %vm1189_vm2 = vcmask (!%p164_p2), 257024  }
   0x7   : > { %1487 = vmatpush3.bf16.msra.mxu0 (!%p164_p2), %v1578_v0  ;;  %v1600_v22 = vld [vmem:[%s2103_s3] sm:$0xff] (!%p164_p2)   ;;  %v1601_v23 = vld [vmem:[%s2103_s3 + $0x8] sm:$0xff] (!%p164_p2)   ;;  %v1602_v24 = vld [vmem:[%s2103_s3 + $0x10] sm:$0xff] (!%p164_p2)  }
   0x8   : > { %1488 = vmatprep.subr.bf16.mxu0 (!%p164_p2), %v1579_v1  ;;  %1530 = vmatprep.subr.bf16.mxu1 (!%p164_p2), %v1600_v22  ;;  %v1603_v25 = vld [vmem:[%s2103_s3 + $0x18] sm:$0xff] (!%p164_p2)   ;;  %v1848_v26 = vld [vmem:[%s2102_s2] ss:$0 sm:$0xff] (!%p164_p2) }
   0x9   : > { %1531 = vmatpush3.bf16.msra.mxu1 (!%p164_p2), %v1600_v22 }
   0xa   : > { %1532 = vmatprep.subr.bf16.mxu1 (!%p164_p2), %v1601_v23 }
   0xb   : > { %1489 = vmatpush3.bf16.msra.mxu0 (!%p164_p2), %v1579_v1 }
   0xc   : > { %1490 = vmatprep.subr.bf16.mxu0 (!%p164_p2), %v1580_v2 }
   0xd   : > { %s2106_s19 = smov (!%p190_p3, %s1283_s19), 63  ;;  %1533 = vmatpush3.bf16.msra.mxu1 %v1601_v23 }
   0xe   : > { %s1284_s24 = sshll.u32 %s2106_s19, 2  ;;  %1534 = vmatprep.subr.bf16.mxu1 %v1602_v24 }
   0xf   : > { %s1790_s27 = scalar_lea.vmem %s2100_s0, %s1284_s24  ;;  %1491 = vmatpush3.bf16.msra.mxu0 %v1580_v2  ;;  %s2031_s22 = scalar_lea.vmem %s2104_s4, %s1284_s24 }
  0x10   : > { %v1584_v3 = vld [vmem:[%s1790_s27] sm:$0xff]   ;;  %1492 = vmatprep.subr.bf16.mxu0 %v1581_v4  ;;  %v1585_v7 = vld [vmem:[%s1790_s27 + $0x8] sm:$0xff]   ;;  %v1586_v8 = vld [vmem:[%s1790_s27 + $0x10] sm:$0xff]  }
  0x11   : > { %1498 = vmatprep.mubr.msk.bf16.mxu0 %vm369_vm0, %v1584_v3  ;;  %v1587_v9 = vld [vmem:[%s1790_s27 + $0x18] sm:$0xff]   ;;  %v1588_v10 = vld [vmem:[%s1790_s27 + $0x20] sm:$0xff]   ;;  %v1589_v11 = vld [vmem:[%s1790_s27 + $0x28] sm:$0xff]   ;;  %1535 = vmatpush3.bf16.msra.mxu1 %v1602_v24 }
  0x12   : > { %v1590_v12 = vld [vmem:[%s1790_s27 + $0x30] sm:$0xff]   ;;  %v1591_v13 = vld [vmem:[%s1790_s27 + $0x38] sm:$0xff]   ;;  %v1592_v14 = vld [vmem:[%s1790_s27 + $0x40] sm:$0xff]   ;;  %1536 = vmatprep.subr.bf16.mxu1 %v1603_v25 }
  0x13   : > { %1493 = vmatpush3.bf16.msra.mxu0 %v1581_v4  ;;  %v1593_v15 = vld [vmem:[%s1790_s27 + $0x48] sm:$0xff]   ;;  %v1594_v16 = vld [vmem:[%s1790_s27 + $0x50] sm:$0xff]   ;;  %v1595_v17 = vld [vmem:[%s1790_s27 + $0x58] sm:$0xff]  }
  0x14   : > { %1494 = vmatprep.subr.bf16.mxu0 %v1582_v5  ;;  %v1596_v18 = vld [vmem:[%s1790_s27 + $0x60] sm:$0xff]   ;;  %v1597_v19 = vld [vmem:[%s1790_s27 + $0x68] sm:$0xff]   ;;  %v1598_v20 = vld [vmem:[%s1790_s27 + $0x70] sm:$0xff]  }
  0x15   : > { %v1599_v21 = vld [vmem:[%s1790_s27 + $0x78] sm:$0xff]   ;;  %1537 = vmatpush3.bf16.msra.mxu1 %v1603_v25 }
  0x17   : > { %1495 = vmatpush3.bf16.msra.mxu0 %v1582_v5 }
  0x18   : > { %1496 = vmatprep.subr.bf16.mxu0 %v1583_v6 }
  0x1b   : > { %1497 = vmatpush3.bf16.msra.mxu0 %v1583_v6 }
  0x1e   : > { %1499 = vmatmul.mubr.msk.bf16.vlgmr.msra.gmra.mrb[0].mxu0 %vm369_vm0, %v1585_v7 }
  0x1f   : > { %1502 = vmatprep.mubr.msk.bf16.mxu0 %vm369_vm0, %v1586_v8 }
  0x26   : > { %1503 = vmatmul.mubr.msk.bf16.gmra.mrb[4].mxu0 %vm369_vm0, %v1587_v9 }
  0x27   : > { %1506 = vmatprep.mubr.msk.bf16.mxu0 %vm369_vm0, %v1588_v10 }
  0x2e   : > { %1507 = vmatmul.mubr.msk.bf16.gmra.mrb[8].mxu0 %vm369_vm0, %v1589_v11 }
  0x2f   : > { %1510 = vmatprep.mubr.msk.bf16.mxu0 %vm369_vm0, %v1590_v12 }
  0x36   : > { %1511 = vmatmul.mubr.msk.bf16.gmra.mrb[12].mxu0 %vm369_vm0, %v1591_v13 }
  0x37   : > { %1514 = vmatprep.mubr.msk.bf16.mxu0 %vm369_vm0, %v1592_v14 }
  0x3e   : > { %1515 = vmatmul.mubr.msk.bf16.gmra.mrb[16].mxu0 %vm369_vm0, %v1593_v15 }
  0x3f   : > { %1518 = vmatprep.mubr.msk.bf16.mxu0 %vm369_vm0, %v1594_v16 }
  0x46   : > { %1519 = vmatmul.mubr.msk.bf16.gmra.mrb[20].mxu0 %vm369_vm0, %v1595_v17 }
  0x47   : > { %1522 = vmatprep.mubr.msk.bf16.mxu0 %vm369_vm0, %v1596_v18 }
  0x4e   : > { %1523 = vmatmul.mubr.msk.bf16.gmra.mrb[24].mxu0 %vm369_vm0, %v1597_v19 }
  0x4f   : > { %1526 = vmatprep.mubr.msk.bf16.mxu0 %vm369_vm0, %v1598_v20 }
  0x56   : > { %1527 = vmatmul.mubr.msk.bf16.gmra.mrb[28].mxu0 %vm369_vm0, %v1599_v21 }
  0xf1   : > { %v1500_v27 = vpop.f32.mrb[0].mxu0 }
  0xf2   : > { %v1851_v28 = vadd.f32 %v1500_v27, %v1848_v26  ;;  %v452_v29 = vpop.f32.mrb[1].mxu0 }
  0xf3   : > { %v1854_v30 = vadd.f32 %v1848_v26, %v452_v29  ;;  %v1501_v31 = vpop.f32.mrb[2].mxu0 }
  0xf4   : > { %v1328_v32 = vmul.f32 -1.442695, %v1851_v28  ;;  %v1858_v33 = vadd.f32 %v1501_v31, %v1848_v26  ;;  %v455_v34 = vpop.f32.mrb[3].mxu0 }
  0xf5   : > { %v1326_v35 = vmul.f32 -1.442695, %v1854_v30  ;;  %v1862_v36 = vadd.f32 %v1848_v26, %v455_v34 }
  0xf6   : > { %1604 = vpow2.f32 %v1328_v32  ;;  %v1329_v37 = vmul.f32 -1.442695, %v1858_v33 }
  0xf7   : > { %1606 = vpow2.f32 %v1326_v35  ;;  %v1327_v38 = vmul.f32 -1.442695, %v1862_v36 }
  0xf8   : > { %1608 = vpow2.f32 %v1329_v37 }
  0xf9   : > { %1610 = vpow2.f32 %v1327_v38  ;;  %v1504_v39 = vpop.f32.mrb[4].mxu0 }
  0xfa   : > { %v1867_v40 = vadd.f32 %v1504_v39, %v1848_v26  ;;  %v468_v41 = vpop.f32.mrb[5].mxu0 }
  0xfb   : > { %v1870_v42 = vadd.f32 %v1848_v26, %v468_v41  ;;  %v1505_v43 = vpop.f32.mrb[6].mxu0 }
  0xfc   : > { %v1332_v44 = vmul.f32 -1.442695, %v1867_v40  ;;  %v1874_v45 = vadd.f32 %v1505_v43, %v1848_v26  ;;  %v471_v46 = vpop.f32.mrb[7].mxu0 }
  0xfd   : > { %v1330_v47 = vmul.f32 -1.442695, %v1870_v42  ;;  %v1878_v48 = vadd.f32 %v1848_v26, %v471_v46 }
  0xfe   : > { %1612 = vpow2.f32 %v1332_v44  ;;  %v1333_v49 = vmul.f32 -1.442695, %v1874_v45 }
  0xff   : > { %1614 = vpow2.f32 %v1330_v47  ;;  %v1331_v50 = vmul.f32 -1.442695, %v1878_v48 }
 0x100   : > { %v1605_v51 = vpop.eup %1604  ;;  %1616 = vpow2.f32 %v1333_v49 }
 0x101   : > { %v1607_v52 = vpop.eup %1606  ;;  %v677_v53 = vadd.f32 1.0, %v1605_v51  ;;  %1618 = vpow2.f32 %v1331_v50  ;;  %v1508_v54 = vpop.f32.mrb[8].mxu0 }
 0x102   : > { %v1609_v55 = vpop.eup %1608  ;;  %v675_v56 = vadd.f32 1.0, %v1607_v52  ;;  %v1883_v57 = vadd.f32 %v1508_v54, %v1848_v26  ;;  %v484_v58 = vpop.f32.mrb[9].mxu0 }
 0x103   : > { %v1611_v59 = vpop.eup %1610  ;;  %1620 = vrcp.f32 %v677_v53  ;;  %v678_v60 = vadd.f32 1.0, %v1609_v55  ;;  %v1886_v61 = vadd.f32 %v1848_v26, %v484_v58  ;;  %v1509_v62 = vpop.f32.mrb[10].mxu0 }
 0x104   : > { %1622 = vrcp.f32 %v675_v56  ;;  %v676_v63 = vadd.f32 1.0, %v1611_v59  ;;  %v1336_v0 = vmul.f32 -1.442695, %v1883_v57  ;;  %v1890_v1 = vadd.f32 %v1509_v62, %v1848_v26  ;;  %v487_v2 = vpop.f32.mrb[11].mxu0 }
 0x105   : > { %1624 = vrcp.f32 %v678_v60  ;;  %v1334_v3 = vmul.f32 -1.442695, %v1886_v61  ;;  %v1894_v4 = vadd.f32 %v1848_v26, %v487_v2 }
 0x106   : > { %1626 = vrcp.f32 %v676_v63  ;;  %v1337_v5 = vmul.f32 -1.442695, %v1890_v1 }
 0x107   : > { %1628 = vpow2.f32 %v1336_v0  ;;  %v1335_v6 = vmul.f32 -1.442695, %v1894_v4 }
 0x108   : > { %v1613_v7 = vpop.eup %1612  ;;  %1630 = vpow2.f32 %v1334_v3 }
 0x109   : > { %v1615_v8 = vpop.eup %1614  ;;  %v681_v9 = vadd.f32 1.0, %v1613_v7  ;;  %1632 = vpow2.f32 %v1337_v5  ;;  %v1512_v10 = vpop.f32.mrb[12].mxu0 }
 0x10a   : > { %v1617_v11 = vpop.eup %1616  ;;  %v679_v12 = vadd.f32 1.0, %v1615_v8  ;;  %1634 = vpow2.f32 %v1335_v6  ;;  %v1899_v13 = vadd.f32 %v1512_v10, %v1848_v26  ;;  %v500_v14 = vpop.f32.mrb[13].mxu0 }
 0x10b   : > { %v1619_v15 = vpop.eup %1618  ;;  %1636 = vrcp.f32 %v681_v9  ;;  %v682_v16 = vadd.f32 1.0, %v1617_v11  ;;  %v1902_v17 = vadd.f32 %v1848_v26, %v500_v14  ;;  %v1513_v18 = vpop.f32.mrb[14].mxu0 }
 0x10c   : > { %1638 = vrcp.f32 %v679_v12  ;;  %v680_v19 = vadd.f32 1.0, %v1619_v15  ;;  %v1340_v20 = vmul.f32 -1.442695, %v1899_v13  ;;  %v1906_v21 = vadd.f32 %v1513_v18, %v1848_v26  ;;  %v503_v22 = vpop.f32.mrb[15].mxu0 }
 0x10d   : > { %v1621_v23 = vpop.eup %1620  ;;  %1640 = vrcp.f32 %v682_v16  ;;  %v1338_v24 = vmul.f32 -1.442695, %v1902_v17  ;;  %v1910_v25 = vadd.f32 %v1848_v26, %v503_v22 }
 0x10e   : > { %v1623_v27 = vpop.eup %1622  ;;  %1642 = vrcp.f32 %v680_v19  ;;  %v1341_v29 = vmul.f32 -1.442695, %v1906_v21  ;;  %v773_v35 = vmul.f32 %v1621_v23, %v1851_v28 }
 0x10f   : > { %v1625_v31 = vpop.eup %1624  ;;  %1644 = vpow2.f32 %v1340_v20  ;;  %v1339_v32 = vmul.f32 -1.442695, %v1910_v25  ;;  %v771_v39 = vmul.f32 %v1623_v27, %v1854_v30 }
 0x110   : > { %v1627_v34 = vpop.eup %1626  ;;  %v774_v37 = vmul.f32 %v1625_v31, %v1858_v33  ;;  %1646 = vpow2.f32 %v1338_v24 }
 0x111   : > { %v1629_v38 = vpop.eup %1628  ;;  %v772_v41 = vmul.f32 %v1627_v34, %v1862_v36  ;;  %1648 = vpow2.f32 %v1341_v29  ;;  %v1516_v43 = vpop.f32.mrb[16].mxu0 }
 0x112   : > { %v1631_v44 = vpop.eup %1630  ;;  %v804_v46 = vpack.c.bf16 %v774_v37, %v773_v35  ;;  %v685_v47 = vadd.f32 1.0, %v1629_v38  ;;  %1650 = vpow2.f32 %v1339_v32  ;;  %v1919_v49 = vadd.f32 %v1516_v43, %v1848_v26  ;;  %v516_v50 = vpop.f32.mrb[17].mxu0 }
 0x113   : > { %v1633_v28 = vpop.eup %1632  ;;  %v683_v51 = vadd.f32 1.0, %v1631_v44  ;;  %v1922_v33 = vadd.f32 %v1848_v26, %v516_v50  ;;  %v1517_v52 = vpop.f32.mrb[18].mxu0  ;;  %v803_v30 = vpack.c.bf16 %v772_v41, %v771_v39 }
 0x114   : > { %v1635_v53 = vpop.eup %1634  ;;  %1652 = vrcp.f32 %v685_v47  ;;  %v686_v36 = vadd.f32 1.0, %v1633_v28  ;;  %v1344_v54 = vmul.f32 -1.442695, %v1919_v49  ;;  %v1926_v55 = vadd.f32 %v1517_v52, %v1848_v26  ;;  %v519_v56 = vpop.f32.mrb[19].mxu0 }
 0x115   : > { %v1637_v58 = vpop.eup %1636  ;;  %1654 = vrcp.f32 %v683_v51  ;;  %v684_v59 = vadd.f32 1.0, %v1635_v53  ;;  %v1342_v60 = vmul.f32 -1.442695, %v1922_v33  ;;  %v1930_v62 = vadd.f32 %v1848_v26, %v519_v56  ;;  %1538 = vmatprep.mubr.msk.bf16.mxu1 %vm851_vm1, %v803_v30 }
 0x116   : > { %v1639_v63 = vpop.eup %1638  ;;  %1656 = vrcp.f32 %v686_v36  ;;  %v1345_v0 = vmul.f32 -1.442695, %v1926_v55  ;;  %1539 = vmatmul.mubr.msk.bf16.vlgmr.msra.gmra.mrb[0].mxu1 %vm851_vm1, %v804_v46  ;;  %v777_v6 = vmul.f32 %v1637_v58, %v1867_v40 }
 0x117   : > { %v1641_v2 = vpop.eup %1640  ;;  %1658 = vrcp.f32 %v684_v59  ;;  %v1343_v3 = vmul.f32 -1.442695, %v1930_v62  ;;  %v775_v9 = vmul.f32 %v1639_v63, %v1870_v42 }
 0x118   : > { %v1643_v5 = vpop.eup %1642  ;;  %v778_v7 = vmul.f32 %v1641_v2, %v1874_v45  ;;  %1660 = vpow2.f32 %v1344_v54 }
 0x119   : > { %v1645_v8 = vpop.eup %1644  ;;  %v776_v10 = vmul.f32 %v1643_v5, %v1878_v48  ;;  %1662 = vpow2.f32 %v1342_v60  ;;  %v1520_v11 = vpop.f32.mrb[20].mxu0 }
 0x11a   : > { %v1647_v12 = vpop.eup %1646  ;;  %v806_v14 = vpack.c.bf16 %v778_v7, %v777_v6  ;;  %v689_v15 = vadd.f32 1.0, %v1645_v8  ;;  %1664 = vpow2.f32 %v1345_v0  ;;  %v1941_v16 = vadd.f32 %v1520_v11, %v1848_v26  ;;  %v532_v18 = vpop.f32.mrb[21].mxu0 }
 0x11b   : > { %v1649_v19 = vpop.eup %1648  ;;  %v805_v40 = vpack.c.bf16 %v776_v10, %v775_v9  ;;  %v687_v20 = vadd.f32 1.0, %v1647_v12  ;;  %1666 = vpow2.f32 %v1343_v3  ;;  %v1944_v45 = vadd.f32 %v1848_v26, %v532_v18  ;;  %v1521_v42 = vpop.f32.mrb[22].mxu0 }
 0x11c   : > { %v1651_v22 = vpop.eup %1650  ;;  %1668 = vrcp.f32 %v689_v15  ;;  %v690_v48 = vadd.f32 1.0, %v1649_v19  ;;  %v1348_v23 = vmul.f32 -1.442695, %v1941_v16  ;;  %v1948_v24 = vadd.f32 %v1521_v42, %v1848_v26  ;;  %v535_v27 = vpop.f32.mrb[23].mxu0 }
 0x11d   : > { %1670 = vrcp.f32 %v687_v20  ;;  %v688_v29 = vadd.f32 1.0, %v1651_v22  ;;  %v1346_v31 = vmul.f32 -1.442695, %v1944_v45  ;;  %v1952_v32 = vadd.f32 %v1848_v26, %v535_v27  ;;  %1542 = vmatprep.mubr.msk.bf16.mxu1 %vm851_vm1, %v805_v40 }
 0x11e   : > { %v1653_v34 = vpop.eup %1652  ;;  %1672 = vrcp.f32 %v690_v48  ;;  %v1349_v35 = vmul.f32 -1.442695, %v1948_v24  ;;  %1543 = vmatmul.mubr.msk.bf16.gmra.mrb[4].mxu1 %vm851_vm1, %v806_v14 }
 0x11f   : > { %v1655_v37 = vpop.eup %1654  ;;  %1674 = vrcp.f32 %v688_v29  ;;  %v1347_v38 = vmul.f32 -1.442695, %v1952_v32  ;;  %v781_v43 = vmul.f32 %v1653_v34, %v1883_v57 }
 0x120   : > { %v1657_v39 = vpop.eup %1656  ;;  %1676 = vpow2.f32 %v1348_v23  ;;  %v779_v50 = vmul.f32 %v1655_v37, %v1886_v61 }
 0x121   : > { %v1659_v41 = vpop.eup %1658  ;;  %v782_v44 = vmul.f32 %v1657_v39, %v1890_v1  ;;  %1678 = vpow2.f32 %v1346_v31  ;;  %v1524_v46 = vpop.f32.mrb[24].mxu0 }
 0x122   : > { %v1661_v47 = vpop.eup %1660  ;;  %v780_v28 = vmul.f32 %v1659_v41, %v1894_v4  ;;  %1680 = vpow2.f32 %v1349_v35  ;;  %v1963_v51 = vadd.f32 %v1524_v46, %v1848_v26  ;;  %v548_v52 = vpop.f32.mrb[25].mxu0 }
 0x123   : > { %v1663_v30 = vpop.eup %1662  ;;  %v808_v53 = vpack.c.bf16 %v782_v44, %v781_v43  ;;  %v693_v36 = vadd.f32 1.0, %v1661_v47  ;;  %1682 = vpow2.f32 %v1347_v38  ;;  %v1966_v57 = vadd.f32 %v1848_v26, %v548_v52  ;;  %v1525_v1 = vpop.f32.mrb[26].mxu0 }
 0x124   : > { %v1665_v54 = vpop.eup %1664  ;;  %v807_v56 = vpack.c.bf16 %v780_v28, %v779_v50  ;;  %v691_v58 = vadd.f32 1.0, %v1663_v30  ;;  %v1969_v61 = vadd.f32 %v1525_v1, %v1848_v26  ;;  %v551_v4 = vpop.f32.mrb[27].mxu0  ;;  %v1352_v63 = vmul.f32 -1.442695, %v1963_v51 }
 0x125   : > { %v1667_v59 = vpop.eup %1666  ;;  %1684 = vrcp.f32 %v693_v36  ;;  %v694_v60 = vadd.f32 1.0, %v1665_v54  ;;  %v1973_v0 = vadd.f32 %v1848_v26, %v551_v4  ;;  %v1350_v5 = vmul.f32 -1.442695, %v1966_v57 }
 0x126   : > { %v1669_v2 = vpop.eup %1668  ;;  %1686 = vrcp.f32 %v691_v58  ;;  %v692_v3 = vadd.f32 1.0, %v1667_v59  ;;  %1546 = vmatprep.mubr.msk.bf16.mxu1 %vm851_vm1, %v807_v56  ;;  %v1353_v7 = vmul.f32 -1.442695, %v1969_v61 }
 0x127   : > { %v1671_v6 = vpop.eup %1670  ;;  %1688 = vrcp.f32 %v694_v60  ;;  %1547 = vmatmul.mubr.msk.bf16.gmra.mrb[8].mxu1 %vm851_vm1, %v808_v53  ;;  %v1351_v9 = vmul.f32 -1.442695, %v1973_v0  ;;  %v785_v11 = vmul.f32 %v1669_v2, %v1899_v13 }
 0x128   : > { %v1673_v8 = vpop.eup %1672  ;;  %1690 = vrcp.f32 %v692_v3  ;;  %v783_v18 = vmul.f32 %v1671_v6, %v1902_v17 }
 0x129   : > { %v1675_v10 = vpop.eup %1674  ;;  %v786_v12 = vmul.f32 %v1673_v8, %v1906_v21  ;;  %1692 = vpow2.f32 %v1352_v63  ;;  %v1528_v14 = vpop.f32.mrb[28].mxu0 }
 0x12a   : > { %v1677_v15 = vpop.eup %1676  ;;  %v784_v19 = vmul.f32 %v1675_v10, %v1910_v25  ;;  %1694 = vpow2.f32 %v1350_v5  ;;  %v1985_v40 = vadd.f32 %v1528_v14, %v1848_v26  ;;  %v564_v20 = vpop.f32.mrb[29].mxu0 }
 0x12b   : > { %v1679_v42 = vpop.eup %1678  ;;  %v810_v22 = vpack.c.bf16 %v786_v12, %v785_v11  ;;  %v697_v48 = vadd.f32 1.0, %v1677_v15  ;;  %1696 = vpow2.f32 %v1353_v7  ;;  %v1988_v13 = vadd.f32 %v1848_v26, %v564_v20  ;;  %v1529_v21 = vpop.f32.mrb[30].mxu0 }
 0x12c   : > { %v1681_v23 = vpop.eup %1680  ;;  %v809_v27 = vpack.c.bf16 %v784_v19, %v783_v18  ;;  %v695_v29 = vadd.f32 1.0, %v1679_v42  ;;  %1698 = vpow2.f32 %v1351_v9  ;;  %v567_v17 = vpop.f32.mrb[31].mxu0  ;;  %v1356_v34 = vmul.f32 -1.442695, %v1985_v40 }
 0x12d   : > { %v1683_v31 = vpop.eup %1682  ;;  %1700 = vrcp.f32 %v697_v48  ;;  %v698_v25 = vadd.f32 1.0, %v1681_v23  ;;  %v1992_v35 = vadd.f32 %v1529_v21, %v1848_v26  ;;  %v1354_v38 = vmul.f32 -1.442695, %v1988_v13 }
 0x12e   : > { %1702 = vrcp.f32 %v695_v29  ;;  %v696_v37 = vadd.f32 1.0, %v1683_v31  ;;  %v1996_v39 = vadd.f32 %v1848_v26, %v567_v17  ;;  %1550 = vmatprep.mubr.msk.bf16.mxu1 %vm851_vm1, %v809_v27 }
 0x12f   : > { %v1685_v41 = vpop.eup %1684  ;;  %1704 = vrcp.f32 %v698_v25  ;;  %v1357_v43 = vmul.f32 -1.442695, %v1992_v35  ;;  %1551 = vmatmul.mubr.msk.bf16.gmra.mrb[12].mxu1 %vm851_vm1, %v810_v22 }
 0x130   : > { %v1687_v44 = vpop.eup %1686  ;;  %1706 = vrcp.f32 %v696_v37  ;;  %v1355_v46 = vmul.f32 -1.442695, %v1996_v39  ;;  %v789_v28 = vmul.f32 %v1685_v41, %v1919_v49 }
 0x131   : > { %v1689_v47 = vpop.eup %1688  ;;  %1708 = vpow2.f32 %v1356_v34  ;;  %v787_v30 = vmul.f32 %v1687_v44, %v1922_v33 }
 0x132   : > { %v1691_v50 = vpop.eup %1690  ;;  %v790_v26 = vmul.f32 %v1689_v47, %v1926_v55  ;;  %1710 = vpow2.f32 %v1354_v38 }
 0x133   : > { %v1693_v52 = vpop.eup %1692  ;;  %v788_v53 = vmul.f32 %v1691_v50, %v1930_v62  ;;  %1712 = vpow2.f32 %v1357_v43 }
 0x134   : > { %v1695_v36 = vpop.eup %1694  ;;  %v812_v1 = vpack.c.bf16 %v790_v26, %v789_v28  ;;  %v701_v54 = vadd.f32 1.0, %v1693_v52  ;;  %1714 = vpow2.f32 %v1355_v46 }
 0x135   : > { %v1697_v56 = vpop.eup %1696  ;;  %v811_v58 = vpack.c.bf16 %v788_v53, %v787_v30  ;;  %v699_v4 = vadd.f32 1.0, %v1695_v36 }
 0x136   : > { %v1699_v59 = vpop.eup %1698  ;;  %1716 = vrcp.f32 %v701_v54  ;;  %v702_v60 = vadd.f32 1.0, %v1697_v56 }
 0x137   : > { %v1701_v49 = vpop.eup %1700  ;;  %1718 = vrcp.f32 %v699_v4  ;;  %v700_v55 = vadd.f32 1.0, %v1699_v59  ;;  %1554 = vmatprep.mubr.msk.bf16.mxu1 %vm851_vm1, %v811_v58 }
 0x138   : > { %v1703_v63 = vpop.eup %1702  ;;  %1720 = vrcp.f32 %v702_v60  ;;  %1555 = vmatmul.mubr.msk.bf16.gmra.mrb[16].mxu1 %vm851_vm1, %v812_v1  ;;  %v793_v2 = vmul.f32 %v1701_v49, %v1941_v16 }
 0x139   : > { %v1705_v33 = vpop.eup %1704  ;;  %1722 = vrcp.f32 %v700_v55  ;;  %v791_v6 = vmul.f32 %v1703_v63, %v1944_v45 }
 0x13a   : > { %v1707_v62 = vpop.eup %1706  ;;  %v794_v3 = vmul.f32 %v1705_v33, %v1948_v24 }
 0x13b   : > { %v1709_v5 = vpop.eup %1708  ;;  %v792_v7 = vmul.f32 %v1707_v62, %v1952_v32 }
 0x13c   : > { %v1711_v8 = vpop.eup %1710  ;;  %v814_v9 = vpack.c.bf16 %v794_v3, %v793_v2  ;;  %v705_v10 = vadd.f32 1.0, %v1709_v5 }
 0x13d   : > { %v1713_v11 = vpop.eup %1712  ;;  %v813_v12 = vpack.c.bf16 %v792_v7, %v791_v6  ;;  %v703_v14 = vadd.f32 1.0, %v1711_v8 }
 0x13e   : > { %v1715_v15 = vpop.eup %1714  ;;  %1724 = vrcp.f32 %v705_v10  ;;  %v706_v18 = vadd.f32 1.0, %v1713_v11 }
 0x13f   : > { %1726 = vrcp.f32 %v703_v14  ;;  %v704_v19 = vadd.f32 1.0, %v1715_v15  ;;  %1558 = vmatprep.mubr.msk.bf16.mxu1 %vm851_vm1, %v813_v12 }
 0x140   : > { %v1717_v16 = vpop.eup %1716  ;;  %1728 = vrcp.f32 %v706_v18  ;;  %1559 = vmatmul.mubr.msk.bf16.gmra.mrb[20].mxu1 %vm851_vm1, %v814_v9 }
 0x141   : > { %v1719_v45 = vpop.eup %1718  ;;  %1730 = vrcp.f32 %v704_v19  ;;  %v797_v20 = vmul.f32 %v1717_v16, %v1963_v51 }
 0x142   : > { %v1721_v24 = vpop.eup %1720  ;;  %v795_v22 = vmul.f32 %v1719_v45, %v1966_v57 }
 0x143   : > { %v1723_v32 = vpop.eup %1722  ;;  %v798_v42 = vmul.f32 %v1721_v24, %v1969_v61 }
 0x144   : > { %v796_v48 = vmul.f32 %v1723_v32, %v1973_v0 }
 0x145   : > { %v816_v21 = vpack.c.bf16 %v798_v42, %v797_v20 }
 0x146   : > { %v815_v23 = vpack.c.bf16 %v796_v48, %v795_v22 }
 0x148   : > { %v1725_v27 = vpop.eup %1724  ;;  %1562 = vmatprep.mubr.msk.bf16.mxu1 %vm851_vm1, %v815_v23 }
 0x149   : > { %v1727_v29 = vpop.eup %1726  ;;  %1563 = vmatmul.mubr.msk.bf16.gmra.mrb[24].mxu1 %vm851_vm1, %v816_v21  ;;  %v801_v25 = vmul.f32 %v1725_v27, %v1985_v40 }
 0x14a   : > { %v1729_v17 = vpop.eup %1728  ;;  %v799_v61 = vmul.f32 %v1727_v29, %v1988_v13 }
 0x14b   : > { %v1731_v31 = vpop.eup %1730  ;;  %v802_v51 = vmul.f32 %v1729_v17, %v1992_v35 }
 0x14c   : > { %v800_v57 = vmul.f32 %v1731_v31, %v1996_v39 }
 0x14d   : > { %v818_v0 = vpack.c.bf16 %v802_v51, %v801_v25 }
 0x14e   : > { %v817_v34 = vpack.c.bf16 %v800_v57, %v799_v61 }
 0x150   : > { %1566 = vmatprep.mubr.msk.bf16.mxu1 %vm851_vm1, %v817_v34 }
 0x151   : > { %1567 = vmatmul.mubr.msk.bf16.gmra.mrb[28].mxu1 %vm851_vm1, %v818_v0 }
 0x1e9   : > { %v1540_v40 = vpop.f32.mrb[0].mxu1 }
 0x1ea   : > { %v1414_v13 = vpack.c.bf16 %v1540_v40, %v1540_v40  ;;  %v934_v35 = vpop.f32.mrb[1].mxu1 }
 0x1eb   : > { %v1412_v37 = vpack.c.bf16 %v934_v35, %v934_v35  ;;  %v1541_v38 = vpop.f32.mrb[2].mxu1 }
 0x1ec   : > { %1192 = vst.msk [vmem:[%s2031_s22 + $0x8] sm:$0xf] %vm1189_vm2, %v1414_v13  ;;  %v1415_v39 = vpack.c.bf16 %v1541_v38, %v1541_v38  ;;  %v937_v41 = vpop.f32.mrb[3].mxu1 }
 0x1ed   : > { %1190 = vst.msk [vmem:[%s2031_s22] sm:$0xf] %vm1189_vm2, %v1412_v37  ;;  %v1413_v43 = vpack.c.bf16 %v937_v41, %v937_v41 }
 0x1ee   : > { %1193 = vst.msk [vmem:[%s2031_s22 + $0xc] sm:$0xf] %vm1189_vm2, %v1415_v39 }
 0x1ef   : > { %1191 = vst.msk [vmem:[%s2031_s22 + $0x4] sm:$0xf] %vm1189_vm2, %v1413_v43 }
 0x1f1   : > { %v1544_v44 = vpop.f32.mrb[4].mxu1 }
 0x1f2   : > { %v1418_v46 = vpack.c.bf16 %v1544_v44, %v1544_v44  ;;  %v950_v47 = vpop.f32.mrb[5].mxu1 }
 0x1f3   : > { %v1416_v50 = vpack.c.bf16 %v950_v47, %v950_v47  ;;  %v1545_v28 = vpop.f32.mrb[6].mxu1 }
 0x1f4   : > { %1196 = vst.msk [vmem:[%s2031_s22 + $0x18] sm:$0xf] %vm1189_vm2, %v1418_v46  ;;  %v1419_v26 = vpack.c.bf16 %v1545_v28, %v1545_v28  ;;  %v953_v52 = vpop.f32.mrb[7].mxu1 }
 0x1f5   : > { %1194 = vst.msk [vmem:[%s2031_s22 + $0x10] sm:$0xf] %vm1189_vm2, %v1416_v50  ;;  %v1417_v30 = vpack.c.bf16 %v953_v52, %v953_v52 }
 0x1f6   : > { %1197 = vst.msk [vmem:[%s2031_s22 + $0x1c] sm:$0xf] %vm1189_vm2, %v1419_v26 }
 0x1f7   : > { %1195 = vst.msk [vmem:[%s2031_s22 + $0x14] sm:$0xf] %vm1189_vm2, %v1417_v30 }
 0x1fa   : > { %v1548_v53 = vpop.f32.mrb[8].mxu1 }
 0x1fb   : > { %v1422_v36 = vpack.c.bf16 %v1548_v53, %v1548_v53  ;;  %v966_v1 = vpop.f32.mrb[9].mxu1 }
 0x1fc   : > { %v1420_v54 = vpack.c.bf16 %v966_v1, %v966_v1  ;;  %v1549_v56 = vpop.f32.mrb[10].mxu1 }
 0x1fd   : > { %1200 = vst.msk [vmem:[%s2031_s22 + $0x28] sm:$0xf] %vm1189_vm2, %v1422_v36  ;;  %v1423_v58 = vpack.c.bf16 %v1549_v56, %v1549_v56  ;;  %v969_v4 = vpop.f32.mrb[11].mxu1 }
 0x1fe   : > { %1198 = vst.msk [vmem:[%s2031_s22 + $0x20] sm:$0xf] %vm1189_vm2, %v1420_v54  ;;  %v1421_v59 = vpack.c.bf16 %v969_v4, %v969_v4 }
 0x1ff   : > { %1201 = vst.msk [vmem:[%s2031_s22 + $0x2c] sm:$0xf] %vm1189_vm2, %v1423_v58 }
 0x200   : > { %1199 = vst.msk [vmem:[%s2031_s22 + $0x24] sm:$0xf] %vm1189_vm2, %v1421_v59 }
 0x202   : > { %v1552_v60 = vpop.f32.mrb[12].mxu1 }
 0x203   : > { %v1426_v49 = vpack.c.bf16 %v1552_v60, %v1552_v60  ;;  %v982_v55 = vpop.f32.mrb[13].mxu1 }
 0x204   : > { %v1424_v63 = vpack.c.bf16 %v982_v55, %v982_v55  ;;  %v1553_v33 = vpop.f32.mrb[14].mxu1 }
 0x205   : > { %1204 = vst.msk [vmem:[%s2031_s22 + $0x38] sm:$0xf] %vm1189_vm2, %v1426_v49  ;;  %v1427_v62 = vpack.c.bf16 %v1553_v33, %v1553_v33  ;;  %v985_v2 = vpop.f32.mrb[15].mxu1 }
 0x206   : > { %1202 = vst.msk [vmem:[%s2031_s22 + $0x30] sm:$0xf] %vm1189_vm2, %v1424_v63  ;;  %v1425_v3 = vpack.c.bf16 %v985_v2, %v985_v2 }
 0x207   : > { %1205 = vst.msk [vmem:[%s2031_s22 + $0x3c] sm:$0xf] %vm1189_vm2, %v1427_v62 }
 0x208   : > { %1203 = vst.msk [vmem:[%s2031_s22 + $0x34] sm:$0xf] %vm1189_vm2, %v1425_v3 }
 0x20b   : > { %v1556_v5 = vpop.f32.mrb[16].mxu1 }
 0x20c   : > { %v1430_v6 = vpack.c.bf16 %v1556_v5, %v1556_v5  ;;  %v998_v7 = vpop.f32.mrb[17].mxu1 }
 0x20d   : > { %v1428_v8 = vpack.c.bf16 %v998_v7, %v998_v7  ;;  %v1557_v9 = vpop.f32.mrb[18].mxu1 }
 0x20e   : > { %1208 = vst.msk [vmem:[%s2031_s22 + $0x48] sm:$0xf] %vm1189_vm2, %v1430_v6  ;;  %v1431_v10 = vpack.c.bf16 %v1557_v9, %v1557_v9  ;;  %v1001_v11 = vpop.f32.mrb[19].mxu1 }
 0x20f   : > { %1206 = vst.msk [vmem:[%s2031_s22 + $0x40] sm:$0xf] %vm1189_vm2, %v1428_v8  ;;  %v1429_v12 = vpack.c.bf16 %v1001_v11, %v1001_v11 }
 0x210   : > { %1209 = vst.msk [vmem:[%s2031_s22 + $0x4c] sm:$0xf] %vm1189_vm2, %v1431_v10 }
 0x211   : > { %1207 = vst.msk [vmem:[%s2031_s22 + $0x44] sm:$0xf] %vm1189_vm2, %v1429_v12 }
 0x213   : > { %v1560_v14 = vpop.f32.mrb[20].mxu1 }
 0x214   : > { %v1434_v15 = vpack.c.bf16 %v1560_v14, %v1560_v14  ;;  %v1014_v18 = vpop.f32.mrb[21].mxu1 }
 0x215   : > { %v1432_v19 = vpack.c.bf16 %v1014_v18, %v1014_v18  ;;  %v1561_v16 = vpop.f32.mrb[22].mxu1 }
 0x216   : > { %1212 = vst.msk [vmem:[%s2031_s22 + $0x58] sm:$0xf] %vm1189_vm2, %v1434_v15  ;;  %v1435_v45 = vpack.c.bf16 %v1561_v16, %v1561_v16  ;;  %v1017_v24 = vpop.f32.mrb[23].mxu1 }
 0x217   : > { %1210 = vst.msk [vmem:[%s2031_s22 + $0x50] sm:$0xf] %vm1189_vm2, %v1432_v19  ;;  %v1433_v32 = vpack.c.bf16 %v1017_v24, %v1017_v24 }
 0x218   : > { %1213 = vst.msk [vmem:[%s2031_s22 + $0x5c] sm:$0xf] %vm1189_vm2, %v1435_v45 }
 0x219   : > { %1211 = vst.msk [vmem:[%s2031_s22 + $0x54] sm:$0xf] %vm1189_vm2, %v1433_v32 }
 0x21c   : > { %v1564_v20 = vpop.f32.mrb[24].mxu1 }
 0x21d   : > { %v1438_v42 = vpack.c.bf16 %v1564_v20, %v1564_v20  ;;  %v1030_v22 = vpop.f32.mrb[25].mxu1 }
 0x21e   : > { %v1436_v48 = vpack.c.bf16 %v1030_v22, %v1030_v22  ;;  %v1565_v21 = vpop.f32.mrb[26].mxu1 }
 0x21f   : > { %1216 = vst.msk [vmem:[%s2031_s22 + $0x68] sm:$0xf] %vm1189_vm2, %v1438_v42  ;;  %v1439_v23 = vpack.c.bf16 %v1565_v21, %v1565_v21  ;;  %v1033_v27 = vpop.f32.mrb[27].mxu1 }
 0x220   : > { %1214 = vst.msk [vmem:[%s2031_s22 + $0x60] sm:$0xf] %vm1189_vm2, %v1436_v48  ;;  %v1437_v29 = vpack.c.bf16 %v1033_v27, %v1033_v27 }
 0x221   : > { %1217 = vst.msk [vmem:[%s2031_s22 + $0x6c] sm:$0xf] %vm1189_vm2, %v1439_v23 }
 0x222   : > { %1215 = vst.msk [vmem:[%s2031_s22 + $0x64] sm:$0xf] %vm1189_vm2, %v1437_v29 }
 0x224   : > { %v1568_v17 = vpop.f32.mrb[28].mxu1 }
 0x225   : > { %v1442_v31 = vpack.c.bf16 %v1568_v17, %v1568_v17  ;;  %v1046_v25 = vpop.f32.mrb[29].mxu1 }
 0x226   : > { %v1440_v51 = vpack.c.bf16 %v1046_v25, %v1046_v25  ;;  %v1569_v61 = vpop.f32.mrb[30].mxu1 }
 0x227   : > { %1220 = vst.msk [vmem:[%s2031_s22 + $0x78] sm:$0xf] %vm1189_vm2, %v1442_v31  ;;  %v1443_v57 = vpack.c.bf16 %v1569_v61, %v1569_v61  ;;  %v1049_v0 = vpop.f32.mrb[31].mxu1 }
 0x228   : > { %1218 = vst.msk [vmem:[%s2031_s22 + $0x70] sm:$0xf] %vm1189_vm2, %v1440_v51  ;;  %v1441_v34 = vpack.c.bf16 %v1049_v0, %v1049_v0 }
 0x229   : > { %1221 = vst.msk [vmem:[%s2031_s22 + $0x7c] sm:$0xf] %vm1189_vm2, %v1443_v57 }
 0x22a   : > { %1219 = vst.msk [vmem:[%s2031_s22 + $0x74] sm:$0xf] %vm1189_vm2, %v1441_v34 }
 0x22b PF: > { %s14_s15 = sadd.s32 1, %s1738_s15  }
 0x22c   : > { %p11_p4 = scmp.ge.s32.totalorder %s14_s15, 4  }
 0x22e   :  { %13 = sbr.rel (!%p11_p4) target bundleno = 1 (0x1), region = 66 }

// kernel: faster_block_ema_forward.5
= control target key start
LH: loop header
LB: loop body
LE: loop exit
PB: predicated region body
PF: predicated region fallthrough
CT: control target
= control target key end

     0   :  { %15 = vsyncpa [#allocation4], 0  ;;  %s14781_s0 = inlined_call_operand.vmem [shape: bf16[2,16,16,32], index: 0, kind: input, shape index: {}]   ;;  %s14782_s1 = inlined_call_operand.vmem [shape: bf16[2,16,16,32], index: 1, kind: input, shape index: {}]   ;;  %s14783_s2 = inlined_call_operand.vmem [shape: bf16[32,32], index: 2, kind: input, shape index: {}]   ;;  %s14784_s3 = inlined_call_operand.vmem [shape: f32[1,32], index: 3, kind: input, shape index: {}]   ;;  %s14785_s4 = inlined_call_operand.vmem [shape: bf16[9,32,32], index: 4, kind: input, shape index: {}]   ;;  %s14786_s5 = inlined_call_operand.vmem [shape: f32[1,32], index: 5, kind: input, shape index: {}]   ;;  %s14787_s6 = inlined_call_operand.vmem [shape: f32[1,32], index: 6, kind: input, shape index: {}]   ;;  %s14788_s7 = inlined_call_operand.vmem [shape: f32[1,32], index: 7, kind: input, shape index: {}]   ;;  %s14789_s8 = inlined_call_operand.vmem [shape: f32[32,8], index: 8, kind: input, shape index: {}]   ;;  %s14790_s9 = inlined_call_operand.vmem [shape: f32[8,32], index: 9, kind: input, shape index: {}]   ;;  %s14791_s10 = inlined_call_operand.hbm [shape: f32[2,16,16,32], index: 10, kind: output, shape index: {}]  }
   0x1   :  { %17 = vsyncpa [#allocation4 + $0x1], 0  ;;  %s10842_s13 = smov 0   ;;  %s10844_s14 = smov 0  }
   0x2   :  { %s10846_s15 = smov 0   ;;  %s10848_s16 = smov 0  }
   0x3 LB: > { %s10863_s17 = sadd.s32 4294967295, %s10777_s16   ;;  %s8565_s18 = sadd.s32 4294967294, %s10777_s16   ;;  %s10777_s16 = sphi %s10848_s16, %s15245_s16   ;;  %s10773_s15 = sphi %s10846_s15, %s15244_s15   ;;  %s10769_s14 = sphi %s10844_s14, %s15243_s14   ;;  %s10765_s13 = sphi %s10842_s13, %s15242_s13  }
   0x4   : > { %s10867_s19 = sadd.s32 1, %s10777_s16   ;;  %s250_s20 = sadd.s32 1, %s10773_s15 }
   0x5   : > { %s247_s21 = ssub.s32 %s10777_s16, %s10867_s19  ;;  %p260_p0 = scmp.ne.s32.totalorder %s10773_s15, %s10769_s14 }
   0x6   : > { %p248_p1 = scmp.eq.s32.totalorder %s247_s21, 0  ;;  %p261_p2 = scmp.eq.s32.totalorder %s10863_s17, 1 }
   0x7   : > { %p266_p3 = scmp.ne.s32.totalorder %s10769_s14, %s10765_s13  ;;  %p267_p4 = scmp.eq.s32.totalorder %s8565_s18, 1 }
   0x8   : > { %s10878_s22 = scalar_select %p248_p1, %s10773_s15, %s250_s20  }
   0x9   : > { %p10880_p5 = por %p261_p2, %p260_p0  ;;  %p10884_p6 = por %p267_p4, %p266_p3 }
   0xa   : > { %p8568_p7 = scmp.ge.s32.totalorder %s10777_s16, 1  ;;  %p325_p8 = scmp.lt.s32.totalorder %s10777_s16, 3 }
   0xc   : > { %p326_p9 = pnand %p8568_p7, %p325_p8 }
   0xe   : > { %329 = sbr.rel (%p326_p9) target bundleno = 2190 (0x88e), region = 60 }
  0x15   : > { %v10457_v0 = vld [vmem:[%s14783_s2] sm:$0xff]   ;;  %v14792_v1 = vmov 0.0   ;;  %v10458_v2 = vld [vmem:[%s14783_s2 + $0x8] sm:$0xff]   ;;  %p368_p10 = scmp.lt.s32.totalorder %s10863_s17, 1  ;;  %vm14865_vm0 = vmmov 0   ;;  %vm1404_vm1 = vcmask 257024  }
  0x16   : > { %9557 = vmatprep.subr.bf16.mxu0 %v14792_v1  ;;  %9565 = vmatprep.subr.bf16.mxu1 %v14792_v1  ;;  %v10905_v3 = vld [vmem:[%s14785_s4 + $0x20] sm:$0xff]   ;;  %vm1407_vm2 = vcmask 253952   ;;  %v10781_v4 = vmov 0   ;;  %vm443_vm3 = vcmask 261120   ;;  %vm696_vm4 = vcmask 1041409   ;;  %s365_s30 = sand.u32 1, %s10769_s14  }
  0x17   : > { %9558 = vmatpush3.bf16.msra.mxu0 %v10457_v0  ;;  %9566 = vmatpush3.bf16.msra.mxu1 %v10457_v0  ;;  %s10908_s11 = scalar_select %p368_p10, %s10863_s17, 1  ;;  %1405 = vst.msk [vmem:[#allocation2] sm:$0xf] %vm1404_vm1, %v10781_v4  ;;  %1406 = vst.msk [vmem:[#allocation2 + $0x4] sm:$0xf] %vm1404_vm1, %v10781_v4  ;;  %vm698_vm5 = vcmask 1042434  }
  0x18   : > { %9559 = vmatprep.subr.bf16.mxu0 %v14792_v1  ;;  %9561 = vmatprep.mubr.msk.bf16.mxu0 %vm14865_vm0, %v14792_v1  ;;  %1408 = vst.msk [vmem:[#allocation2 + $0x8] sm:$0x1] %vm1407_vm2, %v10781_v4  ;;  %1411 = vst.msk [vmem:[#allocation2 + $0x14] sm:$0x1] %vm1407_vm2, %v10781_v4  ;;  %vm2995_vm6 = vcmask 1042432   ;;  %vm2996_vm7 = vcmask 1046532  }
  0x19   : > { %9567 = vmatprep.subr.bf16.mxu1 %v14792_v1  ;;  %9569 = vmatprep.mubr.msk.bf16.mxu1 %vm14865_vm0, %v14792_v1  ;;  %s9109_s12 = sshll.u32 %s10908_s11, 7  ;;  %1409 = vst.msk [vmem:[#allocation2 + $0xc] sm:$0xf] %vm1404_vm1, %v10781_v4  ;;  %1410 = vst.msk [vmem:[#allocation2 + $0x10] sm:$0xf] %vm1404_vm1, %v10781_v4  ;;  %vm700_vm8 = vcmask 1043459  }
  0x1a   : > { %1412 = vst.msk [vmem:[#allocation2 + $0x18] sm:$0xf] %vm1404_vm1, %v10781_v4  ;;  %1413 = vst.msk [vmem:[#allocation2 + $0x1c] sm:$0xf] %vm1404_vm1, %v10781_v4  ;;  %s10973_s21 = scalar_lea.vmem %s14781_s0, %s9109_s12  ;;  %vm702_vm9 = vcmask 1044484   ;;  %vm704_vm10 = vcmask 1045509   ;;  %s14607_s29 = scalar_lea.vmem %s14782_s1, %s9109_s12 }
  0x1b   : > { %9560 = vmatpush3.bf16.msra.mxu0 %v10458_v2  ;;  %9568 = vmatpush3.bf16.msra.mxu1 %v10458_v2  ;;  %1414 = vst.msk [vmem:[#allocation2 + $0x20] sm:$0x1] %vm1407_vm2, %v10781_v4  ;;  %1417 = vst.msk [vmem:[#allocation2 + $0x2c] sm:$0x1] %vm1407_vm2, %v10781_v4  ;;  %v9113_v5 = vld [vmem:[%s10973_s21] sm:$0xff]   ;;  %v9240_v6 = vld [vmem:[%s10973_s21 + $0x8] sm:$0xff]  }
  0x1c   : > { %1415 = vst.msk [vmem:[#allocation2 + $0x24] sm:$0xf] %vm1404_vm1, %v10781_v4  ;;  %1416 = vst.msk [vmem:[#allocation2 + $0x28] sm:$0xf] %vm1404_vm1, %v10781_v4  ;;  %9645 = vmatprep.subr.bf16.mxu0 %v10905_v3  ;;  %v9241_v7 = vld [vmem:[%s10973_s21 + $0x10] sm:$0xff]   ;;  %v10979_v8 = vunpack.c.l.bf16 %v9113_v5  ;;  %v10981_v9 = vunpack.c.h.bf16 %v9113_v5  ;;  %v10983_v10 = vunpack.c.l.bf16 %v9240_v6  ;;  %v10985_v11 = vunpack.c.h.bf16 %v9240_v6  ;;  %v9242_v12 = vld [vmem:[%s10973_s21 + $0x18] sm:$0xff]  }
  0x1d   : > { %1418 = vst.msk [vmem:[#allocation2 + $0x30] sm:$0xf] %vm1404_vm1, %v10781_v4  ;;  %1419 = vst.msk [vmem:[#allocation2 + $0x34] sm:$0xf] %vm1404_vm1, %v10781_v4  ;;  %v9243_v13 = vld [vmem:[%s10973_s21 + $0x20] sm:$0xff]   ;;  %v9244_v14 = vld [vmem:[%s10973_s21 + $0x28] sm:$0xff]   ;;  %v10990_v15 = vunpack.c.l.bf16 %v9241_v7  ;;  %v10992_v16 = vunpack.c.h.bf16 %v9241_v7  ;;  %v10994_v17 = vunpack.c.l.bf16 %v9242_v12  ;;  %v10996_v18 = vunpack.c.h.bf16 %v9242_v12 }
  0x1e   : > { %1420 = vst.msk [vmem:[#allocation2 + $0x38] sm:$0x1] %vm1407_vm2, %v10781_v4  ;;  %1423 = vst.msk [vmem:[#allocation2 + $0x44] sm:$0x1] %vm1407_vm2, %v10781_v4  ;;  %v9245_v19 = vld [vmem:[%s10973_s21 + $0x30] sm:$0xff]   ;;  %v9246_v20 = vld [vmem:[%s10973_s21 + $0x38] sm:$0xff]   ;;  %v11001_v22 = vunpack.c.l.bf16 %v9243_v13  ;;  %v11003_v23 = vunpack.c.h.bf16 %v9243_v13  ;;  %v11005_v24 = vunpack.c.l.bf16 %v9244_v14  ;;  %v11007_v25 = vunpack.c.h.bf16 %v9244_v14 }
  0x1f   : > { %1421 = vst.msk [vmem:[#allocation2 + $0x3c] sm:$0xf] %vm1404_vm1, %v10781_v4  ;;  %1422 = vst.msk [vmem:[#allocation2 + $0x40] sm:$0xf] %vm1404_vm1, %v10781_v4  ;;  %v9247_v21 = vld [vmem:[%s10973_s21 + $0x40] sm:$0xff]   ;;  %v9248_v26 = vld [vmem:[%s10973_s21 + $0x48] sm:$0xff]   ;;  %v11012_v29 = vunpack.c.l.bf16 %v9245_v19  ;;  %v11014_v30 = vunpack.c.h.bf16 %v9245_v19  ;;  %v11016_v31 = vunpack.c.l.bf16 %v9246_v20  ;;  %v11018_v32 = vunpack.c.h.bf16 %v9246_v20 }
  0x20   : > { %1424 = vst.msk [vmem:[#allocation2 + $0x48] sm:$0xf] %vm1404_vm1, %v10781_v4  ;;  %1425 = vst.msk [vmem:[#allocation2 + $0x4c] sm:$0xf] %vm1404_vm1, %v10781_v4  ;;  %v9249_v27 = vld [vmem:[%s10973_s21 + $0x50] sm:$0xff]   ;;  %v9250_v28 = vld [vmem:[%s10973_s21 + $0x58] sm:$0xff]   ;;  %v11022_v35 = vunpack.c.l.bf16 %v9247_v21  ;;  %v11024_v36 = vunpack.c.h.bf16 %v9247_v21  ;;  %v11026_v37 = vunpack.c.l.bf16 %v9248_v26  ;;  %v11028_v38 = vunpack.c.h.bf16 %v9248_v26 }
  0x21   : > { %1426 = vst.msk [vmem:[#allocation2 + $0x50] sm:$0x1] %vm1407_vm2, %v10781_v4  ;;  %1429 = vst.msk [vmem:[#allocation2 + $0x5c] sm:$0x1] %vm1407_vm2, %v10781_v4  ;;  %v9251_v33 = vld [vmem:[%s10973_s21 + $0x60] sm:$0xff]   ;;  %v9252_v34 = vld [vmem:[%s10973_s21 + $0x68] sm:$0xff]   ;;  %v11032_v41 = vunpack.c.l.bf16 %v9249_v27  ;;  %v11034_v42 = vunpack.c.h.bf16 %v9249_v27  ;;  %v11036_v43 = vunpack.c.l.bf16 %v9250_v28  ;;  %v11038_v44 = vunpack.c.h.bf16 %v9250_v28 }
  0x22   : > { %1427 = vst.msk [vmem:[#allocation2 + $0x54] sm:$0xf] %vm1404_vm1, %v10781_v4  ;;  %1428 = vst.msk [vmem:[#allocation2 + $0x58] sm:$0xf] %vm1404_vm1, %v10781_v4  ;;  %v9253_v39 = vld [vmem:[%s10973_s21 + $0x70] sm:$0xff]   ;;  %v9254_v40 = vld [vmem:[%s10973_s21 + $0x78] sm:$0xff]   ;;  %v11040_v45 = vunpack.c.l.bf16 %v9251_v33  ;;  %v11042_v46 = vunpack.c.h.bf16 %v9251_v33  ;;  %v11044_v47 = vunpack.c.l.bf16 %v9252_v34  ;;  %v11046_v48 = vunpack.c.h.bf16 %v9252_v34 }
  0x23   : > { %1430 = vst.msk [vmem:[#allocation2 + $0x60] sm:$0xf] %vm1404_vm1, %v10781_v4  ;;  %1431 = vst.msk [vmem:[#allocation2 + $0x64] sm:$0xf] %vm1404_vm1, %v10781_v4  ;;  %v11048_v49 = vunpack.c.l.bf16 %v9253_v39  ;;  %v11050_v50 = vunpack.c.h.bf16 %v9253_v39  ;;  %v11052_v51 = vunpack.c.l.bf16 %v9254_v40  ;;  %v11054_v52 = vunpack.c.h.bf16 %v9254_v40  ;;  %s14613_s11 = sshll.u32 %s365_s30, 8  ;;  %s9111_s18 = sshll.u32 %s10863_s17, 12 }
  0x24   : > { %1432 = vst.msk [vmem:[#allocation2 + $0x68] sm:$0x1] %vm1407_vm2, %v10781_v4  ;;  %1435 = vst.msk [vmem:[#allocation2 + $0x74] sm:$0x1] %vm1407_vm2, %v10781_v4  ;;  %v11058_v53 = vsel %vm443_vm3, %v10979_v8, 0.0  ;;  %v11062_v54 = vsel %vm443_vm3, %v10981_v9, 0.0  ;;  %s14732_s27 = scalar_lea.hbm %s14791_s10, %s9111_s18 }
  0x25   : > { %1433 = vst.msk [vmem:[#allocation2 + $0x6c] sm:$0xf] %vm1404_vm1, %v10781_v4  ;;  %1434 = vst.msk [vmem:[#allocation2 + $0x70] sm:$0xf] %vm1404_vm1, %v10781_v4  ;;  %v11066_v55 = vsel %vm443_vm3, %v10983_v10, 0.0  ;;  %v11070_v56 = vsel %vm443_vm3, %v10985_v11, 0.0  ;;  %v446_v57 = vadd.f32 %v11062_v54, %v11058_v53 }
  0x26   : > { %1436 = vst.msk [vmem:[#allocation2 + $0x78] sm:$0xf] %vm1404_vm1, %v10781_v4  ;;  %1437 = vst.msk [vmem:[#allocation2 + $0x7c] sm:$0xf] %vm1404_vm1, %v10781_v4  ;;  %v455_v58 = vadd.f32 %v11070_v56, %v11066_v55  ;;  %v11078_v59 = vsel %vm443_vm3, %v10990_v15, 0.0  ;;  %v11082_v60 = vsel %vm443_vm3, %v10992_v16, 0.0 }
  0x27   : > { %1438 = vst.msk [vmem:[#allocation2 + $0x80] sm:$0x1] %vm1407_vm2, %v10781_v4  ;;  %1441 = vst.msk [vmem:[#allocation2 + $0x8c] sm:$0x1] %vm1407_vm2, %v10781_v4  ;;  %v464_v61 = vadd.f32 %v11082_v60, %v11078_v59  ;;  %v11088_v62 = vsel %vm443_vm3, %v10994_v17, 0.0  ;;  %v11092_v63 = vsel %vm443_vm3, %v10996_v18, 0.0 }
  0x28   : > { %1439 = vst.msk [vmem:[#allocation2 + $0x84] sm:$0xf] %vm1404_vm1, %v10781_v4  ;;  %1440 = vst.msk [vmem:[#allocation2 + $0x88] sm:$0xf] %vm1404_vm1, %v10781_v4  ;;  %v11096_v0 = vsel %vm443_vm3, %v11001_v22, 0.0  ;;  %v447_v2 = vrot.slane %v446_v57, 4  ;;  %v473_v5 = vadd.f32 %v11092_v63, %v11088_v62 }
  0x29   : > { %1442 = vst.msk [vmem:[#allocation2 + $0x90] sm:$0xf] %vm1404_vm1, %v10781_v4  ;;  %1443 = vst.msk [vmem:[#allocation2 + $0x94] sm:$0xf] %vm1404_vm1, %v10781_v4  ;;  %v11102_v6 = vsel %vm443_vm3, %v11003_v23, 0.0  ;;  %v465_v7 = vrot.slane %v464_v61, 4 }
  0x2a   : > { %1444 = vst.msk [vmem:[#allocation2 + $0x98] sm:$0x1] %vm1407_vm2, %v10781_v4  ;;  %1447 = vst.msk [vmem:[#allocation2 + $0xa4] sm:$0x1] %vm1407_vm2, %v10781_v4  ;;  %v482_v12 = vadd.f32 %v11102_v6, %v11096_v0  ;;  %v11108_v13 = vsel %vm443_vm3, %v11005_v24, 0.0  ;;  %v11112_v14 = vsel %vm443_vm3, %v11007_v25, 0.0  ;;  %v448_v19 = vadd.f32 %v447_v2, %v446_v57 }
  0x2b   : > { %1445 = vst.msk [vmem:[#allocation2 + $0x9c] sm:$0xf] %vm1404_vm1, %v10781_v4  ;;  %1446 = vst.msk [vmem:[#allocation2 + $0xa0] sm:$0xf] %vm1404_vm1, %v10781_v4  ;;  %v474_v21 = vrot.slane %v473_v5, 4  ;;  %v491_v26 = vadd.f32 %v11112_v14, %v11108_v13  ;;  %v466_v27 = vadd.f32 %v465_v7, %v464_v61  ;;  %v11118_v33 = vsel %vm443_vm3, %v11012_v29, 0.0 }
  0x2c   : > { %1448 = vst.msk [vmem:[#allocation2 + $0xa8] sm:$0xf] %vm1404_vm1, %v10781_v4  ;;  %1449 = vst.msk [vmem:[#allocation2 + $0xac] sm:$0xf] %vm1404_vm1, %v10781_v4  ;;  %v483_v28 = vrot.slane %v482_v12, 4  ;;  %v11122_v34 = vsel %vm443_vm3, %v11014_v30, 0.0 }
  0x2d   : > { %1450 = vst.msk [vmem:[#allocation2 + $0xb0] sm:$0x1] %vm1407_vm2, %v10781_v4  ;;  %1453 = vst.msk [vmem:[#allocation2 + $0xbc] sm:$0x1] %vm1407_vm2, %v10781_v4  ;;  %v449_v39 = vrot.slane %v448_v19, 2  ;;  %v475_v1 = vadd.f32 %v474_v21, %v473_v5  ;;  %v467_v57 = vrot.slane %v466_v27, 2  ;;  %v500_v2 = vadd.f32 %v11122_v34, %v11118_v33 }
  0x2e   : > { %1451 = vst.msk [vmem:[#allocation2 + $0xb4] sm:$0xf] %vm1404_vm1, %v10781_v4  ;;  %1452 = vst.msk [vmem:[#allocation2 + $0xb8] sm:$0xf] %vm1404_vm1, %v10781_v4  ;;  %v11128_v61 = vsel %vm443_vm3, %v11016_v31, 0.0  ;;  %v11132_v5 = vsel %vm443_vm3, %v11018_v32, 0.0 }
  0x2f   : > { %1454 = vst.msk [vmem:[#allocation2 + $0xc0] sm:$0xf] %vm1404_vm1, %v10781_v4  ;;  %1455 = vst.msk [vmem:[#allocation2 + $0xc4] sm:$0xf] %vm1404_vm1, %v10781_v4  ;;  %vm706_vm11 = vcmask 1046534   ;;  %vm708_vm12 = vcmask 1047559  }
  0x30   : > { %1456 = vst.msk [vmem:[#allocation2 + $0xc8] sm:$0x1] %vm1407_vm2, %v10781_v4  ;;  %1459 = vst.msk [vmem:[#allocation2 + $0xd4] sm:$0x1] %vm1407_vm2, %v10781_v4  ;;  %vm1817_vm13 = vsmask.f32 7938 }
  0x31   : > { %1457 = vst.msk [vmem:[#allocation2 + $0xcc] sm:$0xf] %vm1404_vm1, %v10781_v4  ;;  %1458 = vst.msk [vmem:[#allocation2 + $0xd0] sm:$0xf] %vm1404_vm1, %v10781_v4  ;;  %v456_v4 = vrot.slane %v455_v58, 4  ;;  %s14620_s12 = scalar_lea.vmem [#allocation3], %s14613_s11 }
  0x32   : > { %14909 = vst [vmem:[#allocation6_spill] sm:$0xff] %v10979_v8  ;;  %14910 = vst [vmem:[#allocation7_spill] sm:$0xff] %v10981_v9  ;;  %vm1492_vm14 = vsmask.f32 256  ;;  %vm1493_vm15 = vsmask.f32 4368 }
  0x33   : > { %14911 = vst [vmem:[#allocation8_spill] sm:$0xff] %v10983_v10  ;;  %14912 = vst [vmem:[#allocation9_spill] sm:$0xff] %v10985_v11  ;;  %v457_v20 = vadd.f32 %v456_v4, %v455_v58  ;;  %v484_v58 = vadd.f32 %v483_v28, %v482_v12  ;;  %v450_v4 = vadd.f32 %v449_v39, %v448_v19  ;;  %s8491_s20 = sshll.u32 %s14620_s12, 4  ;;  %s14740_s17 = scalar_lea.sflag [#allocation4], %s365_s30  ;;  %s14734_s20 = int_to_ptr.vmem [resolvable:$true] %s8491_s20 }
  0x34   : > { %14913 = vst [vmem:[#allocation10_spill] sm:$0xff] %v10990_v15  ;;  %14914 = vst [vmem:[#allocation11_spill] sm:$0xff] %v10992_v16  ;;  %v509_v19 = vadd.f32 %v11132_v5, %v11128_v61  ;;  %s10715_s28 = scalar_lea.vmem %s14734_s20, 4096 }
  0x35   : > { %14915 = vst [vmem:[#allocation12_spill] sm:$0xff] %v10994_v17  ;;  %14916 = vst [vmem:[#allocation13_spill] sm:$0xff] %v10996_v18  ;;  %v458_v40 = vrot.slane %v457_v20, 2  ;;  %v451_v21 = vrot.slane %v450_v4, 1  ;;  %p10716_p11 = scmp.ne.s32.totalorder %s14734_s20, %s10715_s28 }
  0x36   : > { %14917 = vst [vmem:[#allocation14_spill] sm:$0xff] %v11001_v22  ;;  %14918 = vst [vmem:[#allocation15_spill] sm:$0xff] %v11003_v23  ;;  %v468_v23 = vadd.f32 %v467_v57, %v466_v27  ;;  %v501_v22 = vrot.slane %v500_v2, 4 }
  0x37   : > { %14919 = vst [vmem:[#allocation16_spill] sm:$0xff] %v11005_v24  ;;  %14920 = vst [vmem:[#allocation17_spill] sm:$0xff] %v11007_v25  ;;  %v492_v25 = vrot.slane %v491_v26, 4  ;;  %v459_v7 = vadd.f32 %v458_v40, %v457_v20  ;;  %v11136_v20 = vadd.f32 %v451_v21, %v450_v4  ;;  %v11168_v4 = vsel %vm443_vm3, %v11032_v41, 0.0  ;;  %p10717_p12 = pnand %p10716_p11, %p10880_p5 }
  0x38   : > { %14921 = vst [vmem:[#allocation18_spill] sm:$0xff] %v11012_v29  ;;  %14922 = vst [vmem:[#allocation19_spill] sm:$0xff] %v11014_v30  ;;  %v476_v29 = vrot.slane %v475_v1, 2  ;;  %v485_v30 = vrot.slane %v484_v58, 2  ;;  %v469_v17 = vrot.slane %v468_v23, 1  ;;  %v502_v15 = vadd.f32 %v501_v22, %v500_v2 }
  0x39   : > { %14923 = vst [vmem:[#allocation20_spill] sm:$0xff] %v11016_v31  ;;  %14924 = vst [vmem:[#allocation21_spill] sm:$0xff] %v11018_v32  ;;  %v493_v24 = vadd.f32 %v492_v25, %v491_v26  ;;  %v460_v12 = vrot.slane %v459_v7, 1  ;;  %v510_v32 = vrot.slane %v509_v19, 4  ;;  %v11146_v22 = vsel %vm443_vm3, %v11022_v35, 0.0  ;;  %p10718_p13 = pneg %p10717_p12 }
  0x3a   : > { %14925 = vst [vmem:[#allocation22_spill] sm:$0xff] %v11022_v35  ;;  %14926 = vst [vmem:[#allocation23_spill] sm:$0xff] %v11024_v36  ;;  %v477_v28 = vadd.f32 %v476_v29, %v475_v1  ;;  %v486_v16 = vadd.f32 %v485_v30, %v484_v58  ;;  %v11140_v39 = vadd.f32 %v469_v17, %v468_v23  ;;  %v503_v57 = vrot.slane %v502_v15, 2 }
  0x3b   : > { %14927 = vst [vmem:[#allocation24_spill] sm:$0xff] %v11026_v37  ;;  %14928 = vst [vmem:[#allocation25_spill] sm:$0xff] %v11028_v38  ;;  %v494_v18 = vrot.slane %v493_v24, 2  ;;  %v11138_v25 = vadd.f32 %v460_v12, %v459_v7  ;;  %v11150_v29 = vsel %vm443_vm3, %v11024_v36, 0.0  ;;  %v11164_v2 = vsel %vm443_vm3, %v11028_v38, 0.0 }
  0x3c   : > { %14929 = vst [vmem:[#allocation26_spill] sm:$0xff] %v11032_v41  ;;  %14930 = vst [vmem:[#allocation27_spill] sm:$0xff] %v11034_v42  ;;  %v478_v26 = vrot.slane %v477_v28, 1  ;;  %v487_v40 = vrot.slane %v486_v16, 1  ;;  %v504_v58 = vadd.f32 %v503_v57, %v502_v15  ;;  %v518_v17 = vadd.f32 %v11150_v29, %v11146_v22 }
  0x3d   : > { %14931 = vst [vmem:[#allocation28_spill] sm:$0xff] %v11036_v43  ;;  %14932 = vst [vmem:[#allocation29_spill] sm:$0xff] %v11038_v44  ;;  %v495_v27 = vadd.f32 %v494_v18, %v493_v24  ;;  %v511_v18 = vadd.f32 %v510_v32, %v509_v19  ;;  %v11160_v24 = vsel %vm443_vm3, %v11026_v37, 0.0  ;;  %v11174_v21 = vsel %vm443_vm3, %v11034_v42, 0.0 }
  0x3e   : > { %14933 = vst [vmem:[#allocation30_spill] sm:$0xff] %v11040_v45  ;;  %14934 = vst [vmem:[#allocation31_spill] sm:$0xff] %v11042_v46  ;;  %v11142_v31 = vadd.f32 %v478_v26, %v477_v28  ;;  %v11152_v30 = vadd.f32 %v487_v40, %v486_v16  ;;  %v505_v16 = vrot.slane %v504_v58, 1  ;;  %v519_v32 = vrot.slane %v518_v17, 4 }
  0x3f   : > { %14935 = vst [vmem:[#allocation32_spill] sm:$0xff] %v11044_v47  ;;  %14936 = vst [vmem:[#allocation33_spill] sm:$0xff] %v11046_v48  ;;  %v496_v1 = vrot.slane %v495_v27, 1  ;;  %v512_v15 = vrot.slane %v511_v18, 2  ;;  %v527_v7 = vadd.f32 %v11164_v2, %v11160_v24  ;;  %v11178_v12 = vsel %vm443_vm3, %v11036_v43, 0.0 }
  0x40   : > { %14937 = vst [vmem:[#allocation34_spill] sm:$0xff] %v11048_v49  ;;  %14938 = vst [vmem:[#allocation35_spill] sm:$0xff] %v11050_v50  ;;  %v11182_v28 = vsel %vm443_vm3, %v11038_v44, 0.0  ;;  %v11186_v19 = vsel %vm443_vm3, %v11040_v45, 0.0  ;;  %v506_v26 = vadd.f32 %v505_v16, %v504_v58  ;;  %v520_v40 = vadd.f32 %v519_v32, %v518_v17 }
  0x41   : > { %14939 = vst [vmem:[#allocation36_spill] sm:$0xff] %v11052_v51  ;;  %14940 = vst [vmem:[#allocation37_spill] sm:$0xff] %v11054_v52  ;;  %v11156_v23 = vadd.f32 %v496_v1, %v495_v27  ;;  %v513_v27 = vadd.f32 %v512_v15, %v511_v18  ;;  %v528_v57 = vrot.slane %v527_v7, 4  ;;  %v536_v1 = vadd.f32 %v11174_v21, %v11168_v4 }
  0x42   : > { %v545_v42 = vadd.f32 %v11182_v28, %v11178_v12  ;;  %v11194_v43 = vsel %vm443_vm3, %v11042_v46, 0.0  ;;  %v11198_v44 = vsel %vm443_vm3, %v11044_v47, 0.0  ;;  %v521_v41 = vrot.slane %v520_v40, 2  ;;  %vm11265_vm0 = vmor %vm2995_vm6, %vm2996_vm7 }
  0x43   : > { %14941 = vst [vmem:[#allocation38_spill] sm:$0xff] %v11194_v43  ;;  %14942 = vst [vmem:[#allocation39_spill] sm:$0xff] %v11198_v44  ;;  %v514_v45 = vrot.slane %v513_v27, 1  ;;  %v529_v58 = vadd.f32 %v528_v57, %v527_v7  ;;  %v554_v18 = vadd.f32 %v11194_v43, %v11186_v19  ;;  %v537_v17 = vrot.slane %v536_v1, 4 }
  0x44   : > { %v546_v16 = vrot.slane %v545_v42, 4  ;;  %v11204_v15 = vsel %vm443_vm3, %v11046_v48, 0.0  ;;  %v11208_v32 = vsel %vm443_vm3, %v11048_v49, 0.0  ;;  %v522_v38 = vadd.f32 %v521_v41, %v520_v40  ;;  %vm11317_vm6 = vmand %vm1407_vm2, %vm1492_vm14 }
  0x45   : > { %14943 = vst [vmem:[#allocation40_spill] sm:$0xff] %v11204_v15  ;;  %14944 = vst [vmem:[#allocation41_spill] sm:$0xff] %v11208_v32  ;;  %v515_v46 = vadd.f32 %v514_v45, %v513_v27  ;;  %v530_v47 = vrot.slane %v529_v58, 2  ;;  %v555_v37 = vrot.slane %v554_v18, 4  ;;  %v538_v36 = vadd.f32 %v537_v17, %v536_v1 }
  0x46   : > { %v547_v35 = vadd.f32 %v546_v16, %v545_v42  ;;  %v563_v7 = vadd.f32 %v11204_v15, %v11198_v44  ;;  %v11214_v57 = vsel %vm443_vm3, %v11050_v50, 0.0  ;;  %v523_v11 = vrot.slane %v522_v38, 1 }
  0x47   : > { %14945 = vst [vmem:[#allocation42_spill] sm:$0xff] %v11214_v57  ;;  %v531_v48 = vadd.f32 %v530_v47, %v529_v58  ;;  %v556_v10 = vadd.f32 %v555_v37, %v554_v18  ;;  %v572_v49 = vadd.f32 %v11214_v57, %v11208_v32  ;;  %v539_v9 = vrot.slane %v538_v36, 2 }
  0x48   : > { %v548_v45 = vrot.slane %v547_v35, 2  ;;  %v564_v41 = vrot.slane %v563_v7, 4  ;;  %v11220_v27 = vsel %vm443_vm3, %v11052_v51, 0.0  ;;  %v524_v42 = vadd.f32 %v523_v11, %v522_v38 }
  0x49   : > { %14946 = vst [vmem:[#allocation43_spill] sm:$0xff] %v11220_v27  ;;  %v532_v40 = vrot.slane %v531_v48, 1  ;;  %v557_v1 = vrot.slane %v556_v10, 2  ;;  %v573_v17 = vrot.slane %v572_v49, 4  ;;  %v540_v16 = vadd.f32 %v539_v9, %v538_v36 }
  0x4a   : > { %v549_v50 = vadd.f32 %v548_v45, %v547_v35  ;;  %v565_v8 = vadd.f32 %v564_v41, %v563_v7  ;;  %v11224_v37 = vsel %vm443_vm3, %v11054_v52, 0.0  ;;  %v11229_v11 = vmul.f32 0.0625, %v11136_v20 }
  0x4b   : > { %14947 = vst [vmem:[#allocation44_spill] sm:$0xff] %v11224_v37  ;;  %v533_v47 = vadd.f32 %v532_v40, %v531_v48  ;;  %v558_v58 = vadd.f32 %v557_v1, %v556_v10  ;;  %v574_v18 = vadd.f32 %v573_v17, %v572_v49  ;;  %v581_v57 = vadd.f32 %v11224_v37, %v11220_v27 }
  0x4c   : > { %v541_v32 = vrot.slane %v540_v16, 1  ;;  %v550_v51 = vrot.slane %v549_v50, 1  ;;  %v566_v15 = vrot.slane %v565_v8, 2  ;;  %v11232_v36 = vmul.f32 0.0625, %v11138_v25 }
  0x4d   : > { %v559_v38 = vrot.slane %v558_v58, 1  ;;  %v575_v9 = vrot.slane %v574_v18, 2  ;;  %v582_v35 = vrot.slane %v581_v57, 4  ;;  %v591_v10 = vmul.f32 0.0625, %v11140_v39 }
  0x4e   : > { %v542_v7 = vadd.f32 %v541_v32, %v540_v16  ;;  %v551_v45 = vadd.f32 %v550_v51, %v549_v50  ;;  %v567_v48 = vadd.f32 %v566_v15, %v565_v8  ;;  %v592_v1 = vmul.f32 0.0625, %v11142_v31 }
  0x4f   : > { %v560_v49 = vadd.f32 %v559_v38, %v558_v58  ;;  %v576_v41 = vadd.f32 %v575_v9, %v574_v18  ;;  %v583_v40 = vadd.f32 %v582_v35, %v581_v57  ;;  %v593_v20 = vmul.f32 0.0625, %v11152_v30 }
  0x50   : > { %v568_v17 = vrot.slane %v567_v48, 1  ;;  %v594_v52 = vmul.f32 0.0625, %v11156_v23  ;;  %v595_v37 = vmul.f32 0.0625, %v506_v26  ;;  %v596_v25 = vmul.f32 0.0625, %v515_v46 }
  0x51   : > { %v577_v27 = vrot.slane %v576_v41, 1  ;;  %v584_v44 = vrot.slane %v583_v40, 2  ;;  %v597_v43 = vmul.f32 0.0625, %v524_v42  ;;  %v598_v50 = vmul.f32 0.0625, %v533_v47 }
  0x52   : > { %v569_v32 = vadd.f32 %v568_v17, %v567_v48  ;;  %v599_v8 = vmul.f32 0.0625, %v542_v7  ;;  %v600_v51 = vmul.f32 0.0625, %v551_v45  ;;  %v601_v16 = vmul.f32 0.0625, %v560_v49 }
  0x53   : > { %v578_v39 = vadd.f32 %v577_v27, %v576_v41  ;;  %v585_v15 = vadd.f32 %v584_v44, %v583_v40  ;;  %v605_v31 = vadd.f32 %v11066_v55, %v11058_v53  ;;  %v620_v30 = vadd.f32 %v11070_v56, %v11062_v54 }
  0x54   : > { %v602_v57 = vmul.f32 0.0625, %v569_v32  ;;  %v637_v23 = vpack.c.bf16 %v11229_v11, %v11229_v11  ;;  %v638_v46 = vpack.c.bf16 %v11232_v36, %v11232_v36  ;;  %v639_v27 = vpack.c.bf16 %v591_v10, %v591_v10 }
  0x55   : > { %v586_v26 = vrot.slane %v585_v15, 1  ;;  %v603_v42 = vmul.f32 0.0625, %v578_v39  ;;  %v606_v47 = vadd.f32 %v605_v31, %v11078_v59  ;;  %v621_v44 = vadd.f32 %v620_v30, %v11082_v60  ;;  %v1934_v31 = vld [vmem:[#allocation2 + $0x4] sm:$0xf] }
  0x56   : > { %v640_v58 = vpack.c.bf16 %v592_v1, %v592_v1  ;;  %v641_v53 = vpack.c.bf16 %v593_v20, %v593_v20  ;;  %v642_v55 = vpack.c.bf16 %v594_v52, %v594_v52  ;;  %v643_v18 = vpack.c.bf16 %v595_v37, %v595_v37 }
  0x57   : > { %v587_v54 = vadd.f32 %v586_v26, %v585_v15  ;;  %v607_v56 = vadd.f32 %v606_v47, %v11088_v62  ;;  %v644_v11 = vpack.c.bf16 %v596_v25, %v596_v25  ;;  %v622_v38 = vadd.f32 %v621_v44, %v11092_v63 }
  0x58   : > { %v645_v9 = vpack.c.bf16 %v597_v43, %v597_v43  ;;  %v646_v59 = vpack.c.bf16 %v598_v50, %v598_v50  ;;  %v647_v35 = vpack.c.bf16 %v599_v8, %v599_v8  ;;  %v648_v7 = vpack.c.bf16 %v600_v51, %v600_v51 }
  0x59   : > { %v604_v36 = vmul.f32 0.0625, %v587_v54  ;;  %v608_v60 = vadd.f32 %v607_v56, %v11096_v0  ;;  %v649_v52 = vpack.c.bf16 %v601_v16, %v601_v16  ;;  %v623_v45 = vadd.f32 %v622_v38, %v11102_v6  ;;  %v1460_v56 = vld [vmem:[%s10973_s21] sm:$0xf] }
  0x5a   : > { %v650_v48 = vpack.c.bf16 %v602_v57, %v602_v57  ;;  %v651_v10 = vpack.c.bf16 %v603_v42, %v603_v42  ;;  %v680_v62 = vunpack.c.l.b16 %v637_v23  ;;  %v681_v63 = vunpack.c.l.b16 %v638_v46  ;;  %v1969_v23 = vld [vmem:[#allocation2 + $0x8] sm:$0x1] }
  0x5b   : > { %v609_v37 = vadd.f32 %v608_v60, %v11108_v13  ;;  %v652_v49 = vpack.c.bf16 %v604_v36, %v604_v36  ;;  %v682_v43 = vunpack.c.l.b16 %v639_v27  ;;  %v624_v41 = vadd.f32 %v623_v45, %v11112_v14  ;;  %v2947_v13 = vld [vmem:[#allocation2] sm:$0xe] }
  0x5c   : > { %v683_v40 = vunpack.c.l.b16 %v640_v58  ;;  %v684_v1 = vunpack.c.l.b16 %v641_v53  ;;  %v685_v0 = vunpack.c.l.b16 %v642_v55  ;;  %v686_v20 = vunpack.c.l.b16 %v643_v18 }
  0x5d   : > { %v610_v17 = vadd.f32 %v609_v37, %v11118_v33  ;;  %v687_v25 = vunpack.c.l.b16 %v644_v11  ;;  %v688_v6 = vunpack.c.l.b16 %v645_v9  ;;  %v625_v32 = vadd.f32 %v624_v41, %v11122_v34 }
  0x5e   : > { %v689_v50 = vunpack.c.l.b16 %v646_v59  ;;  %v690_v8 = vunpack.c.l.b16 %v647_v35  ;;  %v691_v51 = vunpack.c.l.b16 %v648_v7  ;;  %v692_v15 = vunpack.c.l.b16 %v649_v52 }
  0x5f   : > { %v611_v39 = vadd.f32 %v610_v17, %v11128_v61  ;;  %v693_v16 = vunpack.c.l.b16 %v650_v48  ;;  %v694_v14 = vunpack.c.l.b16 %v651_v10  ;;  %v626_v33 = vadd.f32 %v625_v32, %v11132_v5  ;;  %v10460_v10 = vld [vmem:[%s14785_s4 + $0x28] sm:$0xff]  }
  0x60   : > { %v695_v57 = vunpack.c.l.b16 %v652_v49  ;;  %v697_v30 = vsel %vm696_vm4, %v681_v63, %v680_v62  ;;  %v710_v34 = vsel %vm696_vm4, %v689_v50, %v688_v6  ;;  %v8657_v5 = vrot.slane %v2947_v13, 9  ;;  %vm11301_vm4 = vmand %vm1404_vm1, %vm1817_vm13 }
  0x61   : > { %v699_v46 = vsel %vm698_vm5, %v682_v43, %v697_v30  ;;  %v711_v26 = vsel %vm698_vm5, %v690_v8, %v710_v34  ;;  %v612_v61 = vadd.f32 %v611_v39, %v11146_v22  ;;  %v627_v44 = vadd.f32 %v626_v33, %v11150_v29  ;;  %vm11310_vm5 = vmor %vm1492_vm14, %vm1493_vm15  ;;  %v1825_v8 = vld [vmem:[#allocation2 + $0x14] sm:$0x1]  ;;  %v14958_v33 = vld [vmem:[#allocation40_spill] sm:$0xff] }
  0x62   : > { %v701_v47 = vsel %vm700_vm8, %v683_v40, %v699_v46  ;;  %v712_v27 = vsel %vm700_vm8, %v691_v51, %v711_v26  ;;  %v3000_v58 = vrot.slane %v1934_v31, 5  ;;  %v3003_v54 = vrot.slane %v1969_v23, 5  ;;  %v1463_v40 = vld [vmem:[%s10973_s21 + $0xc] sm:$0xf]  ;;  %v14955_v51 = vld [vmem:[#allocation39_spill] sm:$0xff]  ;;  %v11324_v39 = vld [vmem:[%s14785_s4 + $0x30] sm:$0xff]  }
  0x63   : > { %v703_v53 = vsel %vm702_vm9, %v684_v1, %v701_v47  ;;  %v713_v55 = vsel %vm702_vm9, %v692_v15, %v712_v27  ;;  %v613_v22 = vadd.f32 %v612_v61, %v11160_v24  ;;  %v628_v38 = vadd.f32 %v627_v44, %v11164_v2  ;;  %v1461_v24 = vld [vmem:[%s10973_s21 + $0x4] sm:$0xf]  ;;  %v1462_v2 = vld [vmem:[%s10973_s21 + $0x8] sm:$0xf]  ;;  %v1464_v31 = vld [vmem:[%s10973_s21 + $0x10] sm:$0xf] }
  0x64   : > { %v705_v18 = vsel %vm704_vm10, %v685_v0, %v703_v53  ;;  %v714_v11 = vsel %vm704_vm10, %v693_v16, %v713_v55  ;;  %v3001_v9 = vsel %vm11265_vm0, %v8657_v5, %v3000_v58  ;;  %v3002_v36 = vrot.slane %v3000_v58, 4  ;;  %v1828_v46 = vld [vmem:[#allocation2 + $0x18] sm:$0xf]  ;;  %v14959_v26 = vld [vmem:[#allocation41_spill] sm:$0xff] }
  0x65   : > { %v707_v29 = vsel %vm706_vm11, %v686_v20, %v705_v18  ;;  %v715_v59 = vsel %vm706_vm11, %v694_v14, %v714_v11  ;;  %v614_v35 = vadd.f32 %v613_v22, %v11168_v4  ;;  %v629_v52 = vadd.f32 %v628_v38, %v11174_v21  ;;  %v1465_v44 = vld [vmem:[%s10973_s21 + $0x14] sm:$0xf]  ;;  %v14960_v58 = vld [vmem:[#allocation42_spill] sm:$0xff]  ;;  %v14961_v18 = vld [vmem:[#allocation43_spill] sm:$0xff] }
  0x66   : > { %v709_v60 = vsel %vm708_vm12, %v687_v25, %v707_v29  ;;  %v716_v7 = vsel %vm708_vm12, %v695_v57, %v715_v59  ;;  %v1496_v45 = vshrl.u32 %v1460_v56, 16  ;;  %v3004_v4 = vsel %vm11265_vm0, %v3002_v36, %v3003_v54  ;;  %v14962_v59 = vld [vmem:[#allocation44_spill] sm:$0xff]  ;;  %v10483_v0 = vld [vmem:[%s14785_s4 + $0x10] sm:$0xff]  }
  0x67   : > { %v717_v48 = vpack.c.b16 %v716_v7, %v709_v60  ;;  %v615_v62 = vadd.f32 %v614_v35, %v11178_v12  ;;  %v1499_v37 = vshll.u32 %v1460_v56, 16  ;;  %v630_v49 = vadd.f32 %v629_v52, %v11182_v28  ;;  %v1819_v12 = vld [vmem:[#allocation2 + $0xc] sm:$0xf]  ;;  %v14952_v28 = vld [vmem:[#allocation38_spill] sm:$0xff]  ;;  %9573 = vmatprep.subr.bf16.mxu1 %v10483_v0 }
  0x68   : > { %v8677_v63 = vcombine.low %v3001_v9, %v3004_v4  ;;  %v1498_v43 = vrot.slane %v1496_v45, 7  ;;  %v1504_v41 = vshrl.u32 %v1461_v24, 16  ;;  %v1507_v1 = vshll.u32 %v1461_v24, 16  ;;  %v1466_v56 = vld [vmem:[%s10973_s21 + $0x18] sm:$0xf] }
  0x69   : > { %9562 = vmatmul.mubr.msk.bf16.vlgmr.msra.gmra.mrb[0].mxu0 %vm443_vm3, %v717_v48  ;;  %v616_v21 = vadd.f32 %v615_v62, %v11186_v19  ;;  %v1513_v17 = vshrl.u32 %v1462_v2, 16  ;;  %v1516_v20 = vshll.u32 %v1462_v2, 16  ;;  %v631_v25 = vadd.f32 %v630_v49, %v14952_v28  ;;  %v1467_v7 = vld [vmem:[%s10973_s21 + $0x1c] sm:$0xf]  ;;  %v1835_v48 = vld [vmem:[#allocation2 + $0x24] sm:$0xf] }
  0x6a   : > { %9646 = vmatpush3.bf16.msra.mxu0 %v10905_v3  ;;  %9649 = vmatprep.mubr.msk.bf16.mxu0 %vm443_vm3, %v8677_v63  ;;  %v1501_v6 = vor.u32 %v1499_v37, %v1498_v43  ;;  %v1502_v32 = vrot.slane %v1498_v43, 4  ;;  %v1506_v50 = vrot.slane %v1504_v41, 7  ;;  %v1521_v16 = vshrl.u32 %v1463_v40, 16  ;;  %v1832_v63 = vld [vmem:[#allocation2 + $0x20] sm:$0x1] }
  0x6b   : > { %9647 = vmatprep.subr.bf16.mxu0 %v10460_v10  ;;  %v617_v13 = vadd.f32 %v616_v21, %v14955_v51  ;;  %v1515_v15 = vrot.slane %v1513_v17, 7  ;;  %v1524_v14 = vshll.u32 %v1463_v40, 16  ;;  %v632_v57 = vadd.f32 %v631_v25, %v14958_v33  ;;  %v1469_v17 = vld [vmem:[%s10973_s21 + $0x24] sm:$0xf] }
  0x6c   : > { %v1509_v30 = vor.u32 %v1507_v1, %v1506_v50  ;;  %v1511_v34 = vrot.slane %v1506_v50, 4  ;;  %v1820_v23 = vsel %vm11301_vm4, %v1501_v6, %v1819_v12  ;;  %v1523_v27 = vrot.slane %v1521_v16, 7  ;;  %v1842_v1 = vld [vmem:[#allocation2 + $0x30] sm:$0xf]  ;;  %v1468_v12 = vld [vmem:[%s10973_s21 + $0x20] sm:$0xf] }
  0x6d   : > { %v618_v61 = vadd.f32 %v617_v13, %v14959_v26  ;;  %1821 = vst [vmem:[#allocation2 + $0xc] sm:$0xf] %v1820_v23  ;;  %v1518_v5 = vor.u32 %v1516_v20, %v1515_v15  ;;  %v1519_v47 = vrot.slane %v1515_v15, 4  ;;  %v633_v53 = vadd.f32 %v632_v57, %v14960_v58  ;;  %v1839_v20 = vld [vmem:[#allocation2 + $0x2c] sm:$0x1] }
  0x6e   : > { %9648 = vmatpush3.bf16.msra.mxu0 %v10460_v10  ;;  %v1510_v55 = vsel %vm11310_vm5, %v1502_v32, %v1509_v30  ;;  %v1826_v22 = vsel %vm11317_vm6, %v1511_v34, %v1825_v8  ;;  %v1530_v54 = vshrl.u32 %v1464_v31, 16  ;;  %v1526_v38 = vor.u32 %v1524_v14, %v1523_v27  ;;  %v1470_v16 = vld [vmem:[%s10973_s21 + $0x28] sm:$0xf]  ;;  %v1471_v26 = vld [vmem:[%s10973_s21 + $0x2c] sm:$0xf] }
  0x6f   : > { %v619_v11 = vadd.f32 %v618_v61, %v14961_v18  ;;  %1822 = vst.msk [vmem:[#allocation2 + $0x10] sm:$0xf] %vm1404_vm1, %v1510_v55  ;;  %1827 = vst [vmem:[#allocation2 + $0x14] sm:$0x1] %v1826_v22  ;;  %9681 = vmatprep.subr.bf16.mxu0 %v11324_v39  ;;  %v1528_v9 = vrot.slane %v1523_v27, 4  ;;  %v1829_v29 = vsel %vm11301_vm4, %v1518_v5, %v1828_v46  ;;  %v1533_v24 = vshll.u32 %v1464_v31, 16 }
  0x70   : > { %v634_v35 = vadd.f32 %v633_v53, %v14962_v59  ;;  %1830 = vst [vmem:[#allocation2 + $0x18] sm:$0xf] %v1829_v29  ;;  %v1532_v36 = vrot.slane %v1530_v54, 7  ;;  %v1538_v60 = vshrl.u32 %v1465_v44, 16  ;;  %v1527_v45 = vsel %vm11310_vm5, %v1519_v47, %v1526_v38  ;;  %v1849_v18 = vld [vmem:[#allocation2 + $0x3c] sm:$0xf] }
  0x71   : > { %v635_v52 = vmul.f32 0.0625, %v619_v11  ;;  %v1541_v2 = vshll.u32 %v1465_v44, 16  ;;  %v1547_v10 = vshrl.u32 %v1466_v56, 16  ;;  %1831 = vst.msk [vmem:[#allocation2 + $0x1c] sm:$0xf] %vm1404_vm1, %v1527_v45  ;;  %v1550_v41 = vshll.u32 %v1466_v56, 16 }
  0x72   : > { %v636_v62 = vmul.f32 0.0625, %v634_v35  ;;  %v1535_v4 = vor.u32 %v1533_v24, %v1532_v36  ;;  %v1536_v37 = vrot.slane %v1532_v36, 4  ;;  %v1540_v49 = vrot.slane %v1538_v60, 7  ;;  %v1472_v44 = vld [vmem:[%s10973_s21 + $0x30] sm:$0xf] }
  0x73   : > { %v1549_v43 = vrot.slane %v1547_v10, 7  ;;  %v1555_v40 = vshrl.u32 %v1467_v7, 16  ;;  %v1558_v21 = vshll.u32 %v1467_v7, 16  ;;  %v1833_v57 = vsel %vm11317_vm6, %v1528_v9, %v1832_v63  ;;  %v1473_v36 = vld [vmem:[%s10973_s21 + $0x34] sm:$0xf]  ;;  %v10462_v7 = vld [vmem:[%s14785_s4 + $0x38] sm:$0xff]  }
  0x74   : > { %v786_v28 = vpack.c.bf16 %v636_v62, %v635_v52  ;;  %v2948_v25 = vld [vmem:[#allocation2 + $0xc] sm:$0xe]  ;;  %v1543_v6 = vor.u32 %v1541_v2, %v1540_v49  ;;  %v1545_v32 = vrot.slane %v1540_v49, 4  ;;  %v1836_v50 = vsel %vm11301_vm4, %v1535_v4, %v1835_v48  ;;  %1834 = vst [vmem:[#allocation2 + $0x20] sm:$0x1] %v1833_v57 }
  0x75   : > { %v8658_v8 = vrot.slane %v2948_v25, 9  ;;  %1837 = vst [vmem:[#allocation2 + $0x24] sm:$0xf] %v1836_v50  ;;  %v1552_v51 = vor.u32 %v1550_v41, %v1549_v43  ;;  %v1553_v13 = vrot.slane %v1549_v43, 4  ;;  %v11352_v15 = vrot.slane %v1555_v40, 7 }
  0x76   : > { %9570 = vmatmul.mubr.msk.bf16.vlgmr.msra.gmra.mrb[0].mxu1 %vm443_vm3, %v786_v28  ;;  %v1936_v14 = vld [vmem:[#allocation2 + $0x10] sm:$0xf]  ;;  %v1970_v31 = vld [vmem:[#allocation2 + $0x14] sm:$0x1]  ;;  %v1544_v33 = vsel %vm11310_vm5, %v1536_v37, %v1543_v6  ;;  %v1840_v30 = vsel %vm11317_vm6, %v1545_v32, %v1839_v20  ;;  %v1564_v5 = vshrl.u32 %v1468_v12, 16  ;;  %v1567_v47 = vshll.u32 %v1468_v12, 16 }
  0x77   : > { %v3007_v34 = vrot.slane %v1936_v14, 5  ;;  %v3010_v23 = vrot.slane %v1970_v31, 5  ;;  %1838 = vst.msk [vmem:[#allocation2 + $0x28] sm:$0xf] %vm1404_vm1, %v1544_v33  ;;  %v1560_v46 = vor.u32 %v1558_v21, %v11352_v15  ;;  %1841 = vst [vmem:[#allocation2 + $0x2c] sm:$0x1] %v1840_v30  ;;  %v1843_v61 = vsel %vm11301_vm4, %v1552_v51, %v1842_v1  ;;  %9574 = vmatpush3.bf16.msra.mxu1 %v10483_v0 }
  0x78   : > { %v1572_v27 = vshrl.u32 %v1469_v17, 16  ;;  %1844 = vst [vmem:[#allocation2 + $0x30] sm:$0xf] %v1843_v61  ;;  %v1575_v22 = vshll.u32 %v1469_v17, 16  ;;  %v1566_v54 = vrot.slane %v1564_v5, 7  ;;  %v1581_v11 = vshrl.u32 %v1470_v16, 16 }
  0x79   : > { %v3008_v58 = vsel %vm11265_vm0, %v8658_v8, %v3007_v34  ;;  %v3009_v53 = vrot.slane %v3007_v34, 4  ;;  %v1561_v55 = vsel %vm11310_vm5, %v1553_v13, %v1560_v46  ;;  %v1584_v38 = vshll.u32 %v1470_v16, 16  ;;  %v10463_v29 = vld [vmem:[#allocation2 + $0xc] sm:$0xff]   ;;  %v1856_v48 = vld [vmem:[#allocation2 + $0x48] sm:$0xf]  ;;  %v11403_v8 = vld [vmem:[%s14785_s4 + $0x40] sm:$0xff]  }
  0x7a   : > { %1845 = vst.msk [vmem:[#allocation2 + $0x34] sm:$0xf] %vm1404_vm1, %v1561_v55  ;;  %v11373_v56 = vrot.slane %v1572_v27, 7  ;;  %v1589_v59 = vshrl.u32 %v1471_v26, 16  ;;  %v1592_v35 = vshll.u32 %v1471_v26, 16  ;;  %v1598_v24 = vshrl.u32 %v1472_v44, 16 }
  0x7b   : > { %v3011_v9 = vsel %vm11265_vm0, %v3009_v53, %v3010_v23  ;;  %v1569_v52 = vor.u32 %v1567_v47, %v1566_v54  ;;  %v1570_v45 = vrot.slane %v1566_v54, 4  ;;  %v1562_v10 = vrot.slane %v11352_v15, 4  ;;  %v1863_v49 = vld [vmem:[#allocation2 + $0x54] sm:$0xf]  ;;  %v1474_v21 = vld [vmem:[%s10973_s21 + $0x38] sm:$0xf] }
  0x7c   : > { %v8678_v60 = vcombine.low %v3008_v58, %v3011_v9  ;;  %v1577_v2 = vor.u32 %v1575_v22, %v11373_v56  ;;  %v1583_v62 = vrot.slane %v1581_v11, 7  ;;  %v11383_v4 = vrot.slane %v1589_v59, 7  ;;  %v1475_v28 = vld [vmem:[%s10973_s21 + $0x3c] sm:$0xf]  ;;  %v1476_v25 = vld [vmem:[%s10973_s21 + $0x40] sm:$0xf] }
  0x7d   : > { %v1600_v37 = vrot.slane %v1598_v24, 7  ;;  %v1850_v43 = vsel %vm11301_vm4, %v1569_v52, %v1849_v18  ;;  %v1601_v41 = vshll.u32 %v1472_v44, 16  ;;  %v1606_v40 = vshrl.u32 %v1473_v36, 16  ;;  %v1477_v31 = vld [vmem:[%s10973_s21 + $0x44] sm:$0xf]  ;;  %v10464_v59 = vld [vmem:[#allocation2 + $0x18] sm:$0xff]  }
  0x7e   : > { %9650 = vmatmul.mubr.msk.bf16.vlgmr.msra.gmra.mrb[4].mxu0 %vm443_vm3, %v8678_v60  ;;  %v1578_v63 = vsel %vm11310_vm5, %v1570_v45, %v1577_v2  ;;  %v1579_v1 = vrot.slane %v11373_v56, 4  ;;  %1851 = vst [vmem:[#allocation2 + $0x3c] sm:$0xf] %v1850_v43  ;;  %v1586_v12 = vor.u32 %v1584_v38, %v1583_v62  ;;  %v1587_v17 = vrot.slane %v1583_v62, 4  ;;  %v1870_v23 = vld [vmem:[#allocation2 + $0x60] sm:$0xf] }
  0x7f   : > { %9682 = vmatpush3.bf16.msra.mxu0 %v11324_v39  ;;  %9685 = vmatprep.mubr.msk.bf16.mxu0 %vm443_vm3, %v10463_v29  ;;  %1852 = vst.msk [vmem:[#allocation2 + $0x40] sm:$0xf] %vm1404_vm1, %v1578_v63  ;;  %v1594_v20 = vor.u32 %v1592_v35, %v11383_v4  ;;  %v1603_v6 = vor.u32 %v1601_v41, %v1600_v37  ;;  %v1604_v32 = vrot.slane %v1600_v37, 4  ;;  %v11398_v50 = vrot.slane %v1606_v40, 7  ;;  %v1478_v46 = vld [vmem:[%s10973_s21 + $0x48] sm:$0xf] }
  0x80   : > { %9683 = vmatprep.subr.bf16.mxu0 %v10462_v7  ;;  %v1609_v39 = vshll.u32 %v1473_v36, 16  ;;  %v1857_v13 = vsel %vm11301_vm4, %v1586_v12, %v1856_v48  ;;  %v1615_v16 = vshrl.u32 %v1474_v21, 16  ;;  %v1618_v14 = vshll.u32 %v1474_v21, 16  ;;  %v1846_v26 = vld [vmem:[#allocation2 + $0x38] sm:$0x1]  ;;  %v10465_v52 = vld [vmem:[#allocation2 + $0x24] sm:$0xff]  }
  0x81   : > { %v1595_v51 = vsel %vm11310_vm5, %v1587_v17, %v1594_v20  ;;  %v1596_v33 = vrot.slane %v11383_v4, 4  ;;  %1858 = vst [vmem:[#allocation2 + $0x48] sm:$0xf] %v1857_v13  ;;  %v1864_v30 = vsel %vm11301_vm4, %v1603_v6, %v1863_v49  ;;  %v1623_v34 = vshrl.u32 %v1475_v28, 16  ;;  %v1853_v44 = vld [vmem:[#allocation2 + $0x44] sm:$0x1] }
  0x82   : > { %1859 = vst.msk [vmem:[#allocation2 + $0x4c] sm:$0xf] %vm1404_vm1, %v1595_v51  ;;  %v1611_v57 = vor.u32 %v1609_v39, %v11398_v50  ;;  %1865 = vst [vmem:[#allocation2 + $0x54] sm:$0xf] %v1864_v30  ;;  %v1617_v61 = vrot.slane %v1615_v16, 7  ;;  %v1626_v5 = vshll.u32 %v1475_v28, 16  ;;  %v1847_v60 = vsel %vm11317_vm6, %v1562_v10, %v1846_v26 }
  0x83   : > { %9684 = vmatpush3.bf16.msra.mxu0 %v10462_v7  ;;  %v1632_v47 = vshrl.u32 %v1476_v25, 16  ;;  %v1635_v27 = vshll.u32 %v1476_v25, 16  ;;  %v11418_v53 = vrot.slane %v1623_v34, 7  ;;  %v1640_v55 = vshrl.u32 %v1477_v31, 16  ;;  %v1877_v54 = vld [vmem:[#allocation2 + $0x6c] sm:$0xf] }
  0x84   : > { %v1612_v58 = vsel %vm11310_vm5, %v1604_v32, %v1611_v57  ;;  %v1643_v22 = vshll.u32 %v1477_v31, 16  ;;  %v1479_v56 = vld [vmem:[%s10973_s21 + $0x4c] sm:$0xf]  ;;  %9717 = vmatprep.subr.bf16.mxu0 %v11403_v8  ;;  %v1620_v18 = vor.u32 %v1618_v14, %v1617_v61  ;;  %v1621_v11 = vrot.slane %v1617_v61, 4  ;;  %v1860_v29 = vld [vmem:[#allocation2 + $0x50] sm:$0x1] }
  0x85   : > { %1866 = vst.msk [vmem:[#allocation2 + $0x58] sm:$0xf] %vm1404_vm1, %v1612_v58  ;;  %v1634_v38 = vrot.slane %v1632_v47, 7  ;;  %v1649_v9 = vshrl.u32 %v1478_v46, 16  ;;  %v1613_v35 = vrot.slane %v11398_v50, 4  ;;  %v1628_v36 = vor.u32 %v1626_v5, %v11418_v53  ;;  %v10480_v41 = vld [vmem:[%s14785_s4 + $0x48] sm:$0xff]  }
  0x86   : > { %v11426_v24 = vld [vmem:[%s10973_s21 + $0x50] sm:$0xf]  ;;  %v1854_v7 = vsel %vm11317_vm6, %v1579_v1, %v1853_v44  ;;  %v1871_v45 = vsel %vm11301_vm4, %v1620_v18, %v1870_v23  ;;  %v11436_v62 = vrot.slane %v1640_v55, 7  ;;  %v1884_v4 = vld [vmem:[#allocation2 + $0x78] sm:$0xf]  ;;  %v1652_v49 = vshll.u32 %v1478_v46, 16 }
  0x87   : > { %v1637_v2 = vor.u32 %v1635_v27, %v1634_v38  ;;  %v1638_v48 = vrot.slane %v1634_v38, 4  ;;  %v1481_v37 = vld [vmem:[%s10973_s21 + $0x54] sm:$0xf]  ;;  %1848 = vst [vmem:[#allocation2 + $0x38] sm:$0x1] %v1847_v60  ;;  %v1629_v15 = vsel %vm11310_vm5, %v1621_v11, %v1628_v36  ;;  %v1651_v10 = vrot.slane %v1649_v9, 7 }
  0x88   : > { %1855 = vst [vmem:[#allocation2 + $0x44] sm:$0x1] %v1854_v7  ;;  %1872 = vst [vmem:[#allocation2 + $0x60] sm:$0xf] %v1871_v45  ;;  %v1657_v63 = vshrl.u32 %v1479_v56, 16  ;;  %v1630_v40 = vrot.slane %v11418_v53, 4  ;;  %v1645_v21 = vor.u32 %v1643_v22, %v11436_v62  ;;  %v1861_v17 = vsel %vm11317_vm6, %v1596_v33, %v1860_v29 }
  0x89   : > { %v11442_v43 = vld [vmem:[%s10973_s21 + $0x58] sm:$0xf]  ;;  %1873 = vst.msk [vmem:[#allocation2 + $0x64] sm:$0xf] %vm1404_vm1, %v1629_v15  ;;  %v1878_v1 = vsel %vm11301_vm4, %v1637_v2, %v1877_v54  ;;  %v11453_v12 = vld [vmem:[%s10973_s21 + $0x5c] sm:$0xf]  ;;  %v1654_v20 = vor.u32 %v1652_v49, %v1651_v10 }
  0x8a   : > { %9686 = vmatmul.mubr.msk.bf16.vlgmr.msra.gmra.mrb[4].mxu0 %vm443_vm3, %v10464_v59  ;;  %1879 = vst [vmem:[#allocation2 + $0x6c] sm:$0xf] %v1878_v1  ;;  %v1655_v28 = vrot.slane %v1651_v10, 4  ;;  %v11458_v25 = vrot.slane %v1657_v63, 7  ;;  %v1660_v6 = vshll.u32 %v1479_v56, 16  ;;  %v1646_v32 = vsel %vm11310_vm5, %v1638_v48, %v1645_v21  ;;  %v11475_v34 = vld [vmem:[%s14785_s4 + $0x50] sm:$0xff]  }
  0x8b   : > { %1862 = vst [vmem:[#allocation2 + $0x50] sm:$0x1] %v1861_v17  ;;  %9689 = vmatprep.mubr.msk.bf16.mxu0 %vm443_vm3, %v10465_v52  ;;  %v1666_v39 = vshrl.u32 %v11426_v24, 16  ;;  %v1669_v51 = vshll.u32 %v11426_v24, 16  ;;  %v1674_v13 = vshrl.u32 %v1481_v37, 16  ;;  %9718 = vmatpush3.bf16.msra.mxu0 %v11403_v8  ;;  %v1647_v14 = vrot.slane %v11436_v62, 4 }
  0x8c   : > { %v1484_v16 = vld [vmem:[%s10973_s21 + $0x60] sm:$0xf]  ;;  %1880 = vst.msk [vmem:[#allocation2 + $0x70] sm:$0xf] %vm1404_vm1, %v1646_v32  ;;  %v1662_v31 = vor.u32 %v1660_v6, %v11458_v25  ;;  %v1885_v33 = vsel %vm11301_vm4, %v1654_v20, %v1884_v4  ;;  %v1677_v57 = vshll.u32 %v1481_v37, 16  ;;  %9719 = vmatprep.subr.bf16.mxu0 %v10480_v41  ;;  %v1683_v46 = vshrl.u32 %v11442_v43, 16 }
  0x8d   : > { %v1891_v30 = vld [vmem:[#allocation2 + $0x84] sm:$0xf]  ;;  %1886 = vst [vmem:[#allocation2 + $0x78] sm:$0xf] %v1885_v33  ;;  %v1668_v8 = vrot.slane %v1666_v39, 7  ;;  %v11477_v23 = vrot.slane %v1674_v13, 7 }
  0x8e   : > { %v1686_v26 = vshll.u32 %v11442_v43, 16  ;;  %v1867_v61 = vld [vmem:[#allocation2 + $0x5c] sm:$0x1]  ;;  %v10466_v5 = vld [vmem:[#allocation2 + $0x30] sm:$0xff]   ;;  %v1663_v47 = vsel %vm11310_vm5, %v1655_v28, %v1662_v31  ;;  %v1691_v27 = vshrl.u32 %v11453_v12, 16  ;;  %v1694_v44 = vshll.u32 %v11453_v12, 16 }
  0x8f   : > { %v1485_v58 = vld [vmem:[%s10973_s21 + $0x64] sm:$0xf]  ;;  %v1700_v55 = vshrl.u32 %v1484_v16, 16  ;;  %v10467_v22 = vld [vmem:[#allocation2 + $0x3c] sm:$0xff]   ;;  %v1664_v54 = vrot.slane %v11458_v25, 4  ;;  %v1671_v56 = vor.u32 %v1669_v51, %v1668_v8  ;;  %v1672_v18 = vrot.slane %v1668_v8, 4  ;;  %9720 = vmatpush3.bf16.msra.mxu0 %v10480_v41 }
  0x90   : > { %1887 = vst.msk [vmem:[#allocation2 + $0x7c] sm:$0xf] %vm1404_vm1, %v1663_v47  ;;  %v1679_v11 = vor.u32 %v1677_v57, %v11477_v23  ;;  %v1898_v38 = vld [vmem:[#allocation2 + $0x90] sm:$0xf]  ;;  %v1486_v9 = vld [vmem:[%s10973_s21 + $0x68] sm:$0xf]  ;;  %v1868_v60 = vsel %vm11317_vm6, %v1613_v35, %v1867_v61  ;;  %9753 = vmatprep.subr.bf16.mxu0 %v11475_v34 }
  0x91   : > { %v1685_v29 = vrot.slane %v1683_v46, 7  ;;  %v11490_v59 = vrot.slane %v1691_v27, 7  ;;  %v1702_v36 = vrot.slane %v1700_v55, 7  ;;  %v1905_v24 = vld [vmem:[#allocation2 + $0x9c] sm:$0xf]  ;;  %v1892_v52 = vsel %vm11301_vm4, %v1671_v56, %v1891_v30  ;;  %v10468_v31 = vld [vmem:[#allocation2 + $0x48] sm:$0xff]  }
  0x92   : > { %v1680_v7 = vsel %vm11310_vm5, %v1672_v18, %v1679_v11  ;;  %v1703_v45 = vshll.u32 %v1484_v16, 16  ;;  %v1708_v2 = vshrl.u32 %v1485_v58, 16  ;;  %v1487_v48 = vld [vmem:[%s10973_s21 + $0x6c] sm:$0xf]  ;;  %1869 = vst [vmem:[#allocation2 + $0x5c] sm:$0x1] %v1868_v60  ;;  %9690 = vmatmul.mubr.msk.bf16.gmra.mrb[8].mxu0 %vm443_vm3, %v10466_v5 }
  0x93   : > { %v1681_v50 = vrot.slane %v11477_v23, 4  ;;  %1893 = vst [vmem:[#allocation2 + $0x84] sm:$0xf] %v1892_v52  ;;  %1894 = vst.msk [vmem:[#allocation2 + $0x88] sm:$0xf] %vm1404_vm1, %v1680_v7  ;;  %v1688_v35 = vor.u32 %v1686_v26, %v1685_v29  ;;  %v1689_v4 = vrot.slane %v1685_v29, 4  ;;  %v1696_v37 = vor.u32 %v1694_v44, %v11490_v59  ;;  %9693 = vmatprep.mubr.msk.bf16.mxu0 %vm443_vm3, %v10467_v22 }
  0x94   : > { %v1488_v15 = vld [vmem:[%s10973_s21 + $0x70] sm:$0xf]  ;;  %v1874_v10 = vld [vmem:[#allocation2 + $0x68] sm:$0x1]  ;;  %v1705_v49 = vor.u32 %v1703_v45, %v1702_v36  ;;  %v1706_v63 = vrot.slane %v1702_v36, 4  ;;  %v11508_v43 = vrot.slane %v1708_v2, 7 }
  0x95   : > { %v1711_v41 = vshll.u32 %v1485_v58, 16  ;;  %v1697_v21 = vsel %vm11310_vm5, %v1689_v4, %v1696_v37  ;;  %v1899_v1 = vsel %vm11301_vm4, %v1688_v35, %v1898_v38  ;;  %v1717_v12 = vshrl.u32 %v1486_v9, 16  ;;  %v1489_v20 = vld [vmem:[%s10973_s21 + $0x74] sm:$0xf]  ;;  %v1912_v51 = vld [vmem:[#allocation2 + $0xa8] sm:$0xf] }
  0x96   : > { %v1720_v17 = vshll.u32 %v1486_v9, 16  ;;  %v1698_v28 = vrot.slane %v11490_v59, 4  ;;  %1900 = vst [vmem:[#allocation2 + $0x90] sm:$0xf] %v1899_v1  ;;  %1901 = vst.msk [vmem:[#allocation2 + $0x94] sm:$0xf] %vm1404_vm1, %v1697_v21  ;;  %v1906_v32 = vsel %vm11301_vm4, %v1705_v49, %v1905_v24  ;;  %v1875_v46 = vsel %vm11317_vm6, %v1630_v40, %v1874_v10 }
  0x97   : > { %v1713_v6 = vor.u32 %v1711_v41, %v11508_v43  ;;  %v1725_v39 = vshrl.u32 %v1487_v48, 16  ;;  %v1881_v13 = vld [vmem:[#allocation2 + $0x74] sm:$0x1]  ;;  %v1888_v16 = vld [vmem:[#allocation2 + $0x80] sm:$0x1]  ;;  %v1719_v33 = vrot.slane %v1717_v12, 7 }
  0x98   : > { %1907 = vst [vmem:[#allocation2 + $0x9c] sm:$0xf] %v1906_v32  ;;  %v1728_v57 = vshll.u32 %v1487_v48, 16  ;;  %v1734_v30 = vshrl.u32 %v1488_v15, 16  ;;  %v1490_v8 = vld [vmem:[%s10973_s21 + $0x78] sm:$0xf]  ;;  %v1882_v38 = vsel %vm11317_vm6, %v1647_v14, %v1881_v13  ;;  %v1889_v9 = vsel %vm11317_vm6, %v1664_v54, %v1888_v16 }
  0x99   : > { %v10469_v26 = vld [vmem:[#allocation2 + $0x54] sm:$0xff]   ;;  %v1714_v61 = vsel %vm11310_vm5, %v1706_v63, %v1713_v6  ;;  %v11527_v5 = vrot.slane %v1725_v39, 7  ;;  %v1737_v47 = vshll.u32 %v1488_v15, 16  ;;  %v1742_v27 = vshrl.u32 %v1489_v20, 16  ;;  %v1491_v58 = vld [vmem:[%s10973_s21 + $0x7c] sm:$0xf] }
  0x9a   : > { %v1919_v44 = vld [vmem:[#allocation2 + $0xb4] sm:$0xf]  ;;  %1876 = vst [vmem:[#allocation2 + $0x68] sm:$0x1] %v1875_v46  ;;  %1908 = vst.msk [vmem:[#allocation2 + $0xa0] sm:$0xf] %vm1404_vm1, %v1714_v61  ;;  %v1722_v55 = vor.u32 %v1720_v17, %v1719_v33  ;;  %9694 = vmatmul.mubr.msk.bf16.gmra.mrb[12].mxu0 %vm443_vm3, %v10468_v31 }
  0x9b   : > { %v1723_v22 = vrot.slane %v1719_v33, 4  ;;  %v1736_v56 = vrot.slane %v1734_v30, 7  ;;  %v1745_v53 = vshll.u32 %v1489_v20, 16  ;;  %v1895_v18 = vld [vmem:[#allocation2 + $0x8c] sm:$0x1]  ;;  %v1715_v40 = vrot.slane %v11508_v43, 4  ;;  %9697 = vmatprep.mubr.msk.bf16.mxu0 %vm443_vm3, %v10469_v26 }
  0x9c   : > { %v1730_v11 = vor.u32 %v1728_v57, %v11527_v5  ;;  %v1913_v29 = vsel %vm11301_vm4, %v1722_v55, %v1912_v51  ;;  %v11544_v60 = vrot.slane %v1742_v27, 7  ;;  %v3786_v7 = vld [vmem:[#allocation2 + $0xc] sm:$0xf]  ;;  %1883 = vst [vmem:[#allocation2 + $0x74] sm:$0x1] %v1882_v38  ;;  %v1751_v25 = vshrl.u32 %v1490_v8, 16 }
  0x9d   : > { %v1739_v36 = vor.u32 %v1737_v47, %v1736_v56  ;;  %v1740_v24 = vrot.slane %v1736_v56, 4  ;;  %1890 = vst [vmem:[#allocation2 + $0x80] sm:$0x1] %v1889_v9  ;;  %1914 = vst [vmem:[#allocation2 + $0xa8] sm:$0xf] %v1913_v29  ;;  %v1754_v14 = vshll.u32 %v1490_v8, 16  ;;  %v1896_v15 = vsel %vm11317_vm6, %v1681_v50, %v1895_v18 }
  0x9e   : > { %v1731_v62 = vsel %vm11310_vm5, %v1723_v22, %v1730_v11  ;;  %v1759_v54 = vshrl.u32 %v1491_v58, 16  ;;  %v11549_v52 = vld [vmem:[#allocation2 + $0x10] sm:$0xf]  ;;  %v1747_v2 = vor.u32 %v1745_v53, %v11544_v60  ;;  %v1926_v35 = vld [vmem:[#allocation2 + $0xc0] sm:$0xf]  ;;  %v1753_v10 = vrot.slane %v1751_v25, 7 }
  0x9f   : > { %1915 = vst.msk [vmem:[#allocation2 + $0xac] sm:$0xf] %vm1404_vm1, %v1731_v62  ;;  %v1920_v48 = vsel %vm11301_vm4, %v1739_v36, %v1919_v44  ;;  %v11556_v4 = vld [vmem:[#allocation2 + $0x14] sm:$0x1]  ;;  %v3789_v37 = vld [vmem:[#allocation2 + $0x18] sm:$0xf] }
  0xa0   : > { %1921 = vst [vmem:[#allocation2 + $0xb4] sm:$0xf] %v1920_v48  ;;  %v11562_v49 = vrot.slane %v1759_v54, 7  ;;  %v1762_v63 = vshll.u32 %v1491_v58, 16  ;;  %v3835_v41 = vshrl.u32 %v3786_v7, 16  ;;  %v10470_v21 = vld [vmem:[#allocation2 + $0x60] sm:$0xff]   ;;  %v1748_v1 = vsel %vm11310_vm5, %v1740_v24, %v1747_v2 }
  0xa1   : > { %1897 = vst [vmem:[#allocation2 + $0x8c] sm:$0x1] %v1896_v15  ;;  %vm1985_vm2 = vsmask.f32 3328  ;;  %v3838_v17 = vshll.u32 %v3786_v7, 16  ;;  %v10471_v23 = vld [vmem:[#allocation2 + $0x6c] sm:$0xff]   ;;  %v1756_v50 = vor.u32 %v1754_v14, %v1753_v10 }
  0xa2   : > { %v1902_v20 = vld [vmem:[#allocation2 + $0x98] sm:$0x1]  ;;  %1922 = vst.msk [vmem:[#allocation2 + $0xb8] sm:$0xf] %vm1404_vm1, %v1748_v1  ;;  %v1757_v6 = vrot.slane %v1753_v10, 4  ;;  %v1764_v32 = vor.u32 %v1762_v63, %v11562_v49  ;;  %v3837_v39 = vrot.slane %v3835_v41, 4  ;;  %9698 = vmatmul.mubr.msk.bf16.gmra.mrb[16].mxu0 %vm443_vm3, %v10470_v21 }
  0xa3   : > { %vm1986_vm7 = vsmask.f32 7440  ;;  %v3840_v51 = vrot.slane %v3838_v17, 5  ;;  %v3844_v13 = vshll.u32 %v11549_v52, 16  ;;  %v3848_v16 = vshrl.u32 %v11549_v52, 16  ;;  %9701 = vmatprep.mubr.msk.bf16.mxu0 %vm443_vm3, %v10471_v23  ;;  %v10484_v36 = vld [vmem:[%s14785_s4 + $0x18] sm:$0xff]  }
  0xa4   : > { %v11571_v31 = vld [vmem:[#allocation2 + $0x1c] sm:$0xf]  ;;  %v1765_v33 = vsel %vm11310_vm5, %v1757_v6, %v1764_v32  ;;  %v1927_v57 = vsel %vm11301_vm4, %v1756_v50, %v1926_v35  ;;  %v3854_v30 = vshll.u32 %v11556_v4, 16  ;;  %v11578_v8 = vld [vmem:[#allocation2 + $0x20] sm:$0x1]  ;;  %v3859_v46 = vshrl.u32 %v3789_v37, 16  ;;  %vm11590_vm8 = vmor %vm1985_vm2, %vm1986_vm7  ;;  %9575 = vmatprep.subr.bf16.mxu1 %v10484_v36 }
  0xa5   : > { %v3792_v26 = vld [vmem:[#allocation2 + $0x24] sm:$0xf]  ;;  %1928 = vst [vmem:[#allocation2 + $0xc0] sm:$0xf] %v1927_v57  ;;  %1929 = vst.msk [vmem:[#allocation2 + $0xc4] sm:$0xf] %vm1404_vm1, %v1765_v33  ;;  %v3841_v61 = vor.u32 %v3840_v51, %v3837_v39  ;;  %v1903_v53 = vsel %vm11317_vm6, %v1698_v28, %v1902_v20  ;;  %9576 = vmatpush3.bf16.msra.mxu1 %v10484_v36 }
  0xa6   : > { %v3846_v47 = vrot.slane %v3844_v13, 5  ;;  %v3850_v27 = vrot.slane %v3848_v16, 4  ;;  %v3862_v44 = vshll.u32 %v3789_v37, 16  ;;  %v11582_v19 = vld [vmem:[#allocation2 + $0x28] sm:$0xf]  ;;  %v3856_v55 = vrot.slane %v3854_v30, 5 }
  0xa7   : > { %v3861_v22 = vrot.slane %v3859_v46, 4  ;;  %v3868_v56 = vshll.u32 %v11571_v31, 16  ;;  %v3842_v18 = vrot.slane %v3841_v61, 4  ;;  %v3872_v9 = vshrl.u32 %v11571_v31, 16  ;;  %1904 = vst [vmem:[#allocation2 + $0x98] sm:$0x1] %v1903_v53 }
  0xa8   : > { %v3851_v11 = vor.u32 %v3850_v27, %v3846_v47  ;;  %v3864_v38 = vrot.slane %v3862_v44, 5  ;;  %v1909_v29 = vld [vmem:[#allocation2 + $0xa4] sm:$0x1]  ;;  %v3878_v7 = vshll.u32 %v11578_v8, 16  ;;  %v11604_v62 = vld [vmem:[#allocation2 + $0x2c] sm:$0x1] }
  0xa9   : > { %v3870_v24 = vrot.slane %v3868_v56, 5  ;;  %v3883_v59 = vshrl.u32 %v3792_v26, 16  ;;  %v3886_v25 = vshll.u32 %v3792_v26, 16  ;;  %v10472_v28 = vld [vmem:[#allocation2 + $0x78] sm:$0xff]   ;;  %v3847_v14 = vsel %vm11590_vm8, %v3842_v18, %v3846_v47  ;;  %v10473_v35 = vld [vmem:[#allocation2 + $0x84] sm:$0xff]   ;;  %v10474_v18 = vld [vmem:[#allocation2 + $0x90] sm:$0xff]  }
  0xaa   : > { %v3852_v54 = vrot.slane %v3851_v11, 4  ;;  %v3865_v2 = vor.u32 %v3864_v38, %v3861_v22  ;;  %v3874_v48 = vrot.slane %v3872_v9, 4  ;;  %v3880_v37 = vrot.slane %v3878_v7, 5  ;;  %v3795_v20 = vld [vmem:[#allocation2 + $0x30] sm:$0xf]  ;;  %9702 = vmatmul.mubr.msk.bf16.gmra.mrb[20].mxu0 %vm443_vm3, %v10472_v28  ;;  %v10475_v36 = vld [vmem:[#allocation2 + $0x9c] sm:$0xff]  }
  0xab   : > { %v3885_v15 = vrot.slane %v3883_v59, 4  ;;  %v3888_v10 = vrot.slane %v3886_v25, 5  ;;  %v3892_v63 = vshll.u32 %v11582_v19, 16  ;;  %v3896_v17 = vshrl.u32 %v11582_v19, 16  ;;  %v11612_v23 = vld [vmem:[#allocation2 + $0x34] sm:$0xf]  ;;  %9705 = vmatprep.mubr.msk.bf16.mxu0 %vm443_vm3, %v10473_v35 }
  0xac   : > { %v3857_v41 = vsel %vm11590_vm8, %v3852_v54, %v3856_v55  ;;  %v3866_v21 = vrot.slane %v3865_v2, 4  ;;  %v3875_v1 = vor.u32 %v3874_v48, %v3870_v24  ;;  %v1910_v39 = vsel %vm11317_vm6, %v1715_v40, %v1909_v29  ;;  %v11628_v30 = vld [vmem:[#allocation2 + $0x38] sm:$0x1]  ;;  %v3798_v44 = vld [vmem:[#allocation2 + $0x3c] sm:$0xf]  ;;  %s10784_s21 = smov [#allocation3]  }
  0xad   : > { %v3889_v6 = vor.u32 %v3888_v10, %v3885_v15  ;;  %v11615_v32 = vrot.slane %v3892_v63, 5  ;;  %v3898_v16 = vrot.slane %v3896_v17, 4  ;;  %v3902_v33 = vshll.u32 %v11604_v62, 16  ;;  %1911 = vst [vmem:[#allocation2 + $0xa4] sm:$0x1] %v1910_v39 }
  0xae   : > { %v3871_v51 = vsel %vm11590_vm8, %v3866_v21, %v3870_v24  ;;  %v3876_v13 = vrot.slane %v3875_v1, 4  ;;  %v11626_v57 = vcombine.low %v3847_v14, %v3857_v41  ;;  %v3907_v43 = vshrl.u32 %v3795_v20, 16  ;;  %v11635_v0 = vld [vmem:[#allocation2 + $0x40] sm:$0xf]  ;;  %v11640_v7 = vld [vmem:[#allocation2 + $0x44] sm:$0x1] }
  0xaf   : > { %v3910_v46 = vshll.u32 %v3795_v20, 16  ;;  %v3916_v40 = vshll.u32 %v11612_v23, 16  ;;  %v3890_v61 = vrot.slane %v3889_v6, 4  ;;  %v3899_v47 = vor.u32 %v3898_v16, %v11615_v32  ;;  %v3801_v35 = vld [vmem:[#allocation2 + $0x48] sm:$0xf] }
  0xb0   : > { %v3881_v26 = vsel %vm11590_vm8, %v3876_v13, %v3880_v37  ;;  %v3920_v27 = vshrl.u32 %v11612_v23, 16  ;;  %v3904_v22 = vrot.slane %v3902_v33, 5  ;;  %v3909_v56 = vrot.slane %v3907_v43, 4  ;;  %v11649_v41 = vld [vmem:[#allocation2 + $0x4c] sm:$0xf] }
  0xb1   : > { %v11637_v55 = vcombine.low %v3871_v51, %v3881_v26  ;;  %v3912_v53 = vrot.slane %v3910_v46, 5  ;;  %v3900_v11 = vrot.slane %v3899_v47, 4  ;;  %v3918_v38 = vrot.slane %v3916_v40, 5  ;;  %v11656_v39 = vld [vmem:[#allocation2 + $0x50] sm:$0x1] }
  0xb2   : > { %v3922_v9 = vrot.slane %v3920_v27, 4  ;;  %v3926_v29 = vshll.u32 %v11628_v30, 16  ;;  %v3931_v59 = vshrl.u32 %v3798_v44, 16  ;;  %v3934_v25 = vshll.u32 %v3798_v44, 16  ;;  %9706 = vmatmul.mubr.msk.bf16.gmra.mrb[24].mxu0 %vm443_vm3, %v10474_v18  ;;  %v3804_v40 = vld [vmem:[#allocation2 + $0x54] sm:$0xf] }
  0xb3   : > { %v3913_v24 = vor.u32 %v3912_v53, %v3909_v56  ;;  %v3940_v28 = vshll.u32 %v11635_v0, 16  ;;  %v3895_v14 = vsel %vm11590_vm8, %v3890_v61, %v11615_v32  ;;  %v3944_v48 = vshrl.u32 %v11635_v0, 16  ;;  %9709 = vmatprep.mubr.msk.bf16.mxu0 %vm443_vm3, %v10475_v36  ;;  %v11663_v44 = vld [vmem:[#allocation2 + $0x58] sm:$0xf]  ;;  %v11671_v36 = vld [vmem:[#allocation2 + $0x5c] sm:$0x1] }
  0xb4   : > { %v3923_v54 = vor.u32 %v3922_v9, %v3918_v38  ;;  %v3928_v2 = vrot.slane %v3926_v29, 5  ;;  %v3905_v37 = vsel %vm11590_vm8, %v3900_v11, %v3904_v22  ;;  %v3933_v10 = vrot.slane %v3931_v59, 4  ;;  %v10476_v22 = vld [vmem:[#allocation2 + $0xa8] sm:$0xff]  }
  0xb5   : > { %v3914_v15 = vrot.slane %v3913_v24, 4  ;;  %v3936_v63 = vrot.slane %v3934_v25, 5  ;;  %v3942_v1 = vrot.slane %v3940_v28, 5  ;;  %v3946_v17 = vrot.slane %v3944_v48, 4 }
  0xb6   : > { %v3924_v21 = vrot.slane %v3923_v54, 4  ;;  %v3950_v20 = vshll.u32 %v11640_v7, 16  ;;  %v3955_v51 = vshrl.u32 %v3801_v35, 16  ;;  %v3958_v13 = vshll.u32 %v3801_v35, 16 }
  0xb7   : > { %v3919_v6 = vsel %vm11590_vm8, %v3914_v15, %v3918_v38  ;;  %v3937_v32 = vor.u32 %v3936_v63, %v3933_v10  ;;  %v3947_v33 = vor.u32 %v3946_v17, %v3942_v1  ;;  %v3964_v46 = vshll.u32 %v11649_v41, 16  ;;  %v10477_v38 = vld [vmem:[#allocation2 + $0xb4] sm:$0xff]   ;;  %v11678_v10 = vld [vmem:[#allocation2 + $0x64] sm:$0xf] }
  0xb8   : > { %v3929_v16 = vsel %vm11590_vm8, %v3924_v21, %v3928_v2  ;;  %v3952_v43 = vrot.slane %v3950_v20, 5  ;;  %v11661_v26 = vcombine.low %v3895_v14, %v3905_v37  ;;  %v3957_v47 = vrot.slane %v3955_v51, 4  ;;  %v3807_v2 = vld [vmem:[#allocation2 + $0x60] sm:$0xf] }
  0xb9   : > { %v3938_v61 = vrot.slane %v3937_v32, 4  ;;  %v3960_v27 = vrot.slane %v3958_v13, 5  ;;  %v3948_v56 = vrot.slane %v3947_v33, 4  ;;  %v11665_v53 = vrot.slane %v3964_v46, 5  ;;  %v11687_v32 = vld [vmem:[#allocation2 + $0x68] sm:$0x1] }
  0xba   : > { %v3968_v18 = vshrl.u32 %v11649_v41, 16  ;;  %v3974_v11 = vshll.u32 %v11656_v39, 16  ;;  %v11669_v9 = vcombine.low %v3919_v6, %v3929_v16  ;;  %v3979_v24 = vshrl.u32 %v3804_v40, 16  ;;  %9710 = vmatmul.mubr.msk.bf16.gmra.mrb[28].mxu0 %vm443_vm3, %v10476_v22  ;;  %v3810_v22 = vld [vmem:[#allocation2 + $0x6c] sm:$0xf] }
  0xbb   : > { %v3961_v29 = vor.u32 %v3960_v27, %v3957_v47  ;;  %v3982_v59 = vshll.u32 %v3804_v40, 16  ;;  %v3943_v25 = vsel %vm11590_vm8, %v3938_v61, %v3942_v1  ;;  %v3953_v28 = vsel %vm11590_vm8, %v3948_v56, %v3952_v43  ;;  %9713 = vmatprep.mubr.msk.bf16.mxu0 %vm443_vm3, %v10477_v38  ;;  %v10478_v56 = vld [vmem:[#allocation2 + $0xc0] sm:$0xff]  }
  0xbc   : > { %v3970_v14 = vrot.slane %v3968_v18, 4  ;;  %v3988_v54 = vshll.u32 %v11663_v44, 16  ;;  %v3976_v35 = vrot.slane %v3974_v11, 5  ;;  %v3981_v37 = vrot.slane %v3979_v24, 4  ;;  %v11695_v24 = vld [vmem:[#allocation2 + $0x70] sm:$0xf] }
  0xbd   : > { %v3962_v48 = vrot.slane %v3961_v29, 4  ;;  %v3984_v15 = vrot.slane %v3982_v59, 5  ;;  %v3992_v1 = vshrl.u32 %v11663_v44, 16  ;;  %v3998_v17 = vshll.u32 %v11671_v36, 16 }
  0xbe   : > { %v3971_v63 = vor.u32 %v3970_v14, %v11665_v53  ;;  %v3990_v21 = vrot.slane %v3988_v54, 5  ;;  %v11685_v20 = vcombine.low %v3943_v25, %v3953_v28  ;;  %v4003_v51 = vshrl.u32 %v3807_v2, 16  ;;  %v11701_v14 = vld [vmem:[#allocation2 + $0x74] sm:$0x1] }
  0xbf   : > { %v3985_v6 = vor.u32 %v3984_v15, %v3981_v37  ;;  %v4006_v13 = vshll.u32 %v3807_v2, 16  ;;  %v3967_v16 = vsel %vm11590_vm8, %v3962_v48, %v11665_v53  ;;  %v3994_v43 = vrot.slane %v3992_v1, 4 }
  0xc0   : > { %v3972_v33 = vrot.slane %v3971_v63, 4  ;;  %v4012_v46 = vshll.u32 %v11678_v10, 16  ;;  %v4005_v61 = vrot.slane %v4003_v51, 4  ;;  %v4016_v27 = vshrl.u32 %v11678_v10, 16 }
  0xc1   : > { %v3986_v40 = vrot.slane %v3985_v6, 4  ;;  %v4008_v47 = vrot.slane %v4006_v13, 5  ;;  %v3995_v18 = vor.u32 %v3994_v43, %v3990_v21  ;;  %v4000_v11 = vrot.slane %v3998_v17, 5  ;;  %v3813_v6 = vld [vmem:[#allocation2 + $0x78] sm:$0xf] }
  0xc2   : > { %v4014_v38 = vrot.slane %v4012_v46, 5  ;;  %v4022_v29 = vshll.u32 %v11687_v32, 16  ;;  %v3977_v53 = vsel %vm11590_vm8, %v3972_v33, %v3976_v35  ;;  %v4018_v28 = vrot.slane %v4016_v27, 4  ;;  %9714 = vmatmul.mubr.msk.bf16.gmra.mrb[32].mxu0 %vm443_vm3, %v10478_v56  ;;  %v11709_v33 = vld [vmem:[#allocation2 + $0x7c] sm:$0xf] }
  0xc3   : > { %v3991_v59 = vsel %vm11590_vm8, %v3986_v40, %v3990_v21  ;;  %v4009_v25 = vor.u32 %v4008_v47, %v4005_v61  ;;  %v3996_v54 = vrot.slane %v3995_v18, 4  ;;  %v4027_v48 = vshrl.u32 %v3810_v22, 16  ;;  %9721 = vmatprep.mubr.msk.bf16.mxu0 %vm443_vm3, %v11626_v57  ;;  %v11719_v56 = vld [vmem:[#allocation2 + $0x80] sm:$0x1] }
  0xc4   : > { %v4024_v2 = vrot.slane %v4022_v29, 5  ;;  %v4030_v37 = vshll.u32 %v3810_v22, 16  ;;  %v4019_v63 = vor.u32 %v4018_v28, %v4014_v38  ;;  %v4036_v1 = vshll.u32 %v11695_v24, 16 }
  0xc5   : > { %v4010_v15 = vrot.slane %v4009_v25, 4  ;;  %v4040_v17 = vshrl.u32 %v11695_v24, 16  ;;  %v4001_v35 = vsel %vm11590_vm8, %v3996_v54, %v4000_v11  ;;  %v4029_v21 = vrot.slane %v4027_v48, 4  ;;  %v11725_v48 = vld [vmem:[#allocation2 + $0x88] sm:$0xf] }
  0xc6   : > { %v4032_v51 = vrot.slane %v4030_v37, 5  ;;  %v4046_v13 = vshll.u32 %v11701_v14, 16  ;;  %v11713_v43 = vcombine.low %v3967_v16, %v3977_v53  ;;  %v11715_v46 = vcombine.low %v3991_v59, %v4001_v35  ;;  %v3816_v53 = vld [vmem:[#allocation2 + $0x84] sm:$0xf]  ;;  %v10482_v35 = vld [vmem:[%s14785_s4 + $0x58] sm:$0xff]  }
  0xc7   : > { %v4020_v40 = vrot.slane %v4019_v63, 4  ;;  %v4038_v61 = vrot.slane %v4036_v1, 5  ;;  %v4015_v47 = vsel %vm11590_vm8, %v4010_v15, %v4014_v38  ;;  %v4042_v22 = vrot.slane %v4040_v17, 4 }
  0xc8   : > { %v4033_v27 = vor.u32 %v4032_v51, %v4029_v21  ;;  %v4051_v18 = vshrl.u32 %v3813_v6, 16  ;;  %v4054_v29 = vshll.u32 %v3813_v6, 16  ;;  %v4060_v57 = vshll.u32 %v11709_v33, 16 }
  0xc9   : > { %v4025_v11 = vsel %vm11590_vm8, %v4020_v40, %v4024_v2  ;;  %v4064_v16 = vshrl.u32 %v11709_v33, 16  ;;  %v4043_v25 = vor.u32 %v4042_v22, %v4038_v61  ;;  %v4048_v28 = vrot.slane %v4046_v13, 5  ;;  %v11733_v40 = vld [vmem:[#allocation2 + $0x8c] sm:$0x1]  ;;  %v3819_v22 = vld [vmem:[#allocation2 + $0x90] sm:$0xf] }
  0xca   : > { %v4034_v59 = vrot.slane %v4033_v27, 4  ;;  %v4053_v54 = vrot.slane %v4051_v18, 4  ;;  %v4056_v38 = vrot.slane %v4054_v29, 5  ;;  %v4062_v37 = vrot.slane %v4060_v57, 5  ;;  %9722 = vmatmul.mubr.msk.bf16.vlgmr.msra.gmra.mrb[4].mxu0 %vm443_vm3, %v11637_v55  ;;  %v11741_v57 = vld [vmem:[#allocation2 + $0x94] sm:$0xf] }
  0xcb   : > { %v4066_v15 = vrot.slane %v4064_v16, 4  ;;  %v4070_v63 = vshll.u32 %v11719_v56, 16  ;;  %v11728_v1 = vcombine.low %v4015_v47, %v4025_v11  ;;  %v4044_v2 = vrot.slane %v4043_v25, 4  ;;  %9725 = vmatprep.mubr.msk.bf16.mxu0 %vm443_vm3, %v11661_v26  ;;  %v3822_v55 = vld [vmem:[#allocation2 + $0x9c] sm:$0xf]  ;;  %9754 = vmatpush3.bf16.msra.mxu0 %v11475_v34  ;;  %v11754_v26 = vld [vmem:[%s14785_s4 + $0x60] sm:$0xff]  }
  0xcc   : > { %v4075_v17 = vshrl.u32 %v3816_v53, 16  ;;  %v4078_v6 = vshll.u32 %v3816_v53, 16  ;;  %v4057_v21 = vor.u32 %v4056_v38, %v4053_v54  ;;  %v4084_v27 = vshll.u32 %v11725_v48, 16  ;;  %9755 = vmatprep.subr.bf16.mxu0 %v10482_v35  ;;  %14965 = vst [vmem:[#allocation38_spill] sm:$0xff] %v11754_v26 }
  0xcd   : > { %v4067_v51 = vor.u32 %v4066_v15, %v4062_v37  ;;  %v4072_v13 = vrot.slane %v4070_v63, 5  ;;  %v4039_v47 = vsel %vm11590_vm8, %v4034_v59, %v4038_v61  ;;  %v4088_v29 = vshrl.u32 %v11725_v48, 16 }
  0xce   : > { %v4077_v18 = vrot.slane %v4075_v17, 4  ;;  %v4080_v11 = vrot.slane %v4078_v6, 5  ;;  %v4049_v16 = vsel %vm11590_vm8, %v4044_v2, %v4048_v28  ;;  %v4058_v53 = vrot.slane %v4057_v21, 4  ;;  %v11760_v2 = vld [vmem:[#allocation2 + $0x98] sm:$0x1] }
  0xcf   : > { %v4068_v25 = vrot.slane %v4067_v51, 4  ;;  %v11747_v54 = vrot.slane %v4084_v27, 5  ;;  %v4090_v59 = vrot.slane %v4088_v29, 4  ;;  %v4094_v38 = vshll.u32 %v11733_v40, 16  ;;  %9756 = vmatpush3.bf16.msra.mxu0 %v10482_v35 }
  0xd0   : > { %v4081_v61 = vor.u32 %v4080_v11, %v4077_v18  ;;  %v4099_v15 = vshrl.u32 %v3819_v22, 16  ;;  %v4063_v28 = vsel %vm11590_vm8, %v4058_v53, %v4062_v37  ;;  %v4102_v34 = vshll.u32 %v3819_v22, 16  ;;  %v11766_v18 = vld [vmem:[#allocation2 + $0xa0] sm:$0xf]  ;;  %v1916_v53 = vld [vmem:[#allocation2 + $0xb0] sm:$0x1]  ;;  %9789 = vmatprep.subr.bf16.mxu0 %v11754_v26 }
  0xd1   : > { %v4073_v63 = vsel %vm11590_vm8, %v4068_v25, %v4072_v13  ;;  %v4108_v17 = vshll.u32 %v11741_v57, 16  ;;  %v11763_v6 = vcombine.low %v4039_v47, %v4049_v16  ;;  %v4091_v51 = vor.u32 %v4090_v59, %v11747_v54  ;;  %v3825_v16 = vld [vmem:[#allocation2 + $0xa8] sm:$0xf] }
  0xd2   : > { %v4082_v21 = vrot.slane %v4081_v61, 4  ;;  %v4096_v27 = vrot.slane %v4094_v38, 5  ;;  %v4101_v11 = vrot.slane %v4099_v15, 4  ;;  %v4104_v29 = vrot.slane %v4102_v34, 5  ;;  %v11773_v38 = vld [vmem:[#allocation2 + $0xa4] sm:$0x1]  ;;  %9726 = vmatmul.mubr.msk.bf16.gmra.mrb[8].mxu0 %vm443_vm3, %v11669_v9 }
  0xd3   : > { %v4110_v50 = vrot.slane %v4108_v17, 5  ;;  %v4112_v37 = vshrl.u32 %v11741_v57, 16  ;;  %v11769_v13 = vcombine.low %v4063_v28, %v4073_v63  ;;  %v4092_v22 = vrot.slane %v4091_v51, 4  ;;  %14966 = vst [vmem:[#allocation39_spill] sm:$0xff] %v11773_v38  ;;  %v11776_v17 = vld [vmem:[#allocation2 + $0xac] sm:$0xf]  ;;  %9729 = vmatprep.mubr.msk.bf16.mxu0 %vm443_vm3, %v11685_v20 }
  0xd4   : > { %v4118_v25 = vshll.u32 %v11760_v2, 16  ;;  %v4123_v47 = vshrl.u32 %v3822_v55, 16  ;;  %v4105_v61 = vor.u32 %v4104_v29, %v4101_v11  ;;  %v4126_v15 = vshll.u32 %v3822_v55, 16 }
  0xd5   : > { %v4114_v59 = vrot.slane %v4112_v37, 4  ;;  %v4132_v34 = vshll.u32 %v11766_v18, 16  ;;  %v4087_v35 = vsel %vm11590_vm8, %v4082_v21, %v11747_v54  ;;  %v4136_v51 = vshrl.u32 %v11766_v18, 16 }
  0xd6   : > { %v4120_v28 = vrot.slane %v4118_v25, 5  ;;  %v4125_v63 = vrot.slane %v4123_v47, 4  ;;  %v4097_v55 = vsel %vm11590_vm8, %v4092_v22, %v4096_v27  ;;  %v4106_v11 = vrot.slane %v4105_v61, 4  ;;  %v1923_v27 = vld [vmem:[#allocation2 + $0xbc] sm:$0x1] }
  0xd7   : > { %v4115_v29 = vor.u32 %v4114_v59, %v4110_v50  ;;  %v4128_v37 = vrot.slane %v4126_v15, 5  ;;  %v4134_v12 = vrot.slane %v4132_v34, 5  ;;  %v4138_v45 = vrot.slane %v4136_v51, 4  ;;  %v3828_v34 = vld [vmem:[#allocation2 + $0xb4] sm:$0xf] }
  0xd8   : > { %v4142_v9 = vshll.u32 %v11773_v38, 16  ;;  %v14967_v26 = vrot.slane %v11527_v5, 4  ;;  %v4111_v21 = vsel %vm11590_vm8, %v4106_v11, %v4110_v50  ;;  %v4147_v47 = vshrl.u32 %v3825_v16, 16 }
  0xd9   : > { %v4116_v25 = vrot.slane %v4115_v29, 4  ;;  %v4129_v20 = vor.u32 %v4128_v37, %v4125_v63  ;;  %v4139_v22 = vor.u32 %v4138_v45, %v4134_v12  ;;  %v4150_v59 = vshll.u32 %v3825_v16, 16  ;;  %v1930_v45 = vld [vmem:[#allocation2 + $0xc8] sm:$0x1] }
  0xda   : > { %v1917_v54 = vsel %vm11317_vm6, %v14967_v26, %v1916_v53  ;;  %v4144_v61 = vrot.slane %v4142_v9, 5  ;;  %v4156_v15 = vshll.u32 %v11776_v17, 16  ;;  %v4149_v38 = vrot.slane %v4147_v47, 4  ;;  %v11799_v53 = vld [vmem:[#allocation2 + $0xb8] sm:$0xf]  ;;  %9730 = vmatmul.mubr.msk.bf16.gmra.mrb[12].mxu0 %vm443_vm3, %v11713_v43 }
  0xdb   : > { %1918 = vst [vmem:[#allocation2 + $0xb0] sm:$0x1] %v1917_v54  ;;  %v4121_v5 = vsel %vm11590_vm8, %v4116_v25, %v4120_v28  ;;  %v4130_v51 = vrot.slane %v4129_v20, 4  ;;  %v4160_v26 = vshrl.u32 %v11776_v17, 16  ;;  %v11801_v50 = vcombine.low %v4087_v35, %v4097_v55  ;;  %v3831_v25 = vld [vmem:[#allocation2 + $0xc0] sm:$0xf]  ;;  %9733 = vmatprep.mubr.msk.bf16.mxu0 %vm443_vm3, %v11715_v46 }
  0xdc   : > { %v4140_v63 = vrot.slane %v4139_v22, 4  ;;  %v4152_v11 = vrot.slane %v4150_v59, 5  ;;  %v4158_v29 = vrot.slane %v4156_v15, 5  ;;  %v11803_v37 = vcombine.low %v4111_v21, %v4121_v5  ;;  %v11809_v20 = vld [vmem:[#allocation2 + $0xc4] sm:$0xf] }
  0xdd   : > { %v4162_v16 = vrot.slane %v4160_v26, 4  ;;  %v14968_v9 = vrot.slane %v11544_v60, 4  ;;  %v4171_v54 = vshrl.u32 %v3828_v34, 16  ;;  %v4135_v35 = vsel %vm11590_vm8, %v4130_v51, %v4134_v12 }
  0xde   : > { %v4153_v55 = vor.u32 %v4152_v11, %v4149_v38  ;;  %v4174_v21 = vshll.u32 %v3828_v34, 16  ;;  %v4180_v47 = vshll.u32 %v11799_v53, 16  ;;  %v4145_v60 = vsel %vm11590_vm8, %v4140_v63, %v4144_v61  ;;  %v4524_v63 = vld [vmem:[#allocation2 + $0xc] sm:$0xe] }
  0xdf   : > { %v1924_v28 = vsel %vm11317_vm6, %v14968_v9, %v1923_v27  ;;  %v4163_v27 = vor.u32 %v4162_v16, %v4158_v29  ;;  %v4173_v22 = vrot.slane %v4171_v54, 4  ;;  %v4184_v59 = vshrl.u32 %v11799_v53, 16 }
  0xe0   : > { %1925 = vst [vmem:[#allocation2 + $0xbc] sm:$0x1] %v1924_v28  ;;  %v4154_v43 = vrot.slane %v4153_v55, 4  ;;  %v4176_v5 = vrot.slane %v4174_v21, 5  ;;  %v11823_v12 = vrot.slane %v4180_v47, 5  ;;  %v14969_v38 = vrot.slane %v11562_v49, 4 }
  0xe1   : > { %v4164_v51 = vrot.slane %v4163_v27, 4  ;;  %v4186_v26 = vrot.slane %v4184_v59, 4  ;;  %v4195_v61 = vshrl.u32 %v3831_v25, 16  ;;  %v4198_v9 = vshll.u32 %v3831_v25, 16  ;;  %v4525_v59 = vld [vmem:[#allocation2 + $0x18] sm:$0xe] }
  0xe2   : > { %v11821_v15 = vld [vmem:[#allocation2 + $0xb0] sm:$0x1]  ;;  %v1931_v34 = vsel %vm11317_vm6, %v14969_v38, %v1930_v45  ;;  %v4159_v11 = vsel %vm11590_vm8, %v4154_v43, %v4158_v29  ;;  %v4177_v16 = vor.u32 %v4176_v5, %v4173_v22  ;;  %v4204_v28 = vshll.u32 %v11809_v20, 16  ;;  %9734 = vmatmul.mubr.msk.bf16.gmra.mrb[16].mxu0 %vm443_vm3, %v11728_v1 }
  0xe3   : > { %v4166_v46 = vshll.u32 %v11821_v15, 16  ;;  %1932 = vst [vmem:[#allocation2 + $0xc8] sm:$0x1] %v1931_v34  ;;  %v4187_v49 = vor.u32 %v4186_v26, %v11823_v12  ;;  %v4197_v55 = vrot.slane %v4195_v61, 4  ;;  %v4208_v3 = vshrl.u32 %v11809_v20, 16  ;;  %9737 = vmatprep.mubr.msk.bf16.mxu0 %vm443_vm3, %v11763_v6 }
  0xe4   : > { %v11835_v45 = vcombine.low %v4135_v35, %v4145_v60  ;;  %v4200_v21 = vrot.slane %v4198_v9, 5  ;;  %v4206_v47 = vrot.slane %v4204_v28, 5  ;;  %v8787_v27 = vrot.slane %v4524_v63, 9  ;;  %v4527_v63 = vld [vmem:[#allocation2 + $0x30] sm:$0xe] }
  0xe5   : > { %v4168_v54 = vrot.slane %v4166_v46, 5  ;;  %v4178_v25 = vrot.slane %v4177_v16, 4  ;;  %v4210_v22 = vrot.slane %v4208_v3, 4  ;;  %v4590_v43 = vrot.slane %v11549_v52, 5  ;;  %v4526_v46 = vld [vmem:[#allocation2 + $0x24] sm:$0xe] }
  0xe6   : > { %v4188_v35 = vrot.slane %v4187_v49, 4  ;;  %v4201_v34 = vor.u32 %v4200_v21, %v4197_v55  ;;  %v4593_v52 = vrot.slane %v11556_v4, 5  ;;  %v8788_v9 = vrot.slane %v4525_v59, 9 }
  0xe7   : > { %v4169_v38 = vsel %vm11590_vm8, %v4164_v51, %v4168_v54  ;;  %v11839_v29 = vld [vmem:[#allocation2 + $0xbc] sm:$0x1]  ;;  %v4211_v51 = vor.u32 %v4210_v22, %v4206_v47  ;;  %v11851_v26 = vsel %vm11265_vm0, %v8787_v27, %v4590_v43  ;;  %v4592_v61 = vrot.slane %v4590_v43, 4  ;;  %v4528_v27 = vld [vmem:[#allocation2 + $0x3c] sm:$0xe] }
  0xe8   : > { %v11844_v5 = vcombine.low %v4159_v11, %v4169_v38  ;;  %v4190_v60 = vshll.u32 %v11839_v29, 16  ;;  %v4202_v16 = vrot.slane %v4201_v34, 4  ;;  %v4597_v28 = vrot.slane %v11571_v31, 5 }
  0xe9   : > { %v4212_v54 = vrot.slane %v4211_v51, 4  ;;  %v11860_v6 = vsel %vm11265_vm0, %v4592_v61, %v4593_v52  ;;  %v4600_v55 = vrot.slane %v11578_v8, 5  ;;  %v4183_v4 = vsel %vm11590_vm8, %v4178_v25, %v11823_v12  ;;  %v4529_v61 = vld [vmem:[#allocation2 + $0x48] sm:$0xe]  ;;  %v4530_v52 = vld [vmem:[#allocation2 + $0x54] sm:$0xe] }
  0xea   : > { %v4192_v1 = vrot.slane %v4190_v60, 5  ;;  %v11854_v11 = vld [vmem:[#allocation2 + $0xc8] sm:$0x1]  ;;  %v4207_v21 = vsel %vm11590_vm8, %v4202_v16, %v4206_v47  ;;  %v11874_v38 = vsel %vm11265_vm0, %v8788_v9, %v4597_v28  ;;  %v4599_v8 = vrot.slane %v4597_v28, 4  ;;  %9738 = vmatmul.mubr.msk.bf16.gmra.mrb[20].mxu0 %vm443_vm3, %v11769_v13 }
  0xeb   : > { %v4214_v49 = vshll.u32 %v11854_v11, 16  ;;  %v8789_v22 = vrot.slane %v4526_v46, 9  ;;  %v4604_v43 = vrot.slane %v11582_v19, 5  ;;  %v4607_v12 = vrot.slane %v11604_v62, 5  ;;  %9741 = vmatprep.mubr.msk.bf16.mxu0 %vm443_vm3, %v11801_v50 }
  0xec   : > { %v4193_v3 = vsel %vm11590_vm8, %v4188_v35, %v4192_v1  ;;  %v8790_v25 = vrot.slane %v4527_v63, 9  ;;  %v4611_v35 = vrot.slane %v11612_v23, 5  ;;  %v11883_v60 = vsel %vm11265_vm0, %v4599_v8, %v4600_v55  ;;  %v4531_v63 = vld [vmem:[#allocation2 + $0x60] sm:$0xe] }
  0xed   : > { %v4216_v59 = vrot.slane %v4214_v49, 5  ;;  %v4614_v34 = vrot.slane %v11628_v30, 5  ;;  %v8791_v51 = vrot.slane %v4528_v27, 9  ;;  %v11888_v19 = vcombine.low %v4183_v4, %v4193_v3  ;;  %v11897_v1 = vld [vmem:[%s14785_s4] sm:$0xff]   ;;  %v4532_v3 = vld [vmem:[#allocation2 + $0x6c] sm:$0xe] }
  0xee   : > { %v4606_v46 = vrot.slane %v4604_v43, 4  ;;  %v11903_v30 = vsel %vm11265_vm0, %v8790_v25, %v4611_v35  ;;  %v4613_v13 = vrot.slane %v4611_v35, 4  ;;  %v4618_v16 = vrot.slane %v11635_v0, 5  ;;  %9609 = vmatprep.subr.bf16.mxu1 %v11897_v1 }
  0xef   : > { %v4217_v47 = vsel %vm11590_vm8, %v4212_v54, %v4216_v59  ;;  %v4621_v9 = vrot.slane %v11640_v7, 5  ;;  %v11909_v28 = vsel %vm11265_vm0, %v8789_v22, %v4604_v43  ;;  %v8792_v54 = vrot.slane %v4529_v61, 9  ;;  %v4533_v59 = vld [vmem:[#allocation2 + $0x78] sm:$0xe] }
  0xf0   : > { %v11890_v62 = vcombine.low %v4207_v21, %v4217_v47  ;;  %v4625_v49 = vrot.slane %v11649_v41, 5  ;;  %v4628_v55 = vrot.slane %v11656_v39, 5  ;;  %v11916_v50 = vsel %vm11265_vm0, %v4606_v46, %v4607_v12 }
  0xf1   : > { %v11920_v0 = vsel %vm11265_vm0, %v4613_v13, %v4614_v34  ;;  %v11924_v7 = vsel %vm11265_vm0, %v8791_v51, %v4618_v16  ;;  %v4620_v4 = vrot.slane %v4618_v16, 4  ;;  %v8793_v27 = vrot.slane %v4530_v52, 9  ;;  %v11946_v51 = vld [vmem:[#allocation2] sm:$0xf] }
  0xf2   : > { %v11930_v39 = vsel %vm11265_vm0, %v8792_v54, %v4625_v49  ;;  %v4627_v21 = vrot.slane %v4625_v49, 4  ;;  %v4632_v22 = vrot.slane %v11663_v44, 5  ;;  %v4635_v43 = vrot.slane %v11671_v36, 5  ;;  %9742 = vmatmul.mubr.msk.bf16.gmra.mrb[24].mxu0 %vm443_vm3, %v11803_v37 }
  0xf3   : > { %v11934_v8 = vsel %vm11265_vm0, %v4620_v4, %v4621_v9  ;;  %v8794_v12 = vrot.slane %v4531_v63, 9  ;;  %v4639_v47 = vrot.slane %v11678_v10, 5  ;;  %v4642_v34 = vrot.slane %v11687_v32, 5  ;;  %9745 = vmatprep.mubr.msk.bf16.mxu0 %vm443_vm3, %v11835_v45 }
  0xf4   : > { %v11942_v35 = vsel %vm11265_vm0, %v4627_v21, %v4628_v55  ;;  %v11952_v44 = vsel %vm11265_vm0, %v8793_v27, %v4632_v22  ;;  %v4634_v36 = vrot.slane %v4632_v22, 4  ;;  %v8795_v52 = vrot.slane %v4532_v3, 9  ;;  %v11992_v21 = vld [vmem:[#allocation2 + $0x4] sm:$0xf]  ;;  %v11996_v22 = vld [vmem:[#allocation2 + $0xc] sm:$0xf] }
  0xf5   : > { %v11958_v46 = vsel %vm11265_vm0, %v8794_v12, %v4639_v47  ;;  %v4641_v10 = vrot.slane %v4639_v47, 4  ;;  %v4646_v32 = vrot.slane %v11695_v24, 5  ;;  %v4649_v63 = vrot.slane %v11701_v14, 5  ;;  %14970 = vst [vmem:[#allocation40_spill] sm:$0xff] %v11996_v22 }
  0xf6   : > { %v11966_v13 = vsel %vm11265_vm0, %v4634_v36, %v4635_v43  ;;  %v8796_v16 = vrot.slane %v4533_v59, 9  ;;  %v4653_v9 = vrot.slane %v11709_v33, 5  ;;  %v4656_v37 = vrot.slane %v11719_v56, 5  ;;  %v12008_v43 = vld [vmem:[#allocation2 + $0x10] sm:$0xf] }
  0xf7   : > { %v11974_v24 = vsel %vm11265_vm0, %v4641_v10, %v4642_v34  ;;  %v11978_v14 = vsel %vm11265_vm0, %v8795_v52, %v4646_v32  ;;  %v4648_v45 = vrot.slane %v4646_v32, 4  ;;  %v1989_v55 = vshrl.u32 %v11946_v51, 16  ;;  %v10678_v34 = vld [vmem:[#allocation2 + $0x8] sm:$0x1] }
  0xf8   : > { %v11984_v33 = vsel %vm11265_vm0, %v8796_v16, %v4653_v9  ;;  %v4655_v56 = vrot.slane %v4653_v9, 4  ;;  %v1992_v3 = vshll.u32 %v11946_v51, 16  ;;  %v1998_v27 = vshll.u32 %v11992_v21, 16  ;;  %v4534_v16 = vld [vmem:[#allocation2 + $0x84] sm:$0xe] }
  0xf9   : > { %v11989_v4 = vsel %vm11265_vm0, %v4648_v45, %v4649_v63  ;;  %v2002_v59 = vshrl.u32 %v11992_v21, 16  ;;  %v1991_v47 = vrot.slane %v1989_v55, 4  ;;  %v2008_v36 = vshll.u32 %v10678_v34, 16 }
  0xfa   : > { %v12002_v12 = vsel %vm11265_vm0, %v4655_v56, %v4656_v37  ;;  %v1994_v10 = vrot.slane %v1992_v3, 5  ;;  %v2000_v32 = vrot.slane %v1998_v27, 5  ;;  %v2013_v45 = vshrl.u32 %v11996_v22, 16  ;;  %9746 = vmatmul.mubr.msk.bf16.gmra.mrb[28].mxu0 %vm443_vm3, %v11844_v5  ;;  %v10680_v3 = vld [vmem:[#allocation2 + $0x14] sm:$0x1] }
  0xfb   : > { %v2004_v63 = vrot.slane %v2002_v59, 4  ;;  %v2010_v9 = vrot.slane %v2008_v36, 5  ;;  %v2016_v49 = vshll.u32 %v11996_v22, 16  ;;  %v2022_v37 = vshll.u32 %v12008_v43, 16  ;;  %v4535_v59 = vld [vmem:[#allocation2 + $0x90] sm:$0xe]  ;;  %9749 = vmatprep.mubr.msk.bf16.mxu0 %vm443_vm3, %v11888_v19 }
  0xfc   : > { %v1995_v56 = vor.u32 %v1994_v10, %v1991_v47  ;;  %v2026_v34 = vshrl.u32 %v12008_v43, 16  ;;  %v2032_v27 = vshll.u32 %v10680_v3, 16  ;;  %v2015_v36 = vrot.slane %v2013_v45, 4 }
  0xfd   : > { %v2005_v55 = vor.u32 %v2004_v63, %v2000_v32  ;;  %v2018_v52 = vrot.slane %v2016_v49, 5  ;;  %v2024_v54 = vrot.slane %v2022_v37, 5  ;;  %v8797_v61 = vrot.slane %v4534_v16, 9  ;;  %v12023_v16 = vld [vmem:[#allocation2 + $0x18] sm:$0xf] }
  0xfe   : > { %v1996_v25 = vrot.slane %v1995_v56, 4  ;;  %v2028_v23 = vrot.slane %v2026_v34, 4  ;;  %v2034_v31 = vrot.slane %v2032_v27, 5  ;;  %v4660_v5 = vrot.slane %v11725_v48, 5  ;;  %v12045_v34 = vld [vmem:[#allocation2 + $0x24] sm:$0xf] }
  0xff   : > { %v2006_v41 = vrot.slane %v2005_v55, 4  ;;  %v2019_v22 = vor.u32 %v2018_v52, %v2015_v36  ;;  %v4663_v47 = vrot.slane %v11733_v40, 5  ;;  %v8798_v10 = vrot.slane %v4535_v59, 9  ;;  %v12029_v40 = vld [vmem:[#allocation2 + $0x1c] sm:$0xf] }
 0x100   : > { %v2001_v63 = vsel %vm11590_vm8, %v1996_v25, %v2000_v32  ;;  %v2029_v45 = vor.u32 %v2028_v23, %v2024_v54  ;;  %v4667_v49 = vrot.slane %v11741_v57, 5  ;;  %v12027_v52 = vsel %vm11265_vm0, %v8797_v61, %v4660_v5  ;;  %v12058_v59 = vld [vmem:[#allocation2 + $0x28] sm:$0xf] }
 0x101   : > { %v2011_v19 = vsel %vm11590_vm8, %v2006_v41, %v2010_v9  ;;  %v2020_v56 = vrot.slane %v2019_v22, 4  ;;  %v4662_v48 = vrot.slane %v4660_v5, 4  ;;  %v4670_v23 = vrot.slane %v11760_v2, 5  ;;  %v1971_v22 = vld [vmem:[#allocation2 + $0x20] sm:$0x1] }
 0x102   : > { %v8589_v37 = vcombine.low %v2001_v63, %v2011_v19  ;;  %v2030_v55 = vrot.slane %v2029_v45, 4  ;;  %v12033_v25 = vsel %vm11265_vm0, %v8798_v10, %v4667_v49  ;;  %v4669_v41 = vrot.slane %v4667_v49, 4  ;;  %9750 = vmatmul.mubr.msk.bf16.gmra.mrb[32].mxu0 %vm443_vm3, %v11890_v62  ;;  %v12066_v10 = vld [vmem:[#allocation2 + $0x2c] sm:$0x1] }
 0x103   : > { %v2025_v57 = vsel %vm11590_vm8, %v2020_v56, %v2024_v54  ;;  %v12041_v61 = vsel %vm11265_vm0, %v4662_v48, %v4663_v47  ;;  %v2037_v32 = vshrl.u32 %v12023_v16, 16  ;;  %v2040_v9 = vshll.u32 %v12023_v16, 16  ;;  %14972 = vst [vmem:[#allocation41_spill] sm:$0xff] %v12066_v10  ;;  %v10497_v63 = vld [vmem:[%s14785_s4 + $0x8] sm:$0xff]  }
 0x104   : > { %9577 = vmatprep.mubr.msk.bf16.mxu1 %vm443_vm3, %v8589_v37  ;;  %v2035_v2 = vsel %vm11590_vm8, %v2030_v55, %v2034_v31  ;;  %v12055_v3 = vsel %vm11265_vm0, %v4669_v41, %v4670_v23  ;;  %v2046_v27 = vshll.u32 %v12029_v40, 16  ;;  %v14971_v36 = vcombine.low %v11851_v26, %v11860_v6 }
 0x105   : > { %v8590_v62 = vcombine.low %v2025_v57, %v2035_v2  ;;  %v2039_v5 = vrot.slane %v2037_v32, 4  ;;  %v2042_v47 = vrot.slane %v2040_v9, 5  ;;  %v2050_v45 = vshrl.u32 %v12029_v40, 16  ;;  %v4536_v32 = vld [vmem:[#allocation2 + $0x9c] sm:$0xe] }
 0x106   : > { %9757 = vmatprep.mubr.msk.bf16.mxu0 %vm443_vm3, %v14971_v36  ;;  %v2048_v19 = vrot.slane %v2046_v27, 5  ;;  %v2056_v49 = vshll.u32 %v1971_v22, 16  ;;  %v2061_v26 = vshrl.u32 %v12045_v34, 16  ;;  %v2064_v37 = vshll.u32 %v12045_v34, 16  ;;  %v4537_v36 = vld [vmem:[#allocation2 + $0xa8] sm:$0xe] }
 0x107   : > { %9578 = vmatmul.mubr.msk.bf16.vlgmr.msra.gmra.mrb[4].mxu1 %vm443_vm3, %v8590_v62  ;;  %v2043_v6 = vor.u32 %v2042_v47, %v2039_v5  ;;  %v2070_v56 = vshll.u32 %v12058_v59, 16  ;;  %v2074_v48 = vshrl.u32 %v12058_v59, 16  ;;  %v8809_v55 = vcombine.low %v11909_v28, %v11916_v50  ;;  %v10486_v28 = vld [vmem:[%s14785_s4 + $0x68] sm:$0xff]  }
 0x108   : > { %v2052_v41 = vrot.slane %v2050_v45, 4  ;;  %v2063_v23 = vrot.slane %v2061_v26, 4  ;;  %v2080_v57 = vshll.u32 %v12066_v10, 16  ;;  %9610 = vmatpush3.bf16.msra.mxu1 %v11897_v1  ;;  %v2066_v9 = vrot.slane %v2064_v37, 5  ;;  %v12086_v1 = vld [vmem:[#allocation2 + $0x30] sm:$0xf] }
 0x109   : > { %v2044_v22 = vrot.slane %v2043_v6, 4  ;;  %v2072_v2 = vrot.slane %v2070_v56, 5  ;;  %v2076_v27 = vrot.slane %v2074_v48, 4  ;;  %9611 = vmatprep.subr.bf16.mxu1 %v10497_v63  ;;  %v2058_v5 = vrot.slane %v2056_v49, 5  ;;  %v14974_v56 = vld [vmem:[#allocation39_spill] sm:$0xff] }
 0x10a   : > { %v2053_v62 = vor.u32 %v2052_v41, %v2048_v19  ;;  %v2082_v47 = vrot.slane %v2080_v57, 5  ;;  %v2067_v45 = vor.u32 %v2066_v9, %v2063_v23  ;;  %v8799_v31 = vrot.slane %v4536_v32, 9  ;;  %v12104_v9 = vld [vmem:[#allocation2 + $0x34] sm:$0xf]  ;;  %v12287_v10 = vld [vmem:[#allocation2 + $0x90] sm:$0xf] }
 0x10b   : > { %v2049_v50 = vsel %vm11590_vm8, %v2044_v22, %v2048_v19  ;;  %v2077_v26 = vor.u32 %v2076_v27, %v2072_v2  ;;  %v14973_v6 = vcombine.low %v11874_v38, %v11883_v60  ;;  %v4674_v49 = vrot.slane %v11766_v18, 5  ;;  %v14975_v22 = vld [vmem:[#allocation38_spill] sm:$0xff] }
 0x10c   : > { %v2054_v37 = vrot.slane %v2053_v62, 4  ;;  %v4677_v48 = vrot.slane %v14974_v56, 5  ;;  %v8800_v41 = vrot.slane %v4537_v36, 9  ;;  %9612 = vmatpush3.bf16.msra.mxu1 %v10497_v63  ;;  %v2068_v19 = vrot.slane %v2067_v45, 4  ;;  %v1973_v62 = vld [vmem:[#allocation2 + $0x38] sm:$0x1] }
 0x10d   : > { %9758 = vmatmul.mubr.msk.bf16.vlgmr.msra.gmra.mrb[4].mxu0 %vm443_vm3, %v14973_v6  ;;  %v2078_v23 = vrot.slane %v2077_v26, 4  ;;  %v4681_v57 = vrot.slane %v11776_v17, 5  ;;  %v4684_v32 = vrot.slane %v11821_v15, 5  ;;  %v12102_v18 = vsel %vm11265_vm0, %v8799_v31, %v4674_v49  ;;  %v12110_v17 = vld [vmem:[%s14785_s4 + $0x70] sm:$0xff]   ;;  %v12115_v15 = vld [vmem:[%s14785_s4 + $0x20] sm:$0xff]  }
 0x10e   : > { %9761 = vmatprep.mubr.msk.bf16.mxu0 %vm443_vm3, %v8809_v55  ;;  %9790 = vmatpush3.bf16.msra.mxu0 %v14975_v22  ;;  %v2059_v38 = vsel %vm11590_vm8, %v2054_v37, %v2058_v5  ;;  %v4676_v60 = vrot.slane %v4674_v49, 4  ;;  %v2085_v63 = vshrl.u32 %v12086_v1, 16  ;;  %14976 = vst [vmem:[#allocation42_spill] sm:$0xff] %v12115_v15  ;;  %v2073_v55 = vsel %vm11590_vm8, %v2068_v19, %v2072_v2  ;;  %v12126_v5 = vld [vmem:[#allocation2 + $0x3c] sm:$0xf] }
 0x10f   : > { %9791 = vmatprep.subr.bf16.mxu0 %v10486_v28  ;;  %10119 = vmatprep.subr.bf16.mxu1 %v12115_v15  ;;  %v8591_v31 = vcombine.low %v2049_v50, %v2059_v38  ;;  %v2083_v27 = vsel %vm11590_vm8, %v2078_v23, %v2082_v47  ;;  %v12124_v36 = vsel %vm11265_vm0, %v8800_v41, %v4681_v57  ;;  %v4683_v6 = vrot.slane %v4681_v57, 4  ;;  %v12138_v56 = vld [vmem:[#allocation2 + $0x40] sm:$0xf]  ;;  %v1974_v19 = vld [vmem:[#allocation2 + $0x44] sm:$0x1] }
 0x110   : > { %v8592_v45 = vcombine.low %v2073_v55, %v2083_v27  ;;  %v12130_v26 = vsel %vm11265_vm0, %v4676_v60, %v4677_v48  ;;  %v2087_v50 = vrot.slane %v2085_v63, 4  ;;  %v2088_v47 = vshll.u32 %v12086_v1, 16  ;;  %v4538_v63 = vld [vmem:[#allocation2 + $0xb4] sm:$0xe] }
 0x111   : > { %9581 = vmatprep.mubr.msk.bf16.mxu1 %vm443_vm3, %v8591_v31  ;;  %v2094_v37 = vshll.u32 %v12104_v9, 16  ;;  %v2098_v49 = vshrl.u32 %v12104_v9, 16  ;;  %v12143_v48 = vsel %vm11265_vm0, %v4683_v6, %v4684_v32  ;;  %v2104_v41 = vshll.u32 %v1973_v62, 16 }
 0x112   : > { %9792 = vmatpush3.bf16.msra.mxu0 %v10486_v28  ;;  %9582 = vmatmul.mubr.msk.bf16.gmra.mrb[8].mxu1 %vm443_vm3, %v8592_v45  ;;  %v2109_v23 = vshrl.u32 %v12126_v5, 16  ;;  %v2112_v57 = vshll.u32 %v12126_v5, 16  ;;  %v2090_v38 = vrot.slane %v2088_v47, 5  ;;  %v14977_v31 = vcombine.low %v11903_v30, %v11920_v0 }
 0x113   : > { %9825 = vmatprep.subr.bf16.mxu0 %v12110_v17  ;;  %v2096_v60 = vrot.slane %v2094_v37, 5  ;;  %v2100_v28 = vrot.slane %v2098_v49, 4  ;;  %v2106_v32 = vrot.slane %v2104_v41, 5  ;;  %v2118_v62 = vshll.u32 %v12138_v56, 16  ;;  %v4539_v41 = vld [vmem:[#allocation2 + $0xc0] sm:$0xe] }
 0x114   : > { %v2111_v55 = vrot.slane %v2109_v23, 4  ;;  %v2114_v27 = vrot.slane %v2112_v57, 5  ;;  %v14978_v45 = vcombine.low %v11924_v7, %v11934_v8  ;;  %v2091_v6 = vor.u32 %v2090_v38, %v2087_v50  ;;  %v12166_v38 = vld [vmem:[#allocation2 + $0x48] sm:$0xf] }
 0x115   : > { %9762 = vmatmul.mubr.msk.bf16.gmra.mrb[8].mxu0 %vm443_vm3, %v14977_v31  ;;  %v2101_v47 = vor.u32 %v2100_v28, %v2096_v60  ;;  %v2122_v37 = vshrl.u32 %v12138_v56, 16  ;;  %v2128_v49 = vshll.u32 %v1974_v19, 16  ;;  %v2120_v2 = vrot.slane %v2118_v62, 5 }
 0x116   : > { %9765 = vmatprep.mubr.msk.bf16.mxu0 %vm443_vm3, %v14978_v45  ;;  %v2115_v22 = vor.u32 %v2114_v27, %v2111_v55  ;;  %v8801_v30 = vrot.slane %v4538_v63, 9  ;;  %v4688_v0 = vrot.slane %v11799_v53, 5  ;;  %v2092_v23 = vrot.slane %v2091_v6, 4  ;;  %v12172_v55 = vld [vmem:[#allocation2 + $0x4c] sm:$0xf] }
 0x117   : > { %v2102_v57 = vrot.slane %v2101_v47, 4  ;;  %v2124_v31 = vrot.slane %v2122_v37, 4  ;;  %v2130_v54 = vrot.slane %v2128_v49, 5  ;;  %v4691_v50 = vrot.slane %v11839_v29, 5  ;;  %v1975_v45 = vld [vmem:[#allocation2 + $0x50] sm:$0x1] }
 0x118   : > { %v2116_v15 = vrot.slane %v2115_v22, 4  ;;  %v12163_v7 = vsel %vm11265_vm0, %v8801_v30, %v4688_v0  ;;  %v4690_v8 = vrot.slane %v4688_v0, 4  ;;  %v2097_v19 = vsel %vm11590_vm8, %v2092_v23, %v2096_v60  ;;  %v12196_v30 = vld [vmem:[#allocation2 + $0x54] sm:$0xf]  ;;  %v12205_v23 = vld [vmem:[#allocation2 + $0x58] sm:$0xf] }
 0x119   : > { %v2107_v53 = vsel %vm11590_vm8, %v2102_v57, %v2106_v32  ;;  %v2125_v28 = vor.u32 %v2124_v31, %v2120_v2  ;;  %v8802_v63 = vrot.slane %v4539_v41, 9  ;;  %v4695_v29 = vrot.slane %v11809_v20, 5 }
 0x11a   : > { %v8593_v22 = vcombine.low %v2097_v19, %v2107_v53  ;;  %v2121_v27 = vsel %vm11590_vm8, %v2116_v15, %v2120_v2  ;;  %v12178_v62 = vsel %vm11265_vm0, %v4690_v8, %v4691_v50  ;;  %v4698_v32 = vrot.slane %v11854_v11, 5  ;;  %v1976_v19 = vld [vmem:[#allocation2 + $0x5c] sm:$0x1] }
 0x11b   : > { %v2126_v6 = vrot.slane %v2125_v28, 4  ;;  %v2133_v47 = vshrl.u32 %v12166_v38, 16  ;;  %v14979_v37 = vcombine.low %v11930_v39, %v11942_v35  ;;  %v12192_v15 = vsel %vm11265_vm0, %v8802_v63, %v4695_v29 }
 0x11c   : > { %9585 = vmatprep.mubr.msk.bf16.mxu1 %vm443_vm3, %v8593_v22  ;;  %v4697_v20 = vrot.slane %v4695_v29, 4  ;;  %v2136_v2 = vshll.u32 %v12166_v38, 16  ;;  %v2142_v49 = vshll.u32 %v12172_v55, 16  ;;  %v14980_v11 = vcombine.low %v11952_v44, %v11966_v13 }
 0x11d   : > { %9766 = vmatmul.mubr.msk.bf16.gmra.mrb[12].mxu0 %vm443_vm3, %v14979_v37  ;;  %v2131_v39 = vsel %vm11590_vm8, %v2126_v6, %v2130_v54  ;;  %v2135_v35 = vrot.slane %v2133_v47, 4  ;;  %v2146_v0 = vshrl.u32 %v12172_v55, 16  ;;  %v2152_v41 = vshll.u32 %v1975_v45, 16 }
 0x11e   : > { %9769 = vmatprep.mubr.msk.bf16.mxu0 %vm443_vm3, %v14980_v11  ;;  %v8594_v57 = vcombine.low %v2121_v27, %v2131_v39  ;;  %v12209_v31 = vsel %vm11265_vm0, %v4697_v20, %v4698_v32  ;;  %v2138_v8 = vrot.slane %v2136_v2, 5  ;;  %v2144_v50 = vrot.slane %v2142_v49, 5  ;;  %v12218_v32 = vld [vmem:[#allocation2 + $0x60] sm:$0xf] }
 0x11f   : > { %v2148_v13 = vrot.slane %v2146_v0, 4  ;;  %v2154_v53 = vrot.slane %v2152_v41, 5  ;;  %v2157_v54 = vshrl.u32 %v12196_v30, 16  ;;  %v2160_v63 = vshll.u32 %v12196_v30, 16 }
 0x120   : > { %9586 = vmatmul.mubr.msk.bf16.gmra.mrb[12].mxu1 %vm443_vm3, %v8594_v57  ;;  %v2139_v28 = vor.u32 %v2138_v8, %v2135_v35  ;;  %v2166_v22 = vshll.u32 %v12205_v23, 16  ;;  %v2170_v27 = vshrl.u32 %v12205_v23, 16  ;;  %v2176_v6 = vshll.u32 %v1976_v19, 16 }
 0x121   : > { %v2149_v29 = vor.u32 %v2148_v13, %v2144_v50  ;;  %v2159_v45 = vrot.slane %v2157_v54, 4  ;;  %v2162_v37 = vrot.slane %v2160_v63, 5  ;;  %v10782_v39 = vmov 1966171168   ;;  %v12228_v13 = vld [vmem:[#allocation2 + $0x64] sm:$0xf] }
 0x122   : > { %v2140_v47 = vrot.slane %v2139_v28, 4  ;;  %v2168_v20 = vrot.slane %v2166_v22, 5  ;;  %v2172_v2 = vrot.slane %v2170_v27, 4  ;;  %v2178_v11 = vrot.slane %v2176_v6, 5  ;;  %v1977_v22 = vld [vmem:[#allocation2 + $0x68] sm:$0x1] }
 0x123   : > { %v2150_v49 = vrot.slane %v2149_v29, 4  ;;  %v12220_v0 = vunpack.c.l.s4 %v10782_v39  ;;  %v849_v35 = vlaneseq  ;;  %v14981_v41 = vcombine.low %v11958_v46, %v11974_v24  ;;  %v12246_v39 = vld [vmem:[#allocation2 + $0x70] sm:$0xf] }
 0x124   : > { %v2145_v57 = vsel %vm11590_vm8, %v2140_v47, %v2144_v50  ;;  %v2163_v8 = vor.u32 %v2162_v37, %v2159_v45  ;;  %v2173_v19 = vor.u32 %v2172_v2, %v2168_v20  ;;  %v2181_v54 = vshrl.u32 %v12218_v32, 16  ;;  %v12240_v47 = vld [vmem:[#allocation2 + $0x6c] sm:$0xf] }
 0x125   : > { %9770 = vmatmul.mubr.msk.bf16.gmra.mrb[16].mxu0 %vm443_vm3, %v14981_v41  ;;  %v14982_v28 = vcombine.low %v11978_v14, %v11989_v4  ;;  %v2155_v24 = vsel %vm11590_vm8, %v2150_v49, %v2154_v53  ;;  %v2184_v50 = vshll.u32 %v12218_v32, 16  ;;  %v12243_v4 = vshrl.u32 %v849_v35, 7 }
 0x126   : > { %v8595_v27 = vcombine.low %v2145_v57, %v2155_v24  ;;  %v2164_v29 = vrot.slane %v2163_v8, 4  ;;  %v2174_v45 = vrot.slane %v2173_v19, 4  ;;  %v2183_v6 = vrot.slane %v2181_v54, 4  ;;  %v1978_v8 = vld [vmem:[#allocation2 + $0x74] sm:$0x1] }
 0x127   : > { %9773 = vmatprep.mubr.msk.bf16.mxu0 %vm443_vm3, %v14982_v28  ;;  %v2186_v37 = vrot.slane %v2184_v50, 5  ;;  %v2190_v2 = vshll.u32 %v12228_v13, 16  ;;  %v2194_v41 = vshrl.u32 %v12228_v13, 16  ;;  %v2200_v57 = vshll.u32 %v1977_v22, 16  ;;  %v12255_v24 = vld [vmem:[#allocation2 + $0x78] sm:$0xf] }
 0x128   : > { %9589 = vmatprep.mubr.msk.bf16.mxu1 %vm443_vm3, %v8595_v27  ;;  %v2169_v53 = vsel %vm11590_vm8, %v2164_v29, %v2168_v20  ;;  %v2179_v49 = vsel %vm11590_vm8, %v2174_v45, %v2178_v11  ;;  %v2205_v28 = vshrl.u32 %v12240_v47, 16  ;;  %v2208_v27 = vshll.u32 %v12240_v47, 16 }
 0x129   : > { %v8596_v19 = vcombine.low %v2169_v53, %v2179_v49  ;;  %v2187_v35 = vor.u32 %v2186_v37, %v2183_v6  ;;  %v2192_v54 = vrot.slane %v2190_v2, 5  ;;  %v2196_v50 = vrot.slane %v2194_v41, 4  ;;  %v12261_v53 = vld [vmem:[#allocation2 + $0x7c] sm:$0xf]  ;;  %v1979_v41 = vld [vmem:[#allocation2 + $0x80] sm:$0x1] }
 0x12a   : > { %v2202_v46 = vrot.slane %v2200_v57, 5  ;;  %v2214_v20 = vshll.u32 %v12246_v39, 16  ;;  %v2207_v29 = vrot.slane %v2205_v28, 4  ;;  %v2218_v22 = vshrl.u32 %v12246_v39, 16 }
 0x12b   : > { %9590 = vmatmul.mubr.msk.bf16.gmra.mrb[16].mxu1 %vm443_vm3, %v8596_v19  ;;  %v2188_v11 = vrot.slane %v2187_v35, 4  ;;  %v2224_v45 = vshll.u32 %v1978_v8, 16  ;;  %v14983_v6 = vcombine.low %v11984_v33, %v12002_v12  ;;  %v2197_v37 = vor.u32 %v2196_v50, %v2192_v54  ;;  %v12275_v12 = vld [vmem:[#allocation2 + $0x84] sm:$0xf] }
 0x12c   : > { %v2210_v2 = vrot.slane %v2208_v27, 5  ;;  %v2216_v49 = vrot.slane %v2214_v20, 5  ;;  %v2229_v57 = vshrl.u32 %v12255_v24, 16  ;;  %v14984_v19 = vcombine.low %v12027_v52, %v12041_v61 }
 0x12d   : > { %9774 = vmatmul.mubr.msk.bf16.gmra.mrb[20].mxu0 %vm443_vm3, %v14983_v6  ;;  %v2193_v8 = vsel %vm11590_vm8, %v2188_v11, %v2192_v54  ;;  %v2220_v35 = vrot.slane %v2218_v22, 4  ;;  %v2226_v28 = vrot.slane %v2224_v45, 5  ;;  %v2232_v33 = vshll.u32 %v12255_v24, 16  ;;  %v12281_v22 = vld [vmem:[#allocation2 + $0x88] sm:$0xf] }
 0x12e   : > { %9777 = vmatprep.mubr.msk.bf16.mxu0 %vm443_vm3, %v14984_v19  ;;  %v2198_v50 = vrot.slane %v2197_v37, 4  ;;  %v2211_v27 = vor.u32 %v2210_v2, %v2207_v29  ;;  %v2231_v20 = vrot.slane %v2229_v57, 4  ;;  %v2238_v6 = vshll.u32 %v12261_v53, 16  ;;  %v1980_v57 = vld [vmem:[#allocation2 + $0x8c] sm:$0x1] }
 0x12f   : > { %v2221_v63 = vor.u32 %v2220_v35, %v2216_v49  ;;  %v2234_v14 = vrot.slane %v2232_v33, 5  ;;  %v2242_v52 = vshrl.u32 %v12261_v53, 16  ;;  %v2248_v61 = vshll.u32 %v1979_v41, 16 }
 0x130   : > { %v2203_v19 = vsel %vm11590_vm8, %v2198_v50, %v2202_v46  ;;  %v2212_v54 = vrot.slane %v2211_v27, 4  ;;  %v2240_v11 = vrot.slane %v2238_v6, 5  ;;  %v2253_v45 = vshrl.u32 %v12275_v12, 16 }
 0x131   : > { %v8597_v44 = vcombine.low %v2193_v8, %v2203_v19  ;;  %v2222_v37 = vrot.slane %v2221_v63, 4  ;;  %v2235_v29 = vor.u32 %v2234_v14, %v2231_v20  ;;  %v2244_v2 = vrot.slane %v2242_v52, 4  ;;  %v12298_v52 = vld [vmem:[#allocation2 + $0x94] sm:$0xf] }
 0x132   : > { %v2217_v35 = vsel %vm11590_vm8, %v2212_v54, %v2216_v49  ;;  %v2250_v33 = vrot.slane %v2248_v61, 5  ;;  %v2255_v60 = vrot.slane %v2253_v45, 4  ;;  %v2256_v41 = vshll.u32 %v12275_v12, 16 }
 0x133   : > { %9593 = vmatprep.mubr.msk.bf16.mxu1 %vm443_vm3, %v8597_v44  ;;  %v2227_v46 = vsel %vm11590_vm8, %v2222_v37, %v2226_v28  ;;  %v2236_v50 = vrot.slane %v2235_v29, 4  ;;  %v2245_v8 = vor.u32 %v2244_v2, %v2240_v11  ;;  %v2262_v63 = vshll.u32 %v12281_v22, 16  ;;  %v12309_v2 = vld [vmem:[#allocation2 + $0x9c] sm:$0xf] }
 0x134   : > { %v14985_v14 = vcombine.low %v12033_v25, %v12055_v3  ;;  %v8598_v49 = vcombine.low %v2217_v35, %v2227_v46  ;;  %v2258_v27 = vrot.slane %v2256_v41, 5  ;;  %v2266_v20 = vshrl.u32 %v12281_v22, 16  ;;  %v1981_v25 = vld [vmem:[#allocation2 + $0x98] sm:$0x1] }
 0x135   : > { %v2272_v6 = vshll.u32 %v1980_v57, 16  ;;  %v14986_v44 = vcombine.low %v12102_v18, %v12130_v26  ;;  %v2241_v28 = vsel %vm11590_vm8, %v2236_v50, %v2240_v11  ;;  %v2246_v61 = vrot.slane %v2245_v8, 4  ;;  %v12315_v8 = vld [vmem:[#allocation2 + $0xa0] sm:$0xf] }
 0x136   : > { %9778 = vmatmul.mubr.msk.bf16.gmra.mrb[24].mxu0 %vm443_vm3, %v14985_v14  ;;  %v2264_v19 = vrot.slane %v2262_v63, 5  ;;  %v2277_v3 = vshrl.u32 %v12287_v10, 16  ;;  %9594 = vmatmul.mubr.msk.bf16.gmra.mrb[20].mxu1 %vm443_vm3, %v8598_v49  ;;  %v2259_v54 = vor.u32 %v2258_v27, %v2255_v60  ;;  %v2268_v45 = vrot.slane %v2266_v20, 4 }
 0x137   : > { %9781 = vmatprep.mubr.msk.bf16.mxu0 %vm443_vm3, %v14986_v44  ;;  %v2274_v37 = vrot.slane %v2272_v6, 5  ;;  %v2280_v29 = vshll.u32 %v12287_v10, 16  ;;  %v2251_v18 = vsel %vm11590_vm8, %v2246_v61, %v2250_v33  ;;  %v2286_v11 = vshll.u32 %v12298_v52, 16  ;;  %v1982_v6 = vld [vmem:[#allocation2 + $0xa4] sm:$0x1] }
 0x138   : > { %v2279_v26 = vrot.slane %v2277_v3, 4  ;;  %v2290_v57 = vshrl.u32 %v12298_v52, 16  ;;  %v8599_v35 = vcombine.low %v2241_v28, %v2251_v18  ;;  %v2260_v41 = vrot.slane %v2259_v54, 4 }
 0x139   : > { %v2269_v46 = vor.u32 %v2268_v45, %v2264_v19  ;;  %v2282_v50 = vrot.slane %v2280_v29, 5  ;;  %v2288_v60 = vrot.slane %v2286_v11, 5  ;;  %v2296_v14 = vshll.u32 %v1981_v25, 16  ;;  %v12323_v45 = vld [vmem:[#allocation2 + $0xa8] sm:$0xf] }
 0x13a   : > { %v2292_v63 = vrot.slane %v2290_v57, 4  ;;  %v2301_v49 = vshrl.u32 %v12309_v2, 16  ;;  %9597 = vmatprep.mubr.msk.bf16.mxu1 %vm443_vm3, %v8599_v35  ;;  %v2265_v33 = vsel %vm11590_vm8, %v2260_v41, %v2264_v19  ;;  %v2304_v44 = vshll.u32 %v12309_v2, 16  ;;  %v12332_v19 = vld [vmem:[%s14784_s3] ss:$0 sm:$0xff] }
 0x13b   : > { %v2270_v27 = vrot.slane %v2269_v46, 4  ;;  %v2283_v20 = vor.u32 %v2282_v50, %v2279_v26  ;;  %v2298_v61 = vrot.slane %v2296_v14, 5  ;;  %v2310_v54 = vshll.u32 %v12315_v8, 16 }
 0x13c   : > { %v2293_v28 = vor.u32 %v2292_v63, %v2288_v60  ;;  %v2303_v3 = vrot.slane %v2301_v49, 4  ;;  %v14987_v25 = vcombine.low %v12124_v36, %v12143_v48  ;;  %v2306_v26 = vrot.slane %v2304_v44, 5  ;;  %v767_v46 = vpop.f32.mrb[0].mxu0 }
 0x13d   : > { %v2275_v29 = vsel %vm11590_vm8, %v2270_v27, %v2274_v37  ;;  %v2284_v18 = vrot.slane %v2283_v20, 4  ;;  %v2314_v11 = vshrl.u32 %v12315_v8, 16  ;;  %v14988_v57 = vcombine.low %v12163_v7, %v12178_v62  ;;  %v12343_v37 = vld [vmem:[#allocation2 + $0xac] sm:$0xf]  ;;  %v9563_v20 = vpop.f32.mrb[1].mxu0 }
 0x13e   : > { %9782 = vmatmul.mubr.msk.bf16.gmra.mrb[28].mxu0 %vm443_vm3, %v14987_v25  ;;  %v8600_v36 = vcombine.low %v2265_v33, %v2275_v29  ;;  %v2294_v48 = vrot.slane %v2293_v28, 4  ;;  %v2312_v35 = vrot.slane %v2310_v54, 5  ;;  %v2320_v41 = vshll.u32 %v1982_v6, 16  ;;  %v1983_v33 = vld [vmem:[#allocation2 + $0xb0] sm:$0x1]  ;;  %v770_v44 = vpop.f32.mrb[2].mxu0 }
 0x13f   : > { %9785 = vmatprep.mubr.msk.bf16.mxu0 %vm443_vm3, %v14988_v57  ;;  %v2289_v50 = vsel %vm11590_vm8, %v2284_v18, %v2288_v60  ;;  %v2307_v63 = vor.u32 %v2306_v26, %v2303_v3  ;;  %v2316_v14 = vrot.slane %v2314_v11, 4  ;;  %v2325_v49 = vshrl.u32 %v12323_v45, 16  ;;  %v12351_v25 = vld [vmem:[#allocation2 + $0xb4] sm:$0xf]  ;;  %v10487_v18 = vld [vmem:[#allocation2 + $0x18] sm:$0xff]   ;;  %v9564_v11 = vpop.f32.mrb[3].mxu0 }
 0x140   : > { %v768_v27 = vadd.f32 %v12332_v19, %v767_v46  ;;  %9598 = vmatmul.mubr.msk.bf16.gmra.mrb[24].mxu1 %vm443_vm3, %v8600_v36  ;;  %v2299_v7 = vsel %vm11590_vm8, %v2294_v48, %v2298_v61  ;;  %v2322_v62 = vrot.slane %v2320_v41, 5  ;;  %v2328_v6 = vshll.u32 %v12323_v45, 16 }
 0x141   : > { %v8601_v60 = vcombine.low %v2289_v50, %v2299_v7  ;;  %v2308_v28 = vrot.slane %v2307_v63, 4  ;;  %v2317_v3 = vor.u32 %v2316_v14, %v2312_v35  ;;  %v2327_v54 = vrot.slane %v2325_v49, 4  ;;  %v12359_v49 = vld [vmem:[#allocation2 + $0xb8] sm:$0xf] }
 0x142   : > { %v8578_v29 = vmul.f32 -1.442695, %v768_v27  ;;  %v771_v26 = vadd.f32 %v12332_v19, %v770_v44  ;;  %v2330_v57 = vrot.slane %v2328_v6, 5  ;;  %v2334_v36 = vshll.u32 %v12343_v37, 16  ;;  %v1984_v6 = vld [vmem:[#allocation2 + $0xbc] sm:$0x1] }
 0x143   : > { %9601 = vmatprep.mubr.msk.bf16.mxu1 %vm443_vm3, %v8601_v60  ;;  %v2313_v61 = vsel %vm11590_vm8, %v2308_v28, %v2312_v35  ;;  %v2318_v48 = vrot.slane %v2317_v3, 4  ;;  %v2338_v41 = vshrl.u32 %v12343_v37, 16  ;;  %v2344_v46 = vshll.u32 %v1983_v33, 16 }
 0x144   : > { %10523 = vpow2.f32 %v8578_v29  ;;  %v8579_v50 = vmul.f32 -1.442695, %v771_v26  ;;  %v2331_v63 = vor.u32 %v2330_v57, %v2327_v54  ;;  %v2336_v14 = vrot.slane %v2334_v36, 5  ;;  %v10488_v57 = vld [vmem:[#allocation2 + $0x24] sm:$0xff]  }
 0x145   : > { %v14989_v27 = vcombine.low %v12192_v15, %v12209_v31  ;;  %v2323_v20 = vsel %vm11590_vm8, %v2318_v48, %v2322_v62  ;;  %v2340_v7 = vrot.slane %v2338_v41, 4  ;;  %v2346_v35 = vrot.slane %v2344_v46, 5  ;;  %v10489_v46 = vld [vmem:[#allocation2 + $0x30] sm:$0xff]  }
 0x146   : > { %v2349_v44 = vshrl.u32 %v12351_v25, 16  ;;  %10525 = vpow2.f32 %v8579_v50  ;;  %v8602_v33 = vcombine.low %v2313_v61, %v2323_v20  ;;  %v2332_v60 = vrot.slane %v2331_v63, 4  ;;  %v5377_v20 = vld [vmem:[#allocation2 + $0x18] sm:$0xf] }
 0x147   : > { %9786 = vmatmul.mubr.msk.bf16.gmra.mrb[32].mxu0 %vm443_vm3, %v14989_v27  ;;  %v2352_v28 = vshll.u32 %v12351_v25, 16  ;;  %v2341_v3 = vor.u32 %v2340_v7, %v2336_v14  ;;  %v2358_v15 = vshll.u32 %v12359_v49, 16  ;;  %v2362_v31 = vshrl.u32 %v12359_v49, 16 }
 0x148   : > { %9793 = vmatprep.mubr.msk.bf16.mxu0 %vm443_vm3, %v10487_v18  ;;  %v2351_v54 = vrot.slane %v2349_v44, 4  ;;  %v14990_v62 = vunpack.c.0.s8 %v12220_v0  ;;  %v12378_v26 = vsub.s32 0, %v12243_v4  ;;  %9602 = vmatmul.mubr.msk.bf16.gmra.mrb[28].mxu1 %vm443_vm3, %v8602_v33  ;;  %v2368_v11 = vshll.u32 %v1984_v6, 16  ;;  %v5378_v33 = vld [vmem:[#allocation2 + $0x1c] sm:$0xf] }
 0x149   : > { %v2354_v18 = vrot.slane %v2352_v28, 5  ;;  %v2337_v36 = vsel %vm11590_vm8, %v2332_v60, %v2336_v14  ;;  %v2342_v61 = vrot.slane %v2341_v3, 4  ;;  %v2360_v48 = vrot.slane %v2358_v15, 5  ;;  %v5379_v60 = vld [vmem:[#allocation2 + $0x20] sm:$0x1]  ;;  %v824_v28 = vpop.f32.mrb[0].mxu1 }
 0x14a   : > { %v12375_v29 = vsub.s32 %v14990_v62, %v12243_v4  ;;  %14991 = vst [vmem:[#allocation43_spill] sm:$0xff] %v12378_v26  ;;  %v2364_v41 = vrot.slane %v2362_v31, 4  ;;  %v2370_v63 = vrot.slane %v2368_v11, 5  ;;  %v8623_v0 = vcombine.low %v11946_v51, %v11992_v21  ;;  %v14992_v4 = vld [vmem:[#allocation40_spill] sm:$0xff]  ;;  %v9571_v31 = vpop.f32.mrb[1].mxu1 }
 0x14b   : > { %v2355_v50 = vor.u32 %v2354_v18, %v2351_v54  ;;  %v8624_v27 = vcombine.low %v14992_v4, %v12008_v43  ;;  %v2347_v7 = vsel %vm11590_vm8, %v2342_v61, %v2346_v35  ;;  %v10512_v35 = vld [vmem:[%s14785_s4 + $0x78] sm:$0xff]   ;;  %v825_v15 = vadd.f32 %v12332_v19, %v824_v28  ;;  %v827_v61 = vpop.f32.mrb[2].mxu1 }
 0x14c   : > { %v2365_v6 = vor.u32 %v2364_v41, %v2360_v48  ;;  %v8603_v3 = vcombine.low %v2337_v36, %v2347_v7  ;;  %v5426_v18 = vshrl.u32 %v5377_v20, 16  ;;  %v5429_v11 = vshll.u32 %v5377_v20, 16  ;;  %v9572_v31 = vpop.f32.mrb[3].mxu1 }
 0x14d   : > { %v2356_v54 = vrot.slane %v2355_v50, 4  ;;  %v5435_v50 = vshll.u32 %v5378_v33, 16  ;;  %v5439_v7 = vshrl.u32 %v5378_v33, 16  ;;  %v5445_v21 = vshll.u32 %v5379_v60, 16  ;;  %v12413_v33 = vld [vmem:[%s14785_s4 + $0x80] sm:$0xff]  }
 0x14e   : > { %v2366_v62 = vrot.slane %v2365_v6, 4  ;;  %v10524_v36 = vpop.eup %10523  ;;  %9605 = vmatprep.mubr.msk.bf16.mxu1 %vm443_vm3, %v8603_v3  ;;  %v828_v28 = vadd.f32 %v12332_v19, %v827_v61  ;;  %v5380_v6 = vld [vmem:[#allocation2 + $0x24] sm:$0xf]  ;;  %v5428_v3 = vrot.slane %v5426_v18, 4  ;;  %v5431_v14 = vrot.slane %v5429_v11, 5 }
 0x14f   : > { %9794 = vmatmul.mubr.msk.bf16.vlgmr.msra.gmra.mrb[4].mxu0 %vm443_vm3, %v10488_v57  ;;  %v2361_v41 = vsel %vm11590_vm8, %v2356_v54, %v2360_v48  ;;  %v780_v51 = vadd.f32 1.0, %v10524_v36  ;;  %v8581_v57 = vmul.f32 -1.442695, %v825_v15  ;;  %v5437_v48 = vrot.slane %v5435_v50, 5  ;;  %v5381_v54 = vld [vmem:[#allocation2 + $0x28] sm:$0xf] }
 0x150   : > { %9797 = vmatprep.mubr.msk.bf16.mxu0 %vm443_vm3, %v10489_v46  ;;  %v2371_v20 = vsel %vm11590_vm8, %v2366_v62, %v2370_v63  ;;  %9826 = vmatpush3.bf16.msra.mxu0 %v12110_v17  ;;  %v10526_v46 = vpop.eup %10525  ;;  %v8582_v60 = vmul.f32 -1.442695, %v828_v28  ;;  %v10490_v15 = vld [vmem:[#allocation2 + $0x3c] sm:$0xff]   ;;  %v5441_v63 = vrot.slane %v5439_v7, 4  ;;  %v10491_v17 = vld [vmem:[#allocation2 + $0x48] sm:$0xff]   ;;  %v5432_v62 = vor.u32 %v5431_v14, %v5428_v3 }
 0x151   : > { %v8604_v44 = vcombine.low %v2361_v41, %v2371_v20  ;;  %9827 = vmatprep.subr.bf16.mxu0 %v10512_v35  ;;  %10527 = vrcp.f32 %v780_v51  ;;  %v781_v19 = vadd.f32 1.0, %v10526_v46  ;;  %v5447_v36 = vrot.slane %v5445_v21, 5  ;;  %v5382_v18 = vld [vmem:[#allocation2 + $0x2c] sm:$0x1]  ;;  %v5383_v7 = vld [vmem:[#allocation2 + $0x30] sm:$0xf] }
 0x152   : > { %10529 = vpow2.f32 %v8581_v57  ;;  %v5450_v11 = vshrl.u32 %v5380_v6, 16  ;;  %v5442_v61 = vor.u32 %v5441_v63, %v5437_v48  ;;  %v5453_v41 = vshll.u32 %v5380_v6, 16  ;;  %v5384_v20 = vld [vmem:[#allocation2 + $0x34] sm:$0xf]  ;;  %v5385_v3 = vld [vmem:[#allocation2 + $0x38] sm:$0x1] }
 0x153   : > { %9606 = vmatmul.mubr.msk.bf16.gmra.mrb[32].mxu1 %vm443_vm3, %v8604_v44  ;;  %10531 = vrcp.f32 %v781_v19  ;;  %v5459_v50 = vshll.u32 %v5381_v54, 16  ;;  %v5433_v51 = vrot.slane %v5432_v62, 4  ;;  %v5463_v31 = vshrl.u32 %v5381_v54, 16 }
 0x154   : > { %9613 = vmatprep.mubr.msk.bf16.mxu1 %vm443_vm3, %v8623_v0  ;;  %9828 = vmatpush3.bf16.msra.mxu0 %v10512_v35  ;;  %10533 = vpow2.f32 %v8582_v60  ;;  %v5452_v28 = vrot.slane %v5450_v11, 4  ;;  %v5443_v14 = vrot.slane %v5442_v61, 4  ;;  %v5455_v44 = vrot.slane %v5453_v41, 5  ;;  %v12430_v11 = vld [vmem:[#allocation2 + $0x3c] sm:$0xf]  ;;  %v10492_v61 = vld [vmem:[#allocation2 + $0x54] sm:$0xff]  }
 0x155   : > { %9861 = vmatprep.subr.bf16.mxu0 %v12413_v33  ;;  %v5461_v21 = vrot.slane %v5459_v50, 5  ;;  %v5469_v57 = vshll.u32 %v5382_v18, 16  ;;  %v5438_v6 = vsel %vm11590_vm8, %v5433_v51, %v5437_v48  ;;  %v5465_v46 = vrot.slane %v5463_v31, 4  ;;  %v10493_v31 = vld [vmem:[#allocation2 + $0x60] sm:$0xff]   ;;  %v15004_v0 = vld [vmem:[#allocation9_spill] sm:$0xff] }
 0x156   : > { %v5448_v54 = vsel %vm11590_vm8, %v5443_v14, %v5447_v36  ;;  %v5456_v19 = vor.u32 %v5455_v44, %v5452_v28  ;;  %v5477_v62 = vshll.u32 %v5383_v7, 16  ;;  %v5483_v18 = vshll.u32 %v5384_v20, 16 }
 0x157   : > { %9798 = vmatmul.mubr.msk.bf16.gmra.mrb[8].mxu0 %vm443_vm3, %v10490_v15  ;;  %v5474_v15 = vshrl.u32 %v5383_v7, 16  ;;  %v5466_v63 = vor.u32 %v5465_v46, %v5461_v21  ;;  %v5487_v48 = vshrl.u32 %v5384_v20, 16  ;;  %v5493_v51 = vshll.u32 %v5385_v3, 16 }
 0x158   : > { %9801 = vmatprep.mubr.msk.bf16.mxu0 %vm443_vm3, %v10491_v17  ;;  %v5471_v17 = vrot.slane %v5469_v57, 5  ;;  %v5457_v41 = vrot.slane %v5456_v19, 4  ;;  %v12436_v36 = vcombine.low %v5438_v6, %v5448_v54  ;;  %v5479_v14 = vrot.slane %v5477_v62, 5 }
 0x159   : > { %v5476_v50 = vrot.slane %v5474_v15, 4  ;;  %v5467_v28 = vrot.slane %v5466_v63, 4  ;;  %v14993_v57 = vcombine.low %v12023_v16, %v12029_v40  ;;  %v12446_v46 = vrot.slane %v5483_v18, 5 }
 0x15a   : > { %v5462_v20 = vsel %vm11590_vm8, %v5457_v41, %v5461_v21  ;;  %v12448_v43 = vrot.slane %v5487_v48, 4  ;;  %v5498_v4 = vshrl.u32 %v12430_v11, 16  ;;  %v12455_v40 = vrot.slane %v5493_v51, 5  ;;  %v10682_v21 = vld [vmem:[%s14785_s4 + $0x28] sm:$0xff]  }
 0x15b   : > { %9614 = vmatmul.mubr.msk.bf16.vlgmr.msra.gmra.mrb[4].mxu1 %vm443_vm3, %v8624_v27  ;;  %v10528_v44 = vpop.eup %10527  ;;  %v14994_v27 = vld [vmem:[#allocation42_spill] sm:$0xff]  ;;  %v5472_v16 = vsel %vm11590_vm8, %v5467_v28, %v5471_v17  ;;  %v5480_v62 = vor.u32 %v5479_v14, %v5476_v50  ;;  %vm15072_vm1 = vmmov 0  }
 0x15c   : > { %9617 = vmatprep.mubr.msk.bf16.mxu1 %vm443_vm3, %v14993_v57  ;;  %10121 = vmatpush3.bf16.msra.mxu1 %v14994_v27  ;;  %v10530_v6 = vpop.eup %10529  ;;  %v845_v3 = vcombine.high %v10528_v44, %v10528_v44  ;;  %v852_v54 = vrot.slane %v10528_v44, %v12375_v29  ;;  %v12461_v63 = vcombine.low %v5462_v20, %v5472_v16  ;;  %v12470_v57 = vrot.slane %v5498_v4, 4  ;;  %v10494_v16 = vld [vmem:[#allocation2 + $0x6c] sm:$0xff]  }
 0x15d   : > { %10120 = vmatprep.subr.bf16.mxu1 %v10682_v21  ;;  %v10532_v19 = vpop.eup %10531  ;;  %v837_v15 = vadd.f32 1.0, %v10530_v6  ;;  %v14995_v6 = vmov 0.0  }
 0x15e   : > { %v10534_v41 = vpop.eup %10533  ;;  %v859_v48 = vrot.slane %v845_v3, %v12375_v29  ;;  %v860_v17 = vcombine.high %v852_v54, %v852_v54  ;;  %v868_v51 = vrot.slane %v852_v54, %v12375_v29  ;;  %v894_v28 = vcombine.high %v10532_v19, %v10532_v19 }
 0x15f   : > { %9802 = vmatmul.mubr.msk.bf16.gmra.mrb[12].mxu0 %vm443_vm3, %v10492_v61  ;;  %v901_v44 = vrot.slane %v10532_v19, %v12375_v29  ;;  %10535 = vrcp.f32 %v837_v15  ;;  %v838_v54 = vadd.f32 1.0, %v10534_v41  ;;  %v12477_v19 = vrot.slane %v5480_v62, 4  ;;  %v15002_v61 = vld [vmem:[#allocation8_spill] sm:$0xff] }
 0x160   : > { %9805 = vmatprep.mubr.msk.bf16.mxu0 %vm443_vm3, %v10493_v31  ;;  %10122 = vmatpush3.bf16.msra.mxu1 %v10682_v21  ;;  %v861_v50 = vcombine.high %v859_v48, %v859_v48  ;;  %v875_v14 = vrot.slane %v859_v48, %v12375_v29  ;;  %v882_v20 = vrot.slane %v860_v17, %v12375_v29  ;;  %v10496_v48 = vld [vmem:[#allocation2 + $0x78] sm:$0xff]  }
 0x161   : > { %v890_v27 = vcombine.high %v868_v51, %v868_v51  ;;  %9908 = vmatprep.subr.mxu1 %v14995_v6  ;;  %v946_v3 = vrot.slane %v868_v51, %v12378_v26  ;;  %v908_v31 = vrot.slane %v894_v28, %v12375_v29  ;;  %v14996_v17 = vcombine.low %v12045_v34, %v12058_v59 }
 0x162   : > { %v889_v4 = vrot.slane %v861_v50, %v12375_v29  ;;  %v891_v15 = vcombine.high %v875_v14, %v875_v14  ;;  %v892_v21 = vcombine.high %v882_v20, %v882_v20  ;;  %v950_v7 = vrot.slane %v882_v20, %v12378_v26 }
 0x163   : > { %9618 = vmatmul.mubr.msk.bf16.gmra.mrb[8].mxu1 %vm443_vm3, %v14996_v17  ;;  %v954_v51 = vrot.slane %v890_v27, %v12378_v26  ;;  %v962_v28 = vrot.slane %v875_v14, %v12378_v26  ;;  %v909_v41 = vcombine.high %v901_v44, %v901_v44  ;;  %v917_v62 = vrot.slane %v901_v44, %v12375_v29  ;;  %v14998_v17 = vld [vmem:[#allocation6_spill] sm:$0xff]  ;;  %v15000_v27 = vld [vmem:[#allocation7_spill] sm:$0xff] }
 0x164   : > { %v14997_v50 = vcombine.low %v12086_v1, %v12104_v9  ;;  %v893_v60 = vcombine.high %v889_v4, %v889_v4  ;;  %v958_v20 = vrot.slane %v892_v21, %v12378_v26  ;;  %v966_v35 = vrot.slane %v889_v4, %v12378_v26  ;;  %v15006_v21 = vld [vmem:[#allocation10_spill] sm:$0xff] }
 0x165   : > { %v970_v34 = vrot.slane %v891_v15, %v12378_v26  ;;  %v12496_v18 = vmul.f32 %v14998_v17, %v946_v3  ;;  %v12499_v14 = vmul.f32 %v15000_v27, %v946_v3  ;;  %v12502_v44 = vmul.f32 %v15002_v61, %v950_v7  ;;  %v15008_v15 = vld [vmem:[#allocation11_spill] sm:$0xff]  ;;  %v15010_v17 = vld [vmem:[#allocation12_spill] sm:$0xff]  ;;  %v15012_v3 = vld [vmem:[#allocation13_spill] sm:$0xff] }
 0x166   : > { %9621 = vmatprep.mubr.msk.bf16.mxu1 %vm443_vm3, %v14997_v50  ;;  %v12505_v1 = vmul.f32 %v15004_v0, %v950_v7  ;;  %v974_v9 = vrot.slane %v893_v60, %v12378_v26  ;;  %v12510_v4 = vmul.f32 %v15006_v21, %v954_v51  ;;  %v12513_v50 = vmul.f32 %v15008_v15, %v954_v51  ;;  %v15014_v7 = vld [vmem:[#allocation14_spill] sm:$0xff]  ;;  %v15018_v60 = vld [vmem:[#allocation16_spill] sm:$0xff] }
 0x167   : > { %14999 = vst [vmem:[#allocation44_spill] sm:$0xff] %v12496_v18  ;;  %15001 = vst [vmem:[#allocation39_spill] sm:$0xff] %v12499_v14  ;;  %9806 = vmatmul.mubr.msk.bf16.gmra.mrb[16].mxu0 %vm443_vm3, %v10494_v16  ;;  %v12516_v18 = vmul.f32 %v15010_v17, %v958_v20  ;;  %v12520_v61 = vmul.f32 %v15012_v3, %v958_v20  ;;  %v12523_v0 = vmul.f32 %v15014_v7, %v962_v28  ;;  %v15016_v16 = vld [vmem:[#allocation15_spill] sm:$0xff]  ;;  %v15022_v15 = vld [vmem:[#allocation18_spill] sm:$0xff] }
 0x168   : > { %15003 = vst [vmem:[#allocation38_spill] sm:$0xff] %v12502_v44  ;;  %15005 = vst [vmem:[#allocation40_spill] sm:$0xff] %v12505_v1  ;;  %9809 = vmatprep.mubr.msk.bf16.mxu0 %vm443_vm3, %v10496_v48  ;;  %v12526_v27 = vmul.f32 %v15016_v16, %v962_v28  ;;  %v12529_v21 = vmul.f32 %v15018_v60, %v966_v35  ;;  %v12535_v17 = vmul.f32 %v15022_v15, %v970_v34  ;;  %v10693_v1 = vld [vmem:[#allocation2 + $0x64] sm:$0xf]  ;;  %v10694_v44 = vld [vmem:[#allocation2 + $0x68] sm:$0x1] }
 0x169   : > { %15007 = vst [vmem:[#allocation42_spill] sm:$0xff] %v12510_v4  ;;  %15009 = vst [vmem:[#allocation45_spill] sm:$0xff] %v12513_v50  ;;  %v15020_v4 = vld [vmem:[#allocation17_spill] sm:$0xff]  ;;  %v910_v20 = vcombine.high %v908_v31, %v908_v31  ;;  %v12540_v3 = vpop.eup %10535  ;;  %v924_v7 = vrot.slane %v908_v31, %v12375_v29  ;;  %v931_v28 = vrot.slane %v909_v41, %v12375_v29  ;;  %10537 = vrcp.f32 %v838_v54 }
 0x16a   : > { %15011 = vst [vmem:[#allocation46_spill] sm:$0xff] %v12516_v18  ;;  %15013 = vst [vmem:[#allocation47_spill] sm:$0xff] %v12520_v61  ;;  %v12532_v51 = vmul.f32 %v15020_v4, %v966_v35  ;;  %v15024_v18 = vld [vmem:[#allocation19_spill] sm:$0xff]  ;;  %v939_v16 = vcombine.high %v917_v62, %v917_v62  ;;  %v978_v60 = vrot.slane %v917_v62, %v12378_v26  ;;  %v15029_v4 = vld [vmem:[#allocation21_spill] sm:$0xff] }
 0x16b   : > { %15015 = vst [vmem:[#allocation48_spill] sm:$0xff] %v12523_v0  ;;  %15017 = vst [vmem:[#allocation49_spill] sm:$0xff] %v12526_v27  ;;  %v12538_v48 = vmul.f32 %v15024_v18, %v970_v34  ;;  %v15027_v27 = vld [vmem:[#allocation20_spill] sm:$0xff]  ;;  %v12549_v15 = vmul.f32 %v15029_v4, %v974_v9  ;;  %v12552_v34 = vrot.slane %v910_v20, %v12375_v29  ;;  %v10499_v18 = vld [vmem:[#allocation2 + $0x90] sm:$0xff]  }
 0x16c   : > { %15019 = vst [vmem:[#allocation50_spill] sm:$0xff] %v12529_v21  ;;  %15021 = vst [vmem:[#allocation51_spill] sm:$0xff] %v12532_v51  ;;  %v10498_v21 = vld [vmem:[#allocation2 + $0x84] sm:$0xff]   ;;  %v12546_v35 = vmul.f32 %v15027_v27, %v974_v9  ;;  %v15031_v31 = vcombine.low %v12126_v5, %v12138_v56  ;;  %v940_v41 = vcombine.high %v924_v7, %v924_v7  ;;  %v12900_v50 = vld [vmem:[#allocation2 + $0xd0] sm:$0xf] }
 0x16d   : > { %15023 = vst [vmem:[#allocation52_spill] sm:$0xff] %v12535_v17  ;;  %15025 = vst [vmem:[#allocation53_spill] sm:$0xff] %v12538_v48  ;;  %v941_v48 = vcombine.high %v931_v28, %v931_v28  ;;  %v982_v62 = vrot.slane %v931_v28, %v12378_v26  ;;  %v986_v27 = vrot.slane %v939_v16, %v12378_v26  ;;  %v5395_v17 = vld [vmem:[#allocation2 + $0x60] sm:$0xf] }
 0x16e   : > { %15026 = vst [vmem:[#allocation54_spill] sm:$0xff] %v12540_v3  ;;  %15028 = vst [vmem:[#allocation55_spill] sm:$0xff] %v12546_v35  ;;  %9622 = vmatmul.mubr.msk.bf16.gmra.mrb[12].mxu1 %vm443_vm3, %v15031_v31  ;;  %v15032_v9 = vcombine.low %v12166_v38, %v12172_v55  ;;  %v994_v29 = vrot.slane %v924_v7, %v12378_v26  ;;  %v998_v54 = vrot.slane %v12552_v34, %v12378_v26  ;;  %v15035_v7 = vld [vmem:[#allocation22_spill] sm:$0xff]  ;;  %v15037_v31 = vld [vmem:[#allocation23_spill] sm:$0xff] }
 0x16f   : > { %15030 = vst [vmem:[#allocation56_spill] sm:$0xff] %v12549_v15  ;;  %v5486_v5 = vsel %vm11590_vm8, %v12477_v19, %v12446_v46  ;;  %v15033_v56 = vor.u32 %v12448_v43, %v12446_v46  ;;  %v990_v38 = vrot.slane %v941_v48, %v12378_v26  ;;  %v12578_v55 = vrot.slane %v940_v41, %v12378_v26  ;;  %v15039_v19 = vld [vmem:[#allocation24_spill] sm:$0xff]  ;;  %v15041_v46 = vld [vmem:[#allocation25_spill] sm:$0xff]  ;;  %v12597_v48 = vld [vmem:[#allocation2 + $0x40] sm:$0xf] }
 0x170   : > { %9625 = vmatprep.mubr.msk.bf16.mxu1 %vm443_vm3, %v15032_v9  ;;  %v12581_v28 = vmul.f32 %v15035_v7, %v978_v60  ;;  %9810 = vmatmul.mubr.msk.bf16.gmra.mrb[20].mxu0 %vm443_vm3, %v10498_v21  ;;  %v12585_v9 = vmul.f32 %v15037_v31, %v978_v60  ;;  %v12588_v4 = vmul.f32 %v15039_v19, %v982_v62  ;;  %v12599_v41 = vld [vmem:[#allocation2 + $0x44] sm:$0x1]  ;;  %v15047_v60 = vld [vmem:[#allocation28_spill] sm:$0xff]  ;;  %v15049_v19 = vld [vmem:[#allocation29_spill] sm:$0xff] }
 0x171   : > { %v5491_v20 = vrot.slane %v15033_v56, 4  ;;  %15034 = vst [vmem:[#allocation57_spill] sm:$0xff] %v12578_v55  ;;  %v12591_v43 = vmul.f32 %v15041_v46, %v982_v62  ;;  %v15043_v56 = vld [vmem:[#allocation26_spill] sm:$0xff]  ;;  %9813 = vmatprep.mubr.msk.bf16.mxu0 %vm443_vm3, %v10499_v18  ;;  %v15045_v7 = vld [vmem:[#allocation27_spill] sm:$0xff]  ;;  %v12605_v31 = vmul.f32 %v15047_v60, %v990_v38  ;;  %v15055_v18 = vld [vmem:[#allocation32_spill] sm:$0xff]  ;;  %v15057_v60 = vshll.u32 %v12430_v11, 16 }
 0x172   : > { %15036 = vst [vmem:[#allocation58_spill] sm:$0xff] %v12581_v28  ;;  %15038 = vst [vmem:[#allocation59_spill] sm:$0xff] %v12585_v9  ;;  %v12594_v16 = vmul.f32 %v15043_v56, %v986_v27  ;;  %v12602_v21 = vmul.f32 %v15045_v7, %v986_v27  ;;  %v15051_v62 = vld [vmem:[#allocation30_spill] sm:$0xff]  ;;  %v5389_v56 = vld [vmem:[#allocation2 + $0x48] sm:$0xf]  ;;  %v12617_v9 = vmul.f32 %v15055_v18, %v998_v54 }
 0x173   : > { %15040 = vst [vmem:[#allocation60_spill] sm:$0xff] %v12588_v4  ;;  %15042 = vst [vmem:[#allocation61_spill] sm:$0xff] %v12591_v43  ;;  %v12608_v4 = vmul.f32 %v15049_v19, %v990_v38  ;;  %v12611_v46 = vmul.f32 %v15051_v62, %v994_v29  ;;  %v5496_v27 = vsel %vm11590_vm8, %v5491_v20, %v12455_v40  ;;  %v5503_v7 = vrot.slane %v15057_v60, 5  ;;  %v10500_v19 = vld [vmem:[#allocation2 + $0x9c] sm:$0xff]   ;;  %v10503_v40 = vld [vmem:[#allocation2 + $0xa8] sm:$0xff]  }
 0x174   : > { %15044 = vst [vmem:[#allocation62_spill] sm:$0xff] %v12594_v16  ;;  %15046 = vst [vmem:[#allocation63_spill] sm:$0xff] %v12602_v21  ;;  %v15053_v16 = vld [vmem:[#allocation31_spill] sm:$0xff]  ;;  %v5507_v62 = vshll.u32 %v12597_v48, 16  ;;  %v15060_v18 = vld [vmem:[#allocation34_spill] sm:$0xff]  ;;  %v15062_v11 = vcombine.low %v12196_v30, %v12205_v23  ;;  %v5525_v21 = vshll.u32 %v5389_v56, 16  ;;  %v12649_v30 = vpop.eup %10537 }
 0x175   : > { %15048 = vst [vmem:[#allocation64_spill] sm:$0xff] %v12605_v31  ;;  %15050 = vst [vmem:[#allocation65_spill] sm:$0xff] %v12608_v4  ;;  %v12614_v43 = vmul.f32 %v15053_v16, %v994_v29  ;;  %v15058_v31 = vld [vmem:[#allocation33_spill] sm:$0xff]  ;;  %v5517_v29 = vshll.u32 %v12599_v41, 16  ;;  %v12630_v16 = vld [vmem:[#allocation2 + $0x4c] sm:$0xf]  ;;  %v5504_v20 = vor.u32 %v5503_v7, %v12470_v57 }
 0x176   : > { %15052 = vst [vmem:[#allocation66_spill] sm:$0xff] %v12611_v46  ;;  %15056 = vst [vmem:[#allocation68_spill] sm:$0xff] %v12617_v9  ;;  %v12625_v38 = vmul.f32 %v15058_v31, %v998_v54  ;;  %v5511_v46 = vshrl.u32 %v12597_v48, 16  ;;  %v12634_v9 = vmul.f32 %v15060_v18, %v12578_v55  ;;  %9626 = vmatmul.mubr.msk.bf16.gmra.mrb[16].mxu1 %vm443_vm3, %v15062_v11  ;;  %v12643_v60 = vld [vmem:[#allocation2 + $0x50] sm:$0x1]  ;;  %v5522_v31 = vshrl.u32 %v5389_v56, 16 }
 0x177   : > { %15054 = vst [vmem:[#allocation67_spill] sm:$0xff] %v12614_v43  ;;  %v12640_v54 = vcombine.low %v5486_v5, %v5496_v27  ;;  %v15063_v43 = vcombine.low %v12218_v32, %v12228_v13  ;;  %v5509_v18 = vrot.slane %v5507_v62, 5  ;;  %v5519_v4 = vrot.slane %v5517_v29, 5  ;;  %15064 = vst [vmem:[#allocation71_spill] sm:$0xff] %v12649_v30  ;;  %v12655_v13 = vld [vmem:[#allocation2 + $0x58] sm:$0xf] }
 0x178   : > { %15059 = vst [vmem:[#allocation69_spill] sm:$0xff] %v12625_v38  ;;  %15061 = vst [vmem:[#allocation70_spill] sm:$0xff] %v12634_v9  ;;  %v5392_v38 = vld [vmem:[#allocation2 + $0x54] sm:$0xf]  ;;  %v5513_v9 = vrot.slane %v5511_v46, 4  ;;  %v5505_v23 = vrot.slane %v5504_v20, 4  ;;  %9814 = vmatmul.mubr.msk.bf16.gmra.mrb[24].mxu0 %vm443_vm3, %v10500_v19  ;;  %v8633_v46 = vcombine.low %v12255_v24, %v12261_v53 }
 0x179   : > { %9629 = vmatprep.mubr.msk.bf16.mxu1 %vm443_vm3, %v15063_v43  ;;  %v5524_v5 = vrot.slane %v5522_v31, 4  ;;  %v5531_v27 = vshll.u32 %v12630_v16, 16  ;;  %v5535_v57 = vshrl.u32 %v12630_v16, 16  ;;  %v5527_v11 = vrot.slane %v5525_v21, 5  ;;  %9817 = vmatprep.mubr.msk.bf16.mxu0 %vm443_vm3, %v10503_v40  ;;  %v12662_v62 = vld [vmem:[#allocation2 + $0x5c] sm:$0x1] }
 0x17a   : > { %v5514_v7 = vor.u32 %v5513_v9, %v5509_v18  ;;  %v5541_v32 = vshll.u32 %v12643_v60, 16  ;;  %v5546_v43 = vshrl.u32 %v5392_v38, 16  ;;  %v5549_v29 = vshll.u32 %v5392_v38, 16  ;;  %v10504_v24 = vld [vmem:[#allocation2 + $0xb4] sm:$0xff]  }
 0x17b   : > { %v12660_v56 = vrot.slane %v5531_v27, 5  ;;  %v5537_v31 = vrot.slane %v5535_v57, 4  ;;  %v5510_v9 = vsel %vm11590_vm8, %v5505_v23, %v5509_v18  ;;  %v5528_v21 = vor.u32 %v5527_v11, %v5524_v5  ;;  %v10507_v18 = vld [vmem:[#allocation2 + $0xc0] sm:$0xff]   ;;  %v6115_v3 = vld [vmem:[#allocation2 + $0x18] sm:$0xe] }
 0x17c   : > { %v5515_v19 = vrot.slane %v5514_v7, 4  ;;  %v5548_v20 = vrot.slane %v5546_v43, 4  ;;  %v5551_v15 = vrot.slane %v5549_v29, 5  ;;  %v5555_v40 = vshll.u32 %v12655_v13, 16 }
 0x17d   : > { %v5538_v28 = vor.u32 %v5537_v31, %v12660_v56  ;;  %v5559_v35 = vshrl.u32 %v12655_v13, 16  ;;  %v5529_v27 = vrot.slane %v5528_v21, 4  ;;  %v5543_v57 = vrot.slane %v5541_v32, 5  ;;  %v12678_v31 = vld [vmem:[#allocation2 + $0x64] sm:$0xf] }
 0x17e   : > { %v5520_v53 = vsel %vm11590_vm8, %v5515_v19, %v5519_v4  ;;  %v5565_v38 = vshll.u32 %v12662_v62, 16  ;;  %v15065_v23 = vcombine.low %v12240_v47, %v12246_v39  ;;  %v8634_v5 = vcombine.low %v12275_v12, %v12281_v22  ;;  %v12688_v39 = vld [vmem:[#allocation2 + $0x68] sm:$0x1]  ;;  %v5398_v19 = vld [vmem:[#allocation2 + $0x6c] sm:$0xf] }
 0x17f   : > { %v5539_v7 = vrot.slane %v5538_v28, 4  ;;  %v5552_v11 = vor.u32 %v5551_v15, %v5548_v20  ;;  %v5557_v43 = vrot.slane %v5555_v40, 5  ;;  %v12680_v4 = vcombine.low %v5510_v9, %v5520_v53 }
 0x180   : > { %9630 = vmatmul.mubr.msk.bf16.gmra.mrb[20].mxu1 %vm443_vm3, %v15065_v23  ;;  %v5534_v32 = vsel %vm11590_vm8, %v5529_v27, %v12660_v56  ;;  %v5561_v29 = vrot.slane %v5559_v35, 4  ;;  %v8635_v47 = vcombine.low %v12287_v10, %v12298_v52  ;;  %v5567_v22 = vrot.slane %v5565_v38, 5  ;;  %9818 = vmatmul.mubr.msk.bf16.gmra.mrb[28].mxu0 %vm443_vm3, %v10504_v24  ;;  %v12695_v56 = vld [vmem:[#allocation2 + $0x70] sm:$0xf]  ;;  %v12701_v23 = vld [vmem:[#allocation2 + $0x74] sm:$0x1] }
 0x181   : > { %9633 = vmatprep.mubr.msk.bf16.mxu1 %vm443_vm3, %v8633_v46  ;;  %v5553_v12 = vrot.slane %v5552_v11, 4  ;;  %v5570_v15 = vshrl.u32 %v5395_v17, 16  ;;  %v5573_v28 = vshll.u32 %v5395_v17, 16  ;;  %v5544_v46 = vsel %vm11590_vm8, %v5539_v7, %v5543_v57  ;;  %9821 = vmatprep.mubr.msk.bf16.mxu0 %vm443_vm3, %v10507_v18 }
 0x182   : > { %v5562_v9 = vor.u32 %v5561_v29, %v5557_v43  ;;  %v5579_v21 = vshll.u32 %v12678_v31, 16  ;;  %v5583_v35 = vshrl.u32 %v12678_v31, 16  ;;  %v5589_v20 = vshll.u32 %v12688_v39, 16  ;;  %v10508_v29 = vld [vmem:[#allocation2 + $0xcc] sm:$0xff]  }
 0x183   : > { %v5558_v10 = vsel %vm11590_vm8, %v5553_v12, %v5557_v43  ;;  %v5572_v52 = vrot.slane %v5570_v15, 4  ;;  %v5575_v17 = vrot.slane %v5573_v28, 5  ;;  %v5594_v27 = vshrl.u32 %v5398_v19, 16  ;;  %v5401_v28 = vld [vmem:[#allocation2 + $0x78] sm:$0xf] }
 0x184   : > { %v5563_v40 = vrot.slane %v5562_v9, 4  ;;  %v5581_v24 = vrot.slane %v5579_v21, 5  ;;  %v5585_v53 = vrot.slane %v5583_v35, 4  ;;  %v5591_v38 = vrot.slane %v5589_v20, 5 }
 0x185   : > { %v5576_v57 = vor.u32 %v5575_v17, %v5572_v52  ;;  %v5597_v7 = vshll.u32 %v5398_v19, 16  ;;  %v5603_v11 = vshll.u32 %v12695_v56, 16  ;;  %v5596_v12 = vrot.slane %v5594_v27, 4 }
 0x186   : > { %v5568_v18 = vsel %vm11590_vm8, %v5563_v40, %v5567_v22  ;;  %v5586_v43 = vor.u32 %v5585_v53, %v5581_v24  ;;  %v5607_v15 = vshrl.u32 %v12695_v56, 16  ;;  %v8636_v9 = vcombine.low %v12309_v2, %v12315_v8  ;;  %v12716_v40 = vld [vmem:[#allocation2 + $0x7c] sm:$0xf]  ;;  %v12722_v8 = vld [vmem:[#allocation2 + $0x80] sm:$0x1] }
 0x187   : > { %v5577_v21 = vrot.slane %v5576_v57, 4  ;;  %v5599_v35 = vrot.slane %v5597_v7, 5  ;;  %v12710_v52 = vrot.slane %v5603_v11, 5  ;;  %v12712_v19 = vcombine.low %v5534_v32, %v5544_v46 }
 0x188   : > { %9634 = vmatmul.mubr.msk.bf16.gmra.mrb[24].mxu1 %vm443_vm3, %v8634_v5  ;;  %v5587_v17 = vrot.slane %v5586_v43, 4  ;;  %v5609_v22 = vrot.slane %v5607_v15, 4  ;;  %v5613_v20 = vshll.u32 %v12701_v23, 16  ;;  %v12718_v53 = vcombine.low %v5558_v10, %v5568_v18  ;;  %9822 = vmatmul.mubr.msk.bf16.gmra.mrb[32].mxu0 %vm443_vm3, %v10508_v29  ;;  %v5404_v10 = vld [vmem:[#allocation2 + $0x84] sm:$0xf] }
 0x189   : > { %9637 = vmatprep.mubr.msk.bf16.mxu1 %vm443_vm3, %v8635_v47  ;;  %v5600_v5 = vor.u32 %v5599_v35, %v5596_v12  ;;  %v8637_v2 = vcombine.low %v12323_v45, %v12343_v37  ;;  %v5618_v27 = vshrl.u32 %v5401_v28, 16  ;;  %v5582_v32 = vsel %vm11590_vm8, %v5577_v21, %v5581_v24  ;;  %9829 = vmatprep.mubr.msk.bf16.mxu0 %vm443_vm3, %v12436_v36  ;;  %v12737_v43 = vld [vmem:[#allocation2 + $0x88] sm:$0xf] }
 0x18a   : > { %v5592_v47 = vsel %vm11590_vm8, %v5587_v17, %v5591_v38  ;;  %v5610_v46 = vor.u32 %v5609_v22, %v12710_v52  ;;  %v5621_v57 = vshll.u32 %v5401_v28, 16  ;;  %v5627_v11 = vshll.u32 %v12716_v40, 16  ;;  %v12741_v28 = vld [vmem:[#allocation2 + $0x8c] sm:$0x1] }
 0x18b   : > { %v5601_v7 = vrot.slane %v5600_v5, 4  ;;  %v5620_v37 = vrot.slane %v5618_v27, 4  ;;  %v5615_v29 = vrot.slane %v5613_v20, 5  ;;  %v5631_v24 = vshrl.u32 %v12716_v40, 16  ;;  %v2949_v5 = vld [vmem:[#allocation2 + $0x18] sm:$0xe] }
 0x18c   : > { %v5623_v18 = vrot.slane %v5621_v57, 5  ;;  %v5637_v38 = vshll.u32 %v12722_v8, 16  ;;  %v12739_v12 = vcombine.low %v5582_v32, %v5592_v47  ;;  %v5629_v15 = vrot.slane %v5627_v11, 5 }
 0x18d   : > { %v5642_v36 = vshrl.u32 %v5404_v10, 16  ;;  %v5645_v21 = vshll.u32 %v5404_v10, 16  ;;  %v5606_v35 = vsel %vm11590_vm8, %v5601_v7, %v12710_v52  ;;  %v5611_v17 = vrot.slane %v5610_v46, 4  ;;  %v10522_v52 = vld [vmem:[%s14785_s4 + $0x88] sm:$0xff]  }
 0x18e   : > { %v5624_v22 = vor.u32 %v5623_v18, %v5620_v37  ;;  %v5633_v20 = vrot.slane %v5631_v24, 4  ;;  %v5639_v27 = vrot.slane %v5637_v38, 5  ;;  %v5651_v32 = vshll.u32 %v12737_v43, 16  ;;  %v10683_v37 = vld [vmem:[#allocation2 + $0x1c] sm:$0xf] }
 0x18f   : > { %v5644_v57 = vrot.slane %v5642_v36, 4  ;;  %v5647_v45 = vrot.slane %v5645_v21, 5  ;;  %v5655_v10 = vshrl.u32 %v12737_v43, 16  ;;  %v5661_v51 = vshll.u32 %v12741_v28, 16  ;;  %v2950_v24 = vld [vmem:[#allocation2 + $0x24] sm:$0xe] }
 0x190   : > { %9638 = vmatmul.mubr.msk.bf16.gmra.mrb[28].mxu1 %vm443_vm3, %v8636_v9  ;;  %v5625_v47 = vrot.slane %v5624_v22, 4  ;;  %v5634_v11 = vor.u32 %v5633_v20, %v5629_v15  ;;  %v12754_v7 = vrot.slane %v5651_v32, 5  ;;  %v8659_v9 = vrot.slane %v2949_v5, 9  ;;  %9830 = vmatmul.mubr.msk.bf16.vlgmr.msra.gmra.mrb[4].mxu0 %vm443_vm3, %v12461_v63  ;;  %v5407_v22 = vld [vmem:[#allocation2 + $0x90] sm:$0xf] }
 0x191   : > { %9641 = vmatprep.mubr.msk.bf16.mxu1 %vm443_vm3, %v8637_v2  ;;  %v5648_v46 = vor.u32 %v5647_v45, %v5644_v57  ;;  %v3014_v18 = vrot.slane %v10683_v37, 5  ;;  %v5616_v2 = vsel %vm11590_vm8, %v5611_v17, %v5615_v29  ;;  %v5657_v21 = vrot.slane %v5655_v10, 4  ;;  %9833 = vmatprep.mubr.msk.bf16.mxu0 %vm443_vm3, %v12640_v54  ;;  %v10684_v57 = vld [vmem:[#allocation2 + $0x20] sm:$0x1]  ;;  %v12774_v54 = vld [vmem:[#allocation2 + $0x94] sm:$0xf] }
 0x192   : > { %v5630_v38 = vsel %vm11590_vm8, %v5625_v47, %v5629_v15  ;;  %v5635_v36 = vrot.slane %v5634_v11, 4  ;;  %v3017_v63 = vrot.slane %v10684_v57, 5  ;;  %9862 = vmatpush3.bf16.msra.mxu0 %v12413_v33  ;;  %v8660_v17 = vrot.slane %v2950_v24, 9  ;;  %v12782_v33 = vld [vmem:[#allocation2 + $0x98] sm:$0x1] }
 0x193   : > { %v12764_v45 = vrot.slane %v5648_v46, 4  ;;  %v3015_v20 = vsel %vm11265_vm0, %v8659_v9, %v3014_v18  ;;  %v3016_v5 = vrot.slane %v3014_v18, 4  ;;  %v5658_v15 = vor.u32 %v5657_v21, %v12754_v7  ;;  %9863 = vmatprep.subr.bf16.mxu0 %v10522_v52  ;;  %v15068_v21 = vld [vmem:[#allocation41_spill] sm:$0xff] }
 0x194   : > { %v5640_v29 = vsel %vm11590_vm8, %v5635_v36, %v5639_v27  ;;  %v15066_v32 = vrot.slane %v12058_v59, 5  ;;  %v12776_v11 = vcombine.low %v5606_v35, %v5616_v2  ;;  %v12778_v10 = vrot.slane %v5661_v51, 5  ;;  %v5410_v27 = vld [vmem:[#allocation2 + $0x9c] sm:$0xf]  ;;  %v12799_v59 = vld [vmem:[#allocation2 + $0xa0] sm:$0xf] }
 0x195   : > { %v3018_v46 = vsel %vm11265_vm0, %v3016_v5, %v3017_v63  ;;  %v5666_v9 = vshrl.u32 %v5407_v22, 16  ;;  %v5659_v37 = vrot.slane %v5658_v15, 4  ;;  %v15069_v57 = vrot.slane %v15068_v21, 5 }
 0x196   : > { %v3023_v47 = vrot.slane %v15066_v32, 4  ;;  %v8679_v18 = vcombine.low %v3015_v20, %v3018_v46  ;;  %v15067_v24 = vmov %v15066_v32  ;;  %v15070_v35 = vcombine.low %v12351_v25, %v12359_v49  ;;  %9864 = vmatpush3.bf16.msra.mxu0 %v10522_v52 }
 0x197   : > { %v3022_v36 = vsel %vm11265_vm0, %v8660_v17, %v15067_v24  ;;  %v12796_v2 = vcombine.low %v5630_v38, %v5640_v29  ;;  %v5668_v5 = vrot.slane %v5666_v9, 4  ;;  %v5669_v63 = vshll.u32 %v5407_v22, 16 }
 0x198   : > { %v3025_v51 = vsel %vm11265_vm0, %v3023_v47, %v15069_v57  ;;  %9642 = vmatmul.mubr.msk.bf16.gmra.mrb[32].mxu1 %vm443_vm3, %v15070_v35  ;;  %v5675_v20 = vshll.u32 %v12774_v54, 16  ;;  %v5654_v15 = vsel %vm11590_vm8, %v12764_v45, %v12754_v7  ;;  %v5679_v25 = vshrl.u32 %v12774_v54, 16  ;;  %v2951_v47 = vld [vmem:[#allocation2 + $0x30] sm:$0xe]  ;;  %9834 = vmatmul.mubr.msk.bf16.gmra.mrb[8].mxu0 %vm443_vm3, %v12680_v4  ;;  %v12813_v45 = vld [vmem:[#allocation2 + $0xa4] sm:$0x1] }
 0x199   : > { %9653 = vmatprep.mubr.msk.bf16.mxu1 %vm443_vm3, %v8679_v18  ;;  %v5685_v49 = vshll.u32 %v12782_v33, 16  ;;  %v5690_v38 = vshrl.u32 %v5410_v27, 16  ;;  %v8680_v29 = vcombine.low %v3022_v36, %v3025_v51  ;;  %v5671_v17 = vrot.slane %v5669_v63, 5  ;;  %9837 = vmatprep.mubr.msk.bf16.mxu0 %vm443_vm3, %v12712_v19  ;;  %v10685_v51 = vld [vmem:[#allocation2 + $0x34] sm:$0xf] }
 0x19a   : > { %v5677_v22 = vrot.slane %v5675_v20, 5  ;;  %v5693_v32 = vshll.u32 %v5410_v27, 16  ;;  %v5664_v52 = vsel %vm11590_vm8, %v5659_v37, %v12778_v10  ;;  %v5681_v7 = vrot.slane %v5679_v25, 4  ;;  %v2952_v37 = vld [vmem:[#allocation2 + $0x3c] sm:$0xe] }
 0x19b   : > { %v5692_v46 = vrot.slane %v5690_v38, 4  ;;  %v5699_v9 = vshll.u32 %v12799_v59, 16  ;;  %v5672_v18 = vor.u32 %v5671_v17, %v5668_v5  ;;  %v5687_v24 = vrot.slane %v5685_v49, 5  ;;  %v10686_v49 = vld [vmem:[#allocation2 + $0x38] sm:$0x1] }
 0x19c   : > { %v5695_v27 = vrot.slane %v5693_v32, 5  ;;  %v5703_v36 = vshrl.u32 %v12799_v59, 16  ;;  %v5682_v21 = vor.u32 %v5681_v7, %v5677_v22  ;;  %v8661_v57 = vrot.slane %v2951_v47, 9 }
 0x19d   : > { %v12819_v4 = vrot.slane %v5699_v9, 5  ;;  %v3028_v10 = vrot.slane %v10685_v51, 5  ;;  %v5673_v35 = vrot.slane %v5672_v18, 4  ;;  %v5709_v25 = vshll.u32 %v12813_v45, 16  ;;  %v5413_v9 = vld [vmem:[#allocation2 + $0xa8] sm:$0xf] }
 0x19e   : > { %v5696_v63 = vor.u32 %v5695_v27, %v5692_v46  ;;  %v5705_v20 = vrot.slane %v5703_v36, 4  ;;  %v5683_v38 = vrot.slane %v5682_v21, 4  ;;  %v3031_v17 = vrot.slane %v10686_v49, 5  ;;  %v10687_v36 = vld [vmem:[#allocation2 + $0x40] sm:$0xf] }
 0x19f   : > { %v3029_v19 = vsel %vm11265_vm0, %v8661_v57, %v3028_v10  ;;  %v3030_v5 = vrot.slane %v3028_v10, 4  ;;  %v5678_v32 = vsel %vm11590_vm8, %v5673_v35, %v5677_v22  ;;  %v8662_v46 = vrot.slane %v2952_v37, 9  ;;  %v10688_v57 = vld [vmem:[#allocation2 + $0x44] sm:$0x1]  ;;  %v12836_v10 = vld [vmem:[#allocation2 + $0xb0] sm:$0x1] }
 0x1a0   : > { %9654 = vmatmul.mubr.msk.bf16.vlgmr.msra.gmra.mrb[8].mxu1 %vm443_vm3, %v8680_v29  ;;  %v12827_v47 = vrot.slane %v5696_v63, 4  ;;  %v5706_v7 = vor.u32 %v5705_v20, %v12819_v4  ;;  %v5688_v18 = vsel %vm11590_vm8, %v5683_v38, %v5687_v24  ;;  %v3035_v21 = vrot.slane %v10687_v36, 5  ;;  %v12834_v29 = vld [vmem:[#allocation2 + $0xac] sm:$0xf]  ;;  %9838 = vmatmul.mubr.msk.bf16.gmra.mrb[12].mxu0 %vm443_vm3, %v12718_v53  ;;  %v5416_v49 = vld [vmem:[#allocation2 + $0xb4] sm:$0xf] }
 0x1a1   : > { %v3032_v27 = vsel %vm11265_vm0, %v3030_v5, %v3031_v17  ;;  %v3038_v51 = vrot.slane %v10688_v57, 5  ;;  %v12838_v22 = vcombine.low %v5654_v15, %v5664_v52  ;;  %v5711_v63 = vrot.slane %v5709_v25, 5  ;;  %9841 = vmatprep.mubr.msk.bf16.mxu0 %vm443_vm3, %v12739_v12  ;;  %v12852_v25 = vld [vmem:[#allocation2 + $0xb8] sm:$0xf]  ;;  %v12862_v57 = vld [vmem:[#allocation2 + $0xbc] sm:$0x1] }
 0x1a2   : > { %v5707_v35 = vrot.slane %v5706_v7, 4  ;;  %v8681_v37 = vcombine.low %v3029_v19, %v3032_v27  ;;  %v3036_v24 = vsel %vm11265_vm0, %v8662_v46, %v3035_v21  ;;  %v3037_v20 = vrot.slane %v3035_v21, 4  ;;  %v2953_v46 = vld [vmem:[#allocation2 + $0x48] sm:$0xe] }
 0x1a3   : > { %v5714_v38 = vshrl.u32 %v5413_v9, 16  ;;  %v5717_v5 = vshll.u32 %v5413_v9, 16  ;;  %v12846_v17 = vcombine.low %v5678_v32, %v5688_v18  ;;  %v5723_v15 = vshll.u32 %v12834_v29, 16 }
 0x1a4   : > { %9657 = vmatprep.mubr.msk.bf16.mxu1 %vm443_vm3, %v8681_v37  ;;  %v5727_v52 = vshrl.u32 %v12834_v29, 16  ;;  %v5733_v53 = vshll.u32 %v12836_v10, 16  ;;  %v5702_v19 = vsel %vm11590_vm8, %v12827_v47, %v12819_v4  ;;  %v3039_v12 = vsel %vm11265_vm0, %v3037_v20, %v3038_v51 }
 0x1a5   : > { %v5716_v32 = vrot.slane %v5714_v38, 4  ;;  %v5719_v7 = vrot.slane %v5717_v5, 5  ;;  %v5712_v9 = vsel %vm11590_vm8, %v5707_v35, %v5711_v63  ;;  %v8682_v18 = vcombine.low %v3036_v24, %v3039_v12  ;;  %v2954_v38 = vld [vmem:[#allocation2 + $0x54] sm:$0xe] }
 0x1a6   : > { %v5725_v27 = vrot.slane %v5723_v15, 5  ;;  %v5729_v36 = vrot.slane %v5727_v52, 4  ;;  %v5738_v37 = vshrl.u32 %v5416_v49, 16  ;;  %v5741_v0 = vshll.u32 %v5416_v49, 16  ;;  %v10689_v49 = vld [vmem:[#allocation2 + $0x4c] sm:$0xf] }
 0x1a7   : > { %v5720_v21 = vor.u32 %v5719_v7, %v5716_v32  ;;  %v5747_v61 = vshll.u32 %v12852_v25, 16  ;;  %v5735_v47 = vrot.slane %v5733_v53, 5  ;;  %v5751_v51 = vshrl.u32 %v12852_v25, 16 }
 0x1a8   : > { %9658 = vmatmul.mubr.msk.bf16.gmra.mrb[12].mxu1 %vm443_vm3, %v8682_v18  ;;  %v5730_v4 = vor.u32 %v5729_v36, %v5725_v27  ;;  %v8663_v20 = vrot.slane %v2953_v46, 9  ;;  %v5740_v35 = vrot.slane %v5738_v37, 4  ;;  %v5743_v63 = vrot.slane %v5741_v0, 5  ;;  %9842 = vmatmul.mubr.msk.bf16.gmra.mrb[16].mxu0 %vm443_vm3, %v12776_v11  ;;  %v10690_v46 = vld [vmem:[#allocation2 + $0x50] sm:$0x1] }
 0x1a9   : > { %v5721_v5 = vrot.slane %v5720_v21, 4  ;;  %v12867_v24 = vrot.slane %v5747_v61, 5  ;;  %v5753_v52 = vrot.slane %v5751_v51, 4  ;;  %v5757_v12 = vshll.u32 %v12862_v57, 16  ;;  %v5419_v21 = vld [vmem:[#allocation2 + $0xc0] sm:$0xf]  ;;  %9845 = vmatprep.mubr.msk.bf16.mxu0 %vm443_vm3, %v12796_v2 }
 0x1aa   : > { %v5731_v15 = vrot.slane %v5730_v4, 4  ;;  %v3042_v32 = vrot.slane %v10689_v49, 5  ;;  %v5744_v7 = vor.u32 %v5743_v63, %v5740_v35  ;;  %v3045_v18 = vrot.slane %v10690_v46, 5  ;;  %v10691_v51 = vld [vmem:[#allocation2 + $0x58] sm:$0xf] }
 0x1ab   : > { %v5726_v53 = vsel %vm11590_vm8, %v5721_v5, %v5725_v27  ;;  %v8664_v36 = vrot.slane %v2954_v38, 9  ;;  %v5754_v61 = vor.u32 %v5753_v52, %v12867_v24  ;;  %v12881_v4 = vcombine.low %v5702_v19, %v5712_v9  ;;  %v10692_v38 = vld [vmem:[#allocation2 + $0x5c] sm:$0x1]  ;;  %v12885_v63 = vld [vmem:[#allocation2 + $0xc4] sm:$0xf] }
 0x1ac   : > { %v5736_v0 = vsel %vm11590_vm8, %v5731_v15, %v5735_v47  ;;  %v3043_v37 = vsel %vm11265_vm0, %v8663_v20, %v3042_v32  ;;  %v3044_v11 = vrot.slane %v3042_v32, 4  ;;  %v12883_v27 = vrot.slane %v5744_v7, 4  ;;  %v12891_v15 = vld [vmem:[#allocation2 + $0xc8] sm:$0x1]  ;;  %v5422_v7 = vld [vmem:[#allocation2 + $0xcc] sm:$0xf] }
 0x1ad   : > { %v3049_v5 = vrot.slane %v10691_v51, 5  ;;  %v3052_v35 = vrot.slane %v10692_v38, 5  ;;  %v12887_v2 = vrot.slane %v5757_v12, 5  ;;  %v5762_v52 = vshrl.u32 %v5419_v21, 16 }
 0x1ae   : > { %v3046_v47 = vsel %vm11265_vm0, %v3044_v11, %v3045_v18  ;;  %v5765_v20 = vshll.u32 %v5419_v21, 16  ;;  %v12893_v49 = vcombine.low %v5726_v53, %v5736_v0  ;;  %v12897_v46 = vrot.slane %v5754_v61, 4  ;;  %v12911_v0 = vld [vmem:[#allocation2 + $0xd4] sm:$0x1] }
 0x1af   : > { %v8683_v19 = vcombine.low %v3043_v37, %v3046_v47  ;;  %v3050_v9 = vsel %vm11265_vm0, %v8664_v36, %v3049_v5  ;;  %v3051_v32 = vrot.slane %v3049_v5, 4  ;;  %v5764_v51 = vrot.slane %v5762_v52, 4  ;;  %v2955_v47 = vld [vmem:[#allocation2 + $0x60] sm:$0xe] }
 0x1b0   : > { %v5767_v12 = vrot.slane %v5765_v20, 5  ;;  %v5771_v38 = vshll.u32 %v12885_v63, 16  ;;  %v5775_v36 = vshrl.u32 %v12885_v63, 16  ;;  %v5781_v21 = vshll.u32 %v12891_v15, 16  ;;  %9846 = vmatmul.mubr.msk.bf16.gmra.mrb[20].mxu0 %vm443_vm3, %v12838_v22 }
 0x1b1   : > { %9661 = vmatprep.mubr.msk.bf16.mxu1 %vm443_vm3, %v8683_v19  ;;  %v3053_v18 = vsel %vm11265_vm0, %v3051_v32, %v3052_v35  ;;  %v5786_v5 = vshrl.u32 %v5422_v7, 16  ;;  %v5789_v19 = vshll.u32 %v5422_v7, 16  ;;  %v5795_v53 = vshll.u32 %v12900_v50, 16  ;;  %9849 = vmatprep.mubr.msk.bf16.mxu0 %vm443_vm3, %v12846_v17 }
 0x1b2   : > { %v8684_v61 = vcombine.low %v3050_v9, %v3053_v18  ;;  %v5768_v37 = vor.u32 %v5767_v12, %v5764_v51  ;;  %v5773_v11 = vrot.slane %v5771_v38, 5  ;;  %v5777_v52 = vrot.slane %v5775_v36, 4  ;;  %v2956_v12 = vld [vmem:[#allocation2 + $0x6c] sm:$0xe] }
 0x1b3   : > { %v5783_v20 = vrot.slane %v5781_v21, 5  ;;  %v5788_v32 = vrot.slane %v5786_v5, 4  ;;  %v5799_v9 = vshrl.u32 %v12900_v50, 16  ;;  %v5805_v51 = vshll.u32 %v12911_v0, 16 }
 0x1b4   : > { %9662 = vmatmul.mubr.msk.bf16.gmra.mrb[16].mxu1 %vm443_vm3, %v8684_v61  ;;  %v5769_v35 = vrot.slane %v5768_v37, 4  ;;  %v5778_v38 = vor.u32 %v5777_v52, %v5773_v11  ;;  %v5791_v18 = vrot.slane %v5789_v19, 5  ;;  %v5797_v22 = vrot.slane %v5795_v53, 5  ;;  %v10695_v52 = vld [vmem:[#allocation2 + $0x70] sm:$0xf] }
 0x1b5   : > { %v8665_v36 = vrot.slane %v2955_v47, 9  ;;  %v5760_v7 = vsel %vm11590_vm8, %v12897_v46, %v12887_v2  ;;  %v5801_v21 = vrot.slane %v5799_v9, 4  ;;  %v5807_v17 = vrot.slane %v5805_v51, 5  ;;  %v10696_v9 = vld [vmem:[#allocation2 + $0x74] sm:$0x1] }
 0x1b6   : > { %v3056_v61 = vrot.slane %v10693_v1, 5  ;;  %v5779_v37 = vrot.slane %v5778_v38, 4  ;;  %v5792_v5 = vor.u32 %v5791_v18, %v5788_v32  ;;  %v3059_v30 = vrot.slane %v10694_v44, 5  ;;  %v6116_v51 = vld [vmem:[#allocation2 + $0x24] sm:$0xe] }
 0x1b7   : > { %v8666_v14 = vrot.slane %v2956_v12, 9  ;;  %v5802_v55 = vor.u32 %v5801_v21, %v5797_v22  ;;  %v3063_v19 = vrot.slane %v10695_v52, 5  ;;  %v5774_v2 = vsel %vm11590_vm8, %v5769_v35, %v5773_v11 }
 0x1b8   : > { %v3057_v53 = vsel %vm11265_vm0, %v8665_v36, %v3056_v61  ;;  %v3058_v47 = vrot.slane %v3056_v61, 4  ;;  %v5784_v46 = vsel %vm11590_vm8, %v5779_v37, %v5783_v20  ;;  %v5793_v1 = vrot.slane %v5792_v5, 4  ;;  %9850 = vmatmul.mubr.msk.bf16.gmra.mrb[24].mxu0 %vm443_vm3, %v12881_v4  ;;  %v10697_v36 = vld [vmem:[#allocation2 + $0x1c] sm:$0xf]  ;;  %v2957_v5 = vld [vmem:[#allocation2 + $0x78] sm:$0xe] }
 0x1b9   : > { %v3066_v32 = vrot.slane %v10696_v9, 5  ;;  %v5803_v44 = vrot.slane %v5802_v55, 4  ;;  %v3064_v38 = vsel %vm11265_vm0, %v8666_v14, %v3063_v19  ;;  %v8917_v18 = vrot.slane %v6115_v3, 9  ;;  %9853 = vmatprep.mubr.msk.bf16.mxu0 %vm443_vm3, %v12893_v49  ;;  %v10699_v3 = vld [vmem:[#allocation2 + $0x28] sm:$0xf] }
 0x1ba   : > { %v3060_v12 = vsel %vm11265_vm0, %v3058_v47, %v3059_v30  ;;  %v5798_v11 = vsel %vm11590_vm8, %v5793_v1, %v5797_v22  ;;  %v3065_v20 = vrot.slane %v3063_v19, 4  ;;  %v6181_v21 = vrot.slane %v10697_v36, 5  ;;  %v10698_v30 = vld [vmem:[#allocation2 + $0x20] sm:$0x1]  ;;  %v10700_v9 = vld [vmem:[#allocation2 + $0x2c] sm:$0x1] }
 0x1bb   : > { %v8685_v35 = vcombine.low %v3057_v53, %v3060_v12  ;;  %v5808_v55 = vsel %vm11590_vm8, %v5803_v44, %v5807_v17  ;;  %v6184_v61 = vrot.slane %v10698_v30, 5  ;;  %v8918_v14 = vrot.slane %v6116_v51, 9  ;;  %v2958_v17 = vld [vmem:[#allocation2 + $0x84] sm:$0xe]  ;;  %v6117_v44 = vld [vmem:[#allocation2 + $0x30] sm:$0xe] }
 0x1bc   : > { %v6188_v37 = vrot.slane %v10699_v3, 5  ;;  %v15071_v4 = vsel %vm11590_vm8, %v12883_v27, %v12867_v24  ;;  %v8897_v53 = vcombine.low %v5774_v2, %v5784_v46  ;;  %v3067_v49 = vsel %vm11265_vm0, %v3065_v20, %v3066_v32  ;;  %v10701_v27 = vld [vmem:[#allocation2 + $0x7c] sm:$0xf]  ;;  %v10702_v2 = vld [vmem:[#allocation2 + $0x80] sm:$0x1] }
 0x1bd   : > { %v8896_v22 = vcombine.low %v15071_v4, %v5760_v7  ;;  %9665 = vmatprep.mubr.msk.bf16.mxu1 %vm443_vm3, %v8685_v35  ;;  %v6183_v47 = vrot.slane %v6181_v21, 4  ;;  %v12951_v52 = vcombine.low %v5798_v11, %v5808_v55  ;;  %v8686_v19 = vcombine.low %v3064_v38, %v3067_v49  ;;  %v10703_v11 = vld [vmem:[#allocation2 + $0x88] sm:$0xf]  ;;  %v6118_v35 = vld [vmem:[#allocation2 + $0x3c] sm:$0xe] }
 0x1be   : > { %v6190_v1 = vrot.slane %v6188_v37, 4  ;;  %v6191_v51 = vrot.slane %v10700_v9, 5  ;;  %v12955_v58 = vsel %vm11265_vm0, %v8917_v18, %v6181_v21  ;;  %v8667_v24 = vrot.slane %v2957_v5, 9  ;;  %v10704_v55 = vld [vmem:[#allocation2 + $0x8c] sm:$0x1] }
 0x1bf   : > { %v3070_v7 = vrot.slane %v10701_v27, 5  ;;  %v3073_v46 = vrot.slane %v10702_v2, 5  ;;  %9666 = vmatmul.mubr.msk.bf16.gmra.mrb[20].mxu1 %vm443_vm3, %v8686_v19  ;;  %v12960_v32 = vsel %vm11265_vm0, %v6183_v47, %v6184_v61  ;;  %v12964_v12 = vsel %vm11265_vm0, %v8918_v14, %v6188_v37  ;;  %v10705_v37 = vld [vmem:[#allocation2 + $0x34] sm:$0xf]  ;;  %v10706_v49 = vld [vmem:[#allocation2 + $0x38] sm:$0x1] }
 0x1c0   : > { %v8668_v38 = vrot.slane %v2958_v17, 9  ;;  %v3077_v18 = vrot.slane %v10703_v11, 5  ;;  %v12968_v20 = vsel %vm11265_vm0, %v6190_v1, %v6191_v51  ;;  %v3080_v30 = vrot.slane %v10704_v55, 5  ;;  %9854 = vmatmul.mubr.msk.bf16.gmra.mrb[28].mxu0 %vm443_vm3, %v8896_v22  ;;  %v2959_v1 = vld [vmem:[#allocation2 + $0x90] sm:$0xe] }
 0x1c1   : > { %v3071_v36 = vsel %vm11265_vm0, %v8667_v24, %v3070_v7  ;;  %v3072_v21 = vrot.slane %v3070_v7, 4  ;;  %v8919_v14 = vrot.slane %v6117_v44, 9  ;;  %v6195_v5 = vrot.slane %v10705_v37, 5  ;;  %9857 = vmatprep.mubr.msk.bf16.mxu0 %vm443_vm3, %v8897_v53  ;;  %v2960_v22 = vld [vmem:[#allocation2 + $0x9c] sm:$0xe] }
 0x1c2   : > { %v3078_v61 = vsel %vm11265_vm0, %v8668_v38, %v3077_v18  ;;  %v3079_v3 = vrot.slane %v3077_v18, 4  ;;  %v6198_v47 = vrot.slane %v10706_v49, 5  ;;  %v8920_v17 = vrot.slane %v6118_v35, 9  ;;  %v10708_v38 = vld [vmem:[#allocation2 + $0x98] sm:$0x1] }
 0x1c3   : > { %v3074_v4 = vsel %vm11265_vm0, %v3072_v21, %v3073_v46  ;;  %v6202_v19 = vrot.slane %v12597_v48, 5  ;;  %v8937_v9 = vcombine.low %v12955_v58, %v12960_v32  ;;  %v6197_v27 = vrot.slane %v6195_v5, 4  ;;  %v10707_v58 = vld [vmem:[#allocation2 + $0x94] sm:$0xf]  ;;  %v6119_v18 = vld [vmem:[#allocation2 + $0x48] sm:$0xe] }
 0x1c4   : > { %v8687_v51 = vcombine.low %v3071_v36, %v3074_v4  ;;  %v3081_v24 = vsel %vm11265_vm0, %v3079_v3, %v3080_v30  ;;  %v8938_v7 = vcombine.low %v12964_v12, %v12968_v20  ;;  %v6205_v44 = vrot.slane %v12599_v41, 5  ;;  %v10709_v21 = vld [vmem:[#allocation2 + $0xa0] sm:$0xf]  ;;  %v6120_v30 = vld [vmem:[#allocation2 + $0x54] sm:$0xe] }
 0x1c5   : > { %v8688_v2 = vcombine.low %v3078_v61, %v3081_v24  ;;  %v6204_v46 = vrot.slane %v6202_v19, 4  ;;  %v12989_v48 = vsel %vm11265_vm0, %v8919_v14, %v6195_v5  ;;  %v8669_v53 = vrot.slane %v2959_v1, 9  ;;  %v10710_v37 = vld [vmem:[#allocation2 + $0xa4] sm:$0x1] }
 0x1c6   : > { %9669 = vmatprep.mubr.msk.bf16.mxu1 %vm443_vm3, %v8687_v51  ;;  %v3084_v32 = vrot.slane %v10707_v58, 5  ;;  %v3087_v11 = vrot.slane %v10708_v38, 5  ;;  %v12993_v35 = vsel %vm11265_vm0, %v6197_v27, %v6198_v47  ;;  %v12997_v36 = vsel %vm11265_vm0, %v8920_v17, %v6202_v19  ;;  %v2961_v27 = vld [vmem:[#allocation2 + $0xa8] sm:$0xe] }
 0x1c7   : > { %v8670_v41 = vrot.slane %v2960_v22, 9  ;;  %v3091_v55 = vrot.slane %v10709_v21, 5  ;;  %9670 = vmatmul.mubr.msk.bf16.gmra.mrb[24].mxu1 %vm443_vm3, %v8688_v2  ;;  %v13002_v61 = vsel %vm11265_vm0, %v6204_v46, %v6205_v44  ;;  %v3094_v5 = vrot.slane %v10710_v37, 5  ;;  %v2962_v44 = vld [vmem:[#allocation2 + $0xb4] sm:$0xe] }
 0x1c8   : > { %v3085_v3 = vsel %vm11265_vm0, %v8669_v53, %v3084_v32  ;;  %v3086_v14 = vrot.slane %v3084_v32, 4  ;;  %v8921_v47 = vrot.slane %v6119_v18, 9  ;;  %v6209_v17 = vrot.slane %v12630_v16, 5  ;;  %9858 = vmatmul.mubr.msk.bf16.gmra.mrb[32].mxu0 %vm443_vm3, %v12951_v52  ;;  %v10711_v32 = vld [vmem:[#allocation2 + $0xac] sm:$0xf] }
 0x1c9   : > { %v3092_v4 = vsel %vm11265_vm0, %v8670_v41, %v3091_v55  ;;  %v3093_v49 = vrot.slane %v3091_v55, 4  ;;  %v6212_v1 = vrot.slane %v12643_v60, 5  ;;  %v8922_v51 = vrot.slane %v6120_v30, 9  ;;  %9865 = vmatprep.mubr.msk.bf16.mxu0 %vm443_vm3, %v8937_v9  ;;  %v10713_v21 = vld [vmem:[#allocation2 + $0xb8] sm:$0xf] }
 0x1ca   : > { %v3088_v19 = vsel %vm11265_vm0, %v3086_v14, %v3087_v11  ;;  %v6216_v24 = vrot.slane %v12655_v13, 5  ;;  %v8939_v22 = vcombine.low %v12989_v48, %v12993_v35  ;;  %v6211_v16 = vrot.slane %v6209_v17, 4  ;;  %v10712_v11 = vld [vmem:[#allocation2 + $0xb0] sm:$0x1]  ;;  %v6121_v35 = vld [vmem:[#allocation2 + $0x60] sm:$0xe] }
 0x1cb   : > { %v8689_v2 = vcombine.low %v3085_v3, %v3088_v19  ;;  %v3095_v46 = vsel %vm11265_vm0, %v3093_v49, %v3094_v5  ;;  %v8940_v60 = vcombine.low %v12997_v36, %v13002_v61  ;;  %v6219_v58 = vrot.slane %v12662_v62, 5  ;;  %v6122_v30 = vld [vmem:[#allocation2 + $0x6c] sm:$0xe]  ;;  %v10714_v5 = vld [vmem:[#allocation2 + $0xbc] sm:$0x1] }
 0x1cc   : > { %v8690_v53 = vcombine.low %v3092_v4, %v3095_v46  ;;  %v6218_v13 = vrot.slane %v6216_v24, 4  ;;  %v13026_v52 = vsel %vm11265_vm0, %v8921_v47, %v6209_v17  ;;  %v8671_v48 = vrot.slane %v2961_v27, 9 }
 0x1cd   : > { %9673 = vmatprep.mubr.msk.bf16.mxu1 %vm443_vm3, %v8689_v2  ;;  %v3098_v38 = vrot.slane %v10711_v32, 5  ;;  %v3101_v18 = vrot.slane %v10712_v11, 5  ;;  %v13030_v9 = vsel %vm11265_vm0, %v6211_v16, %v6212_v1  ;;  %v13034_v41 = vsel %vm11265_vm0, %v8922_v51, %v6216_v24  ;;  %v6123_v2 = vld [vmem:[#allocation2 + $0x78] sm:$0xe] }
 0x1ce   : > { %v8672_v62 = vrot.slane %v2962_v44, 9  ;;  %v3105_v55 = vrot.slane %v10713_v21, 5  ;;  %v13038_v3 = vsel %vm11265_vm0, %v6218_v13, %v6219_v58  ;;  %v3108_v4 = vrot.slane %v10714_v5, 5  ;;  %v6124_v13 = vld [vmem:[#allocation2 + $0x84] sm:$0xe] }
 0x1cf   : > { %v3099_v14 = vsel %vm11265_vm0, %v8671_v48, %v3098_v38  ;;  %v3100_v37 = vrot.slane %v3098_v38, 4  ;;  %9674 = vmatmul.mubr.msk.bf16.gmra.mrb[28].mxu1 %vm443_vm3, %v8690_v53  ;;  %v8923_v17 = vrot.slane %v6121_v35, 9  ;;  %v6223_v19 = vrot.slane %v12678_v31, 5 }
 0x1d0   : > { %v3106_v49 = vsel %vm11265_vm0, %v8672_v62, %v3105_v55  ;;  %v3107_v47 = vrot.slane %v3105_v55, 4  ;;  %v6226_v51 = vrot.slane %v12688_v39, 5  ;;  %v8924_v24 = vrot.slane %v6122_v30, 9  ;;  %9866 = vmatmul.mubr.msk.bf16.vlgmr.msra.gmra.mrb[4].mxu0 %vm443_vm3, %v8938_v7  ;;  %v6125_v7 = vld [vmem:[#allocation2 + $0x90] sm:$0xe] }
 0x1d1   : > { %v3102_v1 = vsel %vm11265_vm0, %v3100_v37, %v3101_v18  ;;  %v6230_v27 = vrot.slane %v12695_v56, 5  ;;  %v13054_v44 = vsel %vm11265_vm0, %v8923_v17, %v6223_v19  ;;  %v6225_v53 = vrot.slane %v6223_v19, 4  ;;  %9869 = vmatprep.mubr.msk.bf16.mxu0 %vm443_vm3, %v8939_v22  ;;  %v6126_v18 = vld [vmem:[#allocation2 + $0x9c] sm:$0xe] }
 0x1d2   : > { %v8691_v46 = vcombine.low %v3099_v14, %v3102_v1  ;;  %v3109_v16 = vsel %vm11265_vm0, %v3107_v47, %v3108_v4  ;;  %v6233_v58 = vrot.slane %v12701_v23, 5  ;;  %v8925_v32 = vrot.slane %v6123_v2, 9  ;;  %v6127_v14 = vld [vmem:[#allocation2 + $0xa8] sm:$0xe]  ;;  %v6130_v2 = vld [vmem:[#allocation2 + $0xcc] sm:$0xe] }
 0x1d3   : > { %v8692_v31 = vcombine.low %v3106_v49, %v3109_v16  ;;  %v13062_v39 = vsel %vm11265_vm0, %v8924_v24, %v6230_v27  ;;  %v6232_v56 = vrot.slane %v6230_v27, 4  ;;  %v13069_v48 = vsel %vm11265_vm0, %v6225_v53, %v6226_v51  ;;  %v6128_v49 = vld [vmem:[#allocation2 + $0xb4] sm:$0xe]  ;;  %v6129_v27 = vld [vmem:[#allocation2 + $0xc0] sm:$0xe] }
 0x1d4   : > { %9677 = vmatprep.mubr.msk.bf16.mxu1 %vm443_vm3, %v8691_v46  ;;  %v6237_v12 = vrot.slane %v12716_v40, 5  ;;  %v6240_v20 = vrot.slane %v12722_v8, 5  ;;  %v8941_v38 = vcombine.low %v13026_v52, %v13030_v9  ;;  %v8926_v22 = vrot.slane %v6124_v13, 9  ;;  %v15104_v46 = vld [vmem:[#allocation66_spill] sm:$0xff]  ;;  %v15106_v9 = vld [vmem:[#allocation68_spill] sm:$0xff] }
 0x1d5   : > { %v13077_v23 = vsel %vm11265_vm0, %v6232_v56, %v6233_v58  ;;  %v6244_v11 = vrot.slane %v12737_v43, 5  ;;  %v8942_v35 = vcombine.low %v13034_v41, %v13038_v3  ;;  %v8943_v40 = vcombine.low %v13054_v44, %v13069_v48  ;;  %v15086_v48 = vld [vmem:[#allocation46_spill] sm:$0xff] }
 0x1d6   : > { %v8944_v8 = vcombine.low %v13062_v39, %v13077_v23  ;;  %v6239_v62 = vrot.slane %v6237_v12, 4  ;;  %v13088_v52 = vsel %vm11265_vm0, %v8925_v32, %v6237_v12  ;;  %v8927_v21 = vrot.slane %v6125_v7, 9 }
 0x1d7   : > { %v6251_v43 = vrot.slane %v12774_v54, 5  ;;  %9678 = vmatmul.mubr.msk.bf16.gmra.mrb[32].mxu1 %vm443_vm3, %v8692_v31  ;;  %v6254_v55 = vrot.slane %v12782_v33, 5  ;;  %v8928_v30 = vrot.slane %v6126_v18, 9  ;;  %v6258_v3 = vrot.slane %v12799_v59, 5  ;;  %v15107_v33 = vld [vmem:[#allocation69_spill] sm:$0xff] }
 0x1d8   : > { %v13095_v41 = vsel %vm11265_vm0, %v6239_v62, %v6240_v20  ;;  %v13101_v37 = vsel %vm11265_vm0, %v8926_v22, %v6244_v11  ;;  %v13103_v5 = vrot.slane %v6244_v11, 4  ;;  %9910 = vmatprep.mubr.msk.f32.mxu1 %vm15072_vm1, %v14995_v6  ;;  %v6261_v17 = vrot.slane %v12813_v45, 5  ;;  %9870 = vmatmul.mubr.msk.bf16.gmra.mrb[8].mxu0 %vm443_vm3, %v8940_v60  ;;  %v15105_v45 = vld [vmem:[#allocation67_spill] sm:$0xff] }
 0x1d9   : > { %v13107_v54 = vsel %vm11265_vm0, %v8927_v21, %v6251_v43  ;;  %v6253_v4 = vrot.slane %v6251_v43, 4  ;;  %v13115_v59 = vsel %vm11265_vm0, %v8928_v30, %v6258_v3  ;;  %v6260_v47 = vrot.slane %v6258_v3, 4  ;;  %9873 = vmatprep.mubr.msk.bf16.mxu0 %vm443_vm3, %v8941_v38  ;;  %v15074_v21 = vld [vmem:[#allocation57_spill] sm:$0xff]  ;;  %v15075_v43 = vld [vmem:[#allocation35_spill] sm:$0xff]  ;;  %v15076_v30 = vld [vmem:[#allocation44_spill] sm:$0xff] }
 0x1da   : > { %v8929_v1 = vrot.slane %v6127_v14, 9  ;;  %v6265_v51 = vrot.slane %v12834_v29, 5  ;;  %v6268_v24 = vrot.slane %v12836_v10, 5  ;;  %v8930_v61 = vrot.slane %v6128_v49, 9  ;;  %v15077_v3 = vld [vmem:[#allocation54_spill] sm:$0xff]  ;;  %v15078_v49 = vld [vmem:[#allocation39_spill] sm:$0xff] }
 0x1db   : > { %v13124_v19 = vsel %vm11265_vm0, %v6253_v4, %v6254_v55  ;;  %v13133_v36 = vsel %vm11265_vm0, %v6260_v47, %v6261_v17  ;;  %v6272_v60 = vrot.slane %v12852_v25, 5  ;;  %v6275_v16 = vrot.slane %v12862_v57, 5  ;;  %v15079_v47 = vld [vmem:[#allocation71_spill] sm:$0xff]  ;;  %v15080_v17 = vld [vmem:[#allocation38_spill] sm:$0xff]  ;;  %v15102_v38 = vld [vmem:[#allocation64_spill] sm:$0xff] }
 0x1dc   : > { %v13140_v29 = vsel %vm11265_vm0, %v8929_v1, %v6265_v51  ;;  %v6267_v10 = vrot.slane %v6265_v51, 4  ;;  %v8931_v31 = vrot.slane %v6129_v27, 9  ;;  %v6279_v56 = vrot.slane %v12885_v63, 5  ;;  %v15081_v51 = vld [vmem:[#allocation36_spill] sm:$0xff]  ;;  %v15082_v27 = vld [vmem:[#allocation37_spill] sm:$0xff] }
 0x1dd   : > { %v13145_v53 = vsel %vm11265_vm0, %v8930_v61, %v6272_v60  ;;  %v6274_v13 = vrot.slane %v6272_v60, 4  ;;  %v6282_v58 = vrot.slane %v12891_v15, 5  ;;  %v8932_v32 = vrot.slane %v6130_v2, 9  ;;  %v15083_v60 = vld [vmem:[#allocation40_spill] sm:$0xff]  ;;  %v15103_v57 = vld [vmem:[#allocation65_spill] sm:$0xff] }
 0x1de   : > { %v13150_v25 = vsel %vm11265_vm0, %v6267_v10, %v6268_v24  ;;  %v6286_v12 = vrot.slane %v12900_v50, 5  ;;  %v13162_v7 = vsel %vm11265_vm0, %v8931_v31, %v6279_v56  ;;  %v6281_v63 = vrot.slane %v6279_v56, 4  ;;  %v15084_v10 = vld [vmem:[#allocation42_spill] sm:$0xff]  ;;  %v15087_v31 = vld [vmem:[#allocation47_spill] sm:$0xff] }
 0x1df   : > { %v13158_v20 = vsel %vm11265_vm0, %v6274_v13, %v6275_v16  ;;  %v6289_v22 = vrot.slane %v12911_v0, 5  ;;  %v15073_v18 = vcombine.high %v12552_v34, %v12552_v34  ;;  %v1052_v55 = vmul.f32 %v15075_v43, %v15074_v21  ;;  %v15085_v13 = vld [vmem:[#allocation45_spill] sm:$0xff]  ;;  %v15092_v21 = vld [vmem:[#allocation52_spill] sm:$0xff]  ;;  %v15101_v0 = vld [vmem:[#allocation63_spill] sm:$0xff] }
 0x1e0   : > { %v13168_v15 = vsel %vm11265_vm0, %v8932_v32, %v6286_v12  ;;  %v6288_v50 = vrot.slane %v6286_v12, 4  ;;  %v13173_v11 = vsel %vm11265_vm0, %v6281_v63, %v6282_v58  ;;  %v13183_v14 = vmul.f32 %v15077_v3, %v15076_v30  ;;  %9874 = vmatmul.mubr.msk.bf16.gmra.mrb[12].mxu0 %vm443_vm3, %v8942_v35  ;;  %v15088_v58 = vld [vmem:[#allocation48_spill] sm:$0xff]  ;;  %v15089_v12 = vld [vmem:[#allocation49_spill] sm:$0xff]  ;;  %v15100_v35 = vld [vmem:[#allocation62_spill] sm:$0xff] }
 0x1e1   : > { %v1006_v62 = vrot.slane %v15073_v18, %v12378_v26  ;;  %v13194_v34 = vmul.f32 %v15079_v47, %v15078_v49  ;;  %v13198_v1 = vmul.f32 %v15077_v3, %v15080_v17  ;;  %9877 = vmatprep.mubr.msk.bf16.mxu0 %vm443_vm3, %v8943_v40  ;;  %v13210_v2 = vmul.f32 %v15079_v47, %v15083_v60  ;;  %v15091_v18 = vld [vmem:[#allocation51_spill] sm:$0xff]  ;;  %v15093_v49 = vld [vmem:[#allocation53_spill] sm:$0xff] }
 0x1e2   : > { %v13190_v4 = vsel %vm11265_vm0, %v6288_v50, %v6289_v22  ;;  %v13214_v16 = vmul.f32 %v15077_v3, %v15084_v10  ;;  %v13218_v44 = vmul.f32 %v15079_v47, %v15085_v13  ;;  %v13222_v40 = vmul.f32 %v15077_v3, %v15086_v48  ;;  %v15090_v50 = vld [vmem:[#allocation50_spill] sm:$0xff]  ;;  %v15094_v60 = vld [vmem:[#allocation55_spill] sm:$0xff]  ;;  %v15095_v13 = vld [vmem:[#allocation56_spill] sm:$0xff] }
 0x1e3   : > { %v1053_v24 = vmul.f32 %v15081_v51, %v1006_v62  ;;  %v1054_v61 = vmul.f32 %v15082_v27, %v1006_v62  ;;  %v13226_v56 = vmul.f32 %v15079_v47, %v15087_v31  ;;  %v13230_v32 = vmul.f32 %v15077_v3, %v15088_v58  ;;  %v15096_v31 = vld [vmem:[#allocation58_spill] sm:$0xff] }
 0x1e4   : > { %v13234_v63 = vmul.f32 %v15079_v47, %v15089_v12  ;;  %v13238_v22 = vmul.f32 %v15077_v3, %v15090_v50  ;;  %v13242_v62 = vmul.f32 %v15079_v47, %v15091_v18  ;;  %v13246_v30 = vmul.f32 %v15077_v3, %v15092_v21  ;;  %v15097_v12 = vld [vmem:[#allocation59_spill] sm:$0xff]  ;;  %v15098_v18 = vld [vmem:[#allocation60_spill] sm:$0xff] }
 0x1e5   : > { %v13250_v17 = vmul.f32 %v15079_v47, %v15093_v49  ;;  %v13254_v10 = vmul.f32 %v15077_v3, %v15094_v60  ;;  %v13258_v48 = vmul.f32 %v15079_v47, %v15095_v13  ;;  %v13262_v58 = vmul.f32 %v15077_v3, %v15096_v31  ;;  %v15099_v49 = vld [vmem:[#allocation61_spill] sm:$0xff] }
 0x1e6   : > { %v13266_v50 = vmul.f32 %v15079_v47, %v15097_v12  ;;  %v13270_v21 = vmul.f32 %v15077_v3, %v15098_v18  ;;  %v13274_v60 = vmul.f32 %v15079_v47, %v15099_v49  ;;  %v13278_v13 = vmul.f32 %v15077_v3, %v15100_v35 }
 0x1e7   : > { %v13282_v31 = vmul.f32 %v15079_v47, %v15101_v0  ;;  %v13286_v12 = vmul.f32 %v15077_v3, %v15102_v38  ;;  %v13290_v18 = vmul.f32 %v15079_v47, %v15103_v57  ;;  %v13294_v49 = vmul.f32 %v15077_v3, %v15104_v46  ;;  %v15108_v57 = vld [vmem:[#allocation70_spill] sm:$0xff] }
 0x1e8   : > { %v13298_v35 = vmul.f32 %v15079_v47, %v15105_v45  ;;  %v13302_v0 = vmul.f32 %v15077_v3, %v15106_v9  ;;  %v13306_v38 = vmul.f32 %v15079_v47, %v15107_v33  ;;  %9878 = vmatmul.mubr.msk.bf16.gmra.mrb[16].mxu0 %vm443_vm3, %v8944_v8  ;;  %v13314_v46 = vmul.f32 %v15077_v3, %v15108_v57 }
 0x1e9   : > { %v13317_v45 = vmul.f32 %v15079_v47, %v1052_v55  ;;  %v13320_v51 = vmul.f32 %v15077_v3, %v1053_v24  ;;  %v13323_v9 = vmul.f32 %v15079_v47, %v1054_v61  ;;  %v15109_v33 = vcombine.low %v13088_v52, %v13095_v41 }
 0x1ea   : > { %v15110_v39 = vrot.slane %v12741_v28, 5  ;;  %v1087_v8 = vsel %vm443_vm3, %v13183_v14, 0.0  ;;  %v1088_v55 = vsel %vm443_vm3, %v13194_v34, 0.0  ;;  %v1090_v3 = vsel %vm443_vm3, %v13198_v1, 0.0 }
 0x1eb   : > { %9881 = vmatprep.mubr.msk.bf16.mxu0 %vm443_vm3, %v15109_v33  ;;  %v1089_v47 = vadd.f32 %v1088_v55, %v1087_v8  ;;  %v1092_v28 = vsel %vm443_vm3, %v13210_v2, 0.0  ;;  %v1094_v42 = vsel %vm443_vm3, %v13214_v16, 0.0  ;;  %v15111_v61 = vcombine.low %v13107_v54, %v13124_v19 }
 0x1ec   : > { %v6248_v23 = vsel %vm11265_vm0, %v13103_v5, %v15110_v39  ;;  %v1096_v57 = vsel %vm443_vm3, %v13218_v44, 0.0  ;;  %v1098_v33 = vsel %vm443_vm3, %v13222_v40, 0.0  ;;  %v1102_v55 = vsel %vm443_vm3, %v13230_v32, 0.0 }
 0x1ed   : > { %v8946_v52 = vcombine.low %v13101_v37, %v6248_v23  ;;  %v1091_v41 = vadd.f32 %v1090_v3, %v1089_v47  ;;  %v1100_v23 = vsel %vm443_vm3, %v13226_v56, 0.0  ;;  %v15112_v54 = vcombine.low %v13115_v59, %v13133_v36 }
 0x1ee   : > { %v15113_v3 = vcombine.low %v13140_v29, %v13150_v25  ;;  %v1104_v47 = vsel %vm443_vm3, %v13234_v63, 0.0  ;;  %v1110_v36 = vsel %vm443_vm3, %v13246_v30, 0.0  ;;  %v15114_v29 = vcombine.low %v13145_v53, %v13158_v20 }
 0x1ef   : > { %v1093_v24 = vadd.f32 %v1092_v28, %v1091_v41  ;;  %v1106_v41 = vsel %vm443_vm3, %v13238_v22, 0.0  ;;  %v1118_v20 = vsel %vm443_vm3, %v13262_v58, 0.0  ;;  %vm6790_vm0 = vcmask 64512  }
 0x1f0   : > { %9882 = vmatmul.mubr.msk.bf16.gmra.mrb[20].mxu0 %vm443_vm3, %v8946_v52 }
 0x1f1   : > { %v1095_v5 = vadd.f32 %v1094_v42, %v1093_v24  ;;  %9885 = vmatprep.mubr.msk.bf16.mxu0 %vm443_vm3, %v15111_v61  ;;  %v1108_v24 = vsel %vm443_vm3, %v13242_v62, 0.0  ;;  %v15115_v42 = vcombine.low %v13162_v7, %v13173_v11  ;;  %v15116_v7 = vcombine.low %v13168_v15, %v13190_v4 }
 0x1f2   : > { %v1126_v15 = vsel %vm443_vm3, %v13278_v13, 0.0 }
 0x1f3   : > { %v1097_v37 = vadd.f32 %v1096_v57, %v1095_v5  ;;  %v1112_v5 = vsel %vm443_vm3, %v13250_v17, 0.0  ;;  %v1114_v57 = vsel %vm443_vm3, %v13254_v10, 0.0 }
 0x1f5   : > { %v1099_v39 = vadd.f32 %v1098_v33, %v1097_v37  ;;  %v1116_v33 = vsel %vm443_vm3, %v13258_v48, 0.0 }
 0x1f7   : > { %v1101_v8 = vadd.f32 %v1100_v23, %v1099_v39  ;;  %v1120_v39 = vsel %vm443_vm3, %v13266_v50, 0.0 }
 0x1f8   : > { %9886 = vmatmul.mubr.msk.bf16.gmra.mrb[24].mxu0 %vm443_vm3, %v15112_v54  ;;  %v1124_v54 = vsel %vm443_vm3, %v13274_v60, 0.0 }
 0x1f9   : > { %v1103_v19 = vadd.f32 %v1102_v55, %v1101_v8  ;;  %9889 = vmatprep.mubr.msk.bf16.mxu0 %vm443_vm3, %v15113_v3  ;;  %v1122_v8 = vsel %vm443_vm3, %v13270_v21, 0.0  ;;  %v1128_v3 = vsel %vm443_vm3, %v13282_v31, 0.0 }
 0x1fb   : > { %v1105_v52 = vadd.f32 %v1104_v47, %v1103_v19 }
 0x1fd   : > { %v1107_v28 = vadd.f32 %v1106_v41, %v1105_v52  ;;  %v1130_v52 = vsel %vm443_vm3, %v13286_v12, 0.0 }
 0x1ff   : > { %v1109_v59 = vadd.f32 %v1108_v24, %v1107_v28  ;;  %v1132_v28 = vsel %vm443_vm3, %v13290_v18, 0.0 }
 0x200   : > { %9890 = vmatmul.mubr.msk.bf16.gmra.mrb[28].mxu0 %vm443_vm3, %v15114_v29  ;;  %v1136_v29 = vsel %vm443_vm3, %v13298_v35, 0.0 }
 0x201   : > { %v1111_v25 = vadd.f32 %v1110_v36, %v1109_v59  ;;  %9893 = vmatprep.mubr.msk.bf16.mxu0 %vm443_vm3, %v15115_v42  ;;  %v1134_v59 = vsel %vm443_vm3, %v13294_v49, 0.0  ;;  %v1138_v42 = vsel %vm443_vm3, %v13302_v0, 0.0 }
 0x203   : > { %v1113_v61 = vadd.f32 %v1112_v5, %v1111_v25 }
 0x205   : > { %v1115_v37 = vadd.f32 %v1114_v57, %v1113_v61  ;;  %v1140_v61 = vsel %vm443_vm3, %v13306_v38, 0.0 }
 0x207   : > { %v1117_v53 = vadd.f32 %v1116_v33, %v1115_v37  ;;  %v1142_v37 = vsel %vm443_vm3, %v13314_v46, 0.0 }
 0x208   : > { %9894 = vmatmul.mubr.msk.bf16.gmra.mrb[32].mxu0 %vm443_vm3, %v15116_v7  ;;  %v1146_v7 = vsel %vm443_vm3, %v13320_v51, 0.0 }
 0x209   : > { %v1119_v11 = vadd.f32 %v1118_v20, %v1117_v53  ;;  %9905 = vmatprep.mubr.msk.f32.mxu0 %vm15072_vm1, %v14995_v6  ;;  %v1144_v53 = vsel %vm443_vm3, %v13317_v45, 0.0 }
 0x20b   : > { %v1121_v23 = vadd.f32 %v1120_v39, %v1119_v11  ;;  %v1148_v39 = vsel %vm443_vm3, %v13323_v9, 0.0 }
 0x20d   : > { %v1123_v55 = vadd.f32 %v1122_v8, %v1121_v23 }
 0x20f   : > { %v1125_v19 = vadd.f32 %v1124_v54, %v1123_v55 }
 0x211   : > { %v1127_v4 = vadd.f32 %v1126_v15, %v1125_v19 }
 0x213   : > { %v1129_v47 = vadd.f32 %v1128_v3, %v1127_v4 }
 0x215   : > { %v1131_v41 = vadd.f32 %v1130_v52, %v1129_v47 }
 0x217   : > { %v1133_v24 = vadd.f32 %v1132_v28, %v1131_v41 }
 0x219   : > { %v1135_v36 = vadd.f32 %v1134_v59, %v1133_v24 }
 0x21b   : > { %v1137_v25 = vadd.f32 %v1136_v29, %v1135_v36 }
 0x21d   : > { %v1139_v5 = vadd.f32 %v1138_v42, %v1137_v25 }
 0x21f   : > { %v1141_v57 = vadd.f32 %v1140_v61, %v1139_v5 }
 0x221   : > { %v1143_v33 = vadd.f32 %v1142_v37, %v1141_v57 }
 0x223   : > { %v1145_v20 = vadd.f32 %v1144_v53, %v1143_v33 }
 0x225   : > { %v1147_v11 = vadd.f32 %v1146_v7, %v1145_v20 }
 0x227   : > { %v1149_v23 = vadd.f32 %v1148_v39, %v1147_v11 }
 0x229   : > { %v1150_v8 = vrot.slane %v1149_v23, 4 }
 0x22b   : > { %v1151_v55 = vadd.f32 %v1150_v8, %v1149_v23 }
 0x22d   : > { %v1152_v54 = vrot.slane %v1151_v55, 2 }
 0x22f   : > { %v1153_v19 = vadd.f32 %v1152_v54, %v1151_v55 }
 0x231   : > { %v1154_v15 = vrot.slane %v1153_v19, 1 }
 0x233   : > { %v1155_v4 = vadd.f32 %v1154_v15, %v1153_v19 }
 0x235   : > { %v13426_v3 = vmul.f32 0.00390625, %v1155_v4 }
 0x237   : > { %v13430_v47 = vsub.f32 %v13183_v14, %v13426_v3  ;;  %v13434_v52 = vsub.f32 %v13194_v34, %v13426_v3  ;;  %v13438_v41 = vsub.f32 %v13198_v1, %v13426_v3  ;;  %v13442_v28 = vsub.f32 %v13210_v2, %v13426_v3 }
 0x238   : > { %v13450_v14 = vsub.f32 %v13214_v16, %v13426_v3  ;;  %v13456_v1 = vsub.f32 %v13218_v44, %v13426_v3  ;;  %v13464_v42 = vsub.f32 %v13222_v40, %v13426_v3  ;;  %v13471_v44 = vsub.f32 %v13226_v56, %v13426_v3 }
 0x239   : > { %v1190_v24 = vmul.f32 %v13430_v47, %v13430_v47  ;;  %v1191_v59 = vmul.f32 %v13434_v52, %v13434_v52  ;;  %v1192_v34 = vmul.f32 %v13438_v41, %v13438_v41  ;;  %v1193_v2 = vmul.f32 %v13442_v28, %v13442_v28 }
 0x23a   : > { %v1194_v16 = vmul.f32 %v13450_v14, %v13450_v14  ;;  %v1195_v57 = vmul.f32 %v13456_v1, %v13456_v1  ;;  %v13478_v40 = vsub.f32 %v13230_v32, %v13426_v3  ;;  %v1196_v53 = vmul.f32 %v13464_v42, %v13464_v42 }
 0x23b   : > { %v1222_v36 = vsel %vm443_vm3, %v1190_v24, 0.0  ;;  %v1223_v29 = vsel %vm443_vm3, %v1191_v59, 0.0  ;;  %v1225_v5 = vsel %vm443_vm3, %v1192_v34, 0.0  ;;  %v1227_v37 = vsel %vm443_vm3, %v1193_v2, 0.0 }
 0x23c   : > { %v1224_v25 = vadd.f32 %v1223_v29, %v1222_v36  ;;  %v1229_v20 = vsel %vm443_vm3, %v1194_v16, 0.0  ;;  %v13485_v56 = vsub.f32 %v13234_v63, %v13426_v3  ;;  %v1197_v11 = vmul.f32 %v13471_v44, %v13471_v44 }
 0x23d   : > { %v1231_v39 = vsel %vm443_vm3, %v1195_v57, 0.0  ;;  %v13492_v32 = vsub.f32 %v13238_v22, %v13426_v3  ;;  %v1198_v8 = vmul.f32 %v13478_v40, %v13478_v40  ;;  %v1233_v55 = vsel %vm443_vm3, %v1196_v53, 0.0 }
 0x23e   : > { %v1226_v61 = vadd.f32 %v1225_v5, %v1224_v25  ;;  %v13499_v63 = vsub.f32 %v13242_v62, %v13426_v3  ;;  %v1199_v19 = vmul.f32 %v13485_v56, %v13485_v56  ;;  %v1235_v15 = vsel %vm443_vm3, %v1197_v11, 0.0 }
 0x23f   : > { %v13506_v22 = vsub.f32 %v13246_v30, %v13426_v3  ;;  %v1200_v24 = vmul.f32 %v13492_v32, %v13492_v32  ;;  %v1237_v59 = vsel %vm443_vm3, %v1198_v8, 0.0  ;;  %v13513_v62 = vsub.f32 %v13250_v17, %v13426_v3 }
 0x240   : > { %v1228_v33 = vadd.f32 %v1227_v37, %v1226_v61  ;;  %v1201_v2 = vmul.f32 %v13499_v63, %v13499_v63  ;;  %v1239_v36 = vsel %vm443_vm3, %v1199_v19, 0.0  ;;  %v13520_v30 = vsub.f32 %v13254_v10, %v13426_v3 }
 0x241   : > { %v1202_v25 = vmul.f32 %v13506_v22, %v13506_v22  ;;  %v1241_v16 = vsel %vm443_vm3, %v1200_v24, 0.0  ;;  %v13527_v17 = vsub.f32 %v13258_v48, %v13426_v3  ;;  %v1203_v61 = vmul.f32 %v13513_v62, %v13513_v62 }
 0x242   : > { %v1230_v7 = vadd.f32 %v1229_v20, %v1228_v33  ;;  %v1243_v57 = vsel %vm443_vm3, %v1201_v2, 0.0  ;;  %v13534_v10 = vsub.f32 %v13262_v58, %v13426_v3  ;;  %v1204_v33 = vmul.f32 %v13520_v30, %v13520_v30 }
 0x243   : > { %v1245_v53 = vsel %vm443_vm3, %v1202_v25, 0.0  ;;  %v13541_v48 = vsub.f32 %v13266_v50, %v13426_v3  ;;  %v1247_v11 = vsel %vm443_vm3, %v1203_v61, 0.0  ;;  %v13548_v58 = vsub.f32 %v13270_v21, %v13426_v3 }
 0x244   : > { %v1232_v23 = vadd.f32 %v1231_v39, %v1230_v7  ;;  %v1205_v7 = vmul.f32 %v13527_v17, %v13527_v17  ;;  %v1249_v8 = vsel %vm443_vm3, %v1204_v33, 0.0  ;;  %v13555_v50 = vsub.f32 %v13274_v60, %v13426_v3 }
 0x245   : > { %v13562_v21 = vsub.f32 %v13278_v13, %v13426_v3  ;;  %v13569_v60 = vsub.f32 %v13282_v31, %v13426_v3  ;;  %v13576_v13 = vsub.f32 %v13286_v12, %v13426_v3  ;;  %v13583_v31 = vsub.f32 %v13290_v18, %v13426_v3 }
 0x246   : > { %v1234_v54 = vadd.f32 %v1233_v55, %v1232_v23  ;;  %v1206_v23 = vmul.f32 %v13534_v10, %v13534_v10  ;;  %v1251_v19 = vsel %vm443_vm3, %v1205_v7, 0.0  ;;  %v13590_v12 = vsub.f32 %v13294_v49, %v13426_v3 }
 0x247   : > { %v13597_v18 = vsub.f32 %v13298_v35, %v13426_v3  ;;  %v13604_v49 = vsub.f32 %v13302_v0, %v13426_v3  ;;  %v13611_v35 = vsub.f32 %v13306_v38, %v13426_v3  ;;  %v13618_v0 = vsub.f32 %v13314_v46, %v13426_v3 }
 0x248   : > { %v1236_v4 = vadd.f32 %v1235_v15, %v1234_v54  ;;  %v1207_v54 = vmul.f32 %v13541_v48, %v13541_v48  ;;  %v1253_v24 = vsel %vm443_vm3, %v1206_v23, 0.0  ;;  %v13625_v38 = vsub.f32 %v13317_v45, %v13426_v3 }
 0x249   : > { %15117 = vst [vmem:[#allocation41_spill] sm:$0xff] %v13618_v0  ;;  %v13632_v46 = vsub.f32 %v13320_v51, %v13426_v3  ;;  %v13639_v45 = vsub.f32 %v13323_v9, %v13426_v3 }
 0x24a   : > { %v1238_v34 = vadd.f32 %v1237_v59, %v1236_v4  ;;  %v1208_v4 = vmul.f32 %v13548_v58, %v13548_v58  ;;  %v1255_v2 = vsel %vm443_vm3, %v1207_v54, 0.0  ;;  %15118 = vst [vmem:[#allocation57_spill] sm:$0xff] %v13625_v38 }
 0x24b   : > { %15119 = vst [vmem:[#allocation44_spill] sm:$0xff] %v13632_v46  ;;  %15120 = vst [vmem:[#allocation54_spill] sm:$0xff] %v13639_v45  ;;  %v1220_v51 = vmul.f32 %v13632_v46, %v13632_v46 }
 0x24c   : > { %v1240_v29 = vadd.f32 %v1239_v36, %v1238_v34  ;;  %v1209_v34 = vmul.f32 %v13555_v50, %v13555_v50  ;;  %v1257_v25 = vsel %vm443_vm3, %v1208_v4, 0.0 }
 0x24d   : > { %v1281_v9 = vsel %vm443_vm3, %v1220_v51, 0.0 }
 0x24e   : > { %v1242_v5 = vadd.f32 %v1241_v16, %v1240_v29  ;;  %v1210_v29 = vmul.f32 %v13562_v21, %v13562_v21  ;;  %v1259_v61 = vsel %vm443_vm3, %v1209_v34, 0.0 }
 0x250   : > { %v1244_v37 = vadd.f32 %v1243_v57, %v1242_v5  ;;  %v1211_v5 = vmul.f32 %v13569_v60, %v13569_v60  ;;  %v1261_v33 = vsel %vm443_vm3, %v1210_v29, 0.0 }
 0x252   : > { %v1246_v20 = vadd.f32 %v1245_v53, %v1244_v37  ;;  %v1212_v37 = vmul.f32 %v13576_v13, %v13576_v13  ;;  %v1263_v7 = vsel %vm443_vm3, %v1211_v5, 0.0 }
 0x254   : > { %v1248_v39 = vadd.f32 %v1247_v11, %v1246_v20  ;;  %v1213_v20 = vmul.f32 %v13583_v31, %v13583_v31  ;;  %v1265_v23 = vsel %vm443_vm3, %v1212_v37, 0.0 }
 0x256   : > { %v1250_v55 = vadd.f32 %v1249_v8, %v1248_v39  ;;  %v1214_v39 = vmul.f32 %v13590_v12, %v13590_v12  ;;  %v1267_v54 = vsel %vm443_vm3, %v1213_v20, 0.0 }
 0x258   : > { %v1252_v15 = vadd.f32 %v1251_v19, %v1250_v55  ;;  %v1215_v55 = vmul.f32 %v13597_v18, %v13597_v18  ;;  %v1269_v4 = vsel %vm443_vm3, %v1214_v39, 0.0 }
 0x25a   : > { %v1254_v59 = vadd.f32 %v1253_v24, %v1252_v15  ;;  %v1216_v15 = vmul.f32 %v13604_v49, %v13604_v49  ;;  %v1271_v34 = vsel %vm443_vm3, %v1215_v55, 0.0  ;;  %v6637_v55 = vld [vmem:[%s14789_s8 + $0x8] sm:$0xff] }
 0x25c   : > { %v1256_v36 = vadd.f32 %v1255_v2, %v1254_v59  ;;  %v1217_v59 = vmul.f32 %v13611_v35, %v13611_v35  ;;  %v1273_v29 = vsel %vm443_vm3, %v1216_v15, 0.0  ;;  %v14876_v15 = vmov 0.0|0.0  }
 0x25d   : > { %10091 = vmatprep.subr.bf16.mxu0 %v14876_v15 }
 0x25e   : > { %v1258_v16 = vadd.f32 %v1257_v25, %v1256_v36  ;;  %v1218_v36 = vmul.f32 %v13618_v0, %v13618_v0  ;;  %v1275_v5 = vsel %vm443_vm3, %v1217_v59, 0.0  ;;  %v6639_v59 = vld [vmem:[%s14789_s8 + $0x18] sm:$0xff] }
 0x260   : > { %v1260_v57 = vadd.f32 %v1259_v61, %v1258_v16  ;;  %v1219_v16 = vmul.f32 %v13625_v38, %v13625_v38 }
 0x262   : > { %v1262_v53 = vadd.f32 %v1261_v33, %v1260_v57  ;;  %v1277_v57 = vsel %vm443_vm3, %v1218_v36, 0.0  ;;  %v1221_v33 = vmul.f32 %v13639_v45, %v13639_v45 }
 0x264   : > { %v1264_v11 = vadd.f32 %v1263_v7, %v1262_v53  ;;  %v1279_v53 = vsel %vm443_vm3, %v1219_v16, 0.0  ;;  %v1283_v7 = vsel %vm443_vm3, %v1221_v33, 0.0 }
 0x266   : > { %v1266_v8 = vadd.f32 %v1265_v23, %v1264_v11  ;;  %v13652_v23 = vpop.f32.mrb[4].mxu1 }
 0x268   : > { %v1268_v19 = vadd.f32 %v1267_v54, %v1266_v8  ;;  %v6636_v8 = vld [vmem:[%s14789_s8] sm:$0xff] }
 0x26a   : > { %v1270_v24 = vadd.f32 %v1269_v4, %v1268_v19  ;;  %v13660_v19 = vpop.f32.mrb[5].mxu1  ;;  %v13663_v4 = vpack.c.bf16 %v6637_v55, %v6636_v8 }
 0x26c   : > { %v1272_v2 = vadd.f32 %v1271_v34, %v1270_v24  ;;  %15121 = vst [vmem:[#allocation39_spill] sm:$0xff] %v13663_v4  ;;  %v6638_v24 = vld [vmem:[%s14789_s8 + $0x10] sm:$0xff]  ;;  %v13671_v34 = vpop.f32.mrb[6].mxu1  ;;  %10093 = vmatpush3.bf16.msra.mxu0 %v13663_v4 }
 0x26d   : > { %v13673_v36 = vpop.f32.mrb[7].mxu1  ;;  %10094 = vmatprep.subr.bf16.mxu0 %v14876_v15 }
 0x26e   : > { %v1274_v25 = vadd.f32 %v1273_v29, %v1272_v2  ;;  %v13676_v29 = vpack.c.bf16 %v6639_v59, %v6638_v24 }
 0x270   : > { %v1276_v61 = vadd.f32 %v1275_v5, %v1274_v25  ;;  %15122 = vst [vmem:[#allocation71_spill] sm:$0xff] %v13676_v29  ;;  %10096 = vmatpush3.bf16.msra.mxu0 %v13676_v29 }
 0x272   : > { %v1278_v37 = vadd.f32 %v1277_v57, %v1276_v61 }
 0x273   : > { %v13678_v25 = vpop.f32.mrb[8].mxu1 }
 0x274   : > { %v1280_v20 = vadd.f32 %v1279_v53, %v1278_v37  ;;  %v13681_v5 = vpop.f32.mrb[9].mxu1 }
 0x275   : > { %v13683_v61 = vpop.f32.mrb[10].mxu1 }
 0x276   : > { %v1282_v3 = vadd.f32 %v1281_v9, %v1280_v20  ;;  %v13685_v51 = vpop.f32.mrb[11].mxu1 }
 0x278   : > { %v1284_v11 = vadd.f32 %v1283_v7, %v1282_v3 }
 0x27a   : > { %v1285_v39 = vrot.slane %v1284_v11, 4 }
 0x27b   : > { %v13688_v57 = vpop.f32.mrb[12].mxu1 }
 0x27c   : > { %v1286_v54 = vadd.f32 %v1285_v39, %v1284_v11  ;;  %v13690_v33 = vpop.f32.mrb[13].mxu1 }
 0x27d   : > { %v13692_v53 = vpop.f32.mrb[14].mxu1 }
 0x27e   : > { %v1287_v2 = vrot.slane %v1286_v54, 2  ;;  %v13694_v20 = vpop.f32.mrb[15].mxu1 }
 0x280   : > { %v1288_v16 = vadd.f32 %v1287_v2, %v1286_v54 }
 0x282   : > { %v1289_v37 = vrot.slane %v1288_v16, 1 }
 0x284   : > { %v1290_v3 = vadd.f32 %v1289_v37, %v1288_v16 }
 0x286   : > { %v1291_v55 = vmul.f32 0.00390625, %v1290_v3 }
 0x287   : > { %v13696_v9 = vpop.f32.mrb[16].mxu1 }
 0x288   : > { %v13698_v7 = vpop.f32.mrb[17].mxu1  ;;  %v1292_v15 = vadd.f32 1e-05, %v1291_v55 }
 0x289   : > { %v13700_v11 = vpop.f32.mrb[18].mxu1 }
 0x28a   : > { %v13702_v39 = vpop.f32.mrb[19].mxu1  ;;  %10539 = vrsqrt.f32 %v1292_v15 }
 0x292   : > { %v13704_v8 = vpop.f32.mrb[20].mxu1 }
 0x293   : > { %15123 = vst [vmem:[#allocation38_spill] sm:$0xff] %v13704_v8  ;;  %v13706_v54 = vpop.f32.mrb[21].mxu1 }
 0x294   : > { %15124 = vst [vmem:[#allocation40_spill] sm:$0xff] %v13706_v54  ;;  %v13708_v24 = vpop.f32.mrb[22].mxu1  ;;  %v13738_v38 = vpop.eup %10539 }
 0x295   : > { %15125 = vst [vmem:[#allocation42_spill] sm:$0xff] %v13708_v24  ;;  %v13710_v59 = vpop.f32.mrb[23].mxu1  ;;  %v1307_v24 = vmul.f32 %v13738_v38, %v13513_v62  ;;  %v1310_v62 = vmul.f32 %v13738_v38, %v13534_v10  ;;  %v1312_v8 = vmul.f32 %v13738_v38, %v13548_v58 }
 0x296   : > { %15126 = vst [vmem:[#allocation45_spill] sm:$0xff] %v13710_v59  ;;  %v1300_v59 = vmul.f32 %v13738_v38, %v13464_v42  ;;  %v1305_v42 = vmul.f32 %v13738_v38, %v13499_v63 }
 0x29a   : > { %v13712_v2 = vpop.f32.mrb[24].mxu1 }
 0x29b   : > { %15127 = vst [vmem:[#allocation46_spill] sm:$0xff] %v13712_v2  ;;  %v13714_v27 = vpop.f32.mrb[25].mxu1  ;;  %v1299_v2 = vmul.f32 %v13738_v38, %v13456_v1 }
 0x29c   : > { %15128 = vst [vmem:[#allocation47_spill] sm:$0xff] %v13714_v27  ;;  %v13716_v16 = vpop.f32.mrb[26].mxu1  ;;  %v1298_v27 = vmul.f32 %v13738_v38, %v13450_v14  ;;  %v1304_v14 = vmul.f32 %v13738_v38, %v13492_v32 }
 0x29d   : > { %15129 = vst [vmem:[#allocation48_spill] sm:$0xff] %v13716_v16  ;;  %v13718_v37 = vpop.f32.mrb[27].mxu1 }
 0x29e   : > { %15130 = vst [vmem:[#allocation49_spill] sm:$0xff] %v13718_v37 }
 0x2a2   : > { %v13720_v43 = vpop.f32.mrb[28].mxu1 }
 0x2a3   : > { %15131 = vst [vmem:[#allocation50_spill] sm:$0xff] %v13720_v43  ;;  %v13722_v26 = vpop.f32.mrb[29].mxu1  ;;  %v13726_v29 = vpop.f32.mrb[4].mxu0  ;;  %v1295_v43 = vmul.f32 %v13738_v38, %v13434_v52 }
 0x2a4   : > { %15132 = vst [vmem:[#allocation51_spill] sm:$0xff] %v13722_v26  ;;  %v13724_v3 = vpop.f32.mrb[30].mxu1  ;;  %v13730_v4 = vpop.f32.mrb[5].mxu0 }
 0x2a5   : > { %15133 = vst [vmem:[#allocation52_spill] sm:$0xff] %v13724_v3  ;;  %v13728_v6 = vpop.f32.mrb[31].mxu1  ;;  %v13732_v55 = vpop.f32.mrb[6].mxu0 }
 0x2a6   : > { %15134 = vst [vmem:[#allocation53_spill] sm:$0xff] %v13728_v6  ;;  %v13734_v45 = vpop.f32.mrb[7].mxu0  ;;  %v1294_v6 = vmul.f32 %v13738_v38, %v13430_v47  ;;  %v1297_v47 = vmul.f32 %v13738_v38, %v13442_v28  ;;  %v13780_v28 = vld [vmem:[%s14788_s7] ss:$0 sm:$0xff] }
 0x2aa   : > { %v13736_v46 = vpop.f32.mrb[32].mxu1 }
 0x2ab   : > { %15135 = vst [vmem:[#allocation55_spill] sm:$0xff] %v13736_v46  ;;  %v13740_v15 = vpop.f32.mrb[33].mxu1  ;;  %v13744_v26 = vpop.f32.mrb[8].mxu0  ;;  %v13757_v46 = vld [vmem:[%s14787_s6] ss:$0 sm:$0xff] }
 0x2ac   : > { %15136 = vst [vmem:[#allocation56_spill] sm:$0xff] %v13740_v15  ;;  %v13742_v0 = vpop.f32.mrb[34].mxu1  ;;  %v13752_v37 = vpop.f32.mrb[9].mxu0  ;;  %v1334_v52 = vmul.f32 %v13757_v46, %v1295_v43  ;;  %v1303_v43 = vmul.f32 %v13738_v38, %v13485_v56  ;;  %v1309_v56 = vmul.f32 %v13738_v38, %v13527_v17  ;;  %v1336_v32 = vmul.f32 %v13757_v46, %v1297_v47 }
 0x2ad   : > { %15137 = vst [vmem:[#allocation58_spill] sm:$0xff] %v13742_v0  ;;  %v13746_v3 = vpop.f32.mrb[35].mxu1  ;;  %v13759_v15 = vpop.f32.mrb[10].mxu0  ;;  %v1296_v0 = vmul.f32 %v13738_v38, %v13438_v41  ;;  %v1301_v41 = vmul.f32 %v13738_v38, %v13471_v44  ;;  %v1306_v44 = vmul.f32 %v13738_v38, %v13506_v22  ;;  %v13818_v17 = vmul.f32 %v13738_v38, %v13555_v50 }
 0x2ae   : > { %15138 = vst [vmem:[#allocation59_spill] sm:$0xff] %v13746_v3  ;;  %v13763_v16 = vpop.f32.mrb[11].mxu0  ;;  %v1333_v3 = vmul.f32 %v13757_v46, %v1294_v6  ;;  %v1302_v6 = vmul.f32 %v13738_v38, %v13478_v40  ;;  %v1308_v40 = vmul.f32 %v13738_v38, %v13520_v30  ;;  %v13806_v63 = vadd.f32 %v13780_v28, %v1334_v52 }
 0x2af   : > { %v1335_v1 = vmul.f32 %v13757_v46, %v1296_v0  ;;  %v1311_v30 = vmul.f32 %v13738_v38, %v13541_v48  ;;  %15141 = vst [vmem:[#allocation62_spill] sm:$0xff] %v13818_v17  ;;  %v13824_v47 = vmul.f32 %v13738_v38, %v13562_v21  ;;  %v13828_v52 = vmul.f32 %v13738_v38, %v13569_v60 }
 0x2b0   : > { %v13803_v0 = vadd.f32 %v13780_v28, %v1333_v3  ;;  %15140 = vst [vmem:[#allocation61_spill] sm:$0xff] %v13806_v63  ;;  %v1337_v10 = vmul.f32 %v13757_v46, %v1298_v27  ;;  %v13838_v50 = vmul.f32 %v13738_v38, %v13576_v13  ;;  %v13842_v17 = vmul.f32 %v13738_v38, %v13583_v31 }
 0x2b1   : > { %15142 = vst [vmem:[#allocation63_spill] sm:$0xff] %v13828_v52  ;;  %v13832_v48 = vadd.f32 %v13780_v28, %v1335_v1  ;;  %v13846_v21 = vmul.f32 %v13738_v38, %v13590_v12  ;;  %v1338_v60 = vmul.f32 %v13757_v46, %v1299_v2  ;;  %v1339_v27 = vmul.f32 %v13757_v46, %v1300_v59 }
 0x2b2   : > { %15139 = vst [vmem:[#allocation60_spill] sm:$0xff] %v13803_v0  ;;  %v13851_v1 = vadd.f32 %v13780_v28, %v1336_v32  ;;  %v6641_v52 = vsel %vm443_vm3, %v13803_v0, 0.0  ;;  %v6642_v13 = vsel %vm443_vm3, %v13806_v63, 0.0  ;;  %v13859_v31 = vmul.f32 %v13738_v38, %v13597_v18 }
 0x2b3   : > { %v13797_v54 = vpop.f32.mrb[12].mxu0  ;;  %15143 = vst [vmem:[#allocation64_spill] sm:$0xff] %v13846_v21  ;;  %v13863_v12 = vmul.f32 %v13738_v38, %v13604_v49  ;;  %v13867_v59 = vmul.f32 %v13738_v38, %v13611_v35  ;;  %v6643_v2 = vadd.f32 %v6642_v13, %v6641_v52  ;;  %v1340_v32 = vmul.f32 %v13757_v46, %v1301_v41 }
 0x2b4   : > { %v13808_v22 = vpop.f32.mrb[13].mxu0  ;;  %15144 = vst [vmem:[#allocation65_spill] sm:$0xff] %v13851_v1  ;;  %15145 = vst [vmem:[#allocation66_spill] sm:$0xff] %v13859_v31  ;;  %v1341_v0 = vmul.f32 %v13757_v46, %v1302_v6  ;;  %v13872_v21 = vadd.f32 %v13780_v28, %v1337_v10  ;;  %v6644_v18 = vsel %vm443_vm3, %v13832_v48, 0.0  ;;  %v1342_v63 = vmul.f32 %v13757_v46, %v1303_v43 }
 0x2b5   : > { %v13820_v3 = vpop.f32.mrb[14].mxu0  ;;  %15146 = vst [vmem:[#allocation67_spill] sm:$0xff] %v13863_v12  ;;  %v1343_v49 = vmul.f32 %v13757_v46, %v1304_v14  ;;  %v1344_v12 = vmul.f32 %v13757_v46, %v1305_v42  ;;  %v6645_v31 = vadd.f32 %v6644_v18, %v6643_v2  ;;  %v1345_v52 = vmul.f32 %v13757_v46, %v1306_v44 }
 0x2b6   : > { %v13834_v58 = vpop.f32.mrb[15].mxu0  ;;  %v13881_v41 = vadd.f32 %v13780_v28, %v1338_v60  ;;  %v13884_v6 = vadd.f32 %v13780_v28, %v1339_v27  ;;  %v6646_v10 = vsel %vm443_vm3, %v13851_v1, 0.0  ;;  %v1346_v43 = vmul.f32 %v13757_v46, %v1307_v24 }
 0x2b7   : > { %v1347_v14 = vmul.f32 %v13757_v46, %v1308_v40  ;;  %v1348_v42 = vmul.f32 %v13757_v46, %v1309_v56  ;;  %v6647_v2 = vadd.f32 %v6646_v10, %v6645_v31  ;;  %v13896_v44 = vmul.f32 %v13757_v46, %v1310_v62 }
 0x2b8   : > { %15147 = vst [vmem:[#allocation68_spill] sm:$0xff] %v13881_v41  ;;  %15148 = vst [vmem:[#allocation69_spill] sm:$0xff] %v13884_v6  ;;  %v13899_v60 = vmul.f32 %v13757_v46, %v1311_v30  ;;  %v13902_v27 = vmul.f32 %v13757_v46, %v1312_v8  ;;  %v6648_v1 = vsel %vm443_vm3, %v13872_v21, 0.0  ;;  %v13909_v40 = vadd.f32 %v13780_v28, %v1340_v32 }
 0x2b9   : > { %v13912_v56 = vadd.f32 %v13780_v28, %v1341_v0  ;;  %v13915_v62 = vadd.f32 %v13780_v28, %v1342_v63  ;;  %v6649_v31 = vadd.f32 %v6648_v1, %v6647_v2  ;;  %v13918_v30 = vadd.f32 %v13780_v28, %v1343_v49  ;;  %v13930_v0 = vld [vmem:[%s14786_s5] ss:$0 sm:$0xff] }
 0x2ba   : > { %v13921_v8 = vadd.f32 %v13780_v28, %v1344_v12  ;;  %v6650_v10 = vsel %vm443_vm3, %v13881_v41, 0.0  ;;  %v6652_v32 = vsel %vm443_vm3, %v13884_v6, 0.0  ;;  %v10123_v1 = vadd.f32 %v13726_v29, %v13652_v23 }
 0x2bb   : > { %v9879_v35 = vpop.f32.mrb[16].mxu0  ;;  %v6651_v63 = vadd.f32 %v6650_v10, %v6649_v31  ;;  %v10124_v49 = vadd.f32 %v13730_v4, %v13660_v19  ;;  %v10125_v12 = vadd.f32 %v13732_v55, %v13671_v34  ;;  %v10126_v2 = vadd.f32 %v13734_v45, %v13673_v36 }
 0x2bc   : > { %v13888_v13 = vpop.f32.mrb[17].mxu0  ;;  %v10127_v6 = vadd.f32 %v13744_v26, %v13678_v25  ;;  %v10128_v41 = vadd.f32 %v13752_v37, %v13681_v5  ;;  %v10129_v31 = vadd.f32 %v13759_v15, %v13683_v61  ;;  %v13947_v23 = vadd.f32 %v13780_v28, %v1345_v52 }
 0x2bd   : > { %v13893_v18 = vpop.f32.mrb[18].mxu0  ;;  %v6653_v29 = vadd.f32 %v6652_v32, %v6651_v63  ;;  %v13950_v19 = vadd.f32 %v10123_v1, %v13930_v0  ;;  %v13953_v4 = vadd.f32 %v10124_v49, %v13930_v0  ;;  %v13956_v34 = vadd.f32 %v13780_v28, %v1346_v43 }
 0x2be   : > { %v13906_v24 = vpop.f32.mrb[19].mxu0  ;;  %v13959_v26 = vadd.f32 %v13780_v28, %v1347_v14  ;;  %v6654_v36 = vsel %vm443_vm3, %v13909_v40, 0.0  ;;  %v13964_v25 = vadd.f32 %v10126_v2, %v13930_v0  ;;  %v6656_v37 = vsel %vm443_vm3, %v13912_v56, 0.0 }
 0x2bf   : > { %15149 = vst [vmem:[#allocation70_spill] sm:$0xff] %v13950_v19  ;;  %v6655_v61 = vadd.f32 %v6654_v36, %v6653_v29  ;;  %v6658_v55 = vsel %vm443_vm3, %v13915_v62, 0.0  ;;  %v13971_v15 = vadd.f32 %v10125_v12, %v13930_v0  ;;  %v6869_v43 = vsel %vm443_vm3, %v13950_v19, 0.0 }
 0x2c0   : > { %v6866_v14 = vsel %vm443_vm3, %v13953_v4, 0.0  ;;  %v6867_v10 = vsel %vm443_vm3, %v13964_v25, 0.0  ;;  %v13980_v32 = vadd.f32 %v10128_v41, %v13930_v0  ;;  %v10130_v12 = vadd.f32 %v13763_v16, %v13685_v51 }
 0x2c1   : > { %v6657_v1 = vadd.f32 %v6656_v37, %v6655_v61  ;;  %v6868_v49 = vadd.f32 %v6867_v10, %v6866_v14  ;;  %v10131_v2 = vadd.f32 %v13797_v54, %v13688_v57  ;;  %v10132_v29 = vadd.f32 %v13808_v22, %v13690_v33 }
 0x2c2   : > { %v13990_v36 = vadd.f32 %v13820_v3, %v13692_v53  ;;  %v10134_v41 = vadd.f32 %v13834_v58, %v13694_v20  ;;  %v13995_v19 = vadd.f32 %v9879_v35, %v13696_v9  ;;  %v13998_v61 = vadd.f32 %v13780_v28, %v1348_v42 }
 0x2c3   : > { %v9883_v45 = vpop.f32.mrb[20].mxu0  ;;  %v6659_v51 = vadd.f32 %v6658_v55, %v6657_v1  ;;  %v6870_v16 = vadd.f32 %v6869_v43, %v6868_v49  ;;  %v14001_v57 = vadd.f32 %v10130_v12, %v13930_v0  ;;  %v6660_v33 = vsel %vm443_vm3, %v13918_v30, 0.0 }
 0x2c4   : > { %v6502_v5 = vpop.f32.mrb[21].mxu0  ;;  %v6662_v53 = vsel %vm443_vm3, %v13921_v8, 0.0  ;;  %v6871_v20 = vsel %vm443_vm3, %v13971_v15, 0.0  ;;  %v6873_v9 = vsel %vm443_vm3, %v13980_v32, 0.0  ;;  %v6664_v22 = vsel %vm443_vm3, %v13947_v23, 0.0 }
 0x2c5   : > { %v9884_v52 = vpop.f32.mrb[22].mxu0  ;;  %15150 = vst [vmem:[#allocation72_spill] sm:$0xff] %v14001_v57  ;;  %v6661_v54 = vadd.f32 %v6660_v33, %v6659_v51  ;;  %v14014_v3 = vadd.f32 %v10127_v6, %v13930_v0  ;;  %v6872_v58 = vadd.f32 %v6871_v20, %v6870_v16  ;;  %v14017_v42 = vadd.f32 %v10129_v31, %v13930_v0  ;;  %v15154_v51 = vld [vmem:[#allocation38_spill] sm:$0xff]  ;;  %v15155_v16 = vld [vmem:[#allocation40_spill] sm:$0xff] }
 0x2c6   : > { %v6505_v63 = vpop.f32.mrb[23].mxu0  ;;  %v6875_v37 = vsel %vm443_vm3, %v14001_v57, 0.0  ;;  %v14022_v55 = vadd.f32 %v10132_v29, %v13930_v0  ;;  %v14025_v43 = vadd.f32 %v10134_v41, %v13930_v0  ;;  %v10136_v6 = vadd.f32 %v13888_v13, %v13698_v7  ;;  %v15156_v33 = vld [vmem:[#allocation42_spill] sm:$0xff] }
 0x2c7   : > { %15151 = vst [vmem:[#allocation73_spill] sm:$0xff] %v14014_v3  ;;  %15152 = vst [vmem:[#allocation74_spill] sm:$0xff] %v14017_v42  ;;  %v6663_v10 = vadd.f32 %v6662_v53, %v6661_v54  ;;  %v6874_v1 = vadd.f32 %v6873_v9, %v6872_v58  ;;  %v14031_v49 = vadd.f32 %v13893_v18, %v13700_v11  ;;  %v15157_v9 = vld [vmem:[#allocation62_spill] sm:$0xff]  ;;  %v6670_v54 = vsel %vm443_vm3, %v13998_v61, 0.0 }
 0x2c8   : > { %15153 = vst [vmem:[#allocation75_spill] sm:$0xff] %v14022_v55  ;;  %v10138_v12 = vadd.f32 %v13906_v24, %v13702_v39  ;;  %v14036_v29 = vadd.f32 %v9883_v45, %v15154_v51  ;;  %v14039_v41 = vadd.f32 %v6502_v5, %v15155_v16  ;;  %v14042_v53 = vadd.f32 %v9884_v52, %v15156_v33  ;;  %v15159_v51 = vld [vmem:[#allocation45_spill] sm:$0xff]  ;;  %v15160_v33 = vld [vmem:[#allocation46_spill] sm:$0xff] }
 0x2c9   : > { %v1352_v7 = vmul.f32 %v13757_v46, %v15157_v9  ;;  %v1353_v11 = vmul.f32 %v13757_v46, %v13824_v47  ;;  %v6665_v13 = vadd.f32 %v6664_v22, %v6663_v10  ;;  %v6876_v18 = vadd.f32 %v6875_v37, %v6874_v1 }
 0x2ca   : > { %v14050_v39 = vadd.f32 %v13780_v28, %v13896_v44  ;;  %v14054_v24 = vadd.f32 %v13780_v28, %v13899_v60  ;;  %v6666_v45 = vsel %vm443_vm3, %v13956_v34, 0.0  ;;  %v6877_v5 = vsel %vm443_vm3, %v14014_v3, 0.0 }
 0x2cb   : > { %v9887_v35 = vpop.f32.mrb[24].mxu0  ;;  %v6667_v52 = vadd.f32 %v6666_v45, %v6665_v13  ;;  %v6668_v47 = vsel %vm443_vm3, %v13959_v26, 0.0  ;;  %v6878_v22 = vadd.f32 %v6877_v5, %v6876_v18  ;;  %v6879_v44 = vsel %vm443_vm3, %v14017_v42, 0.0  ;;  %v15161_v18 = vld [vmem:[#allocation47_spill] sm:$0xff]  ;;  %v15162_v5 = vld [vmem:[#allocation48_spill] sm:$0xff]  ;;  %v15163_v42 = vld [vmem:[#allocation49_spill] sm:$0xff] }
 0x2cc   : > { %v6518_v14 = vpop.f32.mrb[25].mxu0  ;;  %v14067_v60 = vadd.f32 %v10131_v2, %v13930_v0  ;;  %v6881_v58 = vsel %vm443_vm3, %v14022_v55, 0.0  ;;  %v6883_v37 = vsel %vm443_vm3, %v14025_v43, 0.0  ;;  %v10142_v16 = vadd.f32 %v6505_v63, %v15159_v51  ;;  %v15164_v55 = vld [vmem:[#allocation50_spill] sm:$0xff] }
 0x2cd   : > { %v9888_v31 = vpop.f32.mrb[26].mxu0  ;;  %v6669_v10 = vadd.f32 %v6668_v47, %v6667_v52  ;;  %v6880_v1 = vadd.f32 %v6879_v44, %v6878_v22  ;;  %v14075_v9 = vadd.f32 %v9887_v35, %v15160_v33  ;;  %v14078_v45 = vadd.f32 %v6518_v14, %v15161_v18  ;;  %v15165_v47 = vld [vmem:[#allocation63_spill] sm:$0xff] }
 0x2ce   : > { %v6521_v20 = vpop.f32.mrb[27].mxu0  ;;  %15158 = vst [vmem:[#allocation38_spill] sm:$0xff] %v14067_v60  ;;  %v14081_v2 = vadd.f32 %v9888_v31, %v15162_v5  ;;  %v1354_v63 = vmul.f32 %v13757_v46, %v15165_v47  ;;  %v1355_v35 = vmul.f32 %v13757_v46, %v13838_v50  ;;  %v14095_v31 = vadd.f32 %v13780_v28, %v13902_v27 }
 0x2cf   : > { %v14084_v3 = vadd.f32 %v6521_v20, %v15163_v42  ;;  %v6671_v22 = vadd.f32 %v6670_v54, %v6669_v10  ;;  %v6882_v44 = vadd.f32 %v6881_v58, %v6880_v1  ;;  %v6672_v42 = vsel %vm443_vm3, %v14050_v39, 0.0 }
 0x2d0   : > { %v14104_v20 = vadd.f32 %v10136_v6, %v13930_v0  ;;  %v1356_v50 = vmul.f32 %v13757_v46, %v13842_v17  ;;  %v14109_v54 = vadd.f32 %v13780_v28, %v1352_v7  ;;  %v14112_v10 = vadd.f32 %v13780_v28, %v1353_v11  ;;  %v15169_v17 = vld [vmem:[#allocation51_spill] sm:$0xff]  ;;  %v15170_v7 = vld [vmem:[#allocation52_spill] sm:$0xff] }
 0x2d1   : > { %v6673_v58 = vadd.f32 %v6672_v42, %v6671_v22  ;;  %v6884_v27 = vadd.f32 %v6883_v37, %v6882_v44  ;;  %v6674_v1 = vsel %vm443_vm3, %v14054_v24, 0.0  ;;  %v14119_v6 = vadd.f32 %v10138_v12, %v13930_v0  ;;  %v15171_v22 = vld [vmem:[#allocation53_spill] sm:$0xff]  ;;  %v15172_v44 = vld [vmem:[#allocation64_spill] sm:$0xff] }
 0x2d2   : > { %15167 = vst [vmem:[#allocation42_spill] sm:$0xff] %v14104_v20  ;;  %v6676_v11 = vsel %vm443_vm3, %v14095_v31, 0.0  ;;  %v6889_v47 = vsel %vm443_vm3, %v14104_v20, 0.0  ;;  %v1357_v42 = vmul.f32 %v13757_v46, %v15172_v44  ;;  %v14163_v44 = vadd.f32 %v14039_v41, %v13930_v0 }
 0x2d3   : > { %v9891_v13 = vpop.f32.mrb[28].mxu0  ;;  %15168 = vst [vmem:[#allocation62_spill] sm:$0xff] %v14119_v6  ;;  %v6675_v33 = vadd.f32 %v6674_v1, %v6673_v58  ;;  %v6678_v1 = vsel %vm443_vm3, %v14109_v54, 0.0 }
 0x2d4   : > { %v14087_v57 = vadd.f32 %v9891_v13, %v15164_v55  ;;  %v6534_v52 = vpop.f32.mrb[29].mxu0  ;;  %v14101_v55 = vadd.f32 %v13990_v36, %v13930_v0  ;;  %v6885_v36 = vsel %vm443_vm3, %v14067_v60, 0.0  ;;  %15175 = vst [vmem:[#allocation46_spill] sm:$0xff] %v14163_v44 }
 0x2d5   : > { %v9892_v14 = vpop.f32.mrb[30].mxu0  ;;  %v6886_v13 = vadd.f32 %v6885_v36, %v6884_v27  ;;  %v14122_v18 = vadd.f32 %v6534_v52, %v15169_v17  ;;  %v14139_v52 = vadd.f32 %v13780_v28, %v1354_v63  ;;  %v14145_v36 = vadd.f32 %v13995_v19, %v13930_v0  ;;  %v15173_v17 = vld [vmem:[#allocation55_spill] sm:$0xff] }
 0x2d6   : > { %15166 = vst [vmem:[#allocation40_spill] sm:$0xff] %v14101_v55  ;;  %v6537_v51 = vpop.f32.mrb[31].mxu0  ;;  %v14125_v5 = vadd.f32 %v9892_v14, %v15170_v7  ;;  %v6887_v37 = vsel %vm443_vm3, %v14101_v55, 0.0  ;;  %v6677_v14 = vadd.f32 %v6676_v11, %v6675_v33  ;;  %v14153_v63 = vadd.f32 %v13780_v28, %v1355_v35  ;;  %v15179_v55 = vld [vmem:[#allocation59_spill] sm:$0xff] }
 0x2d7   : > { %v14134_v12 = vadd.f32 %v6537_v51, %v15171_v22  ;;  %v6888_v58 = vadd.f32 %v6887_v37, %v6886_v13  ;;  %v6891_v51 = vsel %vm443_vm3, %v14119_v6, 0.0  ;;  %v6680_v13 = vsel %vm443_vm3, %v14112_v10, 0.0  ;;  %v15177_v6 = vld [vmem:[#allocation58_spill] sm:$0xff] }
 0x2d8   : > { %v6679_v33 = vadd.f32 %v6678_v1, %v6677_v14  ;;  %v14159_v19 = vadd.f32 %v14031_v49, %v13930_v0  ;;  %v15178_v1 = vld [vmem:[#allocation66_spill] sm:$0xff]  ;;  %v14177_v49 = vadd.f32 %v13780_v28, %v1356_v50  ;;  %v6682_v41 = vsel %vm443_vm3, %v14139_v52, 0.0 }
 0x2d9   : > { %v6890_v11 = vadd.f32 %v6889_v47, %v6888_v58  ;;  %v1358_v20 = vmul.f32 %v13757_v46, %v15178_v1  ;;  %v14191_v50 = vadd.f32 %v13780_v28, %v1357_v42  ;;  %v15183_v1 = vld [vmem:[#allocation57_spill] sm:$0xff] }
 0x2da   : > { %15174 = vst [vmem:[#allocation45_spill] sm:$0xff] %v14159_v19  ;;  %v6681_v47 = vadd.f32 %v6680_v13, %v6679_v33  ;;  %v15182_v33 = vld [vmem:[#allocation67_spill] sm:$0xff] }
 0x2db   : > { %v9895_v27 = vpop.f32.mrb[32].mxu0  ;;  %v6892_v58 = vadd.f32 %v6891_v51, %v6890_v11  ;;  %v1359_v51 = vmul.f32 %v13757_v46, %v15182_v33  ;;  %v6684_v11 = vsel %vm443_vm3, %v14153_v63, 0.0  ;;  %v1360_v33 = vmul.f32 %v13757_v46, %v13867_v59 }
 0x2dc   : > { %v14150_v7 = vadd.f32 %v9895_v27, %v15173_v17  ;;  %v6550_v22 = vpop.f32.mrb[33].mxu0  ;;  %v15176_v27 = vld [vmem:[#allocation56_spill] sm:$0xff]  ;;  %v14204_v42 = vadd.f32 %v13780_v28, %v1358_v20 }
 0x2dd   : > { %v9896_v37 = vpop.f32.mrb[34].mxu0  ;;  %v14166_v17 = vadd.f32 %v6550_v22, %v15176_v27  ;;  %v6893_v22 = vsel %vm443_vm3, %v14145_v36, 0.0  ;;  %v14218_v20 = vadd.f32 %v13780_v28, %v1359_v51  ;;  %v14234_v51 = vadd.f32 %v13780_v28, %v1360_v33 }
 0x2de   : > { %v14169_v35 = vadd.f32 %v9896_v37, %v15177_v6  ;;  %v6553_v14 = vpop.f32.mrb[35].mxu0  ;;  %v14184_v6 = vadd.f32 %v10142_v16, %v13930_v0  ;;  %v15181_v37 = vld [vmem:[#allocation41_spill] sm:$0xff]  ;;  %v6894_v13 = vadd.f32 %v6893_v22, %v6892_v58  ;;  %v6897_v16 = vsel %vm443_vm3, %v14163_v44, 0.0 }
 0x2df   : > { %v14174_v60 = vadd.f32 %v6553_v14, %v15179_v55  ;;  %v1322_v27 = vmul.f32 %v13738_v38, %v15181_v37  ;;  %v6683_v55 = vadd.f32 %v6682_v41, %v6681_v47  ;;  %v6895_v14 = vsel %vm443_vm3, %v14159_v19, 0.0  ;;  %v15184_v19 = vld [vmem:[#allocation44_spill] sm:$0xff] }
 0x2e0   : > { %15180 = vst [vmem:[#allocation47_spill] sm:$0xff] %v14184_v6  ;;  %v1323_v37 = vmul.f32 %v13738_v38, %v15183_v1  ;;  %v6896_v58 = vadd.f32 %v6895_v14, %v6894_v13  ;;  %v6686_v41 = vsel %vm443_vm3, %v14177_v49, 0.0  ;;  %v14210_v22 = vadd.f32 %v14036_v29, %v13930_v0 }
 0x2e1   : > { %v6685_v47 = vadd.f32 %v6684_v11, %v6683_v55  ;;  %v6899_v44 = vsel %vm443_vm3, %v14184_v6, 0.0  ;;  %v1324_v1 = vmul.f32 %v13738_v38, %v15184_v19  ;;  %v1361_v59 = vmul.f32 %v13757_v46, %v1322_v27  ;;  %v15186_v6 = vld [vmem:[#allocation54_spill] sm:$0xff] }
 0x2e2   : > { %v6898_v13 = vadd.f32 %v6897_v16, %v6896_v58  ;;  %v6688_v11 = vsel %vm443_vm3, %v14191_v50, 0.0  ;;  %v14224_v29 = vadd.f32 %v14042_v53, %v13930_v0  ;;  %v14228_v14 = vadd.f32 %v14078_v45, %v13930_v0 }
 0x2e3   : > { %v6687_v55 = vadd.f32 %v6686_v41, %v6685_v47  ;;  %v1325_v19 = vmul.f32 %v13738_v38, %v15186_v6  ;;  %v1362_v27 = vmul.f32 %v13757_v46, %v1323_v37  ;;  %v6690_v58 = vsel %vm443_vm3, %v14204_v42, 0.0 }
 0x2e4   : > { %15185 = vst [vmem:[#allocation48_spill] sm:$0xff] %v14228_v14  ;;  %v6900_v47 = vadd.f32 %v6899_v44, %v6898_v13  ;;  %v6901_v53 = vsel %vm443_vm3, %v14210_v22, 0.0  ;;  %v14242_v45 = vadd.f32 %v14084_v3, %v13930_v0  ;;  %v1363_v41 = vmul.f32 %v13757_v46, %v1324_v1 }
 0x2e5   : > { %v6689_v16 = vadd.f32 %v6688_v11, %v6687_v55  ;;  %v14246_v37 = vadd.f32 %v13780_v28, %v1361_v59  ;;  %v6692_v44 = vsel %vm443_vm3, %v14218_v20, 0.0  ;;  %v6903_v33 = vsel %vm443_vm3, %v14224_v29, 0.0 }
 0x2e6   : > { %v6902_v6 = vadd.f32 %v6901_v53, %v6900_v47  ;;  %v6905_v55 = vsel %vm443_vm3, %v14228_v14, 0.0  ;;  %v1364_v13 = vmul.f32 %v13757_v46, %v1325_v19  ;;  %v14256_v1 = vadd.f32 %v13780_v28, %v1362_v27 }
 0x2e7   : > { %v6691_v38 = vadd.f32 %v6690_v58, %v6689_v16  ;;  %v6694_v59 = vsel %vm443_vm3, %v14234_v51, 0.0  ;;  %v14262_v16 = vadd.f32 %v14075_v9, %v13930_v0  ;;  %v6907_v47 = vsel %vm443_vm3, %v14242_v45, 0.0 }
 0x2e8   : > { %v6904_v11 = vadd.f32 %v6903_v33, %v6902_v6  ;;  %v14267_v14 = vadd.f32 %v13780_v28, %v1363_v41  ;;  %v6696_v46 = vsel %vm443_vm3, %v14246_v37, 0.0  ;;  %v14273_v19 = vadd.f32 %v14081_v2, %v13930_v0 }
 0x2e9   : > { %v6693_v3 = vadd.f32 %v6692_v44, %v6691_v38  ;;  %v14277_v27 = vadd.f32 %v14122_v18, %v13930_v0  ;;  %v14280_v6 = vadd.f32 %v13780_v28, %v1364_v13  ;;  %v6698_v41 = vsel %vm443_vm3, %v14256_v1, 0.0 }
 0x2ea   : > { %v6906_v53 = vadd.f32 %v6905_v55, %v6904_v11  ;;  %v6909_v44 = vsel %vm443_vm3, %v14262_v16, 0.0  ;;  %v14288_v33 = vadd.f32 %v14134_v12, %v13930_v0  ;;  %v6700_v18 = vsel %vm443_vm3, %v14267_v14, 0.0 }
 0x2eb   : > { %v6695_v58 = vadd.f32 %v6694_v59, %v6693_v3  ;;  %v6911_v3 = vsel %vm443_vm3, %v14273_v19, 0.0  ;;  %v6913_v28 = vsel %vm443_vm3, %v14277_v27, 0.0  ;;  %v6702_v59 = vsel %vm443_vm3, %v14280_v6, 0.0 }
 0x2ec   : > { %v6908_v38 = vadd.f32 %v6907_v47, %v6906_v53  ;;  %v14300_v12 = vadd.f32 %v14087_v57, %v13930_v0  ;;  %v6915_v47 = vsel %vm443_vm3, %v14288_v33, 0.0  ;;  %v14316_v57 = vadd.f32 %v14174_v60, %v13930_v0 }
 0x2ed   : > { %v6697_v9 = vadd.f32 %v6696_v46, %v6695_v58  ;;  %v14306_v46 = vadd.f32 %v14125_v5, %v13930_v0 }
 0x2ee   : > { %v6910_v55 = vadd.f32 %v6909_v44, %v6908_v38  ;;  %v6917_v44 = vsel %vm443_vm3, %v14300_v12, 0.0 }
 0x2ef   : > { %v6699_v2 = vadd.f32 %v6698_v41, %v6697_v9  ;;  %v14310_v9 = vadd.f32 %v14166_v17, %v13930_v0 }
 0x2f0   : > { %v6912_v11 = vadd.f32 %v6911_v3, %v6910_v55 }
 0x2f1   : > { %v6701_v13 = vadd.f32 %v6700_v18, %v6699_v2  ;;  %v6919_v18 = vsel %vm443_vm3, %v14306_v46, 0.0  ;;  %v6921_v5 = vsel %vm443_vm3, %v14310_v9, 0.0 }
 0x2f2   : > { %v6914_v53 = vadd.f32 %v6913_v28, %v6912_v11  ;;  %v14324_v28 = vadd.f32 %v14150_v7, %v13930_v0 }
 0x2f3   : > { %v6703_v58 = vadd.f32 %v6702_v59, %v6701_v13  ;;  %v6923_v13 = vsel %vm443_vm3, %v14316_v57, 0.0  ;;  %v14330_v59 = vadd.f32 %v14169_v35, %v13930_v0 }
 0x2f4   : > { %v6916_v41 = vadd.f32 %v6915_v47, %v6914_v53  ;;  %v6925_v53 = vsel %vm443_vm3, %v14324_v28, 0.0 }
 0x2f5   : > { %v6704_v38 = vrot.slane %v6703_v58, 4  ;;  %v6927_v7 = vsel %vm443_vm3, %v14330_v59, 0.0 }
 0x2f6   : > { %v6918_v55 = vadd.f32 %v6917_v44, %v6916_v41 }
 0x2f7   : > { %v6705_v2 = vadd.f32 %v6704_v38, %v6703_v58 }
 0x2f8   : > { %v6920_v17 = vadd.f32 %v6919_v18, %v6918_v55 }
 0x2f9   : > { %v6706_v3 = vrot.slane %v6705_v2, 2 }
 0x2fa   : > { %v6922_v60 = vadd.f32 %v6921_v5, %v6920_v17 }
 0x2fb   : > { %v6707_v11 = vadd.f32 %v6706_v3, %v6705_v2 }
 0x2fc   : > { %v6924_v58 = vadd.f32 %v6923_v13, %v6922_v60 }
 0x2fd   : > { %v6708_v47 = vrot.slane %v6707_v11, 1 }
 0x2fe   : > { %v6926_v41 = vadd.f32 %v6925_v53, %v6924_v58 }
 0x2ff   : > { %v6709_v38 = vadd.f32 %v6708_v47, %v6707_v11  ;;  %v14341_v11 = vld [vmem:[%s14790_s9] sm:$0xff]  ;;  %v15187_v47 = vmov 0.0|0.0  }
 0x300   : > { %v6928_v55 = vadd.f32 %v6927_v7, %v6926_v41  ;;  %9909 = vmatpush3.msra.mxu1 %v14341_v11 }
 0x301   : > { %v6710_v44 = vmul.f32 0.00390625, %v6709_v38  ;;  %10097 = vmatprep.subr.bf16.mxu1 %v15187_v47 }
 0x302   : > { %v6929_v2 = vrot.slane %v6928_v55, 4 }
 0x303   : > { %v6711_v18 = vsel %vm443_vm3, %v6710_v44, -inf }
 0x304   : > { %6712 = vmax.xlane.f32.xlu0 %v6711_v18  ;;  %v6930_v5 = vadd.f32 %v6929_v2, %v6928_v55 }
 0x306   : > { %v6931_v3 = vrot.slane %v6930_v5, 2 }
 0x308   : > { %v6932_v0 = vadd.f32 %v6931_v3, %v6930_v5  ;;  %v15188_v3 = vld [vmem:[#allocation39_spill] sm:$0xff] }
 0x30a   : > { %v6933_v35 = vrot.slane %v6932_v0, 1 }
 0x30c   : > { %v6934_v17 = vadd.f32 %v6933_v35, %v6932_v0  ;;  %v15189_v0 = vmov 0.0  }
 0x30e   : > { %v6935_v13 = vmul.f32 0.00390625, %v6934_v17 }
 0x310   : > { %v6936_v60 = vsel %vm443_vm3, %v6935_v13, -inf }
 0x311   : > { %6937 = vmax.xlane.f32.xlu0 %v6936_v60 }
 0x391   : > { %v6713_v58 = vpop.xlane.xlu0 %6712 }
 0x392   : > { %v6714_v53 = vsub.f32 %v6710_v44, %v6713_v58  ;;  %v15190_v44 = vld [vmem:[#allocation71_spill] sm:$0xff] }
 0x394   : > { %v6715_v38 = vmul.f32 1.442695, %v6714_v53 }
 0x396   : > { %10541 = vpow2.f32 %v6715_v38 }
 0x39e   : > { %v6938_v7 = vpop.xlane.xlu0 %6937 }
 0x39f   : > { %v6939_v55 = vsub.f32 %v6935_v13, %v6938_v7 }
 0x3a0   : > { %v14345_v41 = vpop.eup %10541 }
 0x3a1   : > { %9906 = vmatmul.mubr.msk.f32.vlgmr.msra.gmra.mrb[36].mxu0 %vm443_vm3, %v14345_v41  ;;  %v6940_v18 = vmul.f32 1.442695, %v6939_v55  ;;  %v15191_v55 = vld [vmem:[#allocation43_spill] sm:$0xff] }
 0x3a3   : > { %10543 = vpow2.f32 %v6940_v18 }
 0x3ad   : > { %v10544_v35 = vpop.eup %10543 }
 0x474   : > { %v6786_v2 = vpop.f32.mrb[36].mxu0 }
 0x475   : > { %v9907_v5 = vpop.f32.mrb[37].mxu0  ;;  %9911 = vmatmul.mubr.msk.f32.vlgmr.msra.gmra.mrb[36].mxu1 %vm6790_vm0, %v6786_v2  ;;  %v15192_v2 = vld [vmem:[#allocation60_spill] sm:$0xff] }
 0x476   : > { %10099 = vmatpush3.bf16.msra.mxu1 %v15188_v3  ;;  %9921 = vmatprep.mubr.msk.f32.mxu1 %vm15072_vm1, %v15189_v0 }
 0x477   : > { %10100 = vmatprep.subr.bf16.mxu1 %v15187_v47 }
 0x47a   : > { %10102 = vmatpush3.bf16.msra.mxu1 %v15190_v44 }
 0x47b   : > { %9924 = vmatprep.subr.mxu1 %v15189_v0 }
 0x47d   : > { %9922 = vmatmul.mubr.msk.f32.vlgmr.msra.gmra.mrb[38].mxu1 %vm443_vm3, %v10544_v35 }
 0x47e   : > { %9925 = vmatpush3.msra.mxu1 %v14341_v11  ;;  %9926 = vmatprep.mubr.msk.f32.mxu1 %vm15072_vm1, %v15189_v0  ;;  %v15193_v0 = vld [vmem:[#allocation61_spill] sm:$0xff] }
 0x47f   : > { %10104 = vmatprep.subr.bf16.mxu1 %v15188_v3 }
 0x548   : > { %v6860_v17 = vpop.f32.mrb[36].mxu1 }
 0x549   : > { %v9912_v13 = vpop.f32.mrb[37].mxu1 }
 0x550   : > { %v7011_v60 = vpop.f32.mrb[38].mxu1 }
 0x551   : > { %v9923_v58 = vpop.f32.mrb[39].mxu1  ;;  %9927 = vmatmul.mubr.msk.f32.vlgmr.msra.gmra.mrb[40].mxu1 %vm6790_vm0, %v7011_v60 }
 0x552   : > { %10106 = vmatpush3.bf16.msra.mxu1 %v15188_v3 }
 0x553   : > { %10108 = vmatprep.subr.bf16.mxu1 %v15190_v44 }
 0x556   : > { %10110 = vmatpush3.bf16.msra.mxu1 %v15190_v44 }
 0x557   : > { %10112 = vmatprep.subr.bf16.mxu1 %v15188_v3 }
 0x624   : > { %v7084_v47 = vpop.f32.mrb[40].mxu1 }
 0x625   : > { %10545 = vrcp.f32 %v7084_v47  ;;  %v9928_v53 = vpop.f32.mrb[41].mxu1 }
 0x626   : > { %10547 = vrcp.f32 %v6860_v17 }
 0x62f   : > { %v10546_v38 = vpop.eup %10545 }
 0x630   : > { %v7089_v7 = vmul.f32 %v10546_v38, %v10544_v35  ;;  %v15194_v35 = vld [vmem:[#allocation65_spill] sm:$0xff]  ;;  %v10548_v17 = vpop.eup %10547 }
 0x632   : > { %v14367_v18 = vrot.slane %v7089_v7, %v15191_v55 }
 0x634   : > { %v7130_v5 = vmul.f32 %v14367_v18, %v15192_v2  ;;  %v7131_v13 = vmul.f32 %v14367_v18, %v15193_v0  ;;  %v7132_v60 = vmul.f32 %v14367_v18, %v13832_v48  ;;  %v7133_v58 = vmul.f32 %v14367_v18, %v15194_v35  ;;  %v15195_v48 = vld [vmem:[#allocation68_spill] sm:$0xff] }
 0x635   : > { %v7134_v47 = vmul.f32 %v14367_v18, %v13872_v21  ;;  %v7135_v53 = vmul.f32 %v14367_v18, %v15195_v48  ;;  %v7137_v21 = vmul.f32 %v14367_v18, %v13909_v40  ;;  %v7138_v7 = vmul.f32 %v14367_v18, %v13912_v56  ;;  %v15203_v48 = vld [vmem:[#allocation40_spill] sm:$0xff] }
 0x636   : > { %9937 = vmatprep.mubr.msk.f32.mxu1 %vm443_vm3, %v7130_v5  ;;  %v7140_v2 = vmul.f32 %v14367_v18, %v13918_v30  ;;  %v7141_v40 = vmul.f32 %v14367_v18, %v13921_v8  ;;  %v7142_v56 = vmul.f32 %v14367_v18, %v13947_v23  ;;  %v7144_v30 = vmul.f32 %v14367_v18, %v13959_v26 }
 0x637   : > { %9938 = vmatmul.mubr.msk.f32.vlgmr.msra.gmra.mrb[42].mxu1 %vm443_vm3, %v7131_v13  ;;  %v7145_v8 = vmul.f32 %v14367_v18, %v13998_v61  ;;  %v7146_v23 = vmul.f32 %v14367_v18, %v14050_v39  ;;  %v7148_v26 = vmul.f32 %v14367_v18, %v14095_v31  ;;  %v7149_v61 = vmul.f32 %v14367_v18, %v14109_v54 }
 0x638   : > { %10114 = vmatpush3.bf16.msra.mxu1 %v15188_v3  ;;  %9940 = vmatprep.mubr.msk.f32.mxu1 %vm443_vm3, %v7132_v60  ;;  %v15196_v3 = vld [vmem:[#allocation69_spill] sm:$0xff]  ;;  %v7150_v39 = vmul.f32 %v14367_v18, %v14112_v10  ;;  %v7152_v31 = vmul.f32 %v14367_v18, %v14153_v63  ;;  %v7153_v54 = vmul.f32 %v14367_v18, %v14177_v49  ;;  %v15201_v60 = vld [vmem:[#allocation75_spill] sm:$0xff] }
 0x639   : > { %10116 = vmatprep.subr.bf16.mxu1 %v15190_v44  ;;  %v7136_v38 = vmul.f32 %v14367_v18, %v15196_v3  ;;  %v7154_v10 = vmul.f32 %v14367_v18, %v14191_v50  ;;  %v7156_v63 = vmul.f32 %v14367_v18, %v14218_v20  ;;  %v7157_v49 = vmul.f32 %v14367_v18, %v14234_v51  ;;  %v15204_v3 = vld [vmem:[#allocation42_spill] sm:$0xff] }
 0x63a   : > { %v6865_v50 = vmul.f32 %v10548_v17, %v14345_v41  ;;  %v7158_v5 = vmul.f32 %v14367_v18, %v14246_v37  ;;  %v7160_v0 = vmul.f32 %v14367_v18, %v14267_v14  ;;  %v7161_v51 = vmul.f32 %v14367_v18, %v14280_v6  ;;  %v15197_v41 = vld [vmem:[#allocation70_spill] sm:$0xff] }
 0x63b   : > { %9941 = vmatmul.mubr.msk.f32.gmra.mrb[44].mxu1 %vm443_vm3, %v7133_v58  ;;  %v15202_v58 = vld [vmem:[#allocation38_spill] sm:$0xff] }
 0x63c   : > { %9943 = vmatprep.mubr.msk.f32.mxu1 %vm443_vm3, %v7134_v47  ;;  %10118 = vmatpush3.bf16.msra.mxu1 %v15190_v44  ;;  %v7139_v44 = vmul.f32 %v14367_v18, %v13915_v62  ;;  %v7143_v62 = vmul.f32 %v14367_v18, %v13956_v34  ;;  %v7147_v34 = vmul.f32 %v14367_v18, %v14054_v24 }
 0x63d   : > { %10041 = vmatprep.subr.mxu1 %v14341_v11  ;;  %v7151_v24 = vmul.f32 %v14367_v18, %v14139_v52  ;;  %v7155_v52 = vmul.f32 %v14367_v18, %v14204_v42  ;;  %v7159_v42 = vmul.f32 %v14367_v18, %v14256_v1  ;;  %v14464_v20 = vrot.slane %v6865_v50, %v15191_v55  ;;  %v15199_v18 = vld [vmem:[#allocation73_spill] sm:$0xff] }
 0x63f   : > { %9944 = vmatmul.mubr.msk.f32.gmra.mrb[46].mxu1 %vm443_vm3, %v7135_v53  ;;  %v7094_v37 = vmul.f32 %v14464_v20, %v13953_v4  ;;  %v7095_v1 = vmul.f32 %v14464_v20, %v13964_v25  ;;  %v7096_v14 = vmul.f32 %v14464_v20, %v15197_v41  ;;  %v7097_v6 = vmul.f32 %v14464_v20, %v13971_v15  ;;  %v15198_v25 = vld [vmem:[#allocation72_spill] sm:$0xff] }
 0x640   : > { %9946 = vmatprep.mubr.msk.f32.mxu1 %vm443_vm3, %v7136_v38  ;;  %v7098_v4 = vmul.f32 %v14464_v20, %v13980_v32  ;;  %v7099_v55 = vmul.f32 %v14464_v20, %v15198_v25  ;;  %v7100_v13 = vmul.f32 %v14464_v20, %v15199_v18  ;;  %v7102_v32 = vmul.f32 %v14464_v20, %v15201_v60 }
 0x641   : > { %v7103_v35 = vmul.f32 %v14464_v20, %v14025_v43  ;;  %v7104_v47 = vmul.f32 %v14464_v20, %v15202_v58  ;;  %v7105_v53 = vmul.f32 %v14464_v20, %v15203_v48  ;;  %v7106_v38 = vmul.f32 %v14464_v20, %v15204_v3 }
 0x643   : > { %9947 = vmatmul.mubr.msk.f32.gmra.mrb[48].mxu1 %vm443_vm3, %v7137_v21  ;;  %v15205_v21 = vld [vmem:[#allocation62_spill] sm:$0xff] }
 0x644   : > { %9949 = vmatprep.mubr.msk.f32.mxu1 %vm443_vm3, %v7138_v7  ;;  %v7107_v43 = vmul.f32 %v14464_v20, %v15205_v21  ;;  %v7108_v7 = vmul.f32 %v14464_v20, %v14145_v36  ;;  %v7112_v36 = vmul.f32 %v14464_v20, %v14210_v22  ;;  %v7116_v22 = vmul.f32 %v14464_v20, %v14262_v16 }
 0x645   : > { %v7120_v16 = vmul.f32 %v14464_v20, %v14300_v12  ;;  %v7124_v12 = vmul.f32 %v14464_v20, %v14324_v28 }
 0x647   : > { %9950 = vmatmul.mubr.msk.f32.gmra.mrb[50].mxu1 %vm443_vm3, %v7139_v44  ;;  %v15206_v44 = vld [vmem:[#allocation45_spill] sm:$0xff] }
 0x648   : > { %9952 = vmatprep.mubr.msk.f32.mxu1 %vm443_vm3, %v7140_v2  ;;  %v7109_v2 = vmul.f32 %v14464_v20, %v15206_v44 }
 0x64b   : > { %9953 = vmatmul.mubr.msk.f32.gmra.mrb[52].mxu1 %vm443_vm3, %v7141_v40  ;;  %v15207_v40 = vld [vmem:[#allocation46_spill] sm:$0xff] }
 0x64c   : > { %9955 = vmatprep.mubr.msk.f32.mxu1 %vm443_vm3, %v7142_v56  ;;  %v7110_v56 = vmul.f32 %v14464_v20, %v15207_v40 }
 0x64f   : > { %9956 = vmatmul.mubr.msk.f32.gmra.mrb[54].mxu1 %vm443_vm3, %v7143_v62  ;;  %v15208_v62 = vld [vmem:[#allocation47_spill] sm:$0xff] }
 0x650   : > { %9958 = vmatprep.mubr.msk.f32.mxu1 %vm443_vm3, %v7144_v30  ;;  %v7111_v30 = vmul.f32 %v14464_v20, %v15208_v62 }
 0x653   : > { %9959 = vmatmul.mubr.msk.f32.gmra.mrb[56].mxu1 %vm443_vm3, %v7145_v8  ;;  %v7113_v8 = vmul.f32 %v14464_v20, %v14224_v29  ;;  %v7117_v29 = vmul.f32 %v14464_v20, %v14273_v19  ;;  %v7121_v19 = vmul.f32 %v14464_v20, %v14306_v46  ;;  %v7125_v46 = vmul.f32 %v14464_v20, %v14330_v59 }
 0x654   : > { %9961 = vmatprep.mubr.msk.f32.mxu1 %vm443_vm3, %v7146_v23  ;;  %v15209_v23 = vld [vmem:[#allocation48_spill] sm:$0xff] }
 0x657   : > { %9962 = vmatmul.mubr.msk.f32.gmra.mrb[58].mxu1 %vm443_vm3, %v7147_v34  ;;  %v7114_v34 = vmul.f32 %v14464_v20, %v15209_v23 }
 0x658   : > { %9964 = vmatprep.mubr.msk.f32.mxu1 %vm443_vm3, %v7148_v26  ;;  %v7115_v26 = vmul.f32 %v14464_v20, %v14242_v45  ;;  %v7119_v45 = vmul.f32 %v14464_v20, %v14288_v33  ;;  %v7123_v33 = vmul.f32 %v14464_v20, %v14316_v57 }
 0x65b   : > { %9965 = vmatmul.mubr.msk.f32.gmra.mrb[60].mxu1 %vm443_vm3, %v7149_v61  ;;  %v7118_v61 = vmul.f32 %v14464_v20, %v14277_v27  ;;  %v7122_v27 = vmul.f32 %v14464_v20, %v14310_v9 }
 0x65c   : > { %9967 = vmatprep.mubr.msk.f32.mxu1 %vm443_vm3, %v7150_v39 }
 0x65f   : > { %9968 = vmatmul.mubr.msk.f32.gmra.mrb[62].mxu1 %vm443_vm3, %v7151_v24 }
 0x660   : > { %9970 = vmatprep.mubr.msk.f32.mxu1 %vm443_vm3, %v7152_v31 }
 0x663   : > { %9971 = vmatmul.mubr.msk.f32.gmra.mrb[64].mxu1 %vm443_vm3, %v7153_v54 }
 0x664   : > { %9973 = vmatprep.mubr.msk.f32.mxu1 %vm443_vm3, %v7154_v10 }
 0x667   : > { %9974 = vmatmul.mubr.msk.f32.gmra.mrb[66].mxu1 %vm443_vm3, %v7155_v52 }
 0x668   : > { %9976 = vmatprep.mubr.msk.f32.mxu1 %vm443_vm3, %v7156_v63 }
 0x66b   : > { %9977 = vmatmul.mubr.msk.f32.gmra.mrb[68].mxu1 %vm443_vm3, %v7157_v49 }
 0x66c   : > { %9979 = vmatprep.mubr.msk.f32.mxu1 %vm443_vm3, %v7158_v5 }
 0x66f   : > { %9980 = vmatmul.mubr.msk.f32.gmra.mrb[70].mxu1 %vm443_vm3, %v7159_v42 }
 0x670   : > { %9982 = vmatprep.mubr.msk.f32.mxu1 %vm443_vm3, %v7160_v0 }
 0x673   : > { %9983 = vmatmul.mubr.msk.f32.gmra.mrb[72].mxu1 %vm443_vm3, %v7161_v51 }
 0x674   : > { %9993 = vmatprep.mubr.msk.f32.mxu1 %vm443_vm3, %v7094_v37 }
 0x677   : > { %9994 = vmatmul.mubr.msk.f32.vlgmr.msra.gmra.mrb[42].mxu1 %vm443_vm3, %v7095_v1 }
 0x678   : > { %9996 = vmatprep.mubr.msk.f32.mxu1 %vm443_vm3, %v7096_v14  ;;  %10042 = vmatpush3.msra.mxu1 %v14341_v11  ;;  %v15200_v11 = vld [vmem:[#allocation74_spill] sm:$0xff] }
 0x679   : > { %v7101_v15 = vmul.f32 %v14464_v20, %v15200_v11 }
 0x67b   : > { %9997 = vmatmul.mubr.msk.f32.gmra.mrb[44].mxu1 %vm443_vm3, %v7097_v6 }
 0x67c   : > { %9999 = vmatprep.mubr.msk.f32.mxu1 %vm443_vm3, %v7098_v4 }
 0x67f   : > { %10000 = vmatmul.mubr.msk.f32.gmra.mrb[46].mxu1 %vm443_vm3, %v7099_v55 }
 0x680   : > { %10002 = vmatprep.mubr.msk.f32.mxu1 %vm443_vm3, %v7100_v13 }
 0x683   : > { %10003 = vmatmul.mubr.msk.f32.gmra.mrb[48].mxu1 %vm443_vm3, %v7101_v15 }
 0x684   : > { %10005 = vmatprep.mubr.msk.f32.mxu1 %vm443_vm3, %v7102_v32 }
 0x687   : > { %10006 = vmatmul.mubr.msk.f32.gmra.mrb[50].mxu1 %vm443_vm3, %v7103_v35 }
 0x688   : > { %10008 = vmatprep.mubr.msk.f32.mxu1 %vm443_vm3, %v7104_v47 }
 0x68b   : > { %10009 = vmatmul.mubr.msk.f32.gmra.mrb[52].mxu1 %vm443_vm3, %v7105_v53 }
 0x68c   : > { %10011 = vmatprep.mubr.msk.f32.mxu1 %vm443_vm3, %v7106_v38 }
 0x68f   : > { %10012 = vmatmul.mubr.msk.f32.gmra.mrb[54].mxu1 %vm443_vm3, %v7107_v43 }
 0x690   : > { %10014 = vmatprep.mubr.msk.f32.mxu1 %vm443_vm3, %v7108_v7 }
 0x693   : > { %10015 = vmatmul.mubr.msk.f32.gmra.mrb[56].mxu1 %vm443_vm3, %v7109_v2 }
 0x694   : > { %10017 = vmatprep.mubr.msk.f32.mxu1 %vm443_vm3, %v7110_v56 }
 0x697   : > { %10018 = vmatmul.mubr.msk.f32.gmra.mrb[58].mxu1 %vm443_vm3, %v7111_v30 }
 0x698   : > { %10020 = vmatprep.mubr.msk.f32.mxu1 %vm443_vm3, %v7112_v36 }
 0x69b   : > { %10021 = vmatmul.mubr.msk.f32.gmra.mrb[60].mxu1 %vm443_vm3, %v7113_v8 }
 0x69c   : > { %10023 = vmatprep.mubr.msk.f32.mxu1 %vm443_vm3, %v7114_v34 }
 0x69f   : > { %10024 = vmatmul.mubr.msk.f32.gmra.mrb[62].mxu1 %vm443_vm3, %v7115_v26 }
 0x6a0   : > { %10026 = vmatprep.mubr.msk.f32.mxu1 %vm443_vm3, %v7116_v22 }
 0x6a3   : > { %10027 = vmatmul.mubr.msk.f32.gmra.mrb[64].mxu1 %vm443_vm3, %v7117_v29 }
 0x6a4   : > { %10029 = vmatprep.mubr.msk.f32.mxu1 %vm443_vm3, %v7118_v61 }
 0x6a7   : > { %10030 = vmatmul.mubr.msk.f32.gmra.mrb[66].mxu1 %vm443_vm3, %v7119_v45 }
 0x6a8   : > { %10032 = vmatprep.mubr.msk.f32.mxu1 %vm443_vm3, %v7120_v16 }
 0x6ab   : > { %10033 = vmatmul.mubr.msk.f32.gmra.mrb[68].mxu1 %vm443_vm3, %v7121_v19 }
 0x6ac   : > { %10035 = vmatprep.mubr.msk.f32.mxu1 %vm443_vm3, %v7122_v27 }
 0x6af   : > { %10036 = vmatmul.mubr.msk.f32.gmra.mrb[70].mxu1 %vm443_vm3, %v7123_v33 }
 0x6b0   : > { %10038 = vmatprep.mubr.msk.f32.mxu1 %vm443_vm3, %v7124_v12 }
 0x6b3   : > { %10039 = vmatmul.mubr.msk.f32.gmra.mrb[72].mxu1 %vm443_vm3, %v7125_v46 }
 0x74a   : > { %v9995_v9 = vpop.f32.mrb[42].mxu1 }
 0x74b   : > { %v7645_v39 = vpop.f32.mrb[43].mxu1 }
 0x74c   : > { %10043 = vmatprep.mubr.msk.f32.mxu1 %vm6790_vm0, %v7645_v39  ;;  %v9177_v39 = vld [vmem:[%s14607_s29] sm:$0xff]  }
 0x74d   : > { %10044 = vmatmul.mubr.msk.f32.vlgmr.msra.gmra.mrb[74].mxu1 %vm6790_vm0, %v9995_v9 }
 0x74e   : > { %v9998_v24 = vpop.f32.mrb[44].mxu1 }
 0x74f   : > { %v7655_v57 = vpop.f32.mrb[45].mxu1 }
 0x750   : > { %10046 = vmatprep.mubr.msk.f32.mxu1 %vm6790_vm0, %v7655_v57 }
 0x751   : > { %10047 = vmatmul.mubr.msk.f32.gmra.mrb[76].mxu1 %vm6790_vm0, %v9998_v24 }
 0x752   : > { %v10001_v28 = vpop.f32.mrb[46].mxu1 }
 0x753   : > { %v7665_v31 = vpop.f32.mrb[47].mxu1 }
 0x754   : > { %10049 = vmatprep.mubr.msk.f32.mxu1 %vm6790_vm0, %v7665_v31 }
 0x755   : > { %10050 = vmatmul.mubr.msk.f32.gmra.mrb[78].mxu1 %vm6790_vm0, %v10001_v28 }
 0x756   : > { %v10004_v59 = vpop.f32.mrb[48].mxu1 }
 0x757   : > { %v7675_v54 = vpop.f32.mrb[49].mxu1 }
 0x758   : > { %10052 = vmatprep.mubr.msk.f32.mxu1 %vm6790_vm0, %v7675_v54  ;;  %v9179_v54 = vunpack.c.h.bf16 %v9177_v39 }
 0x759   : > { %10053 = vmatmul.mubr.msk.f32.gmra.mrb[80].mxu1 %vm6790_vm0, %v10004_v59 }
 0x75a   : > { %v10007_v10 = vpop.f32.mrb[50].mxu1 }
 0x75b   : > { %v7685_v52 = vpop.f32.mrb[51].mxu1 }
 0x75c   : > { %10055 = vmatprep.mubr.msk.f32.mxu1 %vm6790_vm0, %v7685_v52 }
 0x75d   : > { %10056 = vmatmul.mubr.msk.f32.gmra.mrb[82].mxu1 %vm6790_vm0, %v10007_v10  ;;  %v9255_v10 = vld [vmem:[%s14607_s29 + $0x8] sm:$0xff]  }
 0x75e   : > { %v10010_v63 = vpop.f32.mrb[52].mxu1 }
 0x75f   : > { %v7695_v17 = vpop.f32.mrb[53].mxu1 }
 0x760   : > { %10058 = vmatprep.mubr.msk.f32.mxu1 %vm6790_vm0, %v7695_v17 }
 0x761   : > { %10059 = vmatmul.mubr.msk.f32.gmra.mrb[84].mxu1 %vm6790_vm0, %v10010_v63 }
 0x762   : > { %v10013_v49 = vpop.f32.mrb[54].mxu1 }
 0x763   : > { %v7705_v50 = vpop.f32.mrb[55].mxu1 }
 0x764   : > { %10061 = vmatprep.mubr.msk.f32.mxu1 %vm6790_vm0, %v7705_v50 }
 0x765   : > { %10062 = vmatmul.mubr.msk.f32.gmra.mrb[86].mxu1 %vm6790_vm0, %v10013_v49  ;;  %v9178_v49 = vunpack.c.l.bf16 %v9177_v39 }
 0x766   : > { %v10016_v5 = vpop.f32.mrb[56].mxu1 }
 0x767   : > { %v7715_v42 = vpop.f32.mrb[57].mxu1 }
 0x768   : > { %10064 = vmatprep.mubr.msk.f32.mxu1 %vm6790_vm0, %v7715_v42 }
 0x769   : > { %10065 = vmatmul.mubr.msk.f32.gmra.mrb[88].mxu1 %vm6790_vm0, %v10016_v5 }
 0x76a   : > { %v10019_v20 = vpop.f32.mrb[58].mxu1 }
 0x76b   : > { %v7725_v0 = vpop.f32.mrb[59].mxu1 }
 0x76c   : > { %10067 = vmatprep.mubr.msk.f32.mxu1 %vm6790_vm0, %v7725_v0 }
 0x76d   : > { %10068 = vmatmul.mubr.msk.f32.gmra.mrb[90].mxu1 %vm6790_vm0, %v10019_v20  ;;  %v15210_v20 = vld [vmem:[#allocation7_spill] sm:$0xff] }
 0x76e   : > { %v10022_v51 = vpop.f32.mrb[60].mxu1 }
 0x76f   : > { %v7735_v37 = vpop.f32.mrb[61].mxu1 }
 0x770   : > { %10070 = vmatprep.mubr.msk.f32.mxu1 %vm6790_vm0, %v7735_v37  ;;  %v15211_v37 = vld [vmem:[#allocation6_spill] sm:$0xff] }
 0x771   : > { %10071 = vmatmul.mubr.msk.f32.gmra.mrb[92].mxu1 %vm6790_vm0, %v10022_v51 }
 0x772   : > { %v10025_v1 = vpop.f32.mrb[62].mxu1 }
 0x773   : > { %v7745_v41 = vpop.f32.mrb[63].mxu1 }
 0x774   : > { %10073 = vmatprep.mubr.msk.f32.mxu1 %vm6790_vm0, %v7745_v41  ;;  %v9183_v41 = vunpack.c.h.bf16 %v9255_v10 }
 0x775   : > { %10074 = vmatmul.mubr.msk.f32.gmra.mrb[94].mxu1 %vm6790_vm0, %v10025_v1 }
 0x776   : > { %v10028_v14 = vpop.f32.mrb[64].mxu1 }
 0x777   : > { %v7755_v6 = vpop.f32.mrb[65].mxu1 }
 0x778   : > { %10076 = vmatprep.mubr.msk.f32.mxu1 %vm6790_vm0, %v7755_v6 }
 0x779   : > { %10077 = vmatmul.mubr.msk.f32.gmra.mrb[96].mxu1 %vm6790_vm0, %v10028_v14 }
 0x77a   : > { %v10031_v4 = vpop.f32.mrb[66].mxu1 }
 0x77b   : > { %v7765_v25 = vpop.f32.mrb[67].mxu1 }
 0x77c   : > { %10079 = vmatprep.mubr.msk.f32.mxu1 %vm6790_vm0, %v7765_v25  ;;  %v9256_v25 = vld [vmem:[%s14607_s29 + $0x10] sm:$0xff]  }
 0x77d   : > { %10080 = vmatmul.mubr.msk.f32.gmra.mrb[98].mxu1 %vm6790_vm0, %v10031_v4 }
 0x77e   : > { %v10034_v55 = vpop.f32.mrb[68].mxu1 }
 0x77f   : > { %v7775_v18 = vpop.f32.mrb[69].mxu1 }
 0x780   : > { %10082 = vmatprep.mubr.msk.f32.mxu1 %vm6790_vm0, %v7775_v18 }
 0x781   : > { %10083 = vmatmul.mubr.msk.f32.gmra.mrb[100].mxu1 %vm6790_vm0, %v10034_v55 }
 0x782   : > { %v10037_v13 = vpop.f32.mrb[70].mxu1 }
 0x783   : > { %v7785_v11 = vpop.f32.mrb[71].mxu1 }
 0x784   : > { %10085 = vmatprep.mubr.msk.f32.mxu1 %vm6790_vm0, %v7785_v11 }
 0x785   : > { %10086 = vmatmul.mubr.msk.f32.gmra.mrb[102].mxu1 %vm6790_vm0, %v10037_v13 }
 0x786   : > { %v10040_v15 = vpop.f32.mrb[72].mxu1 }
 0x787   : > { %v7795_v60 = vpop.f32.mrb[73].mxu1 }
 0x788   : > { %10088 = vmatprep.mubr.msk.f32.mxu1 %vm6790_vm0, %v7795_v60  ;;  %v9182_v60 = vunpack.c.l.bf16 %v9255_v10 }
 0x789   : > { %10089 = vmatmul.mubr.msk.f32.gmra.mrb[104].mxu1 %vm6790_vm0, %v10040_v15 }
 0x820   : > { %v10045_v32 = vpop.f32.mrb[74].mxu1 }
 0x821   : > { %v9073_v35 = vmul.f32 -1.442695, %v10045_v32  ;;  %v7966_v58 = vpop.f32.mrb[75].mxu1 }
 0x822   : > { %v9072_v47 = vmul.f32 -1.442695, %v7966_v58 }
 0x823   : > { %10549 = vpow2.f32 %v9073_v35 }
 0x824   : > { %10551 = vpow2.f32 %v9072_v47  ;;  %v10048_v48 = vpop.f32.mrb[76].mxu1  ;;  %v15212_v47 = vld [vmem:[#allocation9_spill] sm:$0xff] }
 0x825   : > { %v9075_v53 = vmul.f32 -1.442695, %v10048_v48  ;;  %v7976_v3 = vpop.f32.mrb[77].mxu1 }
 0x826   : > { %v9074_v38 = vmul.f32 -1.442695, %v7976_v3  ;;  %v15213_v3 = vld [vmem:[#allocation8_spill] sm:$0xff] }
 0x827   : > { %10553 = vpow2.f32 %v9075_v53 }
 0x828   : > { %10555 = vpow2.f32 %v9074_v38  ;;  %v10051_v21 = vpop.f32.mrb[78].mxu1 }
 0x829   : > { %v9077_v43 = vmul.f32 -1.442695, %v10051_v21  ;;  %v7986_v7 = vpop.f32.mrb[79].mxu1  ;;  %v9187_v21 = vunpack.c.h.bf16 %v9256_v25 }
 0x82a   : > { %v9076_v44 = vmul.f32 -1.442695, %v7986_v7 }
 0x82b   : > { %10557 = vpow2.f32 %v9077_v43  ;;  %v9186_v43 = vunpack.c.l.bf16 %v9256_v25 }
 0x82c   : > { %10559 = vpow2.f32 %v9076_v44  ;;  %v10054_v2 = vpop.f32.mrb[80].mxu1 }
 0x82d   : > { %v10550_v40 = vpop.eup %10549  ;;  %v9079_v56 = vmul.f32 -1.442695, %v10054_v2  ;;  %v7996_v62 = vpop.f32.mrb[81].mxu1 }
 0x82e   : > { %v10552_v30 = vpop.eup %10551  ;;  %v8286_v36 = vadd.f32 1.0, %v10550_v40  ;;  %v9078_v8 = vmul.f32 -1.442695, %v7996_v62  ;;  %v9257_v40 = vld [vmem:[%s14607_s29 + $0x18] sm:$0xff]  }
 0x82f   : > { %v8285_v23 = vadd.f32 1.0, %v10552_v30  ;;  %10561 = vpow2.f32 %v9079_v56 }
 0x830   : > { %10563 = vrcp.f32 %v8286_v36  ;;  %v10057_v34 = vpop.f32.mrb[82].mxu1 }
 0x831   : > { %v10554_v26 = vpop.eup %10553  ;;  %10565 = vrcp.f32 %v8285_v23  ;;  %v9081_v22 = vmul.f32 -1.442695, %v10057_v34  ;;  %v8006_v29 = vpop.f32.mrb[83].mxu1 }
 0x832   : > { %v10556_v61 = vpop.eup %10555  ;;  %v8288_v45 = vadd.f32 1.0, %v10554_v26  ;;  %10567 = vpow2.f32 %v9078_v8  ;;  %v9080_v16 = vmul.f32 -1.442695, %v8006_v29 }
 0x833   : > { %v8287_v19 = vadd.f32 1.0, %v10556_v61  ;;  %10569 = vpow2.f32 %v9081_v22  ;;  %v15214_v22 = vld [vmem:[#allocation11_spill] sm:$0xff] }
 0x834   : > { %10571 = vrcp.f32 %v8288_v45  ;;  %v10060_v27 = vpop.f32.mrb[84].mxu1  ;;  %v15215_v45 = vld [vmem:[#allocation10_spill] sm:$0xff] }
 0x835   : > { %v10558_v33 = vpop.eup %10557  ;;  %10573 = vrcp.f32 %v8287_v19  ;;  %v9083_v12 = vmul.f32 -1.442695, %v10060_v27  ;;  %v8016_v46 = vpop.f32.mrb[85].mxu1  ;;  %v9191_v19 = vunpack.c.h.bf16 %v9257_v40 }
 0x836   : > { %v10560_v9 = vpop.eup %10559  ;;  %v8290_v24 = vadd.f32 1.0, %v10558_v33  ;;  %10575 = vpow2.f32 %v9080_v16  ;;  %v9082_v57 = vmul.f32 -1.442695, %v8016_v46 }
 0x837   : > { %v8289_v28 = vadd.f32 1.0, %v10560_v9  ;;  %10577 = vpow2.f32 %v9083_v12 }
 0x838   : > { %10579 = vrcp.f32 %v8290_v24  ;;  %v10063_v31 = vpop.f32.mrb[86].mxu1 }
 0x839   : > { %v10562_v59 = vpop.eup %10561  ;;  %10581 = vrcp.f32 %v8289_v28  ;;  %v9085_v52 = vmul.f32 -1.442695, %v10063_v31  ;;  %v8026_v63 = vpop.f32.mrb[87].mxu1  ;;  %v9258_v28 = vld [vmem:[%s14607_s29 + $0x20] sm:$0xff]  }
 0x83a   : > { %v10564_v17 = vpop.eup %10563  ;;  %v8292_v50 = vadd.f32 1.0, %v10562_v59  ;;  %10583 = vpow2.f32 %v9082_v57  ;;  %v9084_v5 = vmul.f32 -1.442695, %v8026_v63  ;;  %v9190_v63 = vunpack.c.l.bf16 %v9257_v40 }
 0x83b   : > { %v10566_v42 = vpop.eup %10565  ;;  %v8382_v0 = vmul.f32 %v10564_v17, %v15210_v20  ;;  %10585 = vpow2.f32 %v9085_v52  ;;  %v9259_v20 = vld [vmem:[%s14607_s29 + $0x28] sm:$0xff]  }
 0x83c   : > { %v10568_v51 = vpop.eup %10567  ;;  %v8381_v1 = vmul.f32 %v10566_v42, %v15211_v37  ;;  %10587 = vrcp.f32 %v8292_v50  ;;  %v10066_v14 = vpop.f32.mrb[88].mxu1  ;;  %v9195_v42 = vunpack.c.h.bf16 %v9258_v28  ;;  %v9198_v40 = vunpack.c.l.bf16 %v9259_v20 }
 0x83d   : > { %v10570_v6 = vpop.eup %10569  ;;  %v8414_v4 = vadd.f32 %v9179_v54, %v8382_v0  ;;  %v8291_v55 = vadd.f32 1.0, %v10568_v51  ;;  %10589 = vpow2.f32 %v9084_v5  ;;  %v9087_v18 = vmul.f32 -1.442695, %v10066_v14  ;;  %v8036_v13 = vpop.f32.mrb[89].mxu1  ;;  %v15216_v54 = vld [vmem:[#allocation13_spill] sm:$0xff] }
 0x83e   : > { %v10572_v11 = vpop.eup %10571  ;;  %v8413_v15 = vadd.f32 %v9178_v49, %v8381_v1  ;;  %v8294_v32 = vadd.f32 1.0, %v10570_v6  ;;  %v9086_v35 = vmul.f32 -1.442695, %v8036_v13  ;;  %v15217_v1 = vld [vmem:[#allocation12_spill] sm:$0xff] }
 0x83f   : > { %v10574_v58 = vpop.eup %10573  ;;  %8446 = vst.msk [vmem:[%s14620_s12 + $0x8] sm:$0xff] %vm443_vm3, %v8414_v4  ;;  %v8384_v48 = vmul.f32 %v10572_v11, %v15212_v47  ;;  %10591 = vrcp.f32 %v8291_v55  ;;  %v15218_v4 = vld [vmem:[#allocation15_spill] sm:$0xff]  ;;  %v9194_v55 = vunpack.c.l.bf16 %v9258_v28  ;;  %v9199_v11 = vunpack.c.h.bf16 %v9259_v20 }
 0x840   : > { %v10576_v53 = vpop.eup %10575  ;;  %8445 = vst.msk [vmem:[%s14620_s12] sm:$0xff] %vm443_vm3, %v8413_v15  ;;  %v8383_v38 = vmul.f32 %v10574_v58, %v15213_v3  ;;  %10593 = vrcp.f32 %v8294_v32  ;;  %v10069_v7 = vpop.f32.mrb[90].mxu1  ;;  %v9260_v58 = vld [vmem:[%s14607_s29 + $0x30] sm:$0xff]   ;;  %v9262_v20 = vld [vmem:[%s14607_s29 + $0x40] sm:$0xff]  }
 0x841   : > { %v10578_v44 = vpop.eup %10577  ;;  %v8416_v2 = vadd.f32 %v9183_v41, %v8384_v48  ;;  %v8293_v56 = vadd.f32 1.0, %v10576_v53  ;;  %10595 = vpow2.f32 %v9087_v18  ;;  %v9089_v62 = vmul.f32 -1.442695, %v10069_v7  ;;  %v8046_v30 = vpop.f32.mrb[91].mxu1 }
 0x842   : > { %v10580_v36 = vpop.eup %10579  ;;  %v8415_v8 = vadd.f32 %v9182_v60, %v8383_v38  ;;  %v8296_v23 = vadd.f32 1.0, %v10578_v44  ;;  %10597 = vpow2.f32 %v9086_v35  ;;  %v9088_v34 = vmul.f32 -1.442695, %v8046_v30  ;;  %v15219_v38 = vld [vmem:[#allocation14_spill] sm:$0xff]  ;;  %v15220_v44 = vld [vmem:[#allocation17_spill] sm:$0xff] }
 0x843   : > { %v10582_v26 = vpop.eup %10581  ;;  %8448 = vst.msk [vmem:[%s14620_s12 + $0x18] sm:$0xff] %vm443_vm3, %v8416_v2  ;;  %v8386_v29 = vmul.f32 %v10580_v36, %v15214_v22  ;;  %10599 = vrcp.f32 %v8293_v56  ;;  %v9203_v30 = vunpack.c.h.bf16 %v9260_v58 }
 0x844   : > { %v10584_v61 = vpop.eup %10583  ;;  %8447 = vst.msk [vmem:[%s14620_s12 + $0x10] sm:$0xff] %vm443_vm3, %v8415_v8  ;;  %v8385_v16 = vmul.f32 %v10582_v26, %v15215_v45  ;;  %10601 = vrcp.f32 %v8296_v23  ;;  %v10072_v27 = vpop.f32.mrb[92].mxu1  ;;  %v15221_v45 = vld [vmem:[#allocation16_spill] sm:$0xff] }
 0x845   : > { %v10586_v33 = vpop.eup %10585  ;;  %v8418_v12 = vadd.f32 %v9187_v21, %v8386_v29  ;;  %v8295_v46 = vadd.f32 1.0, %v10584_v61  ;;  %10603 = vpow2.f32 %v9089_v62  ;;  %v9091_v9 = vmul.f32 -1.442695, %v10072_v27  ;;  %v8056_v39 = vpop.f32.mrb[93].mxu1 }
 0x846   : > { %v10588_v24 = vpop.eup %10587  ;;  %v8417_v57 = vadd.f32 %v9186_v43, %v8385_v16  ;;  %v8298_v31 = vadd.f32 1.0, %v10586_v33  ;;  %10605 = vpow2.f32 %v9088_v34  ;;  %v9090_v52 = vmul.f32 -1.442695, %v8056_v39  ;;  %v15222_v33 = vld [vmem:[#allocation19_spill] sm:$0xff] }
 0x847   : > { %v10590_v59 = vpop.eup %10589  ;;  %8450 = vst.msk [vmem:[%s14620_s12 + $0x28] sm:$0xff] %vm443_vm3, %v8418_v12  ;;  %v8388_v10 = vmul.f32 %v10588_v24, %v15216_v54  ;;  %10607 = vrcp.f32 %v8295_v46  ;;  %v9202_v46 = vunpack.c.l.bf16 %v9260_v58  ;;  %v15223_v54 = vld [vmem:[#allocation18_spill] sm:$0xff]  ;;  %v9263_v58 = vld [vmem:[%s14607_s29 + $0x48] sm:$0xff]  }
 0x848   : > { %8449 = vst.msk [vmem:[%s14620_s12 + $0x20] sm:$0xff] %vm443_vm3, %v8417_v57  ;;  %10609 = vrcp.f32 %v8298_v31  ;;  %v8297_v17 = vadd.f32 1.0, %v10590_v59  ;;  %v10075_v49 = vpop.f32.mrb[94].mxu1 }
 0x849   : > { %v10592_v50 = vpop.eup %10591  ;;  %v8420_v5 = vadd.f32 %v9191_v19, %v8388_v10  ;;  %10611 = vpow2.f32 %v9091_v9  ;;  %v9093_v0 = vmul.f32 -1.442695, %v10075_v49  ;;  %v8066_v51 = vpop.f32.mrb[95].mxu1  ;;  %v9261_v9 = vld [vmem:[%s14607_s29 + $0x38] sm:$0xff]  }
 0x84a   : > { %v10594_v37 = vpop.eup %10593  ;;  %v8387_v41 = vmul.f32 %v10592_v50, %v15217_v1  ;;  %10613 = vrcp.f32 %v8297_v17  ;;  %v9092_v14 = vmul.f32 -1.442695, %v8066_v51  ;;  %v9207_v49 = vunpack.c.h.bf16 %v9261_v9 }
 0x84b   : > { %v10596_v6 = vpop.eup %10595  ;;  %8452 = vst.msk [vmem:[%s14620_s12 + $0x38] sm:$0xff] %vm443_vm3, %v8420_v5  ;;  %v8390_v25 = vmul.f32 %v10594_v37, %v15218_v4  ;;  %10615 = vpow2.f32 %v9090_v52  ;;  %v9206_v1 = vunpack.c.l.bf16 %v9261_v9  ;;  %v15224_v4 = vld [vmem:[#allocation21_spill] sm:$0xff] }
 0x84c   : > { %v10598_v18 = vpop.eup %10597  ;;  %v8419_v13 = vadd.f32 %v9190_v63, %v8387_v41  ;;  %v8300_v15 = vadd.f32 1.0, %v10596_v6  ;;  %10617 = vpow2.f32 %v9093_v0  ;;  %v10078_v60 = vpop.f32.mrb[96].mxu1 }
 0x84d   : > { %v10600_v32 = vpop.eup %10599  ;;  %v8422_v35 = vadd.f32 %v9195_v42, %v8390_v25  ;;  %v8299_v47 = vadd.f32 1.0, %v10598_v18  ;;  %10619 = vpow2.f32 %v9092_v14  ;;  %v9095_v48 = vmul.f32 -1.442695, %v10078_v60  ;;  %v8076_v53 = vpop.f32.mrb[97].mxu1 }
 0x84e   : > { %v10602_v3 = vpop.eup %10601  ;;  %8451 = vst.msk [vmem:[%s14620_s12 + $0x30] sm:$0xff] %vm443_vm3, %v8419_v13  ;;  %v8389_v21 = vmul.f32 %v10600_v32, %v15219_v38  ;;  %10621 = vrcp.f32 %v8300_v15  ;;  %v9094_v43 = vmul.f32 -1.442695, %v8076_v53  ;;  %v9211_v60 = vunpack.c.h.bf16 %v9262_v20 }
 0x84f   : > { %v10604_v7 = vpop.eup %10603  ;;  %8454 = vst.msk [vmem:[%s14620_s12 + $0x48] sm:$0xff] %vm443_vm3, %v8422_v35  ;;  %v8392_v2 = vmul.f32 %v10602_v3, %v15220_v44  ;;  %10623 = vrcp.f32 %v8299_v47  ;;  %v9210_v38 = vunpack.c.l.bf16 %v9262_v20  ;;  %v15226_v44 = vld [vmem:[#allocation23_spill] sm:$0xff] }
 0x850   : > { %v10606_v56 = vpop.eup %10605  ;;  %v8421_v62 = vadd.f32 %v9194_v55, %v8389_v21  ;;  %v8302_v36 = vadd.f32 1.0, %v10604_v7  ;;  %10625 = vpow2.f32 %v9095_v48  ;;  %v10081_v8 = vpop.f32.mrb[98].mxu1 }
 0x851   : > { %v10608_v23 = vpop.eup %10607  ;;  %v8424_v34 = vadd.f32 %v9199_v11, %v8392_v2  ;;  %v8301_v26 = vadd.f32 1.0, %v10606_v56  ;;  %10627 = vpow2.f32 %v9094_v43  ;;  %v9097_v22 = vmul.f32 -1.442695, %v10081_v8  ;;  %v8086_v29 = vpop.f32.mrb[99].mxu1  ;;  %v15225_v11 = vld [vmem:[#allocation20_spill] sm:$0xff] }
 0x852   : > { %v10610_v61 = vpop.eup %10609  ;;  %8453 = vst.msk [vmem:[%s14620_s12 + $0x40] sm:$0xff] %vm443_vm3, %v8421_v62  ;;  %v8391_v16 = vmul.f32 %v10608_v23, %v15221_v45  ;;  %10629 = vrcp.f32 %v8302_v36  ;;  %v9096_v19 = vmul.f32 -1.442695, %v8086_v29  ;;  %v9215_v8 = vunpack.c.h.bf16 %v9263_v58 }
 0x853   : > { %v10612_v27 = vpop.eup %10611  ;;  %8456 = vst.msk [vmem:[%s14620_s12 + $0x58] sm:$0xff] %vm443_vm3, %v8424_v34  ;;  %v8394_v12 = vmul.f32 %v10610_v61, %v15222_v33  ;;  %10631 = vrcp.f32 %v8301_v26  ;;  %v9264_v26 = vld [vmem:[%s14607_s29 + $0x50] sm:$0xff]  }
 0x854   : > { %v10614_v39 = vpop.eup %10613  ;;  %v8423_v24 = vadd.f32 %v9198_v40, %v8391_v16  ;;  %v8304_v57 = vadd.f32 1.0, %v10612_v27  ;;  %10633 = vpow2.f32 %v9097_v22  ;;  %v10084_v28 = vpop.f32.mrb[100].mxu1  ;;  %v15228_v27 = vld [vmem:[#allocation25_spill] sm:$0xff]  ;;  %v9219_v9 = vunpack.c.h.bf16 %v9264_v26 }
 0x855   : > { %v10616_v31 = vpop.eup %10615  ;;  %v8426_v59 = vadd.f32 %v9203_v30, %v8394_v12  ;;  %v8393_v10 = vmul.f32 %v10614_v39, %v15223_v54  ;;  %10635 = vpow2.f32 %v9096_v19  ;;  %v9099_v52 = vmul.f32 -1.442695, %v10084_v28  ;;  %v8096_v63 = vpop.f32.mrb[101].mxu1  ;;  %v15227_v30 = vld [vmem:[#allocation22_spill] sm:$0xff]  ;;  %v15229_v28 = vld [vmem:[#allocation24_spill] sm:$0xff] }
 0x856   : > { %v10618_v17 = vpop.eup %10617  ;;  %8455 = vst.msk [vmem:[%s14620_s12 + $0x50] sm:$0xff] %vm443_vm3, %v8423_v24  ;;  %10637 = vrcp.f32 %v8304_v57  ;;  %v8303_v50 = vadd.f32 1.0, %v10616_v31  ;;  %v9098_v51 = vmul.f32 -1.442695, %v8096_v63  ;;  %v9214_v12 = vunpack.c.l.bf16 %v9263_v58  ;;  %v9265_v54 = vld [vmem:[%s14607_s29 + $0x58] sm:$0xff]  }
 0x857   : > { %v10620_v5 = vpop.eup %10619  ;;  %8458 = vst.msk [vmem:[%s14620_s12 + $0x68] sm:$0xff] %vm443_vm3, %v8426_v59  ;;  %v8425_v42 = vadd.f32 %v9202_v46, %v8393_v10  ;;  %v8306_v0 = vadd.f32 1.0, %v10618_v17  ;;  %10639 = vpow2.f32 %v9099_v52  ;;  %v9218_v59 = vunpack.c.l.bf16 %v9264_v26  ;;  %v15230_v52 = vld [vmem:[#allocation27_spill] sm:$0xff] }
 0x858   : > { %v10622_v37 = vpop.eup %10621  ;;  %10641 = vrcp.f32 %v8303_v50  ;;  %v8305_v41 = vadd.f32 1.0, %v10620_v5  ;;  %v10087_v14 = vpop.f32.mrb[102].mxu1  ;;  %v15231_v50 = vld [vmem:[#allocation26_spill] sm:$0xff] }
 0x859   : > { %v10624_v6 = vpop.eup %10623  ;;  %8457 = vst.msk [vmem:[%s14620_s12 + $0x60] sm:$0xff] %vm443_vm3, %v8425_v42  ;;  %v8396_v25 = vmul.f32 %v10622_v37, %v15224_v4  ;;  %10643 = vrcp.f32 %v8306_v0  ;;  %v9101_v55 = vmul.f32 -1.442695, %v10087_v14  ;;  %v8106_v18 = vpop.f32.mrb[103].mxu1  ;;  %v9223_v0 = vunpack.c.h.bf16 %v9265_v54  ;;  %v9266_v14 = vld [vmem:[%s14607_s29 + $0x60] sm:$0xff]  }
 0x85a   : > { %v10626_v13 = vpop.eup %10625  ;;  %v8395_v15 = vmul.f32 %v10624_v6, %v15225_v11  ;;  %10645 = vrcp.f32 %v8305_v41  ;;  %v9100_v48 = vmul.f32 -1.442695, %v8106_v18  ;;  %v9222_v41 = vunpack.c.l.bf16 %v9265_v54  ;;  %v15240_v54 = vld [vmem:[#allocation37_spill] sm:$0xff] }
 0x85b   : > { %v10628_v32 = vpop.eup %10627  ;;  %v8428_v35 = vadd.f32 %v9207_v49, %v8396_v25  ;;  %v8308_v47 = vadd.f32 1.0, %v10626_v13  ;;  %10647 = vpow2.f32 %v9098_v51  ;;  %v15232_v25 = vld [vmem:[#allocation29_spill] sm:$0xff]  ;;  %v15233_v13 = vld [vmem:[#allocation28_spill] sm:$0xff] }
 0x85c   : > { %v10630_v53 = vpop.eup %10629  ;;  %v8427_v3 = vadd.f32 %v9206_v1, %v8395_v15  ;;  %v8307_v21 = vadd.f32 1.0, %v10628_v32  ;;  %10649 = vpow2.f32 %v9101_v55  ;;  %v10090_v43 = vpop.f32.mrb[104].mxu1  ;;  %v9227_v32 = vunpack.c.h.bf16 %v9266_v14 }
 0x85d   : > { %v10632_v7 = vpop.eup %10631  ;;  %8460 = vst.msk [vmem:[%s14620_s12 + $0x78] sm:$0xff] %vm443_vm3, %v8428_v35  ;;  %v8398_v2 = vmul.f32 %v10630_v53, %v15226_v44  ;;  %10651 = vrcp.f32 %v8308_v47  ;;  %v9103_v40 = vmul.f32 -1.442695, %v10090_v43  ;;  %v8116_v56 = vpop.f32.mrb[105].mxu1  ;;  %v9267_v35 = vld [vmem:[%s14607_s29 + $0x68] sm:$0xff]   ;;  %v9226_v53 = vunpack.c.l.bf16 %v9266_v14  ;;  %v15235_v44 = vld [vmem:[#allocation30_spill] sm:$0xff] }
 0x85e   : > { %v10634_v62 = vpop.eup %10633  ;;  %8459 = vst.msk [vmem:[%s14620_s12 + $0x70] sm:$0xff] %vm443_vm3, %v8427_v3  ;;  %v8397_v36 = vmul.f32 %v10632_v7, %v15227_v30  ;;  %10653 = vrcp.f32 %v8307_v21  ;;  %v9102_v29 = vmul.f32 -1.442695, %v8116_v56  ;;  %v15234_v21 = vld [vmem:[#allocation31_spill] sm:$0xff] }
 0x85f   : > { %v10636_v23 = vpop.eup %10635  ;;  %v8430_v34 = vadd.f32 %v9211_v60, %v8398_v2  ;;  %v8310_v22 = vadd.f32 1.0, %v10634_v62  ;;  %10655 = vpow2.f32 %v9100_v48 }
 0x860   : > { %v10638_v61 = vpop.eup %10637  ;;  %v8429_v45 = vadd.f32 %v9210_v38, %v8397_v36  ;;  %v8309_v16 = vadd.f32 1.0, %v10636_v23  ;;  %10657 = vpow2.f32 %v9103_v40  ;;  %v9231_v40 = vunpack.c.h.bf16 %v9267_v35 }
 0x861   : > { %v10640_v19 = vpop.eup %10639  ;;  %8462 = vst.msk [vmem:[%s14620_s12 + $0x88] sm:$0xff] %vm443_vm3, %v8430_v34  ;;  %v8400_v33 = vmul.f32 %v10638_v61, %v15228_v27  ;;  %10659 = vrcp.f32 %v8310_v22  ;;  %v9268_v34 = vld [vmem:[%s14607_s29 + $0x70] sm:$0xff]   ;;  %v9230_v22 = vunpack.c.l.bf16 %v9267_v35  ;;  %v9269_v27 = vld [vmem:[%s14607_s29 + $0x78] sm:$0xff]   ;;  %s10719_s29 = sshll.u32 %s10784_s21, 4  ;;  %s10720_s29 = int_to_ptr.vmem [resolvable:$false] %s10719_s29 }
 0x862   : > { %v10642_v46 = vpop.eup %10641  ;;  %8461 = vst.msk [vmem:[%s14620_s12 + $0x80] sm:$0xff] %vm443_vm3, %v8429_v45  ;;  %10661 = vrcp.f32 %v8309_v16  ;;  %v8312_v39 = vadd.f32 1.0, %v10640_v19  ;;  %v9235_v61 = vunpack.c.h.bf16 %v9268_v34  ;;  %v15237_v16 = vld [vmem:[#allocation32_spill] sm:$0xff]  ;;  %s10721_s11 = scalar_lea.vmem %s10720_s29, 8192  ;;  %p10722_p0 = scmp.lt.s32.totalorder %s14734_s20, %s10720_s29 }
 0x863   : > { %v10644_v24 = vpop.eup %10643  ;;  %v8432_v57 = vadd.f32 %v9215_v8, %v8400_v33  ;;  %v8399_v31 = vmul.f32 %v10642_v46, %v15229_v28  ;;  %10663 = vpow2.f32 %v9102_v29  ;;  %v15236_v8 = vld [vmem:[#allocation33_spill] sm:$0xff]  ;;  %v15238_v33 = vld [vmem:[#allocation35_spill] sm:$0xff]  ;;  %p10723_p1 = scmp.lt.s32.totalorder %s10721_s11, %s10715_s28 }
 0x864   : > { %v10646_v10 = vpop.eup %10645  ;;  %v8402_v63 = vmul.f32 %v10644_v24, %v15230_v52  ;;  %10665 = vrcp.f32 %v8312_v39 }
 0x865   : > { %v10648_v17 = vpop.eup %10647  ;;  %8464 = vst.msk [vmem:[%s14620_s12 + $0x98] sm:$0xff] %vm443_vm3, %v8432_v57  ;;  %v8431_v49 = vadd.f32 %v9214_v12, %v8399_v31  ;;  %v8401_v5 = vmul.f32 %v10646_v10, %v15231_v50  ;;  %v9239_v57 = vunpack.c.h.bf16 %v9269_v27  ;;  %v15239_v31 = vld [vmem:[#allocation34_spill] sm:$0xff]  ;;  %v15241_v50 = vld [vmem:[#allocation36_spill] sm:$0xff]  ;;  %p10724_p2 = por %p10723_p1, %p10722_p0 }
 0x866   : > { %v10650_v42 = vpop.eup %10649  ;;  %v8434_v20 = vadd.f32 %v9219_v9, %v8402_v63  ;;  %v8311_v51 = vadd.f32 1.0, %v10648_v17  ;;  %v9234_v9 = vunpack.c.l.bf16 %v9268_v34  ;;  %v9238_v63 = vunpack.c.l.bf16 %v9269_v27 }
 0x867   : > { %v10652_v37 = vpop.eup %10651  ;;  %8463 = vst.msk [vmem:[%s14620_s12 + $0x90] sm:$0xff] %vm443_vm3, %v8431_v49  ;;  %v8433_v1 = vadd.f32 %v9218_v59, %v8401_v5  ;;  %v8314_v6 = vadd.f32 1.0, %v10650_v42  ;;  %p10725_p3 = pnand %p10724_p2, %p10718_p13 }
 0x868   : > { %v10654_v4 = vpop.eup %10653  ;;  %8466 = vst.msk [vmem:[%s14620_s12 + $0xa8] sm:$0xff] %vm443_vm3, %v8434_v20  ;;  %v8404_v55 = vmul.f32 %v10652_v37, %v15232_v25  ;;  %10667 = vrcp.f32 %v8311_v51 }
 0x869   : > { %v10656_v18 = vpop.eup %10655  ;;  %8465 = vst.msk [vmem:[%s14620_s12 + $0xa0] sm:$0xff] %vm443_vm3, %v8433_v1  ;;  %v8403_v11 = vmul.f32 %v10654_v4, %v15233_v13  ;;  %10669 = vrcp.f32 %v8314_v6 }
 0x86a   : > { %v10658_v15 = vpop.eup %10657  ;;  %v8436_v60 = vadd.f32 %v9223_v0, %v8404_v55  ;;  %v8313_v58 = vadd.f32 1.0, %v10656_v18 }
 0x86b   : > { %v10660_v47 = vpop.eup %10659  ;;  %v8435_v48 = vadd.f32 %v9222_v41, %v8403_v11  ;;  %v8316_v3 = vadd.f32 1.0, %v10658_v15 }
 0x86c   : > { %v10662_v38 = vpop.eup %10661  ;;  %8468 = vst.msk [vmem:[%s14620_s12 + $0xb8] sm:$0xff] %vm443_vm3, %v8436_v60  ;;  %v8406_v43 = vmul.f32 %v10660_v47, %v15234_v21  ;;  %10671 = vrcp.f32 %v8313_v58 }
 0x86d   : > { %v10664_v7 = vpop.eup %10663  ;;  %8467 = vst.msk [vmem:[%s14620_s12 + $0xb0] sm:$0xff] %vm443_vm3, %v8435_v48  ;;  %v8405_v2 = vmul.f32 %v10662_v38, %v15235_v44  ;;  %10673 = vrcp.f32 %v8316_v3 }
 0x86e   : > { %v10666_v56 = vpop.eup %10665  ;;  %v8438_v62 = vadd.f32 %v9227_v32, %v8406_v43  ;;  %v8315_v30 = vadd.f32 1.0, %v10664_v7 }
 0x86f   : > { %v8437_v36 = vadd.f32 %v9226_v53, %v8405_v2  ;;  %v8408_v23 = vmul.f32 %v10666_v56, %v15236_v8 }
 0x870   : > { %8470 = vst.msk [vmem:[%s14620_s12 + $0xc8] sm:$0xff] %vm443_vm3, %v8438_v62  ;;  %10675 = vrcp.f32 %v8315_v30 }
 0x871   : > { %8469 = vst.msk [vmem:[%s14620_s12 + $0xc0] sm:$0xff] %vm443_vm3, %v8437_v36  ;;  %v8440_v26 = vadd.f32 %v9231_v40, %v8408_v23 }
 0x872   : > { %v10668_v29 = vpop.eup %10667 }
 0x873   : > { %v10670_v45 = vpop.eup %10669  ;;  %8472 = vst.msk [vmem:[%s14620_s12 + $0xd8] sm:$0xff] %vm443_vm3, %v8440_v26  ;;  %v8407_v19 = vmul.f32 %v10668_v29, %v15237_v16 }
 0x874   : > { %v8410_v12 = vmul.f32 %v10670_v45, %v15238_v33 }
 0x875   : > { %v8439_v46 = vadd.f32 %v9230_v22, %v8407_v19 }
 0x876   : > { %v10672_v39 = vpop.eup %10671  ;;  %v8442_v24 = vadd.f32 %v9235_v61, %v8410_v12 }
 0x877   : > { %v10674_v28 = vpop.eup %10673  ;;  %8471 = vst.msk [vmem:[%s14620_s12 + $0xd0] sm:$0xff] %vm443_vm3, %v8439_v46  ;;  %v8409_v59 = vmul.f32 %v10672_v39, %v15239_v31 }
 0x878   : > { %8474 = vst.msk [vmem:[%s14620_s12 + $0xe8] sm:$0xff] %vm443_vm3, %v8442_v24  ;;  %v8412_v10 = vmul.f32 %v10674_v28, %v15240_v54 }
 0x879   : > { %v8441_v52 = vadd.f32 %v9234_v9, %v8409_v59 }
 0x87a   : > { %v10676_v17 = vpop.eup %10675  ;;  %v8444_v49 = vadd.f32 %v9239_v57, %v8412_v10 }
 0x87b   : > { %8473 = vst.msk [vmem:[%s14620_s12 + $0xe0] sm:$0xff] %vm443_vm3, %v8441_v52  ;;  %v8411_v5 = vmul.f32 %v10676_v17, %v15241_v50 }
 0x87c   : > { %8476 = vst.msk [vmem:[%s14620_s12 + $0xf8] sm:$0xff] %vm443_vm3, %v8444_v49 }
 0x87d   : > { %v8443_v42 = vadd.f32 %v9238_v63, %v8411_v5 }
 0x87f   : > { %8475 = vst.msk [vmem:[%s14620_s12 + $0xf0] sm:$0xff] %vm443_vm3, %v8443_v42 }
 0x880   : > { %10728 = shalt.err (!%p10725_p3)
}
 0x881   : > { %s10729_s30 = scalar_lea.hbm %s14732_s27, 4096  ;;  %s10733_s25 = scalar_lea.hbm %s14791_s10, 8192 }
 0x882   : > { %p10730_p4 = scmp.ne.s32.totalorder %s14732_s27, %s10729_s30  ;;  %p10734_p9 = scmp.lt.u32.totalorder %s14732_s27, %s14791_s10 }
 0x883   : > { %p10735_p10 = scmp.lt.u32.totalorder %s10733_s25, %s10729_s30  ;;  %p10737_p12 = scmp.lt.u32.totalorder %s10729_s30, %s14732_s27 }
 0x884   : > { %p10731_p7 = pnand %p10730_p4, %p10880_p5 }
 0x885   : > { %p10736_p11 = por %p10735_p10, %p10734_p9 }
 0x886   : > { %p10732_p8 = pneg %p10731_p7 }
 0x887   : > { %p10738_p13 = por %p10737_p12, %p10736_p11 }
 0x889   : > { %p10739_p0 = pnand %p10738_p13, %p10732_p8 }
 0x88b   : > { %10742 = shalt.err (!%p10739_p0)
}
 0x88c   : > { %s10785_s28 = smov 128   ;;  %s10786_s29 = smov 8  }
 0x88d   : > { %10411 = dma.vmem_to_hbm [thread:$0]  (%p10880_p5), %s14734_s20, 4096, %s14732_s27, %s14740_s17, %s10785_s28, %s10785_s28, %s10786_s29  }
 0x88e PF: > { %p10417_p1 = scmp.ge.s32.totalorder %s10777_s16, 2  ;;  %s8506_s11 = sand.u32 1, %s10765_s13  }
 0x88f   : > { %s8507_s30 = scalar_lea.sflag [#allocation4], %s8506_s11 }
 0x890   : > { %p10414_p2 = pnand %p10417_p1, %p10884_p6 }
 0x892   : > { %10760 = dma.done.wait (!%p10414_p2), %s8507_s30, 4096  }
 0x893   : > { %10762 = vsyncadd (!%p10414_p2), %s8507_s30, 4294963200  ;;  %p20_p3 = scmp.ge.s32.totalorder %s10867_s19, 4   ;;  %s15242_s13 = smov %s10769_s14 }
 0x894   : > { %s15243_s14 = smov %s10773_s15  ;;  %s15244_s15 = smov %s10878_s22 }
 0x895   : > { %s15245_s16 = smov %s10867_s19  ;;  %22 = sbr.rel (!%p20_p3) target bundleno = 3 (0x3), region = 108 }
 0x89c   :  { %8512 = vsyncpa [#allocation4], 1 }
 0x89d   :  { %8514 = vsyncpa [#allocation4 + $0x1], 1 }

</bundles_post_ra>
